<compile_context>
chip_gen: v6e
topology: v6e:2x2x1
jax: 0.10.0
libtpu: 0.0.40
codegen_flags: <defaults>
</compile_context>

<pallas_src>
import functools

import jax
import jax.numpy as jnp
from jax.experimental import pallas as pl
from jax.experimental.pallas import tpu as pltpu


N_OUT_PAD = 128   # lane-dense fused head output: [heatmap | regression | max | 0-pad]


def _halo(width):
    # Halo rows above/below the flattened (H*W, C) image stack.  Needs to be
    # >= width+1 for the 3x3 taps; width+8 keeps the in-bounds writes
    # sublane-aligned (width is a power of two >= 8).
    return width + 8


# ----------------------------------------------------------------------------
# In-kernel helpers (traced inside the Pallas kernel)
# ----------------------------------------------------------------------------
def _boundary_masks(m, width, height):
    """(m, 1) bool validity masks for the 9 taps of a 3x3/s1/p1 conv.

    Built once per resolution (shared by every conv at that resolution) and
    applied to the *narrow* input taps, not the wide f32 conv output.  The
    within-image row index makes stacked-batch blocks exact.
    """
    log2w = width.bit_length() - 1
    p = jax.lax.broadcasted_iota(jnp.int32, (m, 1), 0)
    j = p & (width - 1)                          # within-image column
    i = (p >> log2w) & (height - 1)              # within-image row
    row_ok = {-1: i >= 1, 0: None, 1: i <= height - 2}
    col_ok = {-1: j >= 1, 0: None, 1: j <= width - 2}
    masks = []
    for t in range(9):
        d, e = t // 3 - 1, t % 3 - 1
        r, c = row_ok[d], col_ok[e]
        if r is None:
            masks.append(c)
        elif c is None:
            masks.append(r)
        else:
            masks.append(r & c)
    return masks


def _conv3x3_im2col(src_ref, pat_ref, halo, m, width, masks, w_ref):
    """3x3 / stride-1 / pad-1 conv as ONE MXU matmul with K = 9*Cin.

    src_ref : (m + 2*halo, Cin) f32 zero-haloed scratch (flattened row-major).
    pat_ref : (m, 9*Cin)   f32 im2col scratch.
    w_ref   : (9*Cin, Cout) bf16 weights, tap-major / channel-minor.
    returns : (m, Cout) f32, pre-bias / pre-activation.
    """
    cin = src_ref.shape[1]
    for t in range(9):
        d, e = t // 3 - 1, t % 3 - 1
        tap = src_ref[pl.ds(halo + d * width + e, m), :]   # plain offset vld from halo scratch
        if masks[t] is not None:
            tap = jnp.where(masks[t], tap, 0.0)            # mask the narrow input side
        pat_ref[:, t * cin:(t + 1) * cin] = tap
    patch = pat_ref[...].astype(jnp.bfloat16)
    return jnp.dot(patch, w_ref[...], preferred_element_type=jnp.float32)


# ----------------------------------------------------------------------------
# Fused backbone + head kernel (one grid step = batch_block images)
# ----------------------------------------------------------------------------
def _detector_kernel(x_ref, w1_ref, b1_ref, w2_ref, b2_ref, w3_ref, b3_ref,
                     wh_ref, bh_ref, out_ref,
                     xs_ref, h1s_ref, c2s_ref, h2s_ref,
                     pat1_ref, pat2_ref, pat3_ref,
                     *, width_in, height_in, batch_block, num_heat, max_lane):
    w_in, h_in = width_in, height_in
    w_mid, h_mid = w_in // 2, h_in // 2
    m_img = h_in * w_in
    m_mid_img = h_mid * w_mid
    m1 = batch_block * m_img
    m2 = batch_block * m_mid_img
    halo1 = _halo(w_in)
    halo2 = _halo(w_mid)

    # hoisted boundary masks: one set per resolution, shared by the convs there
    masks_full = _boundary_masks(m1, w_in, h_in)
    masks_half = _boundary_masks(m2, w_mid, h_mid)

    # ---------- stage the input block into a zero-haloed full-res scratch ----------
    xs_ref[pl.ds(0, halo1), :] = jnp.zeros((halo1, xs_ref.shape[1]), jnp.float32)
    xs_ref[pl.ds(halo1 + m1, halo1), :] = jnp.zeros((halo1, xs_ref.shape[1]), jnp.float32)
    for b in range(batch_block):
        xs_ref[pl.ds(halo1 + b * m_img, m_img), :] = x_ref[b]

    # ---------- backbone conv1: 3x3 s1 p1 + ReLU (single K=9*Cin matmul) ----------
    h1 = _conv3x3_im2col(xs_ref, pat1_ref, halo1, m1, w_in, masks_full, w1_ref)
    h1 = jnp.maximum(h1 + b1_ref[...], 0.0)
    h1s_ref[pl.ds(0, halo1), :] = jnp.zeros((halo1, h1s_ref.shape[1]), jnp.float32)
    h1s_ref[pl.ds(halo1 + m1, halo1), :] = jnp.zeros((halo1, h1s_ref.shape[1]), jnp.float32)
    h1s_ref[pl.ds(halo1, m1), :] = h1

    # ---------- backbone conv2: 3x3 s2 p1 + ReLU ----------
    # stride-1 conv (one matmul) staged to VMEM, then the EXACT stride-2
    # subsample via strided pl.ds row reads -- no O(H^4) selector matmul.
    # (Further 4x FLOP saving possible by computing only stride-2 positions
    #  via phase decomposition; not needed at these sizes.)
    c2s_ref[...] = _conv3x3_im2col(h1s_ref, pat2_ref, halo1, m1, w_in, masks_full, w2_ref)
    h2s_ref[pl.ds(0, halo2), :] = jnp.zeros((halo2, h2s_ref.shape[1]), jnp.float32)
    h2s_ref[pl.ds(halo2 + m2, halo2), :] = jnp.zeros((halo2, h2s_ref.shape[1]), jnp.float32)
    for b in range(batch_block):
        for i in range(h_mid):
            rows = c2s_ref[pl.ds(b * m_img + 2 * i * w_in, w_mid, 2), :]
            h2s_ref[pl.ds(halo2 + (b * h_mid + i) * w_mid, w_mid), :] = (
                jnp.maximum(rows + b2_ref[...], 0.0))

    # ---------- head conv: 3x3 s1 p1 + ReLU ----------
    f = _conv3x3_im2col(h2s_ref, pat3_ref, halo2, m2, w_mid, masks_half, w3_ref)
    f = jnp.maximum(f + b3_ref[...], 0.0).astype(jnp.bfloat16)

    # ---------- fused lane-dense 1x1 heads: [heatmap | regression | max | pad] ----------
    z = jnp.dot(f, wh_ref[...], preferred_element_type=jnp.float32) + bh_ref[...]
    col = jax.lax.broadcasted_iota(jnp.int32, z.shape, 1)
    is_heat = col < num_heat
    sig = jax.nn.sigmoid(z)
    zout = jnp.where(is_heat, sig, z)                    # sigmoid heads, raw regression
    heat = jnp.where(is_heat, sig, -jnp.inf)

    # per-image max over heatmap lanes, folded into a spare lane of row 0
    row_local = jax.lax.broadcasted_iota(jnp.int32, (m_mid_img, N_OUT_PAD), 0)
    for b in range(batch_block):
        lo = b * m_mid_img
        z_b = zout[lo:lo + m_mid_img, :]
        img_max = jnp.max(jnp.max(heat[lo:lo + m_mid_img, :], axis=0, keepdims=True),
                          axis=1, keepdims=True)
        z_b = jnp.where((row_local == 0) & (col[lo:lo + m_mid_img, :] == max_lane),
                        img_max, z_b)
        out_ref[b] = z_b.astype(out_ref.dtype)           # bf16, 128-lane unmasked store


def _resident_spec(shape):
    n = len(shape)
    return pl.BlockSpec(shape, lambda g, _n=n: (0,) * _n)


def fused_detector_forward(x_flat, params, *, width_in, height_in, num_heat,
                           max_lane, batch_block):
    """x_flat: (B, Hin*Win, Cin) f32 -> (B, Hmid*Wmid, 128) bf16."""
    batch, m_img, cin = x_flat.shape
    assert batch % batch_block == 0
    num_blocks = batch // batch_block
    w1, b1, w2, b2, w3, b3, wh, bh = params
    c1, c2 = w1.shape[1], w2.shape[1]
    w_mid, h_mid = width_in // 2, height_in // 2
    m_mid_img = w_mid * h_mid
    m1 = batch_block * m_img
    m2 = batch_block * m_mid_img
    halo1, halo2 = _halo(width_in), _halo(w_mid)

    kernel = functools.partial(
        _detector_kernel, width_in=width_in, height_in=height_in,
        batch_block=batch_block, num_heat=num_heat, max_lane=max_lane)

    return pl.pallas_call(
        kernel,
        out_shape=jax.ShapeDtypeStruct((batch, m_mid_img, N_OUT_PAD), jnp.bfloat16),
        grid_spec=pltpu.PrefetchScalarGridSpec(
            num_scalar_prefetch=0,
            grid=(num_blocks,),                  # 2 steps when possible (v7x megacore)
            in_specs=[
                pl.BlockSpec((batch_block, m_img, cin), lambda g: (g, 0, 0)),
                _resident_spec(w1.shape), _resident_spec(b1.shape),
                _resident_spec(w2.shape), _resident_spec(b2.shape),
                _resident_spec(w3.shape), _resident_spec(b3.shape),
                _resident_spec(wh.shape), _resident_spec(bh.shape),
            ],
            out_specs=pl.BlockSpec((batch_block, m_mid_img, N_OUT_PAD),
                                   lambda g: (g, 0, 0)),
            scratch_shapes=[
                pltpu.VMEM((m1 + 2 * halo1, cin), jnp.float32),   # zero-haloed input
                pltpu.VMEM((m1 + 2 * halo1, c1), jnp.float32),    # zero-haloed h1
                pltpu.VMEM((m1, c2), jnp.float32),                # full-res conv2 output
                pltpu.VMEM((m2 + 2 * halo2, c2), jnp.float32),    # zero-haloed h2 (half-res)
                pltpu.VMEM((m1, 9 * cin), jnp.float32),           # im2col, backbone conv1
                pltpu.VMEM((m1, 9 * c1), jnp.float32),            # im2col, backbone conv2
                pltpu.VMEM((m2, 9 * c2), jnp.float32),            # im2col, head conv
            ]),
        compiler_params=pltpu.CompilerParams(
            dimension_semantics=("parallel",)),  # megacore sharding of the batch axis
    )(x_flat, w1, b1, w2, b2, w3, b3, wh, bh)


# ----------------------------------------------------------------------------
# Deterministic parameter init (synthetic; no checkpoint loading)
# ----------------------------------------------------------------------------
def _init_conv3x3(key, cin, cout, scale=0.05):
    kw, kb = jax.random.split(key)
    w = scale * jax.random.normal(kw, (9, cin, cout), jnp.float32)   # tap-major
    b = scale * jax.random.normal(kb, (cout,), jnp.float32)
    return w, b


def _init_conv1x1(key, cin, cout, scale=0.05):
    kw, kb = jax.random.split(key)
    w = scale * jax.random.normal(kw, (cin, cout), jnp.float32)
    b = scale * jax.random.normal(kb, (cout,), jnp.float32)
    return w, b


class KeypointDetector:
    """Backbone + keypoint head, eval-mode forward (test split).

    Backbone and head are fused into a single Pallas kernel; intermediates
    never leave VMEM.
    """

    def __init__(self, in_channels=4, num_classes=3, reg_channels=8, seed=0):
        assert num_classes + reg_channels < N_OUT_PAD   # spare lane for max score
        self.in_channels = in_channels
        self.num_classes = num_classes
        self.reg_channels = reg_channels

        key = jax.random.PRNGKey(seed)
        k1, k2, k3, k4, k5 = jax.random.split(key, 5)
        # backbone: conv3x3(in->32, s1)+ReLU, conv3x3(32->64, s2)+ReLU
        self.bb1_w, self.bb1_b = _init_conv3x3(k1, in_channels, 32)
        self.bb2_w, self.bb2_b = _init_conv3x3(k2, 32, 64)
        self.backbone_out_channels = 64
        # head: conv3x3(64->64)+ReLU -> 1x1 heatmap (sigmoid) + 1x1 regression
        self.hd_w, self.hd_b = _init_conv3x3(k3, 64, 64)
        self.hm_w, self.hm_b = _init_conv1x1(k4, 64, num_classes)
        self.rg_w, self.rg_b = _init_conv1x1(k5, 64, reg_channels)
        self.test = True            # cfg.DATASETS.TEST_SPLIT == 'test'
        self.training = False

        # fused, lane-dense head weights: [heatmap | regression | zero pad] -> 128
        wh = jnp.zeros((64, N_OUT_PAD), jnp.float32)
        wh = wh.at[:, :num_classes].set(self.hm_w)
        wh = wh.at[:, num_classes:num_classes + reg_channels].set(self.rg_w)
        bh = jnp.zeros((N_OUT_PAD,), jnp.float32)
        bh = bh.at[:num_classes].set(self.hm_b)
        bh = bh.at[num_classes:num_classes + reg_channels].set(self.rg_b)

        # kernel params: bf16 matmul operands (weights reshaped to (9*Cin, Cout)
        # tap-major / channel-minor to match the im2col layout), f32 biases.
        self._params = (
            self.bb1_w.reshape(9 * in_channels, 32).astype(jnp.bfloat16),
            self.bb1_b.reshape(1, -1),
            self.bb2_w.reshape(9 * 32, 64).astype(jnp.bfloat16),
            self.bb2_b.reshape(1, -1),
            self.hd_w.reshape(9 * 64, 64).astype(jnp.bfloat16),
            self.hd_b.reshape(1, -1),
            wh.astype(jnp.bfloat16),
            bh.reshape(1, -1),
        )

    def forward(self, images, targets=None):
        if self.training and targets is None:
            raise ValueError("In training mode, targets should be passed.")
        # to_image_list: images is already a batched NCHW tensor here.
        batch, cin, h, w = images.shape
        assert cin == self.in_channels and h == w
        assert (h & (h - 1)) == 0 and h >= 8
        h_mid, w_mid = h // 2, w // 2

        # layout: NCHW -> NHWC -> row-major flattened (B, H*W, C)
        x_flat = jnp.transpose(images, (0, 2, 3, 1)).reshape(batch, h * w, cin)
        x_flat = x_flat.astype(jnp.float32)

        # batch blocking: keep exactly 2 grid steps when possible so both v7x
        # TensorCores get work and per-step overhead is amortized for big B.
        batch_block = batch // 2 if batch % 2 == 0 else batch

        nc, nr = self.num_classes, self.reg_channels
        out = fused_detector_forward(
            x_flat, self._params, width_in=w, height_in=h,
            num_heat=nc, max_lane=nc + nr, batch_block=batch_block)
        out = out.astype(jnp.float32)

        heatmap = out[:, :, :nc].reshape(batch, h_mid, w_mid, nc)
        regression = out[:, :, nc:nc + nr].reshape(batch, h_mid, w_mid, nr)
        results = {"heatmap": heatmap, "regression": regression}
        eval_utils = {"max_score_per_image": out[:, 0, nc + nr]}
        vis_preds = heatmap
        # TODO(synk): training branch (loss_dict, logs_dict) not implemented; eval path only.
        return results, eval_utils, vis_preds

    __call__ = forward


# ----------------------------------------------------------------------------
# Pure-JAX f32 reference (validation only)
# ----------------------------------------------------------------------------
def _reference_forward(det, images):
    x = jnp.transpose(images, (0, 2, 3, 1)).astype(jnp.float32)

    def conv3x3(inp, w9, b, stride):
        w_hwio = w9.reshape(3, 3, w9.shape[1], w9.shape[2])
        y = jax.lax.conv_general_dilated(
            inp, w_hwio, window_strides=(stride, stride),
            padding=((1, 1), (1, 1)),
            dimension_numbers=("NHWC", "HWIO", "NHWC"))
        return y + b

    h = jax.nn.relu(conv3x3(x, det.bb1_w, det.bb1_b, 1))
    h = jax.nn.relu(conv3x3(h, det.bb2_w, det.bb2_b, 2))
    f = jax.nn.relu(conv3x3(h, det.hd_w, det.hd_b, 1))
    hm = jax.nn.sigmoid(jnp.einsum("bhwc,co->bhwo", f, det.hm_w) + det.hm_b)
    rg = jnp.einsum("bhwc,co->bhwo", f, det.rg_w) + det.rg_b
    return hm, rg


if __name__ == "__main__":
    key = jax.random.PRNGKey(0)
    images = jax.random.normal(key, (2, 4, 16, 16), jnp.float32)   # NCHW

    detector = KeypointDetector(in_channels=4, num_classes=3, reg_channels=8, seed=0)
    results, eval_utils, vis_preds = detector(images)

    jax.block_until_ready(results["heatmap"])
    jax.block_until_ready(results["regression"])
    jax.block_until_ready(eval_utils["max_score_per_image"])
    jax.block_until_ready(vis_preds)

    assert results["heatmap"].shape == (2, 8, 8, 3)
    assert results["regression"].shape == (2, 8, 8, 8)
    assert eval_utils["max_score_per_image"].shape == (2,)
    assert bool(jnp.all(results["heatmap"] >= 0.0) & jnp.all(results["heatmap"] <= 1.0))

    # numerical check vs pure-JAX f32 reference (bf16 matmul operands / bf16
    # output store -> loose tolerance)
    hm_ref, rg_ref = _reference_forward(detector, images)
    assert bool(jnp.allclose(results["heatmap"], hm_ref, atol=2e-2, rtol=2e-2))
    assert bool(jnp.allclose(results["regression"], rg_ref, atol=2e-2, rtol=2e-2))
    assert bool(jnp.allclose(eval_utils["max_score_per_image"],
                             jnp.max(hm_ref, axis=(1, 2, 3)), atol=2e-2, rtol=2e-2))
    print("KERNEL_OK")
</pallas_src>

<mosaic_0001>
module attributes {stable_mosaic.version = 11 : i64} {
  func.func @_detector_kernel(%arg0: i32, %arg1: memref<1x256x4xf32, #tpu.memory_space<vmem>>, %arg2: memref<36x32xbf16, #tpu.memory_space<vmem>>, %arg3: memref<1x32xf32, #tpu.memory_space<vmem>>, %arg4: memref<288x64xbf16, #tpu.memory_space<vmem>>, %arg5: memref<1x64xf32, #tpu.memory_space<vmem>>, %arg6: memref<576x64xbf16, #tpu.memory_space<vmem>>, %arg7: memref<1x64xf32, #tpu.memory_space<vmem>>, %arg8: memref<64x128xbf16, #tpu.memory_space<vmem>>, %arg9: memref<1x128xf32, #tpu.memory_space<vmem>>, %arg10: memref<1x64x128xbf16, #tpu.memory_space<vmem>>, %arg11: memref<304x4xf32, #tpu.memory_space<vmem>>, %arg12: memref<304x32xf32, #tpu.memory_space<vmem>>, %arg13: memref<256x64xf32, #tpu.memory_space<vmem>>, %arg14: memref<96x64xf32, #tpu.memory_space<vmem>>, %arg15: memref<256x36xf32, #tpu.memory_space<vmem>>, %arg16: memref<256x288xf32, #tpu.memory_space<vmem>>, %arg17: memref<64x576xf32, #tpu.memory_space<vmem>>) attributes {dimension_semantics = [#tpu.dimension_semantics<parallel>], iteration_bounds = array<i64: 2>, scalar_prefetch = 0 : i64, scratch_operands = 7 : i64, tpu.core_type = #tpu.core_type<tc>, window_params = [{transform_indices = @transform_0, window_bounds = array<i64: 1, 256, 4>}, {pipeline_mode = #tpu.pipeline_mode<synchronous>, transform_indices = @transform_1, window_bounds = array<i64: 36, 32>}, {pipeline_mode = #tpu.pipeline_mode<synchronous>, transform_indices = @transform_2, window_bounds = array<i64: 1, 32>}, {pipeline_mode = #tpu.pipeline_mode<synchronous>, transform_indices = @transform_3, window_bounds = array<i64: 288, 64>}, {pipeline_mode = #tpu.pipeline_mode<synchronous>, transform_indices = @transform_4, window_bounds = array<i64: 1, 64>}, {pipeline_mode = #tpu.pipeline_mode<synchronous>, transform_indices = @transform_5, window_bounds = array<i64: 576, 64>}, {pipeline_mode = #tpu.pipeline_mode<synchronous>, transform_indices = @transform_6, window_bounds = array<i64: 1, 64>}, {pipeline_mode = #tpu.pipeline_mode<synchronous>, transform_indices = @transform_7, window_bounds = array<i64: 64, 128>}, {pipeline_mode = #tpu.pipeline_mode<synchronous>, transform_indices = @transform_8, window_bounds = array<i64: 1, 128>}, {transform_indices = @transform_9, window_bounds = array<i64: 1, 64, 128>}]} {
    %0 = tpu.iota {dimensions = array<i32: 0>} : vector<256x1xi32>
    %c15_i32 = arith.constant 15 : i32
    %1 = vector.broadcast %c15_i32 : i32 to vector<256x1xi32>
    %2 = arith.andi %0, %1 : vector<256x1xi32>
    %c4_i32 = arith.constant 4 : i32
    %3 = vector.broadcast %c4_i32 : i32 to vector<256x1xi32>
    %4 = arith.shrsi %0, %3 : vector<256x1xi32>
    %c15_i32_0 = arith.constant 15 : i32
    %5 = vector.broadcast %c15_i32_0 : i32 to vector<256x1xi32>
    %6 = arith.andi %4, %5 : vector<256x1xi32>
    %c1_i32 = arith.constant 1 : i32
    %7 = vector.broadcast %c1_i32 : i32 to vector<256x1xi32>
    %8 = arith.cmpi sge, %6, %7 : vector<256x1xi32>
    %c14_i32 = arith.constant 14 : i32
    %9 = vector.broadcast %c14_i32 : i32 to vector<256x1xi32>
    %10 = arith.cmpi sle, %6, %9 : vector<256x1xi32>
    %c1_i32_1 = arith.constant 1 : i32
    %11 = vector.broadcast %c1_i32_1 : i32 to vector<256x1xi32>
    %12 = arith.cmpi sge, %2, %11 : vector<256x1xi32>
    %c14_i32_2 = arith.constant 14 : i32
    %13 = vector.broadcast %c14_i32_2 : i32 to vector<256x1xi32>
    %14 = arith.cmpi sle, %2, %13 : vector<256x1xi32>
    %15 = arith.andi %8, %12 : vector<256x1xi1>
    %16 = arith.andi %8, %14 : vector<256x1xi1>
    %17 = arith.andi %10, %12 : vector<256x1xi1>
    %18 = arith.andi %10, %14 : vector<256x1xi1>
    %19 = tpu.iota {dimensions = array<i32: 0>} : vector<64x1xi32>
    %c7_i32 = arith.constant 7 : i32
    %20 = vector.broadcast %c7_i32 : i32 to vector<64x1xi32>
    %21 = arith.andi %19, %20 : vector<64x1xi32>
    %c3_i32 = arith.constant 3 : i32
    %22 = vector.broadcast %c3_i32 : i32 to vector<64x1xi32>
    %23 = arith.shrsi %19, %22 : vector<64x1xi32>
    %c7_i32_3 = arith.constant 7 : i32
    %24 = vector.broadcast %c7_i32_3 : i32 to vector<64x1xi32>
    %25 = arith.andi %23, %24 : vector<64x1xi32>
    %c1_i32_4 = arith.constant 1 : i32
    %26 = vector.broadcast %c1_i32_4 : i32 to vector<64x1xi32>
    %27 = arith.cmpi sge, %25, %26 : vector<64x1xi32>
    %c6_i32 = arith.constant 6 : i32
    %28 = vector.broadcast %c6_i32 : i32 to vector<64x1xi32>
    %29 = arith.cmpi sle, %25, %28 : vector<64x1xi32>
    %c1_i32_5 = arith.constant 1 : i32
    %30 = vector.broadcast %c1_i32_5 : i32 to vector<64x1xi32>
    %31 = arith.cmpi sge, %21, %30 : vector<64x1xi32>
    %c6_i32_6 = arith.constant 6 : i32
    %32 = vector.broadcast %c6_i32_6 : i32 to vector<64x1xi32>
    %33 = arith.cmpi sle, %21, %32 : vector<64x1xi32>
    %34 = arith.andi %27, %31 : vector<64x1xi1>
    %35 = arith.andi %27, %33 : vector<64x1xi1>
    %36 = arith.andi %29, %31 : vector<64x1xi1>
    %37 = arith.andi %29, %33 : vector<64x1xi1>
    %cst = arith.constant 0.000000e+00 : f32
    %38 = vector.broadcast %cst : f32 to vector<24x4xf32>
    %c0 = arith.constant 0 : index
    %c0_7 = arith.constant 0 : index
    %39 = vector.load %arg11[%c0, %c0_7] : memref<304x4xf32, #tpu.memory_space<vmem>>, vector<24x4xf32>
    tpu.vector_store %arg11[%c0, %c0_7], %38 {strides = array<i32>} : memref<304x4xf32, #tpu.memory_space<vmem>>, vector<24x4xf32>,
    %cst_8 = arith.constant 0.000000e+00 : f32
    %40 = vector.broadcast %cst_8 : f32 to vector<24x4xf32>
    %c280 = arith.constant 280 : index
    %c0_9 = arith.constant 0 : index
    %41 = vector.load %arg11[%c280, %c0_9] : memref<304x4xf32, #tpu.memory_space<vmem>>, vector<24x4xf32>
    tpu.vector_store %arg11[%c280, %c0_9], %40 {strides = array<i32>} : memref<304x4xf32, #tpu.memory_space<vmem>>, vector<24x4xf32>,
    %c0_10 = arith.constant 0 : index
    %c0_11 = arith.constant 0 : index
    %c0_12 = arith.constant 0 : index
    %42 = vector.load %arg1[%c0_10, %c0_11, %c0_12] : memref<1x256x4xf32, #tpu.memory_space<vmem>>, vector<1x256x4xf32>
    %43 = vector.shape_cast %42 : vector<1x256x4xf32> to vector<256x4xf32>
    %c24 = arith.constant 24 : index
    %c0_13 = arith.constant 0 : index
    %44 = vector.load %arg11[%c24, %c0_13] : memref<304x4xf32, #tpu.memory_space<vmem>>, vector<256x4xf32>
    tpu.vector_store %arg11[%c24, %c0_13], %43 {strides = array<i32>} : memref<304x4xf32, #tpu.memory_space<vmem>>, vector<256x4xf32>,
    %c7 = arith.constant 7 : index
    %c0_14 = arith.constant 0 : index
    %45 = vector.load %arg11[%c7, %c0_14] : memref<304x4xf32, #tpu.memory_space<vmem>>, vector<256x4xf32>
    %cst_15 = arith.constant 0.000000e+00 : f32
    %46 = vector.shape_cast %15 : vector<256x1xi1> to vector<256x1xi1>
    %47 = vector.broadcast %46 : vector<256x1xi1> to vector<256x4xi1>
    %48 = vector.broadcast %cst_15 : f32 to vector<256x4xf32>
    %49 = arith.select %47, %45, %48 : vector<256x4xi1>, vector<256x4xf32>
    %c0_16 = arith.constant 0 : index
    %c0_17 = arith.constant 0 : index
    %50 = vector.load %arg15[%c0_16, %c0_17] : memref<256x36xf32, #tpu.memory_space<vmem>>, vector<256x4xf32>
    tpu.vector_store %arg15[%c0_16, %c0_17], %49 {strides = array<i32>} : memref<256x36xf32, #tpu.memory_space<vmem>>, vector<256x4xf32>,
    %c8 = arith.constant 8 : index
    %c0_18 = arith.constant 0 : index
    %51 = vector.load %arg11[%c8, %c0_18] : memref<304x4xf32, #tpu.memory_space<vmem>>, vector<256x4xf32>
    %cst_19 = arith.constant 0.000000e+00 : f32
    %52 = vector.shape_cast %8 : vector<256x1xi1> to vector<256x1xi1>
    %53 = vector.broadcast %52 : vector<256x1xi1> to vector<256x4xi1>
    %54 = vector.broadcast %cst_19 : f32 to vector<256x4xf32>
    %55 = arith.select %53, %51, %54 : vector<256x4xi1>, vector<256x4xf32>
    %c0_20 = arith.constant 0 : index
    %c4 = arith.constant 4 : index
    %56 = vector.load %arg15[%c0_20, %c4] : memref<256x36xf32, #tpu.memory_space<vmem>>, vector<256x4xf32>
    tpu.vector_store %arg15[%c0_20, %c4], %55 {strides = array<i32>} : memref<256x36xf32, #tpu.memory_space<vmem>>, vector<256x4xf32>,
    %c9 = arith.constant 9 : index
    %c0_21 = arith.constant 0 : index
    %57 = vector.load %arg11[%c9, %c0_21] : memref<304x4xf32, #tpu.memory_space<vmem>>, vector<256x4xf32>
    %cst_22 = arith.constant 0.000000e+00 : f32
    %58 = vector.shape_cast %16 : vector<256x1xi1> to vector<256x1xi1>
    %59 = vector.broadcast %58 : vector<256x1xi1> to vector<256x4xi1>
    %60 = vector.broadcast %cst_22 : f32 to vector<256x4xf32>
    %61 = arith.select %59, %57, %60 : vector<256x4xi1>, vector<256x4xf32>
    %c0_23 = arith.constant 0 : index
    %c8_24 = arith.constant 8 : index
    %62 = vector.load %arg15[%c0_23, %c8_24] : memref<256x36xf32, #tpu.memory_space<vmem>>, vector<256x4xf32>
    tpu.vector_store %arg15[%c0_23, %c8_24], %61 {strides = array<i32>} : memref<256x36xf32, #tpu.memory_space<vmem>>, vector<256x4xf32>,
    %c23 = arith.constant 23 : index
    %c0_25 = arith.constant 0 : index
    %63 = vector.load %arg11[%c23, %c0_25] : memref<304x4xf32, #tpu.memory_space<vmem>>, vector<256x4xf32>
    %cst_26 = arith.constant 0.000000e+00 : f32
    %64 = vector.shape_cast %12 : vector<256x1xi1> to vector<256x1xi1>
    %65 = vector.broadcast %64 : vector<256x1xi1> to vector<256x4xi1>
    %66 = vector.broadcast %cst_26 : f32 to vector<256x4xf32>
    %67 = arith.select %65, %63, %66 : vector<256x4xi1>, vector<256x4xf32>
    %c0_27 = arith.constant 0 : index
    %c12 = arith.constant 12 : index
    %68 = vector.load %arg15[%c0_27, %c12] : memref<256x36xf32, #tpu.memory_space<vmem>>, vector<256x4xf32>
    tpu.vector_store %arg15[%c0_27, %c12], %67 {strides = array<i32>} : memref<256x36xf32, #tpu.memory_space<vmem>>, vector<256x4xf32>,
    %c24_28 = arith.constant 24 : index
    %c0_29 = arith.constant 0 : index
    %69 = vector.load %arg11[%c24_28, %c0_29] : memref<304x4xf32, #tpu.memory_space<vmem>>, vector<256x4xf32>
    %c0_30 = arith.constant 0 : index
    %c16 = arith.constant 16 : index
    %70 = vector.load %arg15[%c0_30, %c16] : memref<256x36xf32, #tpu.memory_space<vmem>>, vector<256x4xf32>
    tpu.vector_store %arg15[%c0_30, %c16], %69 {strides = array<i32>} : memref<256x36xf32, #tpu.memory_space<vmem>>, vector<256x4xf32>,
    %c25 = arith.constant 25 : index
    %c0_31 = arith.constant 0 : index
    %71 = vector.load %arg11[%c25, %c0_31] : memref<304x4xf32, #tpu.memory_space<vmem>>, vector<256x4xf32>
    %cst_32 = arith.constant 0.000000e+00 : f32
    %72 = vector.shape_cast %14 : vector<256x1xi1> to vector<256x1xi1>
    %73 = vector.broadcast %72 : vector<256x1xi1> to vector<256x4xi1>
    %74 = vector.broadcast %cst_32 : f32 to vector<256x4xf32>
    %75 = arith.select %73, %71, %74 : vector<256x4xi1>, vector<256x4xf32>
    %c0_33 = arith.constant 0 : index
    %c20 = arith.constant 20 : index
    %76 = vector.load %arg15[%c0_33, %c20] : memref<256x36xf32, #tpu.memory_space<vmem>>, vector<256x4xf32>
    tpu.vector_store %arg15[%c0_33, %c20], %75 {strides = array<i32>} : memref<256x36xf32, #tpu.memory_space<vmem>>, vector<256x4xf32>,
    %c39 = arith.constant 39 : index
    %c0_34 = arith.constant 0 : index
    %77 = vector.load %arg11[%c39, %c0_34] : memref<304x4xf32, #tpu.memory_space<vmem>>, vector<256x4xf32>
    %cst_35 = arith.constant 0.000000e+00 : f32
    %78 = vector.shape_cast %17 : vector<256x1xi1> to vector<256x1xi1>
    %79 = vector.broadcast %78 : vector<256x1xi1> to vector<256x4xi1>
    %80 = vector.broadcast %cst_35 : f32 to vector<256x4xf32>
    %81 = arith.select %79, %77, %80 : vector<256x4xi1>, vector<256x4xf32>
    %c0_36 = arith.constant 0 : index
    %c24_37 = arith.constant 24 : index
    %82 = vector.load %arg15[%c0_36, %c24_37] : memref<256x36xf32, #tpu.memory_space<vmem>>, vector<256x4xf32>
    tpu.vector_store %arg15[%c0_36, %c24_37], %81 {strides = array<i32>} : memref<256x36xf32, #tpu.memory_space<vmem>>, vector<256x4xf32>,
    %c40 = arith.constant 40 : index
    %c0_38 = arith.constant 0 : index
    %83 = vector.load %arg11[%c40, %c0_38] : memref<304x4xf32, #tpu.memory_space<vmem>>, vector<256x4xf32>
    %cst_39 = arith.constant 0.000000e+00 : f32
    %84 = vector.shape_cast %10 : vector<256x1xi1> to vector<256x1xi1>
    %85 = vector.broadcast %84 : vector<256x1xi1> to vector<256x4xi1>
    %86 = vector.broadcast %cst_39 : f32 to vector<256x4xf32>
    %87 = arith.select %85, %83, %86 : vector<256x4xi1>, vector<256x4xf32>
    %c0_40 = arith.constant 0 : index
    %c28 = arith.constant 28 : index
    %88 = vector.load %arg15[%c0_40, %c28] : memref<256x36xf32, #tpu.memory_space<vmem>>, vector<256x4xf32>
    tpu.vector_store %arg15[%c0_40, %c28], %87 {strides = array<i32>} : memref<256x36xf32, #tpu.memory_space<vmem>>, vector<256x4xf32>,
    %c41 = arith.constant 41 : index
    %c0_41 = arith.constant 0 : index
    %89 = vector.load %arg11[%c41, %c0_41] : memref<304x4xf32, #tpu.memory_space<vmem>>, vector<256x4xf32>
    %cst_42 = arith.constant 0.000000e+00 : f32
    %90 = vector.shape_cast %18 : vector<256x1xi1> to vector<256x1xi1>
    %91 = vector.broadcast %90 : vector<256x1xi1> to vector<256x4xi1>
    %92 = vector.broadcast %cst_42 : f32 to vector<256x4xf32>
    %93 = arith.select %91, %89, %92 : vector<256x4xi1>, vector<256x4xf32>
    %c0_43 = arith.constant 0 : index
    %c32 = arith.constant 32 : index
    %94 = vector.load %arg15[%c0_43, %c32] : memref<256x36xf32, #tpu.memory_space<vmem>>, vector<256x4xf32>
    tpu.vector_store %arg15[%c0_43, %c32], %93 {strides = array<i32>} : memref<256x36xf32, #tpu.memory_space<vmem>>, vector<256x4xf32>,
    %c0_44 = arith.constant 0 : index
    %c0_45 = arith.constant 0 : index
    %95 = vector.load %arg15[%c0_44, %c0_45] : memref<256x36xf32, #tpu.memory_space<vmem>>, vector<256x36xf32>
    %96 = arith.truncf %95 : vector<256x36xf32> to vector<256x36xbf16>
    %c0_46 = arith.constant 0 : index
    %c0_47 = arith.constant 0 : index
    %97 = vector.load %arg2[%c0_46, %c0_47] : memref<36x32xbf16, #tpu.memory_space<vmem>>, vector<36x32xbf16>
    %cst_48 = arith.constant dense<0.000000e+00> : vector<256x32xf32>
    %98 = tpu.matmul %96, %97, %cst_48 {dimension_numbers = #tpu.dot_dimension_numbers<[1], [0], [0], [1], [0, 0, 1, 1], [], []>} : vector<256x36xbf16>, vector<36x32xbf16>, vector<256x32xf32> -> vector<256x32xf32>
    %c0_49 = arith.constant 0 : index
    %c0_50 = arith.constant 0 : index
    %99 = vector.load %arg3[%c0_49, %c0_50] : memref<1x32xf32, #tpu.memory_space<vmem>>, vector<1x32xf32>
    %100 = vector.broadcast %99 : vector<1x32xf32> to vector<256x32xf32>
    %101 = arith.addf %98, %100 : vector<256x32xf32>
    %cst_51 = arith.constant 0.000000e+00 : f32
    %102 = vector.broadcast %cst_51 : f32 to vector<256x32xf32>
    %103 = arith.maximumf %101, %102 : vector<256x32xf32>
    %cst_52 = arith.constant 0.000000e+00 : f32
    %104 = vector.broadcast %cst_52 : f32 to vector<24x32xf32>
    %c0_53 = arith.constant 0 : index
    %c0_54 = arith.constant 0 : index
    %105 = vector.load %arg12[%c0_53, %c0_54] : memref<304x32xf32, #tpu.memory_space<vmem>>, vector<24x32xf32>
    tpu.vector_store %arg12[%c0_53, %c0_54], %104 {strides = array<i32>} : memref<304x32xf32, #tpu.memory_space<vmem>>, vector<24x32xf32>,
    %cst_55 = arith.constant 0.000000e+00 : f32
    %106 = vector.broadcast %cst_55 : f32 to vector<24x32xf32>
    %c280_56 = arith.constant 280 : index
    %c0_57 = arith.constant 0 : index
    %107 = vector.load %arg12[%c280_56, %c0_57] : memref<304x32xf32, #tpu.memory_space<vmem>>, vector<24x32xf32>
    tpu.vector_store %arg12[%c280_56, %c0_57], %106 {strides = array<i32>} : memref<304x32xf32, #tpu.memory_space<vmem>>, vector<24x32xf32>,
    %c24_58 = arith.constant 24 : index
    %c0_59 = arith.constant 0 : index
    %108 = vector.load %arg12[%c24_58, %c0_59] : memref<304x32xf32, #tpu.memory_space<vmem>>, vector<256x32xf32>
    tpu.vector_store %arg12[%c24_58, %c0_59], %103 {strides = array<i32>} : memref<304x32xf32, #tpu.memory_space<vmem>>, vector<256x32xf32>,
    %c7_60 = arith.constant 7 : index
    %c0_61 = arith.constant 0 : index
    %109 = vector.load %arg12[%c7_60, %c0_61] : memref<304x32xf32, #tpu.memory_space<vmem>>, vector<256x32xf32>
    %cst_62 = arith.constant 0.000000e+00 : f32
    %110 = vector.shape_cast %15 : vector<256x1xi1> to vector<256x1xi1>
    %111 = vector.broadcast %110 : vector<256x1xi1> to vector<256x32xi1>
    %112 = vector.broadcast %cst_62 : f32 to vector<256x32xf32>
    %113 = arith.select %111, %109, %112 : vector<256x32xi1>, vector<256x32xf32>
    %c0_63 = arith.constant 0 : index
    %c0_64 = arith.constant 0 : index
    %114 = vector.load %arg16[%c0_63, %c0_64] : memref<256x288xf32, #tpu.memory_space<vmem>>, vector<256x32xf32>
    tpu.vector_store %arg16[%c0_63, %c0_64], %113 {strides = array<i32>} : memref<256x288xf32, #tpu.memory_space<vmem>>, vector<256x32xf32>,
    %c8_65 = arith.constant 8 : index
    %c0_66 = arith.constant 0 : index
    %115 = vector.load %arg12[%c8_65, %c0_66] : memref<304x32xf32, #tpu.memory_space<vmem>>, vector<256x32xf32>
    %cst_67 = arith.constant 0.000000e+00 : f32
    %116 = vector.shape_cast %8 : vector<256x1xi1> to vector<256x1xi1>
    %117 = vector.broadcast %116 : vector<256x1xi1> to vector<256x32xi1>
    %118 = vector.broadcast %cst_67 : f32 to vector<256x32xf32>
    %119 = arith.select %117, %115, %118 : vector<256x32xi1>, vector<256x32xf32>
    %c0_68 = arith.constant 0 : index
    %c32_69 = arith.constant 32 : index
    %120 = vector.load %arg16[%c0_68, %c32_69] : memref<256x288xf32, #tpu.memory_space<vmem>>, vector<256x32xf32>
    tpu.vector_store %arg16[%c0_68, %c32_69], %119 {strides = array<i32>} : memref<256x288xf32, #tpu.memory_space<vmem>>, vector<256x32xf32>,
    %c9_70 = arith.constant 9 : index
    %c0_71 = arith.constant 0 : index
    %121 = vector.load %arg12[%c9_70, %c0_71] : memref<304x32xf32, #tpu.memory_space<vmem>>, vector<256x32xf32>
    %cst_72 = arith.constant 0.000000e+00 : f32
    %122 = vector.shape_cast %16 : vector<256x1xi1> to vector<256x1xi1>
    %123 = vector.broadcast %122 : vector<256x1xi1> to vector<256x32xi1>
    %124 = vector.broadcast %cst_72 : f32 to vector<256x32xf32>
    %125 = arith.select %123, %121, %124 : vector<256x32xi1>, vector<256x32xf32>
    %c0_73 = arith.constant 0 : index
    %c64 = arith.constant 64 : index
    %126 = vector.load %arg16[%c0_73, %c64] : memref<256x288xf32, #tpu.memory_space<vmem>>, vector<256x32xf32>
    tpu.vector_store %arg16[%c0_73, %c64], %125 {strides = array<i32>} : memref<256x288xf32, #tpu.memory_space<vmem>>, vector<256x32xf32>,
    %c23_74 = arith.constant 23 : index
    %c0_75 = arith.constant 0 : index
    %127 = vector.load %arg12[%c23_74, %c0_75] : memref<304x32xf32, #tpu.memory_space<vmem>>, vector<256x32xf32>
    %cst_76 = arith.constant 0.000000e+00 : f32
    %128 = vector.shape_cast %12 : vector<256x1xi1> to vector<256x1xi1>
    %129 = vector.broadcast %128 : vector<256x1xi1> to vector<256x32xi1>
    %130 = vector.broadcast %cst_76 : f32 to vector<256x32xf32>
    %131 = arith.select %129, %127, %130 : vector<256x32xi1>, vector<256x32xf32>
    %c0_77 = arith.constant 0 : index
    %c96 = arith.constant 96 : index
    %132 = vector.load %arg16[%c0_77, %c96] : memref<256x288xf32, #tpu.memory_space<vmem>>, vector<256x32xf32>
    tpu.vector_store %arg16[%c0_77, %c96], %131 {strides = array<i32>} : memref<256x288xf32, #tpu.memory_space<vmem>>, vector<256x32xf32>,
    %c24_78 = arith.constant 24 : index
    %c0_79 = arith.constant 0 : index
    %133 = vector.load %arg12[%c24_78, %c0_79] : memref<304x32xf32, #tpu.memory_space<vmem>>, vector<256x32xf32>
    %c0_80 = arith.constant 0 : index
    %c128 = arith.constant 128 : index
    %134 = vector.load %arg16[%c0_80, %c128] : memref<256x288xf32, #tpu.memory_space<vmem>>, vector<256x32xf32>
    tpu.vector_store %arg16[%c0_80, %c128], %133 {strides = array<i32>} : memref<256x288xf32, #tpu.memory_space<vmem>>, vector<256x32xf32>,
    %c25_81 = arith.constant 25 : index
    %c0_82 = arith.constant 0 : index
    %135 = vector.load %arg12[%c25_81, %c0_82] : memref<304x32xf32, #tpu.memory_space<vmem>>, vector<256x32xf32>
    %cst_83 = arith.constant 0.000000e+00 : f32
    %136 = vector.shape_cast %14 : vector<256x1xi1> to vector<256x1xi1>
    %137 = vector.broadcast %136 : vector<256x1xi1> to vector<256x32xi1>
    %138 = vector.broadcast %cst_83 : f32 to vector<256x32xf32>
    %139 = arith.select %137, %135, %138 : vector<256x32xi1>, vector<256x32xf32>
    %c0_84 = arith.constant 0 : index
    %c160 = arith.constant 160 : index
    %140 = vector.load %arg16[%c0_84, %c160] : memref<256x288xf32, #tpu.memory_space<vmem>>, vector<256x32xf32>
    tpu.vector_store %arg16[%c0_84, %c160], %139 {strides = array<i32>} : memref<256x288xf32, #tpu.memory_space<vmem>>, vector<256x32xf32>,
    %c39_85 = arith.constant 39 : index
    %c0_86 = arith.constant 0 : index
    %141 = vector.load %arg12[%c39_85, %c0_86] : memref<304x32xf32, #tpu.memory_space<vmem>>, vector<256x32xf32>
    %cst_87 = arith.constant 0.000000e+00 : f32
    %142 = vector.shape_cast %17 : vector<256x1xi1> to vector<256x1xi1>
    %143 = vector.broadcast %142 : vector<256x1xi1> to vector<256x32xi1>
    %144 = vector.broadcast %cst_87 : f32 to vector<256x32xf32>
    %145 = arith.select %143, %141, %144 : vector<256x32xi1>, vector<256x32xf32>
    %c0_88 = arith.constant 0 : index
    %c192 = arith.constant 192 : index
    %146 = vector.load %arg16[%c0_88, %c192] : memref<256x288xf32, #tpu.memory_space<vmem>>, vector<256x32xf32>
    tpu.vector_store %arg16[%c0_88, %c192], %145 {strides = array<i32>} : memref<256x288xf32, #tpu.memory_space<vmem>>, vector<256x32xf32>,
    %c40_89 = arith.constant 40 : index
    %c0_90 = arith.constant 0 : index
    %147 = vector.load %arg12[%c40_89, %c0_90] : memref<304x32xf32, #tpu.memory_space<vmem>>, vector<256x32xf32>
    %cst_91 = arith.constant 0.000000e+00 : f32
    %148 = vector.shape_cast %10 : vector<256x1xi1> to vector<256x1xi1>
    %149 = vector.broadcast %148 : vector<256x1xi1> to vector<256x32xi1>
    %150 = vector.broadcast %cst_91 : f32 to vector<256x32xf32>
    %151 = arith.select %149, %147, %150 : vector<256x32xi1>, vector<256x32xf32>
    %c0_92 = arith.constant 0 : index
    %c224 = arith.constant 224 : index
    %152 = vector.load %arg16[%c0_92, %c224] : memref<256x288xf32, #tpu.memory_space<vmem>>, vector<256x32xf32>
    tpu.vector_store %arg16[%c0_92, %c224], %151 {strides = array<i32>} : memref<256x288xf32, #tpu.memory_space<vmem>>, vector<256x32xf32>,
    %c41_93 = arith.constant 41 : index
    %c0_94 = arith.constant 0 : index
    %153 = vector.load %arg12[%c41_93, %c0_94] : memref<304x32xf32, #tpu.memory_space<vmem>>, vector<256x32xf32>
    %cst_95 = arith.constant 0.000000e+00 : f32
    %154 = vector.shape_cast %18 : vector<256x1xi1> to vector<256x1xi1>
    %155 = vector.broadcast %154 : vector<256x1xi1> to vector<256x32xi1>
    %156 = vector.broadcast %cst_95 : f32 to vector<256x32xf32>
    %157 = arith.select %155, %153, %156 : vector<256x32xi1>, vector<256x32xf32>
    %c0_96 = arith.constant 0 : index
    %c256 = arith.constant 256 : index
    %158 = vector.load %arg16[%c0_96, %c256] : memref<256x288xf32, #tpu.memory_space<vmem>>, vector<256x32xf32>
    tpu.vector_store %arg16[%c0_96, %c256], %157 {strides = array<i32>} : memref<256x288xf32, #tpu.memory_space<vmem>>, vector<256x32xf32>,
    %c0_97 = arith.constant 0 : index
    %c0_98 = arith.constant 0 : index
    %159 = vector.load %arg16[%c0_97, %c0_98] : memref<256x288xf32, #tpu.memory_space<vmem>>, vector<256x288xf32>
    %160 = arith.truncf %159 : vector<256x288xf32> to vector<256x288xbf16>
    %c0_99 = arith.constant 0 : index
    %c0_100 = arith.constant 0 : index
    %161 = vector.load %arg4[%c0_99, %c0_100] : memref<288x64xbf16, #tpu.memory_space<vmem>>, vector<288x64xbf16>
    %cst_101 = arith.constant dense<0.000000e+00> : vector<256x64xf32>
    %162 = tpu.matmul %160, %161, %cst_101 {dimension_numbers = #tpu.dot_dimension_numbers<[1], [0], [0], [1], [0, 0, 1, 1], [], []>} : vector<256x288xbf16>, vector<288x64xbf16>, vector<256x64xf32> -> vector<256x64xf32>
    %c0_102 = arith.constant 0 : index
    %c0_103 = arith.constant 0 : index
    %163 = vector.load %arg13[%c0_102, %c0_103] : memref<256x64xf32, #tpu.memory_space<vmem>>, vector<256x64xf32>
    tpu.vector_store %arg13[%c0_102, %c0_103], %162 {strides = array<i32>} : memref<256x64xf32, #tpu.memory_space<vmem>>, vector<256x64xf32>,
    %cst_104 = arith.constant 0.000000e+00 : f32
    %164 = vector.broadcast %cst_104 : f32 to vector<16x64xf32>
    %c0_105 = arith.constant 0 : index
    %c0_106 = arith.constant 0 : index
    %165 = vector.load %arg14[%c0_105, %c0_106] : memref<96x64xf32, #tpu.memory_space<vmem>>, vector<16x64xf32>
    tpu.vector_store %arg14[%c0_105, %c0_106], %164 {strides = array<i32>} : memref<96x64xf32, #tpu.memory_space<vmem>>, vector<16x64xf32>,
    %cst_107 = arith.constant 0.000000e+00 : f32
    %166 = vector.broadcast %cst_107 : f32 to vector<16x64xf32>
    %c80 = arith.constant 80 : index
    %c0_108 = arith.constant 0 : index
    %167 = vector.load %arg14[%c80, %c0_108] : memref<96x64xf32, #tpu.memory_space<vmem>>, vector<16x64xf32>
    tpu.vector_store %arg14[%c80, %c0_108], %166 {strides = array<i32>} : memref<96x64xf32, #tpu.memory_space<vmem>>, vector<16x64xf32>,
    %c0_109 = arith.constant 0 : index
    %c0_110 = arith.constant 0 : index
    %168 = tpu.strided_load %arg13[%c0_109, %c0_110] {strides = array<i32: 2, 1>} : memref<256x64xf32, #tpu.memory_space<vmem>>, vector<8x64xf32>
    %c0_111 = arith.constant 0 : index
    %c0_112 = arith.constant 0 : index
    %169 = vector.load %arg5[%c0_111, %c0_112] : memref<1x64xf32, #tpu.memory_space<vmem>>, vector<1x64xf32>
    %170 = vector.broadcast %169 : vector<1x64xf32> to vector<8x64xf32>
    %171 = arith.addf %168, %170 : vector<8x64xf32>
    %cst_113 = arith.constant 0.000000e+00 : f32
    %172 = vector.broadcast %cst_113 : f32 to vector<8x64xf32>
    %173 = arith.maximumf %171, %172 : vector<8x64xf32>
    %c16_114 = arith.constant 16 : index
    %c0_115 = arith.constant 0 : index
    %174 = vector.load %arg14[%c16_114, %c0_115] : memref<96x64xf32, #tpu.memory_space<vmem>>, vector<8x64xf32>
    tpu.vector_store %arg14[%c16_114, %c0_115], %173 {strides = array<i32>} : memref<96x64xf32, #tpu.memory_space<vmem>>, vector<8x64xf32>,
    %c32_116 = arith.constant 32 : index
    %c0_117 = arith.constant 0 : index
    %175 = tpu.strided_load %arg13[%c32_116, %c0_117] {strides = array<i32: 2, 1>} : memref<256x64xf32, #tpu.memory_space<vmem>>, vector<8x64xf32>
    %c0_118 = arith.constant 0 : index
    %c0_119 = arith.constant 0 : index
    %176 = vector.load %arg5[%c0_118, %c0_119] : memref<1x64xf32, #tpu.memory_space<vmem>>, vector<1x64xf32>
    %177 = vector.broadcast %176 : vector<1x64xf32> to vector<8x64xf32>
    %178 = arith.addf %175, %177 : vector<8x64xf32>
    %cst_120 = arith.constant 0.000000e+00 : f32
    %179 = vector.broadcast %cst_120 : f32 to vector<8x64xf32>
    %180 = arith.maximumf %178, %179 : vector<8x64xf32>
    %c24_121 = arith.constant 24 : index
    %c0_122 = arith.constant 0 : index
    %181 = vector.load %arg14[%c24_121, %c0_122] : memref<96x64xf32, #tpu.memory_space<vmem>>, vector<8x64xf32>
    tpu.vector_store %arg14[%c24_121, %c0_122], %180 {strides = array<i32>} : memref<96x64xf32, #tpu.memory_space<vmem>>, vector<8x64xf32>,
    %c64_123 = arith.constant 64 : index
    %c0_124 = arith.constant 0 : index
    %182 = tpu.strided_load %arg13[%c64_123, %c0_124] {strides = array<i32: 2, 1>} : memref<256x64xf32, #tpu.memory_space<vmem>>, vector<8x64xf32>
    %c0_125 = arith.constant 0 : index
    %c0_126 = arith.constant 0 : index
    %183 = vector.load %arg5[%c0_125, %c0_126] : memref<1x64xf32, #tpu.memory_space<vmem>>, vector<1x64xf32>
    %184 = vector.broadcast %183 : vector<1x64xf32> to vector<8x64xf32>
    %185 = arith.addf %182, %184 : vector<8x64xf32>
    %cst_127 = arith.constant 0.000000e+00 : f32
    %186 = vector.broadcast %cst_127 : f32 to vector<8x64xf32>
    %187 = arith.maximumf %185, %186 : vector<8x64xf32>
    %c32_128 = arith.constant 32 : index
    %c0_129 = arith.constant 0 : index
    %188 = vector.load %arg14[%c32_128, %c0_129] : memref<96x64xf32, #tpu.memory_space<vmem>>, vector<8x64xf32>
    tpu.vector_store %arg14[%c32_128, %c0_129], %187 {strides = array<i32>} : memref<96x64xf32, #tpu.memory_space<vmem>>, vector<8x64xf32>,
    %c96_130 = arith.constant 96 : index
    %c0_131 = arith.constant 0 : index
    %189 = tpu.strided_load %arg13[%c96_130, %c0_131] {strides = array<i32: 2, 1>} : memref<256x64xf32, #tpu.memory_space<vmem>>, vector<8x64xf32>
    %c0_132 = arith.constant 0 : index
    %c0_133 = arith.constant 0 : index
    %190 = vector.load %arg5[%c0_132, %c0_133] : memref<1x64xf32, #tpu.memory_space<vmem>>, vector<1x64xf32>
    %191 = vector.broadcast %190 : vector<1x64xf32> to vector<8x64xf32>
    %192 = arith.addf %189, %191 : vector<8x64xf32>
    %cst_134 = arith.constant 0.000000e+00 : f32
    %193 = vector.broadcast %cst_134 : f32 to vector<8x64xf32>
    %194 = arith.maximumf %192, %193 : vector<8x64xf32>
    %c40_135 = arith.constant 40 : index
    %c0_136 = arith.constant 0 : index
    %195 = vector.load %arg14[%c40_135, %c0_136] : memref<96x64xf32, #tpu.memory_space<vmem>>, vector<8x64xf32>
    tpu.vector_store %arg14[%c40_135, %c0_136], %194 {strides = array<i32>} : memref<96x64xf32, #tpu.memory_space<vmem>>, vector<8x64xf32>,
    %c128_137 = arith.constant 128 : index
    %c0_138 = arith.constant 0 : index
    %196 = tpu.strided_load %arg13[%c128_137, %c0_138] {strides = array<i32: 2, 1>} : memref<256x64xf32, #tpu.memory_space<vmem>>, vector<8x64xf32>
    %c0_139 = arith.constant 0 : index
    %c0_140 = arith.constant 0 : index
    %197 = vector.load %arg5[%c0_139, %c0_140] : memref<1x64xf32, #tpu.memory_space<vmem>>, vector<1x64xf32>
    %198 = vector.broadcast %197 : vector<1x64xf32> to vector<8x64xf32>
    %199 = arith.addf %196, %198 : vector<8x64xf32>
    %cst_141 = arith.constant 0.000000e+00 : f32
    %200 = vector.broadcast %cst_141 : f32 to vector<8x64xf32>
    %201 = arith.maximumf %199, %200 : vector<8x64xf32>
    %c48 = arith.constant 48 : index
    %c0_142 = arith.constant 0 : index
    %202 = vector.load %arg14[%c48, %c0_142] : memref<96x64xf32, #tpu.memory_space<vmem>>, vector<8x64xf32>
    tpu.vector_store %arg14[%c48, %c0_142], %201 {strides = array<i32>} : memref<96x64xf32, #tpu.memory_space<vmem>>, vector<8x64xf32>,
    %c160_143 = arith.constant 160 : index
    %c0_144 = arith.constant 0 : index
    %203 = tpu.strided_load %arg13[%c160_143, %c0_144] {strides = array<i32: 2, 1>} : memref<256x64xf32, #tpu.memory_space<vmem>>, vector<8x64xf32>
    %c0_145 = arith.constant 0 : index
    %c0_146 = arith.constant 0 : index
    %204 = vector.load %arg5[%c0_145, %c0_146] : memref<1x64xf32, #tpu.memory_space<vmem>>, vector<1x64xf32>
    %205 = vector.broadcast %204 : vector<1x64xf32> to vector<8x64xf32>
    %206 = arith.addf %203, %205 : vector<8x64xf32>
    %cst_147 = arith.constant 0.000000e+00 : f32
    %207 = vector.broadcast %cst_147 : f32 to vector<8x64xf32>
    %208 = arith.maximumf %206, %207 : vector<8x64xf32>
    %c56 = arith.constant 56 : index
    %c0_148 = arith.constant 0 : index
    %209 = vector.load %arg14[%c56, %c0_148] : memref<96x64xf32, #tpu.memory_space<vmem>>, vector<8x64xf32>
    tpu.vector_store %arg14[%c56, %c0_148], %208 {strides = array<i32>} : memref<96x64xf32, #tpu.memory_space<vmem>>, vector<8x64xf32>,
    %c192_149 = arith.constant 192 : index
    %c0_150 = arith.constant 0 : index
    %210 = tpu.strided_load %arg13[%c192_149, %c0_150] {strides = array<i32: 2, 1>} : memref<256x64xf32, #tpu.memory_space<vmem>>, vector<8x64xf32>
    %c0_151 = arith.constant 0 : index
    %c0_152 = arith.constant 0 : index
    %211 = vector.load %arg5[%c0_151, %c0_152] : memref<1x64xf32, #tpu.memory_space<vmem>>, vector<1x64xf32>
    %212 = vector.broadcast %211 : vector<1x64xf32> to vector<8x64xf32>
    %213 = arith.addf %210, %212 : vector<8x64xf32>
    %cst_153 = arith.constant 0.000000e+00 : f32
    %214 = vector.broadcast %cst_153 : f32 to vector<8x64xf32>
    %215 = arith.maximumf %213, %214 : vector<8x64xf32>
    %c64_154 = arith.constant 64 : index
    %c0_155 = arith.constant 0 : index
    %216 = vector.load %arg14[%c64_154, %c0_155] : memref<96x64xf32, #tpu.memory_space<vmem>>, vector<8x64xf32>
    tpu.vector_store %arg14[%c64_154, %c0_155], %215 {strides = array<i32>} : memref<96x64xf32, #tpu.memory_space<vmem>>, vector<8x64xf32>,
    %c224_156 = arith.constant 224 : index
    %c0_157 = arith.constant 0 : index
    %217 = tpu.strided_load %arg13[%c224_156, %c0_157] {strides = array<i32: 2, 1>} : memref<256x64xf32, #tpu.memory_space<vmem>>, vector<8x64xf32>
    %c0_158 = arith.constant 0 : index
    %c0_159 = arith.constant 0 : index
    %218 = vector.load %arg5[%c0_158, %c0_159] : memref<1x64xf32, #tpu.memory_space<vmem>>, vector<1x64xf32>
    %219 = vector.broadcast %218 : vector<1x64xf32> to vector<8x64xf32>
    %220 = arith.addf %217, %219 : vector<8x64xf32>
    %cst_160 = arith.constant 0.000000e+00 : f32
    %221 = vector.broadcast %cst_160 : f32 to vector<8x64xf32>
    %222 = arith.maximumf %220, %221 : vector<8x64xf32>
    %c72 = arith.constant 72 : index
    %c0_161 = arith.constant 0 : index
    %223 = vector.load %arg14[%c72, %c0_161] : memref<96x64xf32, #tpu.memory_space<vmem>>, vector<8x64xf32>
    tpu.vector_store %arg14[%c72, %c0_161], %222 {strides = array<i32>} : memref<96x64xf32, #tpu.memory_space<vmem>>, vector<8x64xf32>,
    %c7_162 = arith.constant 7 : index
    %c0_163 = arith.constant 0 : index
    %224 = vector.load %arg14[%c7_162, %c0_163] : memref<96x64xf32, #tpu.memory_space<vmem>>, vector<64x64xf32>
    %cst_164 = arith.constant 0.000000e+00 : f32
    %225 = vector.shape_cast %34 : vector<64x1xi1> to vector<64x1xi1>
    %226 = vector.broadcast %225 : vector<64x1xi1> to vector<64x64xi1>
    %227 = vector.broadcast %cst_164 : f32 to vector<64x64xf32>
    %228 = arith.select %226, %224, %227 : vector<64x64xi1>, vector<64x64xf32>
    %c0_165 = arith.constant 0 : index
    %c0_166 = arith.constant 0 : index
    %229 = vector.load %arg17[%c0_165, %c0_166] : memref<64x576xf32, #tpu.memory_space<vmem>>, vector<64x64xf32>
    tpu.vector_store %arg17[%c0_165, %c0_166], %228 {strides = array<i32>} : memref<64x576xf32, #tpu.memory_space<vmem>>, vector<64x64xf32>,
    %c8_167 = arith.constant 8 : index
    %c0_168 = arith.constant 0 : index
    %230 = vector.load %arg14[%c8_167, %c0_168] : memref<96x64xf32, #tpu.memory_space<vmem>>, vector<64x64xf32>
    %cst_169 = arith.constant 0.000000e+00 : f32
    %231 = vector.shape_cast %27 : vector<64x1xi1> to vector<64x1xi1>
    %232 = vector.broadcast %231 : vector<64x1xi1> to vector<64x64xi1>
    %233 = vector.broadcast %cst_169 : f32 to vector<64x64xf32>
    %234 = arith.select %232, %230, %233 : vector<64x64xi1>, vector<64x64xf32>
    %c0_170 = arith.constant 0 : index
    %c64_171 = arith.constant 64 : index
    %235 = vector.load %arg17[%c0_170, %c64_171] : memref<64x576xf32, #tpu.memory_space<vmem>>, vector<64x64xf32>
    tpu.vector_store %arg17[%c0_170, %c64_171], %234 {strides = array<i32>} : memref<64x576xf32, #tpu.memory_space<vmem>>, vector<64x64xf32>,
    %c9_172 = arith.constant 9 : index
    %c0_173 = arith.constant 0 : index
    %236 = vector.load %arg14[%c9_172, %c0_173] : memref<96x64xf32, #tpu.memory_space<vmem>>, vector<64x64xf32>
    %cst_174 = arith.constant 0.000000e+00 : f32
    %237 = vector.shape_cast %35 : vector<64x1xi1> to vector<64x1xi1>
    %238 = vector.broadcast %237 : vector<64x1xi1> to vector<64x64xi1>
    %239 = vector.broadcast %cst_174 : f32 to vector<64x64xf32>
    %240 = arith.select %238, %236, %239 : vector<64x64xi1>, vector<64x64xf32>
    %c0_175 = arith.constant 0 : index
    %c128_176 = arith.constant 128 : index
    %241 = vector.load %arg17[%c0_175, %c128_176] : memref<64x576xf32, #tpu.memory_space<vmem>>, vector<64x64xf32>
    tpu.vector_store %arg17[%c0_175, %c128_176], %240 {strides = array<i32>} : memref<64x576xf32, #tpu.memory_space<vmem>>, vector<64x64xf32>,
    %c15 = arith.constant 15 : index
    %c0_177 = arith.constant 0 : index
    %242 = vector.load %arg14[%c15, %c0_177] : memref<96x64xf32, #tpu.memory_space<vmem>>, vector<64x64xf32>
    %cst_178 = arith.constant 0.000000e+00 : f32
    %243 = vector.shape_cast %31 : vector<64x1xi1> to vector<64x1xi1>
    %244 = vector.broadcast %243 : vector<64x1xi1> to vector<64x64xi1>
    %245 = vector.broadcast %cst_178 : f32 to vector<64x64xf32>
    %246 = arith.select %244, %242, %245 : vector<64x64xi1>, vector<64x64xf32>
    %c0_179 = arith.constant 0 : index
    %c192_180 = arith.constant 192 : index
    %247 = vector.load %arg17[%c0_179, %c192_180] : memref<64x576xf32, #tpu.memory_space<vmem>>, vector<64x64xf32>
    tpu.vector_store %arg17[%c0_179, %c192_180], %246 {strides = array<i32>} : memref<64x576xf32, #tpu.memory_space<vmem>>, vector<64x64xf32>,
    %c16_181 = arith.constant 16 : index
    %c0_182 = arith.constant 0 : index
    %248 = vector.load %arg14[%c16_181, %c0_182] : memref<96x64xf32, #tpu.memory_space<vmem>>, vector<64x64xf32>
    %c0_183 = arith.constant 0 : index
    %c256_184 = arith.constant 256 : index
    %249 = vector.load %arg17[%c0_183, %c256_184] : memref<64x576xf32, #tpu.memory_space<vmem>>, vector<64x64xf32>
    tpu.vector_store %arg17[%c0_183, %c256_184], %248 {strides = array<i32>} : memref<64x576xf32, #tpu.memory_space<vmem>>, vector<64x64xf32>,
    %c17 = arith.constant 17 : index
    %c0_185 = arith.constant 0 : index
    %250 = vector.load %arg14[%c17, %c0_185] : memref<96x64xf32, #tpu.memory_space<vmem>>, vector<64x64xf32>
    %cst_186 = arith.constant 0.000000e+00 : f32
    %251 = vector.shape_cast %33 : vector<64x1xi1> to vector<64x1xi1>
    %252 = vector.broadcast %251 : vector<64x1xi1> to vector<64x64xi1>
    %253 = vector.broadcast %cst_186 : f32 to vector<64x64xf32>
    %254 = arith.select %252, %250, %253 : vector<64x64xi1>, vector<64x64xf32>
    %c0_187 = arith.constant 0 : index
    %c320 = arith.constant 320 : index
    %255 = vector.load %arg17[%c0_187, %c320] : memref<64x576xf32, #tpu.memory_space<vmem>>, vector<64x64xf32>
    tpu.vector_store %arg17[%c0_187, %c320], %254 {strides = array<i32>} : memref<64x576xf32, #tpu.memory_space<vmem>>, vector<64x64xf32>,
    %c23_188 = arith.constant 23 : index
    %c0_189 = arith.constant 0 : index
    %256 = vector.load %arg14[%c23_188, %c0_189] : memref<96x64xf32, #tpu.memory_space<vmem>>, vector<64x64xf32>
    %cst_190 = arith.constant 0.000000e+00 : f32
    %257 = vector.shape_cast %36 : vector<64x1xi1> to vector<64x1xi1>
    %258 = vector.broadcast %257 : vector<64x1xi1> to vector<64x64xi1>
    %259 = vector.broadcast %cst_190 : f32 to vector<64x64xf32>
    %260 = arith.select %258, %256, %259 : vector<64x64xi1>, vector<64x64xf32>
    %c0_191 = arith.constant 0 : index
    %c384 = arith.constant 384 : index
    %261 = vector.load %arg17[%c0_191, %c384] : memref<64x576xf32, #tpu.memory_space<vmem>>, vector<64x64xf32>
    tpu.vector_store %arg17[%c0_191, %c384], %260 {strides = array<i32>} : memref<64x576xf32, #tpu.memory_space<vmem>>, vector<64x64xf32>,
    %c24_192 = arith.constant 24 : index
    %c0_193 = arith.constant 0 : index
    %262 = vector.load %arg14[%c24_192, %c0_193] : memref<96x64xf32, #tpu.memory_space<vmem>>, vector<64x64xf32>
    %cst_194 = arith.constant 0.000000e+00 : f32
    %263 = vector.shape_cast %29 : vector<64x1xi1> to vector<64x1xi1>
    %264 = vector.broadcast %263 : vector<64x1xi1> to vector<64x64xi1>
    %265 = vector.broadcast %cst_194 : f32 to vector<64x64xf32>
    %266 = arith.select %264, %262, %265 : vector<64x64xi1>, vector<64x64xf32>
    %c0_195 = arith.constant 0 : index
    %c448 = arith.constant 448 : index
    %267 = vector.load %arg17[%c0_195, %c448] : memref<64x576xf32, #tpu.memory_space<vmem>>, vector<64x64xf32>
    tpu.vector_store %arg17[%c0_195, %c448], %266 {strides = array<i32>} : memref<64x576xf32, #tpu.memory_space<vmem>>, vector<64x64xf32>,
    %c25_196 = arith.constant 25 : index
    %c0_197 = arith.constant 0 : index
    %268 = vector.load %arg14[%c25_196, %c0_197] : memref<96x64xf32, #tpu.memory_space<vmem>>, vector<64x64xf32>
    %cst_198 = arith.constant 0.000000e+00 : f32
    %269 = vector.shape_cast %37 : vector<64x1xi1> to vector<64x1xi1>
    %270 = vector.broadcast %269 : vector<64x1xi1> to vector<64x64xi1>
    %271 = vector.broadcast %cst_198 : f32 to vector<64x64xf32>
    %272 = arith.select %270, %268, %271 : vector<64x64xi1>, vector<64x64xf32>
    %c0_199 = arith.constant 0 : index
    %c512 = arith.constant 512 : index
    %273 = vector.load %arg17[%c0_199, %c512] : memref<64x576xf32, #tpu.memory_space<vmem>>, vector<64x64xf32>
    tpu.vector_store %arg17[%c0_199, %c512], %272 {strides = array<i32>} : memref<64x576xf32, #tpu.memory_space<vmem>>, vector<64x64xf32>,
    %c0_200 = arith.constant 0 : index
    %c0_201 = arith.constant 0 : index
    %274 = vector.load %arg17[%c0_200, %c0_201] : memref<64x576xf32, #tpu.memory_space<vmem>>, vector<64x576xf32>
    %275 = arith.truncf %274 : vector<64x576xf32> to vector<64x576xbf16>
    %c0_202 = arith.constant 0 : index
    %c0_203 = arith.constant 0 : index
    %276 = vector.load %arg6[%c0_202, %c0_203] : memref<576x64xbf16, #tpu.memory_space<vmem>>, vector<576x64xbf16>
    %cst_204 = arith.constant dense<0.000000e+00> : vector<64x64xf32>
    %277 = tpu.matmul %275, %276, %cst_204 {dimension_numbers = #tpu.dot_dimension_numbers<[1], [0], [0], [1], [0, 0, 1, 1], [], []>} : vector<64x576xbf16>, vector<576x64xbf16>, vector<64x64xf32> -> vector<64x64xf32>
    %c0_205 = arith.constant 0 : index
    %c0_206 = arith.constant 0 : index
    %278 = vector.load %arg7[%c0_205, %c0_206] : memref<1x64xf32, #tpu.memory_space<vmem>>, vector<1x64xf32>
    %279 = vector.broadcast %278 : vector<1x64xf32> to vector<64x64xf32>
    %280 = arith.addf %277, %279 : vector<64x64xf32>
    %cst_207 = arith.constant 0.000000e+00 : f32
    %281 = vector.broadcast %cst_207 : f32 to vector<64x64xf32>
    %282 = arith.maximumf %280, %281 : vector<64x64xf32>
    %283 = arith.truncf %282 : vector<64x64xf32> to vector<64x64xbf16>
    %c0_208 = arith.constant 0 : index
    %c0_209 = arith.constant 0 : index
    %284 = vector.load %arg8[%c0_208, %c0_209] : memref<64x128xbf16, #tpu.memory_space<vmem>>, vector<64x128xbf16>
    %cst_210 = arith.constant dense<0.000000e+00> : vector<64x128xf32>
    %285 = tpu.matmul %283, %284, %cst_210 {dimension_numbers = #tpu.dot_dimension_numbers<[1], [0], [0], [1], [0, 0, 1, 1], [], []>} : vector<64x64xbf16>, vector<64x128xbf16>, vector<64x128xf32> -> vector<64x128xf32>
    %c0_211 = arith.constant 0 : index
    %c0_212 = arith.constant 0 : index
    %286 = vector.load %arg9[%c0_211, %c0_212] : memref<1x128xf32, #tpu.memory_space<vmem>>, vector<1x128xf32>
    %287 = vector.broadcast %286 : vector<1x128xf32> to vector<64x128xf32>
    %288 = arith.addf %285, %287 : vector<64x128xf32>
    %289 = tpu.iota {dimensions = array<i32: 1>} : vector<64x128xi32>
    %c3_i32_213 = arith.constant 3 : i32
    %290 = vector.broadcast %c3_i32_213 : i32 to vector<64x128xi32>
    %291 = arith.cmpi slt, %289, %290 : vector<64x128xi32>
    %292 = arith.negf %288 : vector<64x128xf32>
    %293 = math.exp %292 : vector<64x128xf32>
    %cst_214 = arith.constant 1.000000e+00 : f32
    %294 = vector.broadcast %cst_214 : f32 to vector<64x128xf32>
    %295 = arith.addf %294, %293 : vector<64x128xf32>
    %296 = arith.divf %294, %295 : vector<64x128xf32>
    %297 = arith.select %291, %296, %288 : vector<64x128xi1>, vector<64x128xf32>
    %cst_215 = arith.constant 0xFF800000 : f32
    %298 = vector.broadcast %cst_215 : f32 to vector<64x128xf32>
    %299 = arith.select %291, %296, %298 : vector<64x128xi1>, vector<64x128xf32>
    %300 = tpu.iota {dimensions = array<i32: 0>} : vector<64x128xi32>
    %cst_216 = arith.constant dense<0xFF800000> : vector<128xf32>
    %301 = vector.multi_reduction <maximumf>, %299, %cst_216 [0] : vector<64x128xf32> to vector<128xf32>
    %302 = vector.shape_cast %301 : vector<128xf32> to vector<1x128xf32>
    %cst_217 = arith.constant dense<0xFF800000> : vector<1xf32>
    %303 = vector.multi_reduction <maximumf>, %302, %cst_217 [1] : vector<1x128xf32> to vector<1xf32>
    %304 = vector.shape_cast %303 : vector<1xf32> to vector<1x1xf32>
    %c0_i32 = arith.constant 0 : i32
    %305 = vector.broadcast %c0_i32 : i32 to vector<64x128xi32>
    %306 = arith.cmpi eq, %300, %305 : vector<64x128xi32>
    %c11_i32 = arith.constant 11 : i32
    %307 = vector.broadcast %c11_i32 : i32 to vector<64x128xi32>
    %308 = arith.cmpi eq, %289, %307 : vector<64x128xi32>
    %309 = arith.andi %306, %308 : vector<64x128xi1>
    %310 = vector.shape_cast %304 : vector<1x1xf32> to vector<1x1xf32>
    %311 = vector.broadcast %310 : vector<1x1xf32> to vector<64x128xf32>
    %312 = arith.select %309, %311, %297 : vector<64x128xi1>, vector<64x128xf32>
    %313 = arith.truncf %312 : vector<64x128xf32> to vector<64x128xbf16>
    %c0_218 = arith.constant 0 : index
    %c0_219 = arith.constant 0 : index
    %c0_220 = arith.constant 0 : index
    %314 = vector.load %arg10[%c0_218, %c0_219, %c0_220] : memref<1x64x128xbf16, #tpu.memory_space<vmem>>, vector<1x64x128xbf16>
    %315 = vector.shape_cast %314 : vector<1x64x128xbf16> to vector<64x128xbf16>
    %316 = vector.shape_cast %313 : vector<64x128xbf16> to vector<1x64x128xbf16>
    tpu.vector_store %arg10[%c0_218, %c0_219, %c0_220], %316 {strides = array<i32>} : memref<1x64x128xbf16, #tpu.memory_space<vmem>>, vector<1x64x128xbf16>,
    return
  }
  func.func @transform_0(%arg0: i32) -> (i32, i32, i32) {
    %c0_i32 = arith.constant 0 : i32
    %c0_i32_0 = arith.constant 0 : i32
    %c0_i32_1 = arith.constant 0 : i32
    return %arg0, %c0_i32, %c0_i32_0 : i32, i32, i32
  }
  func.func @transform_1(%arg0: i32) -> (i32, i32) {
    %c0_i32 = arith.constant 0 : i32
    %c0_i32_0 = arith.constant 0 : i32
    %c0_i32_1 = arith.constant 0 : i32
    return %c0_i32, %c0_i32_0 : i32, i32
  }
  func.func @transform_2(%arg0: i32) -> (i32, i32) {
    %c0_i32 = arith.constant 0 : i32
    %c0_i32_0 = arith.constant 0 : i32
    %c0_i32_1 = arith.constant 0 : i32
    return %c0_i32, %c0_i32_0 : i32, i32
  }
  func.func @transform_3(%arg0: i32) -> (i32, i32) {
    %c0_i32 = arith.constant 0 : i32
    %c0_i32_0 = arith.constant 0 : i32
    %c0_i32_1 = arith.constant 0 : i32
    return %c0_i32, %c0_i32_0 : i32, i32
  }
  func.func @transform_4(%arg0: i32) -> (i32, i32) {
    %c0_i32 = arith.constant 0 : i32
    %c0_i32_0 = arith.constant 0 : i32
    %c0_i32_1 = arith.constant 0 : i32
    return %c0_i32, %c0_i32_0 : i32, i32
  }
  func.func @transform_5(%arg0: i32) -> (i32, i32) {
    %c0_i32 = arith.constant 0 : i32
    %c0_i32_0 = arith.constant 0 : i32
    %c0_i32_1 = arith.constant 0 : i32
    return %c0_i32, %c0_i32_0 : i32, i32
  }
  func.func @transform_6(%arg0: i32) -> (i32, i32) {
    %c0_i32 = arith.constant 0 : i32
    %c0_i32_0 = arith.constant 0 : i32
    %c0_i32_1 = arith.constant 0 : i32
    return %c0_i32, %c0_i32_0 : i32, i32
  }
  func.func @transform_7(%arg0: i32) -> (i32, i32) {
    %c0_i32 = arith.constant 0 : i32
    %c0_i32_0 = arith.constant 0 : i32
    %c0_i32_1 = arith.constant 0 : i32
    return %c0_i32, %c0_i32_0 : i32, i32
  }
  func.func @transform_8(%arg0: i32) -> (i32, i32) {
    %c0_i32 = arith.constant 0 : i32
    %c0_i32_0 = arith.constant 0 : i32
    %c0_i32_1 = arith.constant 0 : i32
    return %c0_i32, %c0_i32_0 : i32, i32
  }
  func.func @transform_9(%arg0: i32) -> (i32, i32, i32) {
    %c0_i32 = arith.constant 0 : i32
    %c0_i32_0 = arith.constant 0 : i32
    %c0_i32_1 = arith.constant 0 : i32
    return %arg0, %c0_i32, %c0_i32_0 : i32, i32, i32
  }
}

</mosaic_0001>

<bundles_post_ra>
// kernel: tpu_custom_call.1
= control target key start
LH: loop header
LB: loop body
LE: loop exit
PB: predicated region body
PF: predicated region fallthrough
CT: control target
= control target key end

     0   :  { %14 = vsyncpa [#allocation10], 0  ;;  %s13044_s0 = inlined_call_operand.vmem [shape: f32[2,256,4], index: 0, kind: input, shape index: {}]   ;;  %s13045_s1 = inlined_call_operand.vmem [shape: bf16[36,32], index: 1, kind: input, shape index: {}]   ;;  %s13046_s2 = inlined_call_operand.vmem [shape: f32[1,32], index: 2, kind: input, shape index: {}]   ;;  %s13047_s3 = inlined_call_operand.vmem [shape: bf16[288,64], index: 3, kind: input, shape index: {}]   ;;  %s13048_s4 = inlined_call_operand.vmem [shape: f32[1,64], index: 4, kind: input, shape index: {}]   ;;  %s13049_s5 = inlined_call_operand.vmem [shape: bf16[576,64], index: 5, kind: input, shape index: {}]   ;;  %s13050_s6 = inlined_call_operand.vmem [shape: f32[1,64], index: 6, kind: input, shape index: {}]   ;;  %s13051_s7 = inlined_call_operand.vmem [shape: bf16[64,128], index: 7, kind: input, shape index: {}]   ;;  %s13052_s8 = inlined_call_operand.vmem [shape: f32[1,128], index: 8, kind: input, shape index: {}]   ;;  %s13053_s9 = inlined_call_operand.hbm [shape: bf16[2,64,128], index: 9, kind: output, shape index: {}]  }
   0x1   :  { %16 = vsyncpa [#allocation10 + $0x1], 0  ;;  %s8185_s30 = smov 0   ;;  %s8187_s10 = smov 0  }
   0x2   :  { %s8189_s11 = smov 0   ;;  %s8191_s12 = smov 0  }
   0x3 LB: > { %s8206_s13 = sadd.s32 4294967295, %s8121_s12   ;;  %s7383_s14 = sadd.s32 4294967294, %s8121_s12   ;;  %s8121_s12 = sphi %s8191_s12, %s14764_s12   ;;  %s8117_s11 = sphi %s8189_s11, %s14763_s11   ;;  %s8113_s10 = sphi %s8187_s10, %s14762_s10   ;;  %s8109_s30 = sphi %s8185_s30, %s14761_s30  }
   0x4   : > { %s8210_s15 = sadd.s32 1, %s8121_s12   ;;  %s223_s16 = sadd.s32 1, %s8117_s11 }
   0x5   : > { %s220_s17 = ssub.s32 %s8121_s12, %s8210_s15  ;;  %p233_p0 = scmp.ne.s32.totalorder %s8117_s11, %s8113_s10 }
   0x6   : > { %p221_p1 = scmp.eq.s32.totalorder %s220_s17, 0  ;;  %p234_p2 = scmp.eq.s32.totalorder %s8206_s13, 1 }
   0x7   : > { %p239_p3 = scmp.ne.s32.totalorder %s8113_s10, %s8109_s30  ;;  %p240_p4 = scmp.eq.s32.totalorder %s7383_s14, 1 }
   0x8   : > { %s8221_s18 = scalar_select %p221_p1, %s8117_s11, %s223_s16  }
   0x9   : > { %p8223_p5 = por %p234_p2, %p233_p0  ;;  %p8227_p6 = por %p240_p4, %p239_p3 }
   0xa   : > { %p7386_p7 = scmp.ge.s32.totalorder %s8121_s12, 1  ;;  %p290_p8 = scmp.lt.s32.totalorder %s8121_s12, 3 }
   0xc   : > { %p291_p9 = pnand %p7386_p7, %p290_p8 }
   0xe   : > { %294 = sbr.rel (%p291_p9) target bundleno = 2035 (0x7f3), region = 56 }
  0x13   : > { %v13081_v0 = vlaneseq  ;;  %vm13058_vm0 = vcmask 31744   ;;  %v13088_v1 = vmov 0.0   ;;  %p326_p10 = scmp.lt.s32.totalorder %s8206_s13, 1  ;;  %s8124_s26 = smov 4   ;;  %v13348_v22 = vmov 0 }
  0x14   : > { %807 = vst.msk [vmem:[#allocation2 + $0x8] sm:$0xff] %vm13058_vm0, %v13088_v1  ;;  %806 = vst.msk [vmem:[#allocation2] sm:$0xff] %vm13058_vm0, %v13088_v1  ;;  %v13350_v28 = vmov 0  ;;  %s8125_s27 = smov 8   ;;  %s8126_s28 = smov 12   ;;  %v13353_v43 = vmov 0 }
  0x15   : > { %808 = vst.msk [vmem:[#allocation2 + $0x10] sm:$0xff] %vm13058_vm0, %v13088_v1  ;;  %809 = vst.msk [vmem:[#allocation2 + $0x118] sm:$0xff] %vm13058_vm0, %v13088_v1  ;;  %v8247_v2 = vshrl.u32 %v13081_v0, 7  ;;  %s327_s21 = scalar_select %p326_p10, %s8206_s13, 1  ;;  %v13355_v48 = vmov 0  ;;  %v13357_v51 = vmov 0 }
  0x16   : > { %810 = vst.msk [vmem:[#allocation2 + $0x120] sm:$0xff] %vm13058_vm0, %v13088_v1  ;;  %811 = vst.msk [vmem:[#allocation2 + $0x128] sm:$0xff] %vm13058_vm0, %v13088_v1  ;;  %v13359_v52 = vmov 0  ;;  %v13362_v55 = vmov 0  ;;  %s8127_s29 = smov 16   ;;  %s8128_s14 = smov 20  }
  0x17   : > { %13344 = vst [vmem:[#allocation12_spill] sm:$0xff] %v8247_v2  ;;  %v397_v3 = vshra.s32 %v8247_v2, 4  ;;  %v8252_v4 = vadd.s32 8, %v8247_v2  ;;  %v8255_v5 = vadd.s32 16, %v8247_v2  ;;  %s7523_s22 = sshll.u32 %s327_s21, 8  ;;  %v8258_v6 = vadd.s32 24, %v8247_v2 }
  0x18   : > { %s8265_s25 = scalar_lea.vmem %s13044_s0, %s7523_s22  ;;  %v365_v10 = vand.u32 15, %v8247_v2  ;;  %s8129_s16 = smov 24   ;;  %v13430_v0 = vmov 0 }
  0x19   : > { %13345 = vst [vmem:[#allocation13_spill] sm:$0xff] %v8252_v4  ;;  %13346 = vst [vmem:[#allocation14_spill] sm:$0xff] %v8255_v5  ;;  %v8260_v7 = vand.u32 15, %v397_v3  ;;  %v398_v8 = vshra.s32 %v8252_v4, 4  ;;  %v399_v9 = vshra.s32 %v8255_v5, 4  ;;  %v812_v11 = vld [vmem:[%s8265_s25] sm:$0xff] }
  0x1a   : > { %13347 = vst [vmem:[#allocation15_spill] sm:$0xff] %v8258_v6  ;;  %v813_v12 = vld [vmem:[%s8265_s25 + $0x8] sm:$0xff]  ;;  %v814_v13 = vld [vmem:[%s8265_s25 + $0x10] sm:$0xff]  ;;  %844 = vst.msk [vmem:[#allocation2 + $0x18] sm:$0xff] %vm13058_vm0, %v812_v11  ;;  %v400_v21 = vshra.s32 %v8258_v6, 4  ;;  %vm8287_vm2 = vcmp.ge.s32.totalorder %v365_v10, 1 }
  0x1b   : > { %vm13055_vm1 = vcmp.ge.s32.totalorder %v8260_v7, 1  ;;  %v1036_v14 = vld [vmem:[#allocation2 + $0x8] sm:$0xff]  ;;  %845 = vst.msk [vmem:[#allocation2 + $0x20] sm:$0xff] %vm13058_vm0, %v813_v12  ;;  %v8276_v16 = vand.u32 15, %v398_v8  ;;  %846 = vst.msk [vmem:[#allocation2 + $0x28] sm:$0xff] %vm13058_vm0, %v814_v13  ;;  %v815_v18 = vld [vmem:[%s8265_s25 + $0x18] sm:$0xff] }
  0x1c   : > { %v1325_v15 = vld [vmem:[#allocation2 + $0x9] sm:$0xff]  ;;  %v1132_v17 = vsel %vm13055_vm1, %v1036_v14, 0.0  ;;  %v816_v19 = vld [vmem:[%s8265_s25 + $0x20] sm:$0xff]  ;;  %v8284_v20 = vand.u32 15, %v399_v9  ;;  %v13349_v22 = vsel %vm8287_vm2, 4294967295, %v13348_v22  ;;  %847 = vst.msk [vmem:[#allocation2 + $0x30] sm:$0xff] %vm13058_vm0, %v815_v18  ;;  %vm8305_vm3 = vmand %vm13055_vm1, %vm8287_vm2 }
  0x1d   : > { %1196 = vrot.lane.b32.xlu0 %v1132_v17, %s8124_s26  ;;  %848 = vst.msk [vmem:[#allocation2 + $0x38] sm:$0xff] %vm13058_vm0, %v816_v19  ;;  %v817_v23 = vld [vmem:[%s8265_s25 + $0x28] sm:$0xff]  ;;  %v818_v24 = vld [vmem:[%s8265_s25 + $0x30] sm:$0xff]  ;;  %v1421_v25 = vsel %vm13055_vm1, %v1325_v15, 0.0  ;;  %v819_v26 = vld [vmem:[%s8265_s25 + $0x38] sm:$0xff]  ;;  %v13351_v28 = vsel %vm8305_vm3, 4294967295, %v13350_v28 }
  0x1e   : > { %849 = vst.msk [vmem:[#allocation2 + $0x40] sm:$0xff] %vm13058_vm0, %v817_v23  ;;  %850 = vst.msk [vmem:[#allocation2 + $0x48] sm:$0xff] %vm13058_vm0, %v818_v24  ;;  %v820_v27 = vld [vmem:[%s8265_s25 + $0x40] sm:$0xff]  ;;  %vm13056_vm4 = vcmp.ge.s32.totalorder %v8276_v16, 1  ;;  %v1037_v29 = vld [vmem:[#allocation2 + $0x10] sm:$0xff]  ;;  %vm13054_vm5 = vcmp.ge.s32.totalorder %v8284_v20, 1 }
  0x1f   : > { %851 = vst.msk [vmem:[#allocation2 + $0x50] sm:$0xff] %vm13058_vm0, %v819_v26  ;;  %852 = vst.msk [vmem:[#allocation2 + $0x58] sm:$0xff] %vm13058_vm0, %v820_v27  ;;  %v821_v30 = vld [vmem:[%s8265_s25 + $0x48] sm:$0xff]  ;;  %v822_v32 = vld [vmem:[%s8265_s25 + $0x50] sm:$0xff]  ;;  %v8317_v33 = vand.u32 15, %v400_v21  ;;  %v1133_v36 = vsel %vm13056_vm4, %v1037_v29, 0.0 }
  0x20   : > { %v876_v31 = vld [vmem:[#allocation2 + $0x7] sm:$0xff]  ;;  %853 = vst.msk [vmem:[#allocation2 + $0x60] sm:$0xff] %vm13058_vm0, %v821_v30  ;;  %854 = vst.msk [vmem:[#allocation2 + $0x68] sm:$0xff] %vm13058_vm0, %v822_v32  ;;  %v366_v38 = vand.u32 15, %v8252_v4  ;;  %v368_v44 = vand.u32 15, %v8258_v6  ;;  %v367_v46 = vand.u32 15, %v8255_v5 }
  0x21   : > { %1485 = vrot.lane.b32.xlu0 %v1421_v25, %s8125_s27  ;;  %13352 = vst [vmem:[#allocation16_spill] sm:$0xff] %v8317_v33  ;;  %v972_v34 = vsel %vm8305_vm3, %v876_v31, 0.0  ;;  %v1038_v37 = vld [vmem:[#allocation2 + $0x18] sm:$0xff]  ;;  %vm13057_vm6 = vcmp.ge.s32.totalorder %v8317_v33, 1  ;;  %v877_v58 = vld [vmem:[#allocation2 + $0xf] sm:$0xff]  ;;  %vm13064_vm13 = vcmp.le.s32.totalorder %v8260_v7, 14 }
  0x22   : > { %v1615_v35 = vld [vmem:[#allocation2 + $0x1f] sm:$0xff]  ;;  %1004 = vst.msk [vmem:[#allocation6] sm:$0xff] %vm13058_vm0, %v972_v34  ;;  %v1134_v40 = vsel %vm13054_vm5, %v1038_v37, 0.0  ;;  %vm8333_vm7 = vcmp.le.s32.totalorder %v366_v38, 14  ;;  %v1614_v45 = vld [vmem:[#allocation2 + $0x17] sm:$0xff]  ;;  %vm8353_vm9 = vcmp.le.s32.totalorder %v368_v44, 14  ;;  %vm8434_vm14 = vmand %vm13064_vm13, %vm8287_vm2 }
  0x23   : > { %1776 = vrot.lane.b32.xlu1 %v1615_v35, %s8126_s28  ;;  %v1327_v39 = vld [vmem:[#allocation2 + $0x19] sm:$0xff]  ;;  %v13354_v43 = vsel %vm8333_vm7, 4294967295, %v13353_v43  ;;  %vm8347_vm8 = vmand %vm13056_vm4, %vm8333_vm7  ;;  %v1326_v49 = vld [vmem:[#allocation2 + $0x11] sm:$0xff]  ;;  %v1710_v50 = vsel %vm8287_vm2, %v1614_v45, 0.0  ;;  %v13358_v51 = vsel %vm8353_vm9, 4294967295, %v13357_v51  ;;  %vm8358_vm10 = vcmp.ge.s32.totalorder %v367_v46, 1 }
  0x24   : > { %v1039_v41 = vld [vmem:[#allocation2 + $0x20] sm:$0xff]  ;;  %v1423_v42 = vsel %vm13054_vm5, %v1327_v39, 0.0  ;;  %v13356_v48 = vsel %vm8347_vm8, 4294967295, %v13355_v48  ;;  %v13360_v52 = vsel %vm8358_vm10, 4294967295, %v13359_v52  ;;  %v1422_v54 = vsel %vm8347_vm8, %v1326_v49, 0.0  ;;  %vm8371_vm11 = vmand %vm13057_vm6, %vm8353_vm9  ;;  %v823_v60 = vld [vmem:[%s8265_s25 + $0x58] sm:$0xff] }
  0x25   : > { %1198 = vrot.lane.b32.xlu0 %v1133_v36, %s8124_s26  ;;  %v1135_v47 = vsel %vm13057_vm6, %v1039_v41, 0.0  ;;  %13361 = vst [vmem:[#allocation17_spill] sm:$0xff] %v13360_v52  ;;  %v8362_v53 = vld [vmem:[#allocation2 + $0x27] sm:$0xff]  ;;  %v13363_v55 = vsel %vm8371_vm11, 4294967295, %v13362_v55  ;;  %vm8383_vm12 = vmand %vm13054_vm5, %vm8358_vm10  ;;  %v973_v62 = vsel %vm13056_vm4, %v877_v58, 0.0  ;;  %v975_v3 = vsel %vm13057_vm6, %v1615_v35, 0.0 }
  0x26   : > { %13364 = vst [vmem:[#allocation18_spill] sm:$0xff] %v13363_v55  ;;  %v1328_v56 = vld [vmem:[#allocation2 + $0x21] sm:$0xff]  ;;  %v1712_v57 = vsel %vm8358_vm10, %v8362_v53, 0.0  ;;  %855 = vst.msk [vmem:[#allocation2 + $0x70] sm:$0xff] %vm13058_vm0, %v823_v60  ;;  %v974_v63 = vsel %vm8383_vm12, %v1614_v45, 0.0  ;;  %v8402_v8 = vld [vmem:[#allocation2 + $0x2f] sm:$0xff] }
  0x27   : > { %1200 = vrot.lane.b32.xlu1 %v1134_v40, %s8124_s26  ;;  %v1424_v61 = vsel %vm8371_vm11, %v1328_v56, 0.0  ;;  %1005 = vst.msk [vmem:[#allocation6 + $0x8] sm:$0xff] %vm13058_vm0, %v973_v62  ;;  %1006 = vst.msk [vmem:[#allocation6 + $0x10] sm:$0xff] %vm13058_vm0, %v974_v63  ;;  %v8405_v9 = vld [vmem:[#allocation2 + $0x28] sm:$0xff]  ;;  %v8412_v10 = vld [vmem:[#allocation2 + $0x30] sm:$0xff]  ;;  %v8417_v11 = vadd.s32 32, %v8247_v2 }
  0x28   : > { %1007 = vst.msk [vmem:[#allocation6 + $0x18] sm:$0xff] %vm13058_vm0, %v975_v3  ;;  %v824_v12 = vld [vmem:[%s8265_s25 + $0x60] sm:$0xff]  ;;  %v8420_v13 = vld [vmem:[#allocation2 + $0x29] sm:$0xff]  ;;  %v8423_v14 = vadd.s32 48, %v8247_v2  ;;  %v2193_v15 = vsel %vm8333_vm7, %v1328_v56, 0.0  ;;  %v13369_v17 = vmov 0 }
  0x29   : > { %1489 = vrot.lane.b32.xlu0 %v1423_v42, %s8125_s27  ;;  %13367 = vst [vmem:[#allocation19_spill] sm:$0xff] %v8417_v11  ;;  %856 = vst.msk [vmem:[#allocation2 + $0x78] sm:$0xff] %vm13058_vm0, %v824_v12  ;;  %v13370_v17 = vsel %vm8434_vm14, 4294967295, %v13369_v17  ;;  %vm13059_vm15 = vcmp.le.s32.totalorder %v8284_v20, 14  ;;  %v8441_v18 = vld [vmem:[#allocation2 + $0x31] sm:$0xff]  ;;  %v8444_v19 = vadd.s32 40, %v8247_v2 }
  0x2a   : > { %13368 = vst [vmem:[#allocation20_spill] sm:$0xff] %v8423_v14  ;;  %v2481_v21 = vsel %vm8434_vm14, %v8362_v53, 0.0  ;;  %vm8453_vm5 = vmand %vm13059_vm15, %vm8358_vm10  ;;  %v13372_v23 = vmov 0  ;;  %v8458_v24 = vld [vmem:[#allocation2 + $0x37] sm:$0xff]  ;;  %v401_v25 = vshra.s32 %v8417_v11, 4  ;;  %v2195_v26 = vsel %vm8353_vm9, %v8441_v18, 0.0 }
  0x2b   : > { %1202 = vrot.lane.b32.xlu1 %v1135_v47, %s8124_s26  ;;  %13371 = vst [vmem:[#allocation21_spill] sm:$0xff] %v8444_v19  ;;  %v13373_v23 = vsel %vm8453_vm5, 4294967295, %v13372_v23  ;;  %v403_v27 = vshra.s32 %v8423_v14, 4  ;;  %vm13063_vm1 = vcmp.le.s32.totalorder %v8276_v16, 14  ;;  %vm13060_vm4 = vcmp.le.s32.totalorder %v8317_v33, 14  ;;  %v825_v30 = vld [vmem:[%s8265_s25 + $0x68] sm:$0xff] }
  0x2c   : > { %13374 = vst [vmem:[#allocation22_spill] sm:$0xff] %v13373_v23  ;;  %v402_v29 = vshra.s32 %v8444_v19, 4  ;;  %v2483_v31 = vsel %vm8453_vm5, %v8458_v24, 0.0  ;;  %v8474_v32 = vadd.s32 56, %v8247_v2  ;;  %857 = vst.msk [vmem:[#allocation2 + $0x80] sm:$0xff] %vm13058_vm0, %v825_v30  ;;  %v8478_v34 = vld [vmem:[#allocation2 + $0x3f] sm:$0xff] }
  0x2d   : > { %1774 = vrot.lane.b32.xlu0 %v1710_v50, %s8126_s28  ;;  %v8480_v35 = vand.u32 15, %v401_v25  ;;  %v2482_v36 = vsel %vm13063_vm1, %v8402_v8, 0.0  ;;  %v369_v38 = vand.u32 15, %v8417_v11  ;;  %v2770_v40 = vsel %vm13064_vm13, %v8405_v9, 0.0  ;;  %v8498_v44 = vld [vmem:[#allocation2 + $0x38] sm:$0xff]  ;;  %s8130_s17 = smov 28  }
  0x2e   : > { %13375 = vst [vmem:[#allocation23_spill] sm:$0xff] %v8474_v32  ;;  %v2484_v42 = vsel %vm13060_vm4, %v8478_v34, 0.0  ;;  %v2772_v45 = vsel %vm13059_vm15, %v8498_v44, 0.0  ;;  %v8505_v46 = vld [vmem:[#allocation2 + $0x40] sm:$0xff]  ;;  %v404_v47 = vshra.s32 %v8474_v32, 4  ;;  %v13377_v49 = vmov 0 }
  0x2f   : > { %1487 = vrot.lane.b32.xlu1 %v1422_v54, %s8125_s27  ;;  %vm13062_vm6 = vcmp.ge.s32.totalorder %v8480_v35, 1  ;;  %vm8509_vm0 = vcmp.ge.s32.totalorder %v369_v38, 1  ;;  %v7966_v50 = vld [vmem:[%s13045_s1 + $0x10] ss:$0 sps:$4 sm:$0x33]   ;;  %v2771_v54 = vsel %vm13063_vm1, %v8412_v10, 0.0 }
  0x30   : > { %v13378_v49 = vsel %vm8509_vm0, 4294967295, %v13377_v49  ;;  %vm3376_vm15 = vcmask 1041408   ;;  %vm8524_vm4 = vmand %vm13062_vm6, %vm8509_vm0  ;;  %vm13382_vm10 = vcmp.le.s32.totalorder %v8317_v33, 14  ;;  %v8538_v62 = vld [vmem:[#allocation2 + $0x39] sm:$0xff]  ;;  %vm13383_vm1 = vcmask 31744   ;;  %v7967_v3 = vld [vmem:[%s13045_s1 + $0x8] sm:$0xff]  }
  0x31   : > { %1778 = vrot.lane.b32.xlu0 %v1712_v57, %s8126_s28  ;;  %13379 = vst [vmem:[#allocation25_spill] sm:$0xff] %v13378_v49  ;;  %v3059_v57 = vsel %vm13064_vm13, %v8420_v13, 0.0  ;;  %v2773_v58 = vsel %vm13382_vm10, %v8505_v46, 0.0  ;;  %7915 = vmatprep.subr.msk.bf16.mxu0 %vm3376_vm15, %v7966_v50  ;;  %v976_v60 = vsel %vm8524_vm4, %v8362_v53, 0.0  ;;  %v13384_v63 = vmov 0  ;;  %s8131_s21 = smov 32  }
  0x32   : > { %1008 = vst.msk [vmem:[#allocation6 + $0x20] sm:$0xff] %vm13383_vm1, %v976_v60  ;;  %v8551_v53 = vand.u32 15, %v404_v47  ;;  %vm13392_vm11 = vcmask 31744   ;;  %v13402_v47 = vmov 0  ;;  %v13413_v60 = vmov 0  ;;  %s8133_s24 = smov 96  }
  0x33   : > { %1491 = vrot.lane.b32.xlu1 %v1424_v61, %s8125_s27  ;;  %v3378_v61 = vsel %vm3376_vm15, %v7966_v50, 0  ;;  %vm13389_vm15 = vcmp.le.s32.totalorder %v8276_v16, 14  ;;  %vm13393_vm5 = vmmov %vm13392_vm11  ;;  %v372_v50 = vand.u32 15, %v8474_v32  ;;  %vm13433_vm14 = vcmask 31744   ;;  %v9040_v4 = vld [vmem:[#allocation2 + $0x7f] sm:$0xff] }
  0x34   : > { %7802 = vmatpush3.bf16.msra.mxu0 %v3378_v61  ;;  %vm13395_vm2 = vmmov %vm13393_vm5  ;;  %v1714_v61 = vsel %vm8509_vm0, %v8458_v24, 0.0 }
  0x35   : > { %1967 = vrot.lane.b32.xlu0 %v1038_v37, %s8127_s29  ;;  %v8485_v37 = vand.u32 15, %v403_v27  ;;  %7803 = vmatprep.subr.bf16.mxu0 %v7967_v3  ;;  %v7968_v27 = vld [vmem:[%s13045_s1] sm:$0xff]   ;;  %vm8644_vm8 = vcmp.le.s32.totalorder %v372_v50, 14  ;;  %v8745_v50 = vadd.s32 72, %v8247_v2 }
  0x37   : > { %1780 = vrot.lane.b32.xlu1 %v8402_v8, %s8126_s28  ;;  %vm13065_vm6 = vcmp.ge.s32.totalorder %v8485_v37, 1 }
  0x38   : > { %7804 = vmatpush3.bf16.msra.mxu0 %v7967_v3  ;;  %v8664_v3 = vld [vmem:[#allocation2 + $0x47] sm:$0xff] }
  0x39   : > { %1971 = vrot.lane.b32.xlu0 %v8405_v9, %s8127_s29  ;;  %7805 = vmatprep.subr.bf16.mxu0 %v7968_v27 }
  0x3b   : > { %1969 = vrot.lane.b32.xlu1 %v1039_v41, %s8127_s29  ;;  %v8493_v41 = vand.u32 15, %v402_v29 }
  0x3c   : > { %7806 = vmatpush3.bf16.msra.mxu0 %v7968_v27  ;;  %v8715_v27 = vld [vmem:[#allocation2 + $0x51] sm:$0xff] }
  0x3d   : > { %2256 = vrot.lane.b32.xlu0 %v1327_v39, %s8128_s14  ;;  %v371_v39 = vand.u32 15, %v8423_v14  ;;  %13376 = vst [vmem:[#allocation24_spill] sm:$0xff] %v8493_v41  ;;  %vm13068_vm10 = vcmp.ge.s32.totalorder %v8493_v41, 1  ;;  %v830_v14 = vld [vmem:[%s8265_s25 + $0x90] sm:$0xff] }
  0x3f   : > { %1973 = vrot.lane.b32.xlu1 %v8412_v10, %s8127_s29  ;;  %vm8542_vm13 = vcmp.ge.s32.totalorder %v371_v39, 1 }
  0x40   : > { %v13385_v63 = vsel %vm8542_vm13, 4294967295, %v13384_v63  ;;  %vm8557_vm1 = vmand %vm13065_vm6, %vm8542_vm13 }
  0x41   : > { %2260 = vrot.lane.b32.xlu0 %v8420_v13, %s8128_s14  ;;  %13386 = vst [vmem:[#allocation26_spill] sm:$0xff] %v13385_v63  ;;  %vm8572_vm6 = vmand %vm13389_vm15, %vm8333_vm7  ;;  %vm13070_vm15 = vcmp.ge.s32.totalorder %v8551_v53, 1  ;;  %v9097_v63 = vld [vmem:[#allocation2 + $0x79] sm:$0xff] }
  0x42   : > { %v3060_v29 = vsel %vm8572_vm6, %v8441_v18, 0.0 }
  0x43   : > { %2258 = vrot.lane.b32.xlu1 %v2193_v15, %s8128_s14  ;;  %v978_v15 = vsel %vm8557_vm1, %v8458_v24, 0.0  ;;  %v8679_v24 = vld [vmem:[#allocation2 + $0x4f] sm:$0xff] }
  0x44   : > { %1010 = vst.msk [vmem:[#allocation6 + $0x30] sm:$0xff] %vm13392_vm11, %v978_v15  ;;  %v1716_v15 = vsel %vm8542_vm13, %v8664_v3, 0.0 }
  0x45   : > { %2545 = vrot.lane.b32.xlu0 %v2481_v21, %s8129_s16  ;;  %v977_v21 = vsel %vm13068_vm10, %v8402_v8, 0.0  ;;  %vm13394_vm10 = vcmp.le.s32.totalorder %v8284_v20, 14 }
  0x46   : > { %1009 = vst.msk [vmem:[#allocation6 + $0x28] sm:$0xff] %vm13393_vm5, %v977_v21  ;;  %v3061_v8 = vsel %vm13394_vm10, %v8538_v62, 0.0  ;;  %vm13396_vm5 = vcmp.le.s32.totalorder %v8317_v33, 14  ;;  %vm13399_vm10 = vcmp.ge.s32.totalorder %v8480_v35, 1  ;;  %v827_v21 = vld [vmem:[%s8265_s25 + $0x78] sm:$0xff] }
  0x47   : > { %2262 = vrot.lane.b32.xlu1 %v2195_v26, %s8128_s14  ;;  %v826_v26 = vld [vmem:[%s8265_s25 + $0x70] sm:$0xff]  ;;  %vm8595_vm11 = vmand %vm13396_vm5, %vm8353_vm9  ;;  %v1136_v38 = vsel %vm13399_vm10, %v8405_v9, 0.0  ;;  %vm13400_vm5 = vcmp.ge.s32.totalorder %v8485_v37, 1  ;;  %v1425_v9 = vsel %vm13399_vm10, %v8420_v13, 0.0  ;;  %vm13409_vm9 = vcmp.ge.s32.totalorder %v8485_v37, 1 }
  0x48   : > { %858 = vst.msk [vmem:[#allocation2 + $0x88] sm:$0xff] %vm13395_vm2, %v826_v26  ;;  %v1427_v13 = vsel %vm13409_vm9, %v8538_v62, 0.0  ;;  %vm13416_vm9 = vcmask 31744   ;;  %v8683_v26 = vld [vmem:[#allocation2 + $0x48] sm:$0xff] }
  0x49   : > { %2549 = vrot.lane.b32.xlu0 %v2483_v31, %s8129_s16  ;;  %v979_v31 = vsel %vm13070_vm15, %v8478_v34, 0.0  ;;  %859 = vst.msk [vmem:[#allocation2 + $0x90] sm:$0xff] %vm13416_vm9, %v827_v21 }
  0x4a   : > { %1011 = vst.msk [vmem:[#allocation6 + $0x38] sm:$0xff] %vm13395_vm2, %v979_v31  ;;  %vm13401_vm2 = vcmp.ge.s32.totalorder %v8493_v41, 1  ;;  %v341_v31 = vadd.s32 64, %v8247_v2 }
  0x4b   : > { %2547 = vrot.lane.b32.xlu1 %v2482_v36, %s8129_s16  ;;  %v2966_v36 = vld [vmem:[#allocation2 + $0x41] sm:$0xff] }
  0x4c   : > { %v3062_v39 = vsel %vm8595_vm11, %v2966_v36, 0.0  ;;  %v373_v21 = vand.u32 15, %v341_v31 }
  0x4d   : > { %2834 = vrot.lane.b32.xlu0 %v2770_v40, %s8130_s17  ;;  %v1138_v40 = vsel %vm13400_vm5, %v8498_v44, 0.0  ;;  %vm13405_vm5 = vcmp.ge.s32.totalorder %v8551_v53, 1 }
  0x4f   : > { %2551 = vrot.lane.b32.xlu1 %v2484_v42, %s8129_s16  ;;  %v370_v42 = vand.u32 15, %v8444_v19 }
  0x51   : > { %2838 = vrot.lane.b32.xlu0 %v2772_v45, %s8130_s17  ;;  %v1137_v45 = vsel %vm13401_vm2, %v8412_v10, 0.0  ;;  %vm8623_vm15 = vcmp.le.s32.totalorder %v370_v42, 14  ;;  %v13406_v10 = vmov 0 }
  0x52   : > { %v13403_v47 = vsel %vm8623_vm15, 4294967295, %v13402_v47  ;;  %vm8637_vm10 = vmand %vm13401_vm2, %vm8623_vm15 }
  0x53   : > { %2836 = vrot.lane.b32.xlu1 %v2771_v54, %s8130_s17  ;;  %13404 = vst [vmem:[#allocation27_spill] sm:$0xff] %v13403_v47  ;;  %v1139_v54 = vsel %vm13405_vm5, %v8505_v46, 0.0  ;;  %v13407_v10 = vsel %vm8637_vm10, 4294967295, %v13406_v10  ;;  %vm8657_vm2 = vmand %vm13405_vm5, %vm8644_vm8  ;;  %vm13075_vm5 = vcmp.le.s32.totalorder %v8480_v35, 14 }
  0x54   : > { %13408 = vst [vmem:[#allocation28_spill] sm:$0xff] %v13407_v10  ;;  %v13414_v60 = vsel %vm8657_vm2, 4294967295, %v13413_v60 }
  0x55   : > { %3123 = vrot.lane.b32.xlu0 %v3059_v57, %s8131_s21  ;;  %v13410_v57 = vmov 0  ;;  %13415 = vst [vmem:[#allocation30_spill] sm:$0xff] %v13414_v60  ;;  %v13503_v60 = vmov 0 }
  0x56   : > { %v13411_v57 = vsel %vm8644_vm8, 4294967295, %v13410_v57 }
  0x57   : > { %2840 = vrot.lane.b32.xlu1 %v2773_v58, %s8130_s17  ;;  %13412 = vst [vmem:[#allocation29_spill] sm:$0xff] %v13411_v57  ;;  %v1426_v58 = vsel %vm8637_vm10, %v8441_v18, 0.0  ;;  %v1428_v18 = vsel %vm8657_vm2, %v2966_v36, 0.0  ;;  %vm8706_vm2 = vmand %vm13075_vm5, %vm8509_vm0  ;;  %vm13076_vm10 = vcmp.le.s32.totalorder %v8485_v37, 14  ;;  %vm13079_vm5 = vcmp.le.s32.totalorder %v8493_v41, 14 }
  0x58   : > { %vm8776_vm0 = vcmp.ge.s32.totalorder %v373_v21, 1  ;;  %v8800_v21 = vld [vmem:[#allocation2 + $0x60] sm:$0xff] }
  0x59   : > { %3127 = vrot.lane.b32.xlu0 %v3061_v8, %s8131_s21  ;;  %v8691_v8 = vld [vmem:[#allocation2 + $0x50] sm:$0xff] }
  0x5b   : > { %3125 = vrot.lane.b32.xlu1 %v3060_v29, %s8131_s21  ;;  %v2485_v29 = vsel %vm8706_vm2, %v8664_v3, 0.0 }
  0x5d   : > { %1204 = vrot.lane.b32.xlu0 %v1136_v38, %s8124_s26  ;;  %v8730_v38 = vld [vmem:[#allocation2 + $0x57] sm:$0xff] }
  0x5f   : > { %3129 = vrot.lane.b32.xlu1 %v3062_v39, %s8131_s21  ;;  %v2199_v39 = vsel %vm8644_vm8, %v8715_v27, 0.0 }
  0x61   : > { %1208 = vrot.lane.b32.xlu0 %v1138_v40, %s8124_s26  ;;  %v829_v40 = vld [vmem:[%s8265_s25 + $0x88] sm:$0xff] }
  0x63   : > { %1206 = vrot.lane.b32.xlu1 %v1137_v45, %s8124_s26  ;;  %v405_v45 = vshra.s32 %v341_v31, 4 }
  0x65   : > { %1493 = vrot.lane.b32.xlu0 %v1425_v9, %s8125_s27  ;;  %v343_v9 = vadd.s32 80, %v8247_v2 }
  0x67   : > { %1210 = vrot.lane.b32.xlu1 %v1139_v54, %s8124_s26  ;;  %v2486_v54 = vsel %vm13079_vm5, %v8679_v24, 0.0 }
  0x69   : > { %1497 = vrot.lane.b32.xlu0 %v1427_v13, %s8125_s27  ;;  %v8752_v13 = vld [vmem:[#allocation2 + $0x5f] sm:$0xff] }
  0x6b   : > { %1495 = vrot.lane.b32.xlu1 %v1426_v58, %s8125_s27 }
  0x6d   : > { %1782 = vrot.lane.b32.xlu0 %v1714_v61, %s8126_s28  ;;  %v8757_v61 = vld [vmem:[#allocation2 + $0x58] sm:$0xff] }
  0x6f   : > { %1499 = vrot.lane.b32.xlu1 %v1428_v18, %s8125_s27  ;;  %v8759_v18 = vand.u32 15, %v405_v45 }
  0x71   : > { %1786 = vrot.lane.b32.xlu0 %v1716_v15, %s8126_s28  ;;  %v407_v15 = vshra.s32 %v343_v9, 4  ;;  %vm13085_vm5 = vcmp.ge.s32.totalorder %v8759_v18, 1 }
  0x73   : > { %1784 = vrot.lane.b32.xlu1 %v8478_v34, %s8126_s28  ;;  %v828_v34 = vld [vmem:[%s8265_s25 + $0x80] sm:$0xff]  ;;  %v8774_v31 = vand.u32 15, %v407_v15 }
  0x74   : > { %860 = vst.msk [vmem:[#allocation2 + $0x98] sm:$0xff] %vm13416_vm9, %v828_v34  ;;  %vm8726_vm9 = vmand %vm13076_vm10, %vm8542_vm13  ;;  %vm13423_vm10 = vcmask 31744   ;;  %vm13082_vm13 = vcmp.le.s32.totalorder %v8551_v53, 14  ;;  %v406_v34 = vshra.s32 %v8745_v50, 4 }
  0x75   : > { %1975 = vrot.lane.b32.xlu0 %v8498_v44, %s8127_s29  ;;  %v8697_v44 = vld [vmem:[#allocation2 + $0x49] sm:$0xff]  ;;  %v2487_v42 = vsel %vm8726_vm9, %v8730_v38, 0.0  ;;  %861 = vst.msk [vmem:[#allocation2 + $0xa0] sm:$0xff] %vm13423_vm10, %v829_v40  ;;  %vm13086_vm10 = vcmask 64544   ;;  %13426 = vst [vmem:[#allocation33_spill] sm:$0xff] %v8774_v31  ;;  %v13427_v40 = vmov 0 }
  0x76   : > { %v13428_v40 = vsel %vm8776_vm0, 4294967295, %v13427_v40 }
  0x77   : > { %1788 = vrot.lane.b32.xlu1 %v8679_v24, %s8126_s28  ;;  %13429 = vst [vmem:[#allocation34_spill] sm:$0xff] %v13428_v40 }
  0x79   : > { %1979 = vrot.lane.b32.xlu0 %v8683_v26, %s8127_s29 }
  0x7b   : > { %1977 = vrot.lane.b32.xlu1 %v8505_v46, %s8127_s29  ;;  %v13417_v46 = vmov 0 }
  0x7c   : > { %v13418_v46 = vsel %vm8706_vm2, 4294967295, %v13417_v46  ;;  %vm13091_vm2 = vcmask 97344  }
  0x7d   : > { %2264 = vrot.lane.b32.xlu0 %v8538_v62, %s8128_s14  ;;  %13419 = vst [vmem:[#allocation31_spill] sm:$0xff] %v13418_v46  ;;  %v2197_v62 = vsel %vm8623_vm15, %v2966_v36, 0.0  ;;  %v13420_v36 = vmov 0 }
  0x7e   : > { %v13421_v36 = vsel %vm8726_vm9, 4294967295, %v13420_v36  ;;  %vm13424_vm9 = vcmp.le.s32.totalorder %v8480_v35, 14 }
  0x7f   : > { %1981 = vrot.lane.b32.xlu1 %v8691_v8, %s8127_s29  ;;  %13422 = vst [vmem:[#allocation32_spill] sm:$0xff] %v13421_v36  ;;  %v2774_v58 = vsel %vm13424_vm9, %v8683_v26, 0.0  ;;  %vm13425_vm9 = vcmp.le.s32.totalorder %v8485_v37, 14 }
  0x81   : > { %2268 = vrot.lane.b32.xlu0 %v8697_v44, %s8128_s14 }
  0x83   : > { %2266 = vrot.lane.b32.xlu1 %v2197_v62, %s8128_s14  ;;  %v8764_v62 = vadd.s32 88, %v8247_v2 }
  0x85   : > { %2553 = vrot.lane.b32.xlu0 %v2485_v29, %s8129_s16  ;;  %v2488_v29 = vsel %vm13082_vm13, %v8752_v13, 0.0  ;;  %vm13432_vm13 = vcmp.le.s32.totalorder %v8493_v41, 14 }
  0x87   : > { %2270 = vrot.lane.b32.xlu1 %v2199_v39, %s8128_s14  ;;  %v2776_v39 = vsel %vm13425_vm9, %v8757_v61, 0.0  ;;  %vm8788_vm9 = vmand %vm13085_vm5, %vm8776_vm0  ;;  %vm13434_vm5 = vcmp.le.s32.totalorder %v8480_v35, 14 }
  0x88   : > { %v13431_v0 = vsel %vm8788_vm9, 4294967295, %v13430_v0  ;;  %v980_v15 = vsel %vm8788_vm9, %v8664_v3, 0.0 }
  0x89   : > { %2557 = vrot.lane.b32.xlu0 %v2487_v42, %s8129_s16  ;;  %v375_v42 = vand.u32 15, %v343_v9  ;;  %v2775_v9 = vsel %vm13432_vm13, %v8691_v8, 0.0  ;;  %1012 = vst.msk [vmem:[#allocation6 + $0x40] sm:$0xff] %vm13433_vm14, %v980_v15  ;;  %v13438_v15 = vmov 0 }
  0x8b   : > { %2555 = vrot.lane.b32.xlu1 %v2486_v54, %s8129_s16  ;;  %v8781_v54 = vand.u32 15, %v406_v34  ;;  %v3063_v34 = vsel %vm13434_vm5, %v8697_v44, 0.0  ;;  %vm8807_vm7 = vcmp.ge.s32.totalorder %v375_v42, 1  ;;  %vm13440_vm5 = vcmp.le.s32.totalorder %v8551_v53, 14 }
  0x8c   : > { %v2777_v42 = vsel %vm13440_vm5, %v8800_v21, 0.0  ;;  %vm13444_vm5 = vcmask 31744  }
  0x8d   : > { %2842 = vrot.lane.b32.xlu0 %v2774_v58, %s8130_s17  ;;  %v408_v58 = vshra.s32 %v8764_v62, 4  ;;  %vm13096_vm13 = vcmp.ge.s32.totalorder %v8781_v54, 1  ;;  %vm13445_vm3 = vmmov %vm13444_vm5 }
  0x8f   : > { %2559 = vrot.lane.b32.xlu1 %v2488_v29, %s8129_s16  ;;  %v1197_v45 = vpop.permute.xlu0 %1196  ;;  %v13435_v29 = vmov 0 }
  0x90   : > { %1293 = vst.msk [vmem:[#allocation6] sm:$0xff] %vm13086_vm10, %v1197_v45  ;;  %vm13090_vm10 = vcmp.ge.s32.totalorder %v8774_v31, 1  ;;  %v13436_v29 = vsel %vm8807_vm7, 4294967295, %v13435_v29  ;;  %v8815_v45 = vand.u32 15, %v408_v58  ;;  %v981_v58 = vsel %vm13096_vm13, %v8679_v24, 0.0  ;;  %vm13447_vm13 = vmmov %vm13445_vm3 }
  0x91   : > { %2846 = vrot.lane.b32.xlu0 %v2776_v39, %s8130_s17  ;;  %13437 = vst [vmem:[#allocation35_spill] sm:$0xff] %v13436_v29  ;;  %v8812_v39 = vld [vmem:[#allocation2 + $0x59] sm:$0xff]  ;;  %vm8821_vm14 = vmand %vm13090_vm10, %vm8807_vm7  ;;  %vm13441_vm10 = vcmp.le.s32.totalorder %v8493_v41, 14 }
  0x92   : > { %v13439_v15 = vsel %vm8821_vm14, 4294967295, %v13438_v15  ;;  %1013 = vst.msk [vmem:[#allocation6 + $0x48] sm:$0xff] %vm13445_vm3, %v981_v58  ;;  %vm13100_vm9 = vcmp.ge.s32.totalorder %v8815_v45, 1  ;;  %vm13449_vm3 = vcmp.le.s32.totalorder %v8551_v53, 14 }
  0x93   : > { %2844 = vrot.lane.b32.xlu1 %v2775_v9, %s8130_s17  ;;  %v1486_v3 = vpop.permute.xlu0 %1485  ;;  %v982_v9 = vsel %vm8821_vm14, %v8730_v38, 0.0  ;;  %vm13446_vm14 = vcmp.le.s32.totalorder %v8485_v37, 14  ;;  %862 = vst.msk [vmem:[#allocation2 + $0xa8] sm:$0xff] %vm13447_vm13, %v830_v14  ;;  %v983_v58 = vsel %vm13100_vm9, %v8752_v13, 0.0  ;;  %vm8865_vm13 = vmand %vm13449_vm3, %vm8644_vm8  ;;  %v13450_v14 = vmov 0 }
  0x94   : > { %1582 = vst.msk [vmem:[#allocation6] sm:$0xff] %vm13091_vm2, %v1486_v3  ;;  %vm8840_vm2 = vmand %vm13441_vm10, %vm8623_vm15  ;;  %v13442_v3 = vmov 0  ;;  %v3065_v24 = vsel %vm13446_vm14, %v8812_v39, 0.0  ;;  %vm13448_vm10 = vcmask 64544   ;;  %v13451_v14 = vsel %vm8865_vm13, 4294967295, %v13450_v14 }
  0x95   : > { %v1777_v1 = vpop.permute.xlu1 %1776  ;;  %3131 = vrot.lane.b32.xlu0 %v3063_v34, %s8131_s21  ;;  %v13443_v3 = vsel %vm8840_vm2, 4294967295, %v13442_v3  ;;  %1014 = vst.msk [vmem:[#allocation6 + $0x50] sm:$0xff] %vm13444_vm5, %v982_v9  ;;  %v3064_v9 = vsel %vm8840_vm2, %v8715_v27, 0.0  ;;  %vm13452_vm14 = vmmov %vm13444_vm5  ;;  %vm13455_vm9 = vcmask 97344   ;;  %vm13469_vm15 = vcmask 97344  }
  0x96   : > { %1015 = vst.msk [vmem:[#allocation6 + $0x58] sm:$0xff] %vm13452_vm14, %v983_v58  ;;  %vm13453_vm5 = vmmov %vm13448_vm10  ;;  %vm13457_vm14 = vcmp.ge.s32.totalorder %v8774_v31, 1 }
  0x97   : > { %2848 = vrot.lane.b32.xlu1 %v2777_v42, %s8130_s17  ;;  %v1199_v34 = vpop.permute.xlu0 %1198  ;;  %v8869_v42 = vld [vmem:[#allocation2 + $0x61] sm:$0xff]  ;;  %vm13456_vm3 = vmmov %vm13453_vm5 }
  0x98   : > { %1294 = vst.msk [vmem:[#allocation6 + $0x8] sm:$0xff] %vm13448_vm10, %v1199_v34  ;;  %vm13454_vm10 = vcmp.ge.s32.totalorder %v8759_v18, 1  ;;  %v3066_v19 = vsel %vm8865_vm13, %v8869_v42, 0.0 }
  0x99   : > { %v1201_v32 = vpop.permute.xlu1 %1200  ;;  %3135 = vrot.lane.b32.xlu0 %v3065_v24, %s8131_s21  ;;  %v1140_v34 = vsel %vm13454_vm10, %v8683_v26, 0.0  ;;  %v374_v26 = vand.u32 15, %v8745_v50  ;;  %vm13459_vm10 = vcmask 97344   ;;  %v13461_v50 = vmov 0 }
  0x9a   : > { %1295 = vst.msk [vmem:[#allocation6 + $0x10] sm:$0xff] %vm13453_vm5, %v1201_v32  ;;  %v1142_v32 = vsel %vm13457_vm14, %v8757_v61, 0.0  ;;  %vm13107_vm5 = vcmask 130144  }
  0x9b   : > { %3133 = vrot.lane.b32.xlu1 %v3064_v9, %s8131_s21  ;;  %v1490_v24 = vpop.permute.xlu0 %1489  ;;  %vm8897_vm14 = vcmp.le.s32.totalorder %v374_v26, 14 }
  0x9c   : > { %1584 = vst.msk [vmem:[#allocation6 + $0x10] sm:$0xff] %vm13455_vm9, %v1490_v24  ;;  %vm13458_vm9 = vcmp.ge.s32.totalorder %v8781_v54, 1  ;;  %v13462_v50 = vsel %vm8897_vm14, 4294967295, %v13461_v50 }
  0x9d   : > { %v1203_v11 = vpop.permute.xlu1 %1202  ;;  %1212 = vrot.lane.b32.xlu0 %v1140_v34, %s8124_s26  ;;  %v1141_v58 = vsel %vm13458_vm9, %v8691_v8, 0.0  ;;  %13463 = vst [vmem:[#allocation36_spill] sm:$0xff] %v13462_v50  ;;  %vm13464_vm9 = vcmp.ge.s32.totalorder %v8815_v45, 1 }
  0x9e   : > { %1296 = vst.msk [vmem:[#allocation6 + $0x18] sm:$0xff] %vm13456_vm3, %v1203_v11  ;;  %vm13460_vm3 = vcmp.ge.s32.totalorder %v8759_v18, 1  ;;  %v1143_v34 = vsel %vm13464_vm9, %v8800_v21, 0.0 }
  0x9f   : > { %3137 = vrot.lane.b32.xlu1 %v3066_v19, %s8131_s21  ;;  %v1775_v9 = vpop.permute.xlu0 %1774  ;;  %v1429_v11 = vsel %vm13460_vm3, %v8697_v44, 0.0  ;;  %v376_v19 = vand.u32 15, %v8764_v62  ;;  %vm13465_vm3 = vcmp.ge.s32.totalorder %v8781_v54, 1  ;;  %v13466_v44 = vmov 0 }
  0xa0   : > { %1871 = vst.msk [vmem:[#allocation6] sm:$0xff] %vm13107_vm5, %v1775_v9  ;;  %vm8913_vm8 = vmand %vm13465_vm3, %vm8897_vm14  ;;  %v13471_v62 = vmov 0  ;;  %vm13110_vm3 = vcmask 195744  }
  0xa1   : > { %v1488_v24 = vpop.permute.xlu1 %1487  ;;  %1216 = vrot.lane.b32.xlu0 %v1142_v32, %s8124_s26  ;;  %v13467_v44 = vsel %vm8913_vm8, 4294967295, %v13466_v44  ;;  %vm8921_vm13 = vcmp.le.s32.totalorder %v376_v19, 14  ;;  %v1430_v9 = vsel %vm8913_vm8, %v8715_v27, 0.0  ;;  %v1624_v19 = vld [vmem:[#allocation2 + $0x67] sm:$0xff]  ;;  %vm13502_vm8 = vcmp.le.s32.totalorder %v8759_v18, 14 }
  0xa2   : > { %1583 = vst.msk [vmem:[#allocation6 + $0x8] sm:$0xff] %vm13459_vm10, %v1488_v24  ;;  %vm13109_vm10 = vcmask 162944   ;;  %13468 = vst [vmem:[#allocation37_spill] sm:$0xff] %v13467_v44  ;;  %v13472_v62 = vsel %vm8921_vm13, 4294967295, %v13471_v62  ;;  %v13475_v24 = vmov 0 }
  0xa3   : > { %1872 = vst.msk [vmem:[#allocation6 + $0x8] sm:$0xff] %vm13107_vm5, %v1777_v1  ;;  %1214 = vrot.lane.b32.xlu1 %v1141_v58, %s8124_s26  ;;  %v1779_v8 = vpop.permute.xlu0 %1778  ;;  %13473 = vst [vmem:[#allocation38_spill] sm:$0xff] %v13472_v62 }
  0xa4   : > { %1873 = vst.msk [vmem:[#allocation6 + $0x10] sm:$0xff] %vm13107_vm5, %v1779_v8  ;;  %vm13470_vm5 = vcmp.ge.s32.totalorder %v8774_v31, 1 }
  0xa5   : > { %v1492_v32 = vpop.permute.xlu1 %1491  ;;  %1501 = vrot.lane.b32.xlu0 %v1429_v11, %s8125_s27  ;;  %v1431_v1 = vsel %vm13470_vm5, %v8812_v39, 0.0  ;;  %v1718_v11 = vsel %vm8776_vm0, %v8730_v38, 0.0  ;;  %v831_v38 = vld [vmem:[%s8265_s25 + $0x98] sm:$0xff] }
  0xa6   : > { %1585 = vst.msk [vmem:[#allocation6 + $0x18] sm:$0xff] %vm13469_vm15, %v1492_v32  ;;  %vm13474_vm15 = vmmov %vm13464_vm9  ;;  %vm13478_vm9 = vcmask 130144   ;;  %v1720_v32 = vsel %vm8807_vm7, %v1624_v19, 0.0 }
  0xa7   : > { %1218 = vrot.lane.b32.xlu1 %v1143_v34, %s8124_s26  ;;  %v1968_v26 = vpop.permute.xlu0 %1967  ;;  %vm8935_vm5 = vmand %vm13474_vm15, %vm8921_vm13  ;;  %vm13479_vm15 = vcmask 31744  }
  0xa8   : > { %2064 = vst.msk [vmem:[#allocation6] sm:$0xff] %vm13109_vm10, %v1968_v26  ;;  %v13476_v24 = vsel %vm8935_vm5, 4294967295, %v13475_v24  ;;  %v1432_v8 = vsel %vm8935_vm5, %v8869_v42, 0.0 }
  0xa9   : > { %v1781_v58 = vpop.permute.xlu1 %1780  ;;  %1505 = vrot.lane.b32.xlu0 %v1431_v1, %s8125_s27  ;;  %13477 = vst [vmem:[#allocation39_spill] sm:$0xff] %v13476_v24  ;;  %863 = vst.msk [vmem:[#allocation2 + $0xb0] sm:$0xff] %vm13479_vm15, %v831_v38  ;;  %vm13112_vm15 = vcmp.le.s32.totalorder %v8759_v18, 14  ;;  %v832_v38 = vld [vmem:[%s8265_s25 + $0xa0] sm:$0xff] }
  0xaa   : > { %1874 = vst.msk [vmem:[#allocation6 + $0x18] sm:$0xff] %vm13478_vm9, %v1781_v58  ;;  %v1625_v58 = vld [vmem:[#allocation2 + $0x6f] sm:$0xff]  ;;  %vm13113_vm9 = vcmask 228544   ;;  %vm8990_vm5 = vmand %vm13112_vm15, %vm8776_vm0  ;;  %vm13128_vm0 = vcmp.le.s32.totalorder %v8781_v54, 14 }
  0xab   : > { %1503 = vrot.lane.b32.xlu1 %v1430_v9, %s8125_s27  ;;  %v1972_v27 = vpop.permute.xlu0 %1971 }
  0xac   : > { %2066 = vst.msk [vmem:[#allocation6 + $0x10] sm:$0xff] %vm13109_vm10, %v1972_v27  ;;  %v8964_v27 = vld [vmem:[#allocation2 + $0x68] sm:$0xff] }
  0xad   : > { %v1970_v34 = vpop.permute.xlu1 %1969  ;;  %1790 = vrot.lane.b32.xlu0 %v1718_v11, %s8126_s28 }
  0xae   : > { %2065 = vst.msk [vmem:[#allocation6 + $0x8] sm:$0xff] %vm13109_vm10, %v1970_v34  ;;  %v8974_v34 = vld [vmem:[#allocation2 + $0x70] sm:$0xff] }
  0xaf   : > { %1507 = vrot.lane.b32.xlu1 %v1432_v8, %s8125_s27  ;;  %v2257_v1 = vpop.permute.xlu0 %2256 }
  0xb0   : > { %2353 = vst.msk [vmem:[#allocation6] sm:$0xff] %vm13110_vm3, %v2257_v1  ;;  %v8981_v1 = vld [vmem:[#allocation2 + $0x69] sm:$0xff] }
  0xb1   : > { %v1974_v26 = vpop.permute.xlu1 %1973  ;;  %1794 = vrot.lane.b32.xlu0 %v1720_v32, %s8126_s28 }
  0xb2   : > { %2067 = vst.msk [vmem:[#allocation6 + $0x18] sm:$0xff] %vm13109_vm10, %v1974_v26  ;;  %vm13120_vm10 = vcmask 261344   ;;  %v13481_v26 = vmov 0 }
  0xb3   : > { %1792 = vrot.lane.b32.xlu1 %v8752_v13, %s8126_s28  ;;  %v2261_v9 = vpop.permute.xlu0 %2260  ;;  %v13482_v26 = vsel %vm8990_vm5, 4294967295, %v13481_v26 }
  0xb4   : > { %2355 = vst.msk [vmem:[#allocation6 + $0x10] sm:$0xff] %vm13110_vm3, %v2261_v9  ;;  %13483 = vst [vmem:[#allocation40_spill] sm:$0xff] %v13482_v26 }
  0xb5   : > { %v2259_v11 = vpop.permute.xlu1 %2258  ;;  %1983 = vrot.lane.b32.xlu0 %v8757_v61, %s8127_s29 }
  0xb6   : > { %2354 = vst.msk [vmem:[#allocation6 + $0x8] sm:$0xff] %vm13110_vm3, %v2259_v11  ;;  %v9001_v11 = vld [vmem:[#allocation2 + $0x71] sm:$0xff] }
  0xb7   : > { %1796 = vrot.lane.b32.xlu1 %v1625_v58, %s8126_s28  ;;  %v2546_v8 = vpop.permute.xlu0 %2545 }
  0xb8   : > { %2642 = vst.msk [vmem:[#allocation6] sm:$0xff] %vm13113_vm9, %v2546_v8  ;;  %v2489_v8 = vsel %vm8990_vm5, %v1624_v19, 0.0  ;;  %v2203_v19 = vsel %vm8921_vm13, %v9001_v11, 0.0  ;;  %vm13511_vm5 = vcmp.le.s32.totalorder %v8815_v45, 14 }
  0xb9   : > { %v2263_v13 = vpop.permute.xlu1 %2262  ;;  %1987 = vrot.lane.b32.xlu0 %v8964_v27, %s8127_s29 }
  0xba   : > { %2356 = vst.msk [vmem:[#allocation6 + $0x18] sm:$0xff] %vm13110_vm3, %v2263_v13  ;;  %vm13480_vm3 = vcmask 31744   ;;  %v345_v13 = vadd.s32 96, %v8247_v2 }
  0xbb   : > { %1985 = vrot.lane.b32.xlu1 %v8800_v21, %s8127_s29  ;;  %v2550_v61 = vpop.permute.xlu0 %2549  ;;  %864 = vst.msk [vmem:[#allocation2 + $0xb8] sm:$0xff] %vm13480_vm3, %v832_v38  ;;  %vm13115_vm3 = vcmp.le.s32.totalorder %v8774_v31, 14 }
  0xbc   : > { %2644 = vst.msk [vmem:[#allocation6 + $0x10] sm:$0xff] %vm13113_vm9, %v2550_v61  ;;  %vm9012_vm15 = vmand %vm13115_vm3, %vm8807_vm7  ;;  %vm13487_vm3 = vcmask 31744   ;;  %vm13488_vm7 = vcmask 261344   ;;  %v377_v24 = vand.u32 15, %v345_v13 }
  0xbd   : > { %v2548_v32 = vpop.permute.xlu1 %2547  ;;  %2272 = vrot.lane.b32.xlu0 %v8812_v39, %s8128_s14  ;;  %v2201_v39 = vsel %vm8897_vm14, %v8869_v42, 0.0  ;;  %v13484_v42 = vmov 0 }
  0xbe   : > { %2643 = vst.msk [vmem:[#allocation6 + $0x8] sm:$0xff] %vm13113_vm9, %v2548_v32  ;;  %v13485_v42 = vsel %vm9012_vm15, 4294967295, %v13484_v42  ;;  %v9016_v32 = vld [vmem:[#allocation2 + $0x77] sm:$0xff] }
  0xbf   : > { %1989 = vrot.lane.b32.xlu1 %v8974_v34, %s8127_s29  ;;  %v2835_v21 = vpop.permute.xlu0 %2834  ;;  %13486 = vst [vmem:[#allocation41_spill] sm:$0xff] %v13485_v42  ;;  %v9053_v42 = vadd.s32 120, %v8247_v2 }
  0xc0   : > { %2931 = vst.msk [vmem:[#allocation6] sm:$0xff] %vm13120_vm10, %v2835_v21  ;;  %v833_v21 = vld [vmem:[%s8265_s25 + $0xa8] sm:$0xff] }
  0xc1   : > { %v2552_v9 = vpop.permute.xlu1 %2551  ;;  %2276 = vrot.lane.b32.xlu0 %v8981_v1, %s8128_s14  ;;  %865 = vst.msk [vmem:[#allocation2 + $0xc0] sm:$0xff] %vm13487_vm3, %v833_v21  ;;  %vm13489_vm3 = vcmp.le.s32.totalorder %v8759_v18, 14  ;;  %v9046_v21 = vld [vmem:[#allocation2 + $0x78] sm:$0xff] }
  0xc2   : > { %2645 = vst.msk [vmem:[#allocation6 + $0x18] sm:$0xff] %vm13113_vm9, %v2552_v9  ;;  %vm13132_vm9 = vcmask 294144   ;;  %v409_v9 = vshra.s32 %v345_v13, 4 }
  0xc3   : > { %2274 = vrot.lane.b32.xlu1 %v2201_v39, %s8128_s14  ;;  %v2839_v61 = vpop.permute.xlu0 %2838  ;;  %v2491_v39 = vsel %vm9012_vm15, %v9016_v32, 0.0  ;;  %vm13500_vm15 = vcmask 31744  }
  0xc4   : > { %2933 = vst.msk [vmem:[#allocation6 + $0x10] sm:$0xff] %vm13120_vm10, %v2839_v61  ;;  %v347_v61 = vadd.s32 112, %v8247_v2  ;;  %v9048_v29 = vand.u32 15, %v409_v9 }
  0xc5   : > { %v2837_v38 = vpop.permute.xlu1 %2836  ;;  %2561 = vrot.lane.b32.xlu0 %v2489_v8, %s8129_s16  ;;  %v9033_v8 = vadd.s32 104, %v8247_v2 }
  0xc6   : > { %2932 = vst.msk [vmem:[#allocation6 + $0x8] sm:$0xff] %vm13120_vm10, %v2837_v38  ;;  %v2490_v38 = vsel %vm13128_vm0, %v1625_v58, 0.0  ;;  %vm13131_vm10 = vcmp.le.s32.totalorder %v8815_v45, 14  ;;  %13490 = vst [vmem:[#allocation42_spill] sm:$0xff] %v9048_v29  ;;  %vm9067_vm0 = vcmp.ge.s32.totalorder %v377_v24, 1  ;;  %v888_v24 = vld [vmem:[#allocation2 + $0x67] sm:$0xff] }
  0xc7   : > { %2278 = vrot.lane.b32.xlu1 %v2203_v19, %s8128_s14  ;;  %v3124_v6 = vpop.permute.xlu0 %3123  ;;  %v2778_v19 = vsel %vm13489_vm3, %v8964_v27, 0.0  ;;  %vm13134_vm3 = vcmp.ge.s32.totalorder %v9048_v29, 1 }
  0xc8   : > { %3220 = vst.msk [vmem:[#allocation6] sm:$0xff] %vm13132_vm9, %v3124_v6  ;;  %v411_v6 = vshra.s32 %v347_v61, 4 }
  0xc9   : > { %v2841_v5 = vpop.permute.xlu1 %2840  ;;  %2565 = vrot.lane.b32.xlu0 %v2491_v39, %s8129_s16  ;;  %v410_v39 = vshra.s32 %v9033_v8, 4 }
  0xca   : > { %2934 = vst.msk [vmem:[#allocation6 + $0x18] sm:$0xff] %vm13488_vm7, %v2841_v5  ;;  %v2492_v5 = vsel %vm13131_vm10, %v9040_v4, 0.0  ;;  %vm13491_vm7 = vcmp.le.s32.totalorder %v8774_v31, 14  ;;  %v9065_v9 = vand.u32 15, %v411_v6  ;;  %vm13498_vm10 = vcmask 64544  }
  0xcb   : > { %2563 = vrot.lane.b32.xlu1 %v2490_v38, %s8129_s16  ;;  %v3128_v58 = vpop.permute.xlu0 %3127  ;;  %v2780_v13 = vsel %vm13491_vm7, %v9046_v21, 0.0  ;;  %v13493_v38 = vmov 0  ;;  %v9072_v26 = vand.u32 15, %v410_v39  ;;  %vm9079_vm7 = vmand %vm13134_vm3, %vm9067_vm0  ;;  %vm13501_vm3 = vcmask 294144  }
  0xcc   : > { %3222 = vst.msk [vmem:[#allocation6 + $0x10] sm:$0xff] %vm13132_vm9, %v3128_v58  ;;  %13492 = vst [vmem:[#allocation43_spill] sm:$0xff] %v9065_v9  ;;  %v13494_v38 = vsel %vm9067_vm0, 4294967295, %v13493_v38  ;;  %v379_v58 = vand.u32 15, %v347_v61  ;;  %v984_v6 = vsel %vm9079_vm7, %v888_v24, 0.0 }
  0xcd   : > { %v3126_v40 = vpop.permute.xlu1 %3125  ;;  %2850 = vrot.lane.b32.xlu0 %v2778_v19, %s8130_s17  ;;  %13495 = vst [vmem:[#allocation44_spill] sm:$0xff] %v13494_v38  ;;  %v412_v19 = vshra.s32 %v9053_v42, 4  ;;  %1016 = vst.msk [vmem:[#allocation6 + $0x60] sm:$0xff] %vm13500_vm15, %v984_v6  ;;  %vm13147_vm15 = vcmp.ge.s32.totalorder %v9072_v26, 1  ;;  %v9345_v38 = vadd.s32 152, %v8247_v2 }
  0xce   : > { %3221 = vst.msk [vmem:[#allocation6 + $0x8] sm:$0xff] %vm13132_vm9, %v3126_v40  ;;  %v13496_v40 = vmov 0  ;;  %vm13499_vm9 = vcmp.le.s32.totalorder %v8781_v54, 14 }
  0xcf   : > { %2567 = vrot.lane.b32.xlu1 %v2492_v5, %s8129_s16  ;;  %v1205_v44 = vpop.permute.xlu0 %1204  ;;  %v13497_v40 = vsel %vm9079_vm7, 4294967295, %v13496_v40  ;;  %v2779_v61 = vsel %vm13499_vm9, %v8974_v34, 0.0  ;;  %v9090_v5 = vld [vmem:[#allocation2 + $0x80] sm:$0xff]  ;;  %vm9100_vm9 = vcmp.ge.s32.totalorder %v379_v58, 1  ;;  %v9106_v6 = vand.u32 15, %v412_v19  ;;  %v889_v58 = vld [vmem:[#allocation2 + $0x6f] sm:$0xff] }
  0xd0   : > { %1297 = vst.msk [vmem:[#allocation6 + $0x20] sm:$0xff] %vm13498_vm10, %v1205_v44  ;;  %v3067_v44 = vsel %vm13502_vm8, %v8981_v1, 0.0  ;;  %vm13142_vm10 = vcmp.ge.s32.totalorder %v9065_v9, 1  ;;  %v13504_v60 = vsel %vm9100_vm9, 4294967295, %v13503_v60  ;;  %v3252_v24 = vld [vmem:[#allocation6] sm:$0xff]  ;;  %v985_v36 = vsel %vm13147_vm15, %v889_v58, 0.0 }
  0xd1   : > { %v3130_v39 = vpop.permute.xlu1 %3129  ;;  %2854 = vrot.lane.b32.xlu0 %v2780_v13, %s8130_s17  ;;  %13505 = vst [vmem:[#allocation45_spill] sm:$0xff] %v13504_v60  ;;  %13506 = vst [vmem:[#allocation46_spill] sm:$0xff] %v9106_v6  ;;  %vm13519_vm15 = vcmp.le.s32.totalorder %v8774_v31, 14  ;;  %v9332_v60 = vld [vmem:[#allocation2 + $0x9f] sm:$0xff] }
  0xd2   : > { %3223 = vst.msk [vmem:[#allocation6 + $0x18] sm:$0xff] %vm13501_vm3, %v3130_v39  ;;  %vm9112_vm8 = vmand %vm13142_vm10, %vm9100_vm9  ;;  %v13507_v39 = vmov 0  ;;  %vm13510_vm3 = vcmask 64544   ;;  %v9389_v31 = vld [vmem:[#allocation2 + $0x99] sm:$0xff] }
  0xd3   : > { %2852 = vrot.lane.b32.xlu1 %v2779_v61, %s8130_s17  ;;  %v1209_v13 = vpop.permute.xlu0 %1208  ;;  %v13508_v39 = vsel %vm9112_vm8, 4294967295, %v13507_v39  ;;  %v2781_v61 = vsel %vm13511_vm5, %v9090_v5, 0.0  ;;  %v986_v19 = vsel %vm9112_vm8, %v9016_v32, 0.0  ;;  %vm13516_vm5 = vcmask 31744   ;;  %v3254_v10 = vld [vmem:[#allocation6 + $0x10] sm:$0xff] }
  0xd4   : > { %13509 = vst [vmem:[#allocation47_spill] sm:$0xff] %v13508_v39  ;;  %1299 = vst.msk [vmem:[#allocation6 + $0x30] sm:$0xff] %vm13510_vm3, %v1209_v13  ;;  %vm13512_vm3 = vcmp.le.s32.totalorder %v8781_v54, 14  ;;  %v13513_v13 = vmov 0  ;;  %v834_v39 = vld [vmem:[%s8265_s25 + $0xb0] sm:$0xff]  ;;  %vm13518_vm8 = vcmask 64544  }
  0xd5   : > { %v1207_v57 = vpop.permute.xlu1 %1206  ;;  %3139 = vrot.lane.b32.xlu0 %v3067_v44, %s8131_s21  ;;  %v3253_v49 = vld [vmem:[#allocation6 + $0x8] sm:$0xff]  ;;  %vm9130_vm7 = vmand %vm13512_vm3, %vm8897_vm14  ;;  %1018 = vst.msk [vmem:[#allocation6 + $0x70] sm:$0xff] %vm13516_vm5, %v986_v19  ;;  %v3069_v44 = vsel %vm13519_vm15, %v9097_v63, 0.0  ;;  %vm13153_vm3 = vcmp.ge.s32.totalorder %v9106_v6, 1  ;;  %vm13521_vm14 = vcmask 97344  }
  0xd6   : > { %v13514_v13 = vsel %vm9130_vm7, 4294967295, %v13513_v13  ;;  %vm13517_vm2 = vmmov %vm13516_vm5  ;;  %1298 = vst.msk [vmem:[#allocation6 + $0x28] sm:$0xff] %vm13518_vm8, %v1207_v57  ;;  %v3284_v58 = vpack.c.bf16 %v3253_v49, %v3252_v24  ;;  %vm13522_vm5 = vcmask 293888   ;;  %v3068_v49 = vsel %vm9130_vm7, %v9001_v11, 0.0 }
  0xd7   : > { %13515 = vst [vmem:[#allocation48_spill] sm:$0xff] %v13514_v13  ;;  %1017 = vst.msk [vmem:[#allocation6 + $0x68] sm:$0xff] %vm13517_vm2, %v985_v36  ;;  %2856 = vrot.lane.b32.xlu1 %v2781_v61, %s8130_s17  ;;  %v1494_v50 = vpop.permute.xlu0 %1493  ;;  %v987_v57 = vsel %vm13153_vm3, %v9040_v4, 0.0 }
  0xd8   : > { %vm13520_vm10 = vmmov %vm13517_vm2  ;;  %1586 = vst.msk [vmem:[#allocation6 + $0x20] sm:$0xff] %vm13521_vm14, %v1494_v50  ;;  %7807 = vmatprep.mubr.msk.bf16.mxu0 %vm13522_vm5, %v3284_v58  ;;  %vm13523_vm2 = vcmp.le.s32.totalorder %v8815_v45, 14  ;;  %v13524_v50 = vmov 0  ;;  %vm13527_vm14 = vcmask 31744   ;;  %vm13530_vm5 = vcmask 97344  }
  0xd9   : > { %866 = vst.msk [vmem:[#allocation2 + $0xc8] sm:$0xff] %vm13520_vm10, %v834_v39  ;;  %v1211_v36 = vpop.permute.xlu1 %1210  ;;  %3143 = vrot.lane.b32.xlu0 %v3069_v44, %s8131_s21  ;;  %v3255_v24 = vld [vmem:[#allocation6 + $0x18] sm:$0xff]  ;;  %vm9157_vm10 = vmand %vm13523_vm2, %vm8921_vm13  ;;  %v9161_v39 = vld [vmem:[#allocation2 + $0x81] sm:$0xff]  ;;  %vm13531_vm2 = vcmask 293888  }
  0xda   : > { %v13525_v50 = vsel %vm9157_vm10, 4294967295, %v13524_v50  ;;  %1019 = vst.msk [vmem:[#allocation6 + $0x78] sm:$0xff] %vm13527_vm14, %v987_v57  ;;  %vm13528_vm15 = vmmov %vm13518_vm8  ;;  %v3285_v61 = vpack.c.bf16 %v3255_v24, %v3254_v10  ;;  %vm13529_vm8 = vcmp.ge.s32.totalorder %v9048_v29, 1  ;;  %v3070_v44 = vsel %vm9157_vm10, %v9161_v39, 0.0 }
  0xdb   : > { %13526 = vst [vmem:[#allocation49_spill] sm:$0xff] %v13525_v50  ;;  %1300 = vst.msk [vmem:[#allocation6 + $0x38] sm:$0xff] %vm13528_vm15, %v1211_v36  ;;  %v1144_v19 = vsel %vm13529_vm8, %v8964_v27, 0.0  ;;  %3141 = vrot.lane.b32.xlu1 %v3068_v49, %s8131_s21  ;;  %v1498_v58 = vpop.permute.xlu0 %1497  ;;  %vm13533_vm15 = vcmp.ge.s32.totalorder %v9065_v9, 1  ;;  %v378_v27 = vand.u32 15, %v9033_v8  ;;  %vm13534_vm8 = vcmask 130144  }
  0xdc   : > { %1588 = vst.msk [vmem:[#allocation6 + $0x30] sm:$0xff] %vm13530_vm5, %v1498_v58  ;;  %7808 = vmatmul.mubr.msk.bf16.vlgmr.msra.gmra.mxu0 %vm13531_vm2, %v3285_v61  ;;  %vm13532_vm14 = vmmov %vm13530_vm5  ;;  %v1146_v10 = vsel %vm13533_vm15, %v9046_v21, 0.0  ;;  %vm13535_vm5 = vcmp.ge.s32.totalorder %v9072_v26, 1  ;;  %v13538_v8 = vmov 0  ;;  %v380_v24 = vand.u32 15, %v9053_v42 }
  0xdd   : > { %v1496_v62 = vpop.permute.xlu1 %1495  ;;  %1220 = vrot.lane.b32.xlu0 %v1144_v19, %s8124_s26  ;;  %v1145_v57 = vsel %vm13535_vm5, %v8974_v34, 0.0  ;;  %vm13536_vm2 = vmmov %vm13532_vm14  ;;  %vm9190_vm15 = vcmp.le.s32.totalorder %v378_v27, 14  ;;  %v1147_v34 = vsel %vm13153_vm3, %v9090_v5, 0.0  ;;  %v13546_v58 = vmov 0 }
  0xde   : > { %1587 = vst.msk [vmem:[#allocation6 + $0x28] sm:$0xff] %vm13532_vm14, %v1496_v62  ;;  %vm13537_vm14 = vcmp.ge.s32.totalorder %v9048_v29, 1  ;;  %v13539_v8 = vsel %vm9190_vm15, 4294967295, %v13538_v8  ;;  %vm9213_vm13 = vcmp.le.s32.totalorder %v380_v24, 14  ;;  %vm13549_vm3 = vcmask 162944  }
  0xdf   : > { %3145 = vrot.lane.b32.xlu1 %v3070_v44, %s8131_s21  ;;  %v1783_v49 = vpop.permute.xlu0 %1782  ;;  %v1433_v62 = vsel %vm13537_vm14, %v8981_v1, 0.0  ;;  %13540 = vst [vmem:[#allocation50_spill] sm:$0xff] %v13539_v8  ;;  %v13541_v1 = vmov 0  ;;  %vm13544_vm14 = vmmov %vm13534_vm8  ;;  %v13547_v58 = vsel %vm9213_vm13, 4294967295, %v13546_v58 }
  0xe0   : > { %1875 = vst.msk [vmem:[#allocation6 + $0x20] sm:$0xff] %vm13534_vm8, %v1783_v49  ;;  %13548 = vst [vmem:[#allocation52_spill] sm:$0xff] %v13547_v58  ;;  %v13551_v49 = vmov 0 }
  0xe1   : > { %v1500_v36 = vpop.permute.xlu1 %1499  ;;  %1224 = vrot.lane.b32.xlu0 %v1146_v10, %s8124_s26 }
  0xe2   : > { %1589 = vst.msk [vmem:[#allocation6 + $0x38] sm:$0xff] %vm13536_vm2, %v1500_v36  ;;  %vm9205_vm2 = vmand %vm13535_vm5, %vm9190_vm15  ;;  %vm13550_vm5 = vcmp.ge.s32.totalorder %v9106_v6, 1  ;;  %v1628_v36 = vld [vmem:[#allocation2 + $0x87] sm:$0xff] }
  0xe3   : > { %1222 = vrot.lane.b32.xlu1 %v1145_v57, %s8124_s26  ;;  %v1787_v61 = vpop.permute.xlu0 %1786  ;;  %v13542_v1 = vsel %vm9205_vm2, 4294967295, %v13541_v1  ;;  %v1434_v10 = vsel %vm9205_vm2, %v9001_v11, 0.0  ;;  %v1722_v57 = vsel %vm9067_vm0, %v9016_v32, 0.0  ;;  %vm13557_vm2 = vcmask 195744  }
  0xe4   : > { %1877 = vst.msk [vmem:[#allocation6 + $0x30] sm:$0xff] %vm13534_vm8, %v1787_v61  ;;  %13543 = vst [vmem:[#allocation51_spill] sm:$0xff] %v13542_v1  ;;  %vm13545_vm8 = vcmp.ge.s32.totalorder %v9065_v9, 1  ;;  %v1724_v61 = vsel %vm9100_vm9, %v1628_v36, 0.0 }
  0xe5   : > { %v1785_v19 = vpop.permute.xlu1 %1784  ;;  %1509 = vrot.lane.b32.xlu0 %v1433_v62, %s8125_s27  ;;  %v1435_v42 = vsel %vm13545_vm8, %v9097_v63, 0.0  ;;  %vm13554_vm8 = vcmask 130144  }
  0xe6   : > { %1876 = vst.msk [vmem:[#allocation6 + $0x28] sm:$0xff] %vm13544_vm14, %v1785_v19  ;;  %vm9227_vm14 = vmand %vm13550_vm5, %vm9213_vm13 }
  0xe7   : > { %1226 = vrot.lane.b32.xlu1 %v1147_v34, %s8124_s26  ;;  %v1976_v44 = vpop.permute.xlu0 %1975  ;;  %v13552_v49 = vsel %vm9227_vm14, 4294967295, %v13551_v49  ;;  %v1436_v62 = vsel %vm9227_vm14, %v9161_v39, 0.0  ;;  %vm13555_vm5 = vmmov %vm13549_vm3  ;;  %v835_v34 = vld [vmem:[%s8265_s25 + $0xb8] sm:$0xff] }
  0xe8   : > { %2068 = vst.msk [vmem:[#allocation6 + $0x20] sm:$0xff] %vm13549_vm3, %v1976_v44  ;;  %13553 = vst [vmem:[#allocation53_spill] sm:$0xff] %v13552_v49  ;;  %v1629_v44 = vld [vmem:[#allocation2 + $0x8f] sm:$0xff] }
  0xe9   : > { %v1789_v27 = vpop.permute.xlu1 %1788  ;;  %1513 = vrot.lane.b32.xlu0 %v1435_v42, %s8125_s27  ;;  %vm13559_vm14 = vmmov %vm13557_vm2 }
  0xea   : > { %1878 = vst.msk [vmem:[#allocation6 + $0x38] sm:$0xff] %vm13554_vm8, %v1789_v27  ;;  %vm13556_vm8 = vcmask 31744   ;;  %v9256_v27 = vld [vmem:[#allocation2 + $0x88] sm:$0xff] }
  0xeb   : > { %1511 = vrot.lane.b32.xlu1 %v1434_v10, %s8125_s27  ;;  %v1980_v11 = vpop.permute.xlu0 %1979  ;;  %867 = vst.msk [vmem:[#allocation2 + $0xd0] sm:$0xff] %vm13556_vm8, %v835_v34  ;;  %v13565_v34 = vmov 0 }
  0xec   : > { %2070 = vst.msk [vmem:[#allocation6 + $0x30] sm:$0xff] %vm13549_vm3, %v1980_v11 }
  0xed   : > { %v1978_v24 = vpop.permute.xlu1 %1977  ;;  %1798 = vrot.lane.b32.xlu0 %v1722_v57, %s8126_s28 }
  0xee   : > { %2069 = vst.msk [vmem:[#allocation6 + $0x28] sm:$0xff] %vm13555_vm5, %v1978_v24  ;;  %vm13558_vm5 = vmmov %vm13557_vm2  ;;  %v836_v24 = vld [vmem:[%s8265_s25 + $0xc0] sm:$0xff] }
  0xef   : > { %1515 = vrot.lane.b32.xlu1 %v1436_v62, %s8125_s27  ;;  %v2265_v32 = vpop.permute.xlu0 %2264  ;;  %vm13561_vm8 = vmmov %vm13558_vm5 }
  0xf0   : > { %2357 = vst.msk [vmem:[#allocation6 + $0x20] sm:$0xff] %vm13557_vm2, %v2265_v32  ;;  %vm13560_vm2 = vcmask 228544  }
  0xf1   : > { %v1982_v19 = vpop.permute.xlu1 %1981  ;;  %1802 = vrot.lane.b32.xlu0 %v1724_v61, %s8126_s28  ;;  %v9273_v61 = vld [vmem:[#allocation2 + $0x89] sm:$0xff] }
  0xf2   : > { %2071 = vst.msk [vmem:[#allocation6 + $0x38] sm:$0xff] %vm13549_vm3, %v1982_v19  ;;  %vm13562_vm3 = vmmov %vm13560_vm2  ;;  %v9293_v19 = vld [vmem:[#allocation2 + $0x91] sm:$0xff] }
  0xf3   : > { %1800 = vrot.lane.b32.xlu1 %v9040_v4, %s8126_s28  ;;  %v2269_v42 = vpop.permute.xlu0 %2268 }
  0xf4   : > { %2359 = vst.msk [vmem:[#allocation6 + $0x30] sm:$0xff] %vm13558_vm5, %v2269_v42  ;;  %vm13563_vm5 = vmmov %vm13560_vm2 }
  0xf5   : > { %v2267_v10 = vpop.permute.xlu1 %2266  ;;  %1991 = vrot.lane.b32.xlu0 %v9046_v21, %s8127_s29  ;;  %v9266_v21 = vld [vmem:[#allocation2 + $0x90] sm:$0xff] }
  0xf6   : > { %2358 = vst.msk [vmem:[#allocation6 + $0x28] sm:$0xff] %vm13559_vm14, %v2267_v10  ;;  %vm13156_vm14 = vcmp.le.s32.totalorder %v9048_v29, 14  ;;  %v349_v10 = vadd.s32 128, %v8247_v2 }
  0xf7   : > { %1804 = vrot.lane.b32.xlu1 %v1629_v44, %s8126_s28  ;;  %v2554_v57 = vpop.permute.xlu0 %2553 }
  0xf8   : > { %2646 = vst.msk [vmem:[#allocation6 + $0x20] sm:$0xff] %vm13560_vm2, %v2554_v57  ;;  %vm13564_vm2 = vcmask 31744  }
  0xf9   : > { %v2271_v11 = vpop.permute.xlu1 %2270  ;;  %1995 = vrot.lane.b32.xlu0 %v9256_v27, %s8127_s29  ;;  %868 = vst.msk [vmem:[#allocation2 + $0xd8] sm:$0xff] %vm13564_vm2, %v836_v24  ;;  %vm13569_vm2 = vcmask 228544  }
  0xfa   : > { %2360 = vst.msk [vmem:[#allocation6 + $0x38] sm:$0xff] %vm13561_vm8, %v2271_v11  ;;  %vm9282_vm8 = vmand %vm13156_vm14, %vm9067_vm0  ;;  %v9308_v11 = vld [vmem:[#allocation2 + $0x97] sm:$0xff]  ;;  %vm13573_vm14 = vcmask 261344  }
  0xfb   : > { %1993 = vrot.lane.b32.xlu1 %v9090_v5, %s8127_s29  ;;  %v2558_v4 = vpop.permute.xlu0 %2557  ;;  %v13566_v34 = vsel %vm9282_vm8, 4294967295, %v13565_v34  ;;  %v2493_v42 = vsel %vm9282_vm8, %v1628_v36, 0.0  ;;  %v2207_v36 = vsel %vm9213_vm13, %v9293_v19, 0.0  ;;  %vm13574_vm0 = vmmov %vm13573_vm14  ;;  %vm13594_vm8 = vcmp.le.s32.totalorder %v9048_v29, 14 }
  0xfc   : > { %2648 = vst.msk [vmem:[#allocation6 + $0x30] sm:$0xff] %vm13562_vm3, %v2558_v4  ;;  %13567 = vst [vmem:[#allocation54_spill] sm:$0xff] %v13566_v34  ;;  %vm13568_vm3 = vcmask 261344  }
  0xfd   : > { %v2556_v62 = vpop.permute.xlu1 %2555  ;;  %2280 = vrot.lane.b32.xlu0 %v9097_v63, %s8128_s14  ;;  %v2205_v63 = vsel %vm9190_vm15, %v9161_v39, 0.0  ;;  %v13570_v39 = vmov 0 }
  0xfe   : > { %2647 = vst.msk [vmem:[#allocation6 + $0x28] sm:$0xff] %vm13563_vm5, %v2556_v62  ;;  %vm13158_vm5 = vcmp.le.s32.totalorder %v9065_v9, 14  ;;  %v837_v62 = vld [vmem:[%s8265_s25 + $0xc8] sm:$0xff] }
  0xff   : > { %1997 = vrot.lane.b32.xlu1 %v9266_v21, %s8127_s29  ;;  %v2843_v5 = vpop.permute.xlu0 %2842 }
 0x100   : > { %2935 = vst.msk [vmem:[#allocation6 + $0x20] sm:$0xff] %vm13568_vm3, %v2843_v5  ;;  %vm9304_vm3 = vmand %vm13158_vm5, %vm9100_vm9  ;;  %v413_v5 = vshra.s32 %v349_v10, 4  ;;  %vm13576_vm5 = vcmask 294144   ;;  %vm13577_vm9 = vcmask 261344  }
 0x101   : > { %v2560_v32 = vpop.permute.xlu1 %2559  ;;  %2284 = vrot.lane.b32.xlu0 %v9273_v61, %s8128_s14  ;;  %v13571_v39 = vsel %vm9304_vm3, 4294967295, %v13570_v39  ;;  %v2495_v24 = vsel %vm9304_vm3, %v9308_v11, 0.0 }
 0x102   : > { %2649 = vst.msk [vmem:[#allocation6 + $0x38] sm:$0xff] %vm13569_vm2, %v2560_v32  ;;  %13572 = vst [vmem:[#allocation55_spill] sm:$0xff] %v13571_v39  ;;  %vm13165_vm2 = vcmp.le.s32.totalorder %v9072_v26, 14  ;;  %v9340_v49 = vand.u32 15, %v413_v5  ;;  %v381_v39 = vand.u32 15, %v349_v10 }
 0x103   : > { %2282 = vrot.lane.b32.xlu1 %v2205_v63, %s8128_s14  ;;  %v2847_v57 = vpop.permute.xlu0 %2846  ;;  %v351_v63 = vadd.s32 144, %v8247_v2 }
 0x104   : > { %2937 = vst.msk [vmem:[#allocation6 + $0x30] sm:$0xff] %vm13573_vm14, %v2847_v57  ;;  %vm13575_vm14 = vcmask 31744   ;;  %v9325_v57 = vadd.s32 136, %v8247_v2  ;;  %13579 = vst [vmem:[#allocation56_spill] sm:$0xff] %v9340_v49  ;;  %vm9359_vm3 = vcmp.ge.s32.totalorder %v381_v39, 1  ;;  %v892_v39 = vld [vmem:[#allocation2 + $0x87] sm:$0xff] }
 0x105   : > { %v2845_v4 = vpop.permute.xlu1 %2844  ;;  %2569 = vrot.lane.b32.xlu0 %v2493_v42, %s8129_s16  ;;  %869 = vst.msk [vmem:[#allocation2 + $0xe0] sm:$0xff] %vm13575_vm14, %v837_v62  ;;  %v2494_v42 = vsel %vm13165_vm2, %v1629_v44, 0.0  ;;  %vm13578_vm14 = vcmp.le.s32.totalorder %v9048_v29, 14  ;;  %v9338_v62 = vld [vmem:[#allocation2 + $0x98] sm:$0xff]  ;;  %vm13170_vm2 = vcmp.ge.s32.totalorder %v9340_v49, 1 }
 0x106   : > { %2936 = vst.msk [vmem:[#allocation6 + $0x28] sm:$0xff] %vm13574_vm0, %v2845_v4  ;;  %vm13169_vm0 = vcmp.le.s32.totalorder %v9106_v6, 14 }
 0x107   : > { %2286 = vrot.lane.b32.xlu1 %v2207_v36, %s8128_s14  ;;  %v3132_v32 = vpop.permute.xlu0 %3131  ;;  %v2782_v36 = vsel %vm13578_vm14, %v9256_v27, 0.0  ;;  %vm13581_vm14 = vmmov %vm13576_vm5 }
 0x108   : > { %3224 = vst.msk [vmem:[#allocation6 + $0x20] sm:$0xff] %vm13576_vm5, %v3132_v32  ;;  %v415_v32 = vshra.s32 %v351_v63, 4 }
 0x109   : > { %v2849_v4 = vpop.permute.xlu1 %2848  ;;  %2573 = vrot.lane.b32.xlu0 %v2495_v24, %s8129_s16  ;;  %v414_v24 = vshra.s32 %v9325_v57, 4 }
 0x10a   : > { %2938 = vst.msk [vmem:[#allocation6 + $0x38] sm:$0xff] %vm13577_vm9, %v2849_v4  ;;  %v2496_v4 = vsel %vm13169_vm0, %v9332_v60, 0.0  ;;  %vm13580_vm9 = vcmp.le.s32.totalorder %v9065_v9, 14  ;;  %v9357_v5 = vand.u32 15, %v415_v32  ;;  %vm13592_vm0 = vcmask 31744  }
 0x10b   : > { %2571 = vrot.lane.b32.xlu1 %v2494_v42, %s8129_s16  ;;  %v3136_v44 = vpop.permute.xlu0 %3135  ;;  %v2784_v10 = vsel %vm13580_vm9, %v9338_v62, 0.0  ;;  %v13583_v42 = vmov 0  ;;  %v9364_v50 = vand.u32 15, %v414_v24  ;;  %vm13590_vm9 = vcmask 64544  }
 0x10c   : > { %3226 = vst.msk [vmem:[#allocation6 + $0x30] sm:$0xff] %vm13576_vm5, %v3136_v44  ;;  %13582 = vst [vmem:[#allocation57_spill] sm:$0xff] %v9357_v5  ;;  %v13584_v42 = vsel %vm9359_vm3, 4294967295, %v13583_v42  ;;  %v383_v44 = vand.u32 15, %v351_v63  ;;  %v9991_v52 = vld [vmem:[#allocation2 + $0xd9] sm:$0xff] }
 0x10d   : > { %v3134_v1 = vpop.permute.xlu1 %3133  ;;  %2858 = vrot.lane.b32.xlu0 %v2782_v36, %s8130_s17  ;;  %13585 = vst [vmem:[#allocation58_spill] sm:$0xff] %v13584_v42  ;;  %13586 = vst [vmem:[#allocation59_spill] sm:$0xff] %v9364_v50  ;;  %v416_v36 = vshra.s32 %v9345_v38, 4  ;;  %v9649_v42 = vadd.s32 184, %v8247_v2 }
 0x10e   : > { %3225 = vst.msk [vmem:[#allocation6 + $0x28] sm:$0xff] %vm13581_vm14, %v3134_v1  ;;  %vm9371_vm5 = vmand %vm13170_vm2, %vm9359_vm3  ;;  %v13587_v1 = vmov 0  ;;  %vm13591_vm14 = vcmp.le.s32.totalorder %v9072_v26, 14  ;;  %vm13593_vm2 = vcmask 294144  }
 0x10f   : > { %2575 = vrot.lane.b32.xlu1 %v2496_v4, %s8129_s16  ;;  %v1213_v34 = vpop.permute.xlu0 %1212  ;;  %v13588_v1 = vsel %vm9371_vm5, 4294967295, %v13587_v1  ;;  %v2783_v63 = vsel %vm13591_vm14, %v9266_v21, 0.0  ;;  %v988_v32 = vsel %vm9371_vm5, %v892_v39, 0.0  ;;  %v9382_v4 = vld [vmem:[#allocation2 + $0xa0] sm:$0xff]  ;;  %vm9392_vm14 = vcmp.ge.s32.totalorder %v383_v44, 1  ;;  %v893_v44 = vld [vmem:[#allocation2 + $0x8f] sm:$0xff] }
 0x110   : > { %13589 = vst [vmem:[#allocation60_spill] sm:$0xff] %v13588_v1  ;;  %1301 = vst.msk [vmem:[#allocation6 + $0x40] sm:$0xff] %vm13590_vm9, %v1213_v34  ;;  %v3071_v34 = vsel %vm13594_vm8, %v9273_v61, 0.0  ;;  %vm13180_vm9 = vcmp.ge.s32.totalorder %v9357_v5, 1  ;;  %v13595_v1 = vmov 0  ;;  %v3256_v39 = vld [vmem:[#allocation6 + $0x20] sm:$0xff] }
 0x111   : > { %v3138_v24 = vpop.permute.xlu1 %3137  ;;  %2862 = vrot.lane.b32.xlu0 %v2784_v10, %s8130_s17  ;;  %1020 = vst.msk [vmem:[#allocation6 + $0x80] sm:$0xff] %vm13592_vm0, %v988_v32  ;;  %v13596_v1 = vsel %vm9392_vm14, 4294967295, %v13595_v1  ;;  %vm13184_vm0 = vcmp.ge.s32.totalorder %v9364_v50, 1  ;;  %v9398_v32 = vand.u32 15, %v416_v36  ;;  %vm9404_vm8 = vmand %vm13180_vm9, %vm9392_vm14  ;;  %vm13603_vm5 = vcmp.le.s32.totalorder %v9106_v6, 14 }
 0x112   : > { %3227 = vst.msk [vmem:[#allocation6 + $0x38] sm:$0xff] %vm13593_vm2, %v3138_v24  ;;  %13597 = vst [vmem:[#allocation61_spill] sm:$0xff] %v13596_v1  ;;  %v13599_v24 = vmov 0  ;;  %vm13602_vm2 = vcmask 64544   ;;  %v990_v36 = vsel %vm9404_vm8, %v9308_v11, 0.0  ;;  %v989_v29 = vsel %vm13184_vm0, %v893_v44, 0.0 }
 0x113   : > { %2860 = vrot.lane.b32.xlu1 %v2783_v63, %s8130_s17  ;;  %v1217_v10 = vpop.permute.xlu0 %1216  ;;  %13598 = vst [vmem:[#allocation62_spill] sm:$0xff] %v9398_v32  ;;  %v13600_v24 = vsel %vm9404_vm8, 4294967295, %v13599_v24  ;;  %v2785_v63 = vsel %vm13603_vm5, %v9382_v4, 0.0  ;;  %vm13604_vm9 = vcmp.le.s32.totalorder %v9072_v26, 14  ;;  %vm13608_vm5 = vcmask 31744   ;;  %v3258_v47 = vld [vmem:[#allocation6 + $0x30] sm:$0xff] }
 0x114   : > { %13601 = vst [vmem:[#allocation63_spill] sm:$0xff] %v13600_v24  ;;  %1303 = vst.msk [vmem:[#allocation6 + $0x50] sm:$0xff] %vm13602_vm2, %v1217_v10  ;;  %v13605_v10 = vmov 0  ;;  %v838_v24 = vld [vmem:[%s8265_s25 + $0xd0] sm:$0xff]  ;;  %vm13610_vm8 = vcmask 64544   ;;  %vm13611_vm0 = vcmp.le.s32.totalorder %v9065_v9, 14 }
 0x115   : > { %v1215_v13 = vpop.permute.xlu1 %1214  ;;  %3147 = vrot.lane.b32.xlu0 %v3071_v34, %s8131_s21  ;;  %v3257_v46 = vld [vmem:[#allocation6 + $0x28] sm:$0xff]  ;;  %vm9422_vm2 = vmand %vm13604_vm9, %vm9190_vm15  ;;  %1022 = vst.msk [vmem:[#allocation6 + $0x90] sm:$0xff] %vm13608_vm5, %v990_v36  ;;  %v3073_v34 = vsel %vm13611_vm0, %v9389_v31, 0.0  ;;  %vm13192_vm9 = vcmp.ge.s32.totalorder %v9398_v32, 1  ;;  %vm13613_vm15 = vcmask 97344   ;;  %v9629_v1 = vadd.s32 168, %v8247_v2 }
 0x116   : > { %v13606_v10 = vsel %vm9422_vm2, 4294967295, %v13605_v10  ;;  %vm13609_vm10 = vmmov %vm13608_vm5  ;;  %1302 = vst.msk [vmem:[#allocation6 + $0x48] sm:$0xff] %vm13610_vm8, %v1215_v13  ;;  %v3286_v44 = vpack.c.bf16 %v3257_v46, %v3256_v39  ;;  %v3072_v46 = vsel %vm9422_vm2, %v9293_v19, 0.0  ;;  %v9693_v9 = vld [vmem:[#allocation2 + $0xb9] sm:$0xff] }
 0x117   : > { %13607 = vst [vmem:[#allocation64_spill] sm:$0xff] %v13606_v10  ;;  %1021 = vst.msk [vmem:[#allocation6 + $0x88] sm:$0xff] %vm13609_vm10, %v989_v29  ;;  %2864 = vrot.lane.b32.xlu1 %v2785_v63, %s8130_s17  ;;  %v1502_v8 = vpop.permute.xlu0 %1501  ;;  %v991_v29 = vsel %vm13192_vm9, %v9332_v60, 0.0 }
 0x118   : > { %vm13612_vm7 = vmmov %vm13608_vm5  ;;  %1590 = vst.msk [vmem:[#allocation6 + $0x40] sm:$0xff] %vm13613_vm15, %v1502_v8  ;;  %vm13614_vm5 = vcmask 293888   ;;  %v13616_v8 = vmov 0  ;;  %vm13619_vm15 = vcmask 31744  }
 0x119   : > { %870 = vst.msk [vmem:[#allocation2 + $0xe8] sm:$0xff] %vm13612_vm7, %v838_v24  ;;  %7811 = vmatprep.mubr.msk.bf16.mxu0 %vm13614_vm5, %v3286_v44  ;;  %v1219_v13 = vpop.permute.xlu1 %1218  ;;  %3151 = vrot.lane.b32.xlu0 %v3073_v34, %s8131_s21  ;;  %v3259_v39 = vld [vmem:[#allocation6 + $0x38] sm:$0xff]  ;;  %vm13615_vm7 = vcmp.le.s32.totalorder %v9106_v6, 14  ;;  %v9453_v24 = vld [vmem:[#allocation2 + $0xa1] sm:$0xff]  ;;  %vm13620_vm0 = vmmov %vm13610_vm8  ;;  %vm13621_vm8 = vcmp.ge.s32.totalorder %v9340_v49, 1  ;;  %vm13622_vm5 = vcmask 97344  }
 0x11a   : > { %vm9449_vm10 = vmand %vm13615_vm7, %vm9213_vm13  ;;  %1023 = vst.msk [vmem:[#allocation6 + $0x98] sm:$0xff] %vm13619_vm15, %v991_v29  ;;  %v3287_v63 = vpack.c.bf16 %v3259_v39, %v3258_v47  ;;  %v1148_v36 = vsel %vm13621_vm8, %v9256_v27, 0.0  ;;  %vm13623_vm7 = vcmask 293888   ;;  %v382_v27 = vand.u32 15, %v9325_v57 }
 0x11b   : > { %v13617_v8 = vsel %vm9449_vm10, 4294967295, %v13616_v8  ;;  %1304 = vst.msk [vmem:[#allocation6 + $0x58] sm:$0xff] %vm13620_vm0, %v1219_v13  ;;  %3149 = vrot.lane.b32.xlu1 %v3072_v46, %s8131_s21  ;;  %v1506_v44 = vpop.permute.xlu0 %1505  ;;  %v3074_v34 = vsel %vm9449_vm10, %v9453_v24, 0.0  ;;  %vm13624_vm15 = vmmov %vm13622_vm5  ;;  %vm13625_vm0 = vcmp.ge.s32.totalorder %v9357_v5, 1  ;;  %vm13190_vm8 = vcmask 261120  }
 0x11c   : > { %13618 = vst [vmem:[#allocation65_spill] sm:$0xff] %v13617_v8  ;;  %1592 = vst.msk [vmem:[#allocation6 + $0x50] sm:$0xff] %vm13622_vm5, %v1506_v44  ;;  %7812 = vmatmul.mubr.msk.bf16.gmra.mxu0 %vm13623_vm7, %v3287_v63  ;;  %v1150_v47 = vsel %vm13625_vm0, %v9338_v62, 0.0  ;;  %vm13626_vm5 = vcmask 130144   ;;  %vm13627_vm7 = vcmp.ge.s32.totalorder %v9364_v50, 1  ;;  %v13628_v13 = vmov 0.0  }
 0x11d   : > { %v1504_v58 = vpop.permute.xlu1 %1503  ;;  %1228 = vrot.lane.b32.xlu0 %v1148_v36, %s8124_s26  ;;  %v1149_v29 = vsel %vm13627_vm7, %v9266_v21, 0.0  ;;  %3574 = vst.msk [vmem:[#allocation3] sm:$0xff] %vm13190_vm8, %v13628_v13  ;;  %3575 = vst.msk [vmem:[#allocation3 + $0x8] sm:$0xff] %vm13190_vm8, %v13628_v13  ;;  %vm13629_vm0 = vcmp.ge.s32.totalorder %v9340_v49, 1  ;;  %v13630_v57 = vmov 0  ;;  %v384_v39 = vand.u32 15, %v9345_v38 }
 0x11e   : > { %1591 = vst.msk [vmem:[#allocation6 + $0x48] sm:$0xff] %vm13624_vm15, %v1504_v58  ;;  %v1437_v21 = vsel %vm13629_vm0, %v9273_v61, 0.0  ;;  %vm13633_vm7 = vcmask 130144   ;;  %v1151_v36 = vsel %vm13192_vm9, %v9382_v4, 0.0  ;;  %v13635_v61 = vmov 0 }
 0x11f   : > { %3153 = vrot.lane.b32.xlu1 %v3074_v34, %s8131_s21  ;;  %v1791_v46 = vpop.permute.xlu0 %1790  ;;  %3576 = vst.msk [vmem:[#allocation3 + $0x10] sm:$0xff] %vm13190_vm8, %v13628_v13  ;;  %3577 = vst.msk [vmem:[#allocation3 + $0x118] sm:$0xff] %vm13190_vm8, %v13628_v13  ;;  %vm9517_vm13 = vcmp.le.s32.totalorder %v384_v39, 14  ;;  %v13640_v34 = vmov 0  ;;  %vm13643_vm9 = vcmask 162944  }
 0x120   : > { %1879 = vst.msk [vmem:[#allocation6 + $0x40] sm:$0xff] %vm13626_vm5, %v1791_v46  ;;  %vm9494_vm5 = vcmp.le.s32.totalorder %v382_v27, 14  ;;  %v13641_v34 = vsel %vm9517_vm13, 4294967295, %v13640_v34  ;;  %v10216_v56 = vld [vmem:[#allocation2 + $0xe8] sm:$0xff] }
 0x121   : > { %3578 = vst.msk [vmem:[#allocation3 + $0x120] sm:$0xff] %vm13190_vm8, %v13628_v13  ;;  %3579 = vst.msk [vmem:[#allocation3 + $0x128] sm:$0xff] %vm13190_vm8, %v13628_v13  ;;  %v1508_v58 = vpop.permute.xlu1 %1507  ;;  %1232 = vrot.lane.b32.xlu0 %v1150_v47, %s8124_s26  ;;  %v13631_v57 = vsel %vm9494_vm5, 4294967295, %v13630_v57 }
 0x122   : > { %1593 = vst.msk [vmem:[#allocation6 + $0x58] sm:$0xff] %vm13624_vm15, %v1508_v58  ;;  %13632 = vst [vmem:[#allocation66_spill] sm:$0xff] %v13631_v57  ;;  %vm13634_vm15 = vcmp.ge.s32.totalorder %v9364_v50, 1  ;;  %v1726_v58 = vsel %vm9359_vm3, %v9308_v11, 0.0 }
 0x123   : > { %1230 = vrot.lane.b32.xlu1 %v1149_v29, %s8124_s26  ;;  %v1795_v63 = vpop.permute.xlu0 %1794  ;;  %vm9509_vm0 = vmand %vm13634_vm15, %vm9494_vm5  ;;  %13642 = vst [vmem:[#allocation68_spill] sm:$0xff] %v13641_v34  ;;  %v13645_v29 = vmov 0 }
 0x124   : > { %1881 = vst.msk [vmem:[#allocation6 + $0x50] sm:$0xff] %vm13633_vm7, %v1795_v63  ;;  %v13636_v61 = vsel %vm9509_vm0, 4294967295, %v13635_v61  ;;  %vm13638_vm8 = vmmov %vm13633_vm7  ;;  %vm13639_vm7 = vcmp.ge.s32.totalorder %v9357_v5, 1  ;;  %v1438_v27 = vsel %vm9509_vm0, %v9293_v19, 0.0  ;;  %vm13651_vm0 = vcmask 195744  }
 0x125   : > { %v1793_v44 = vpop.permute.xlu1 %1792  ;;  %1517 = vrot.lane.b32.xlu0 %v1437_v21, %s8125_s27  ;;  %13637 = vst [vmem:[#allocation67_spill] sm:$0xff] %v13636_v61  ;;  %v1439_v38 = vsel %vm13639_vm7, %v9389_v31, 0.0  ;;  %vm13648_vm7 = vcmask 130144   ;;  %v1632_v21 = vld [vmem:[#allocation2 + $0xa7] sm:$0xff] }
 0x126   : > { %1880 = vst.msk [vmem:[#allocation6 + $0x48] sm:$0xff] %vm13638_vm8, %v1793_v44  ;;  %vm13644_vm8 = vcmp.ge.s32.totalorder %v9398_v32, 1  ;;  %v839_v44 = vld [vmem:[%s8265_s25 + $0xd8] sm:$0xff] }
 0x127   : > { %1234 = vrot.lane.b32.xlu1 %v1151_v36, %s8124_s26  ;;  %v1984_v47 = vpop.permute.xlu0 %1983  ;;  %vm9531_vm15 = vmand %vm13644_vm8, %vm9517_vm13  ;;  %v1728_v36 = vsel %vm9392_vm14, %v1632_v21, 0.0 }
 0x128   : > { %2072 = vst.msk [vmem:[#allocation6 + $0x40] sm:$0xff] %vm13643_vm9, %v1984_v47  ;;  %v13646_v29 = vsel %vm9531_vm15, 4294967295, %v13645_v29  ;;  %v1440_v39 = vsel %vm9531_vm15, %v9453_v24, 0.0  ;;  %vm13649_vm8 = vmmov %vm13643_vm9 }
 0x129   : > { %v1797_v46 = vpop.permute.xlu1 %1796  ;;  %1521 = vrot.lane.b32.xlu0 %v1439_v38, %s8125_s27  ;;  %13647 = vst [vmem:[#allocation69_spill] sm:$0xff] %v13646_v29  ;;  %vm13654_vm15 = vmmov %vm13651_vm0  ;;  %v9636_v29 = vld [vmem:[#allocation2 + $0xbf] sm:$0xff] }
 0x12a   : > { %1882 = vst.msk [vmem:[#allocation6 + $0x58] sm:$0xff] %vm13648_vm7, %v1797_v46  ;;  %vm13650_vm7 = vcmask 31744  }
 0x12b   : > { %1519 = vrot.lane.b32.xlu1 %v1438_v27, %s8125_s27  ;;  %v1988_v19 = vpop.permute.xlu0 %1987  ;;  %871 = vst.msk [vmem:[#allocation2 + $0xf0] sm:$0xff] %vm13650_vm7, %v839_v44  ;;  %v1633_v27 = vld [vmem:[#allocation2 + $0xaf] sm:$0xff] }
 0x12c   : > { %2074 = vst.msk [vmem:[#allocation6 + $0x50] sm:$0xff] %vm13643_vm9, %v1988_v19  ;;  %vm13652_vm9 = vmmov %vm13649_vm8  ;;  %v9577_v44 = vld [vmem:[#allocation2 + $0xa9] sm:$0xff] }
 0x12d   : > { %v1986_v63 = vpop.permute.xlu1 %1985  ;;  %1806 = vrot.lane.b32.xlu0 %v1726_v58, %s8126_s28  ;;  %v9560_v58 = vld [vmem:[#allocation2 + $0xa8] sm:$0xff] }
 0x12e   : > { %2073 = vst.msk [vmem:[#allocation6 + $0x48] sm:$0xff] %vm13649_vm8, %v1986_v63  ;;  %vm13653_vm8 = vmmov %vm13651_vm0 }
 0x12f   : > { %1523 = vrot.lane.b32.xlu1 %v1440_v39, %s8125_s27  ;;  %v2273_v11 = vpop.permute.xlu0 %2272  ;;  %vm13656_vm7 = vmmov %vm13653_vm8 }
 0x130   : > { %2361 = vst.msk [vmem:[#allocation6 + $0x40] sm:$0xff] %vm13651_vm0, %v2273_v11  ;;  %vm13655_vm0 = vcmask 228544   ;;  %v13660_v11 = vmov 0 }
 0x131   : > { %v1990_v38 = vpop.permute.xlu1 %1989  ;;  %1810 = vrot.lane.b32.xlu0 %v1728_v36, %s8126_s28  ;;  %v840_v36 = vld [vmem:[%s8265_s25 + $0xe0] sm:$0xff] }
 0x132   : > { %2075 = vst.msk [vmem:[#allocation6 + $0x58] sm:$0xff] %vm13652_vm9, %v1990_v38  ;;  %vm13657_vm9 = vmmov %vm13655_vm0 }
 0x133   : > { %1808 = vrot.lane.b32.xlu1 %v9332_v60, %s8126_s28  ;;  %v2277_v47 = vpop.permute.xlu0 %2276 }
 0x134   : > { %2363 = vst.msk [vmem:[#allocation6 + $0x50] sm:$0xff] %vm13653_vm8, %v2277_v47  ;;  %vm13658_vm8 = vmmov %vm13655_vm0  ;;  %v9597_v47 = vld [vmem:[#allocation2 + $0xb1] sm:$0xff] }
 0x135   : > { %v2275_v46 = vpop.permute.xlu1 %2274  ;;  %1999 = vrot.lane.b32.xlu0 %v9338_v62, %s8127_s29  ;;  %v9570_v62 = vld [vmem:[#allocation2 + $0xb0] sm:$0xff] }
 0x136   : > { %2362 = vst.msk [vmem:[#allocation6 + $0x48] sm:$0xff] %vm13654_vm15, %v2275_v46  ;;  %vm13195_vm15 = vcmp.le.s32.totalorder %v9340_v49, 14 }
 0x137   : > { %1812 = vrot.lane.b32.xlu1 %v1633_v27, %s8126_s28  ;;  %v2562_v19 = vpop.permute.xlu0 %2561 }
 0x138   : > { %2650 = vst.msk [vmem:[#allocation6 + $0x40] sm:$0xff] %vm13655_vm0, %v2562_v19  ;;  %vm13659_vm0 = vcmask 31744   ;;  %v353_v19 = vadd.s32 160, %v8247_v2 }
 0x139   : > { %v2279_v39 = vpop.permute.xlu1 %2278  ;;  %2003 = vrot.lane.b32.xlu0 %v9560_v58, %s8127_s29  ;;  %872 = vst.msk [vmem:[#allocation2 + $0xf8] sm:$0xff] %vm13659_vm0, %v840_v36  ;;  %vm13664_vm0 = vcmask 228544   ;;  %v841_v36 = vld [vmem:[%s8265_s25 + $0xe8] sm:$0xff] }
 0x13a   : > { %2364 = vst.msk [vmem:[#allocation6 + $0x58] sm:$0xff] %vm13656_vm7, %v2279_v39  ;;  %vm9586_vm7 = vmand %vm13195_vm15, %vm9359_vm3  ;;  %vm13668_vm15 = vcmask 261344   ;;  %v385_v13 = vand.u32 15, %v353_v19 }
 0x13b   : > { %2001 = vrot.lane.b32.xlu1 %v9382_v4, %s8127_s29  ;;  %v2566_v60 = vpop.permute.xlu0 %2565  ;;  %v13661_v11 = vsel %vm9586_vm7, 4294967295, %v13660_v11  ;;  %v2497_v46 = vsel %vm9586_vm7, %v1632_v21, 0.0  ;;  %v2211_v21 = vsel %vm9517_vm13, %v9597_v47, 0.0  ;;  %vm13669_vm3 = vmmov %vm13668_vm15  ;;  %vm13689_vm7 = vcmp.le.s32.totalorder %v9340_v49, 14 }
 0x13c   : > { %2652 = vst.msk [vmem:[#allocation6 + $0x50] sm:$0xff] %vm13657_vm9, %v2566_v60  ;;  %13662 = vst [vmem:[#allocation70_spill] sm:$0xff] %v13661_v11  ;;  %vm13663_vm9 = vcmask 261344   ;;  %v9612_v60 = vld [vmem:[#allocation2 + $0xb7] sm:$0xff] }
 0x13d   : > { %v2564_v63 = vpop.permute.xlu1 %2563  ;;  %2288 = vrot.lane.b32.xlu0 %v9389_v31, %s8128_s14  ;;  %v2209_v31 = vsel %vm9494_vm5, %v9453_v24, 0.0  ;;  %v13665_v24 = vmov 0 }
 0x13e   : > { %2651 = vst.msk [vmem:[#allocation6 + $0x48] sm:$0xff] %vm13658_vm8, %v2564_v63  ;;  %vm13198_vm8 = vcmp.le.s32.totalorder %v9357_v5, 14 }
 0x13f   : > { %2005 = vrot.lane.b32.xlu1 %v9570_v62, %s8127_s29  ;;  %v2851_v4 = vpop.permute.xlu0 %2850 }
 0x140   : > { %2939 = vst.msk [vmem:[#allocation6 + $0x40] sm:$0xff] %vm13663_vm9, %v2851_v4  ;;  %vm9608_vm9 = vmand %vm13198_vm8, %vm9392_vm14  ;;  %vm13671_vm8 = vcmask 294144   ;;  %vm13672_vm14 = vcmask 261344  }
 0x141   : > { %v2568_v38 = vpop.permute.xlu1 %2567  ;;  %2292 = vrot.lane.b32.xlu0 %v9577_v44, %s8128_s14  ;;  %v13666_v24 = vsel %vm9608_vm9, 4294967295, %v13665_v24  ;;  %v2499_v4 = vsel %vm9608_vm9, %v9612_v60, 0.0  ;;  %vm9663_vm9 = vcmp.ge.s32.totalorder %v385_v13, 1  ;;  %v896_v13 = vld [vmem:[#allocation2 + $0xa7] sm:$0xff] }
 0x142   : > { %2653 = vst.msk [vmem:[#allocation6 + $0x58] sm:$0xff] %vm13664_vm0, %v2568_v38  ;;  %13667 = vst [vmem:[#allocation71_spill] sm:$0xff] %v13666_v24  ;;  %vm13205_vm0 = vcmp.le.s32.totalorder %v9364_v50, 14  ;;  %v355_v38 = vadd.s32 176, %v8247_v2 }
 0x143   : > { %2290 = vrot.lane.b32.xlu1 %v2209_v31, %s8128_s14  ;;  %v2855_v39 = vpop.permute.xlu0 %2854  ;;  %v417_v31 = vshra.s32 %v353_v19, 4 }
 0x144   : > { %2941 = vst.msk [vmem:[#allocation6 + $0x50] sm:$0xff] %vm13668_vm15, %v2855_v39  ;;  %vm13670_vm15 = vcmask 31744  }
 0x145   : > { %v2853_v63 = vpop.permute.xlu1 %2852  ;;  %2577 = vrot.lane.b32.xlu0 %v2497_v46, %s8129_s16  ;;  %873 = vst.msk [vmem:[#allocation2 + $0x100] sm:$0xff] %vm13670_vm15, %v841_v36  ;;  %v2498_v46 = vsel %vm13205_vm0, %v1633_v27, 0.0  ;;  %vm13673_vm15 = vcmp.le.s32.totalorder %v9340_v49, 14  ;;  %v9642_v36 = vld [vmem:[#allocation2 + $0xb8] sm:$0xff]  ;;  %v9644_v24 = vand.u32 15, %v417_v31 }
 0x146   : > { %2940 = vst.msk [vmem:[#allocation6 + $0x48] sm:$0xff] %vm13669_vm3, %v2853_v63  ;;  %vm13209_vm3 = vcmp.le.s32.totalorder %v9398_v32, 14 }
 0x147   : > { %2294 = vrot.lane.b32.xlu1 %v2211_v21, %s8128_s14  ;;  %v3140_v39 = vpop.permute.xlu0 %3139  ;;  %v2786_v21 = vsel %vm13673_vm15, %v9560_v58, 0.0  ;;  %13674 = vst [vmem:[#allocation72_spill] sm:$0xff] %v9644_v24  ;;  %vm13676_vm15 = vmmov %vm13671_vm8  ;;  %vm13210_vm0 = vcmp.ge.s32.totalorder %v9644_v24, 1 }
 0x148   : > { %3228 = vst.msk [vmem:[#allocation6 + $0x40] sm:$0xff] %vm13671_vm8, %v3140_v39  ;;  %v419_v39 = vshra.s32 %v355_v38, 4 }
 0x149   : > { %v2857_v63 = vpop.permute.xlu1 %2856  ;;  %2581 = vrot.lane.b32.xlu0 %v2499_v4, %s8129_s16  ;;  %v418_v4 = vshra.s32 %v9629_v1, 4 }
 0x14a   : > { %2942 = vst.msk [vmem:[#allocation6 + $0x58] sm:$0xff] %vm13672_vm14, %v2857_v63  ;;  %v2500_v63 = vsel %vm13209_vm3, %v9636_v29, 0.0  ;;  %vm13675_vm14 = vcmp.le.s32.totalorder %v9357_v5, 14  ;;  %v9661_v31 = vand.u32 15, %v419_v39  ;;  %vm13687_vm3 = vcmask 31744  }
 0x14b   : > { %2579 = vrot.lane.b32.xlu1 %v2498_v46, %s8129_s16  ;;  %v3144_v27 = vpop.permute.xlu0 %3143  ;;  %v2788_v19 = vsel %vm13675_vm14, %v9642_v36, 0.0  ;;  %v13678_v46 = vmov 0  ;;  %v9668_v8 = vand.u32 15, %v418_v4  ;;  %vm13685_vm14 = vcmask 64544  }
 0x14c   : > { %3230 = vst.msk [vmem:[#allocation6 + $0x50] sm:$0xff] %vm13671_vm8, %v3144_v27  ;;  %13677 = vst [vmem:[#allocation73_spill] sm:$0xff] %v9661_v31  ;;  %v13679_v46 = vsel %vm9663_vm9, 4294967295, %v13678_v46  ;;  %v387_v27 = vand.u32 15, %v355_v38 }
 0x14d   : > { %v3142_v61 = vpop.permute.xlu1 %3141  ;;  %2866 = vrot.lane.b32.xlu0 %v2786_v21, %s8130_s17  ;;  %13680 = vst [vmem:[#allocation74_spill] sm:$0xff] %v13679_v46  ;;  %13681 = vst [vmem:[#allocation75_spill] sm:$0xff] %v9668_v8  ;;  %v420_v21 = vshra.s32 %v9649_v42, 4 }
 0x14e   : > { %3229 = vst.msk [vmem:[#allocation6 + $0x48] sm:$0xff] %vm13676_vm15, %v3142_v61  ;;  %vm9675_vm8 = vmand %vm13210_vm0, %vm9663_vm9  ;;  %v13682_v61 = vmov 0  ;;  %vm13686_vm15 = vcmp.le.s32.totalorder %v9364_v50, 14  ;;  %vm13688_vm0 = vcmask 294144  }
 0x14f   : > { %2583 = vrot.lane.b32.xlu1 %v2500_v63, %s8129_s16  ;;  %v1221_v11 = vpop.permute.xlu0 %1220  ;;  %v13683_v61 = vsel %vm9675_vm8, 4294967295, %v13682_v61  ;;  %v2787_v38 = vsel %vm13686_vm15, %v9570_v62, 0.0  ;;  %v992_v39 = vsel %vm9675_vm8, %v896_v13, 0.0  ;;  %v9686_v63 = vld [vmem:[#allocation2 + $0xc0] sm:$0xff]  ;;  %vm9696_vm15 = vcmp.ge.s32.totalorder %v387_v27, 1  ;;  %v897_v27 = vld [vmem:[#allocation2 + $0xaf] sm:$0xff] }
 0x150   : > { %13684 = vst [vmem:[#allocation76_spill] sm:$0xff] %v13683_v61  ;;  %1305 = vst.msk [vmem:[#allocation6 + $0x60] sm:$0xff] %vm13685_vm14, %v1221_v11  ;;  %v3075_v11 = vsel %vm13689_vm7, %v9577_v44, 0.0  ;;  %vm13221_vm14 = vcmp.ge.s32.totalorder %v9661_v31, 1  ;;  %v13690_v61 = vmov 0  ;;  %v3260_v13 = vld [vmem:[#allocation6 + $0x40] sm:$0xff] }
 0x151   : > { %v3146_v4 = vpop.permute.xlu1 %3145  ;;  %2870 = vrot.lane.b32.xlu0 %v2788_v19, %s8130_s17  ;;  %1024 = vst.msk [vmem:[#allocation6 + $0xa0] sm:$0xff] %vm13687_vm3, %v992_v39  ;;  %v13691_v61 = vsel %vm9696_vm15, 4294967295, %v13690_v61  ;;  %vm13225_vm3 = vcmp.ge.s32.totalorder %v9668_v8, 1  ;;  %v9702_v39 = vand.u32 15, %v420_v21  ;;  %vm9708_vm7 = vmand %vm13221_vm14, %vm9696_vm15  ;;  %vm13698_vm8 = vcmp.le.s32.totalorder %v9398_v32, 14 }
 0x152   : > { %3231 = vst.msk [vmem:[#allocation6 + $0x58] sm:$0xff] %vm13688_vm0, %v3146_v4  ;;  %13692 = vst [vmem:[#allocation77_spill] sm:$0xff] %v13691_v61  ;;  %v13694_v4 = vmov 0  ;;  %vm13697_vm0 = vcmask 64544   ;;  %v994_v21 = vsel %vm9708_vm7, %v9612_v60, 0.0  ;;  %v993_v49 = vsel %vm13225_vm3, %v897_v27, 0.0 }
 0x153   : > { %2868 = vrot.lane.b32.xlu1 %v2787_v38, %s8130_s17  ;;  %v1225_v19 = vpop.permute.xlu0 %1224  ;;  %13693 = vst [vmem:[#allocation78_spill] sm:$0xff] %v9702_v39  ;;  %v13695_v4 = vsel %vm9708_vm7, 4294967295, %v13694_v4  ;;  %v2789_v38 = vsel %vm13698_vm8, %v9686_v63, 0.0  ;;  %vm13699_vm14 = vcmp.le.s32.totalorder %v9364_v50, 14  ;;  %vm13703_vm8 = vcmask 31744   ;;  %v3262_v50 = vld [vmem:[#allocation6 + $0x50] sm:$0xff] }
 0x154   : > { %13696 = vst [vmem:[#allocation79_spill] sm:$0xff] %v13695_v4  ;;  %1307 = vst.msk [vmem:[#allocation6 + $0x70] sm:$0xff] %vm13697_vm0, %v1225_v19  ;;  %v13700_v19 = vmov 0  ;;  %v842_v4 = vld [vmem:[%s8265_s25 + $0xf0] sm:$0xff]  ;;  %vm13705_vm7 = vcmask 64544   ;;  %vm13706_vm3 = vcmp.le.s32.totalorder %v9357_v5, 14 }
 0x155   : > { %v1223_v10 = vpop.permute.xlu1 %1222  ;;  %3155 = vrot.lane.b32.xlu0 %v3075_v11, %s8131_s21  ;;  %v3261_v6 = vld [vmem:[#allocation6 + $0x48] sm:$0xff]  ;;  %vm9726_vm0 = vmand %vm13699_vm14, %vm9494_vm5  ;;  %1026 = vst.msk [vmem:[#allocation6 + $0xb0] sm:$0xff] %vm13703_vm8, %v994_v21  ;;  %v3077_v11 = vsel %vm13706_vm3, %v9693_v9, 0.0  ;;  %vm13233_vm14 = vcmp.ge.s32.totalorder %v9702_v39, 1  ;;  %vm13708_vm5 = vcmask 97344  }
 0x156   : > { %v13701_v19 = vsel %vm9726_vm0, 4294967295, %v13700_v19  ;;  %vm13704_vm10 = vmmov %vm13703_vm8  ;;  %1306 = vst.msk [vmem:[#allocation6 + $0x68] sm:$0xff] %vm13705_vm7, %v1223_v10  ;;  %v3288_v27 = vpack.c.bf16 %v3261_v6, %v3260_v13  ;;  %v3076_v6 = vsel %vm9726_vm0, %v9597_v47, 0.0 }
 0x157   : > { %13702 = vst [vmem:[#allocation80_spill] sm:$0xff] %v13701_v19  ;;  %1025 = vst.msk [vmem:[#allocation6 + $0xa8] sm:$0xff] %vm13704_vm10, %v993_v49  ;;  %2872 = vrot.lane.b32.xlu1 %v2789_v38, %s8130_s17  ;;  %v1510_v57 = vpop.permute.xlu0 %1509  ;;  %v995_v49 = vsel %vm13233_vm14, %v9636_v29, 0.0 }
 0x158   : > { %vm13707_vm2 = vmmov %vm13703_vm8  ;;  %1594 = vst.msk [vmem:[#allocation6 + $0x60] sm:$0xff] %vm13708_vm5, %v1510_v57  ;;  %vm13709_vm8 = vcmask 293888   ;;  %v13711_v57 = vmov 0  ;;  %vm13714_vm5 = vcmask 31744  }
 0x159   : > { %874 = vst.msk [vmem:[#allocation2 + $0x108] sm:$0xff] %vm13707_vm2, %v842_v4  ;;  %7815 = vmatprep.mubr.msk.bf16.mxu0 %vm13709_vm8, %v3288_v27  ;;  %v1227_v10 = vpop.permute.xlu1 %1226  ;;  %3159 = vrot.lane.b32.xlu0 %v3077_v11, %s8131_s21  ;;  %v3263_v13 = vld [vmem:[#allocation6 + $0x58] sm:$0xff]  ;;  %vm13710_vm2 = vcmp.le.s32.totalorder %v9398_v32, 14  ;;  %v9757_v4 = vld [vmem:[#allocation2 + $0xc1] sm:$0xff]  ;;  %vm13715_vm3 = vmmov %vm13705_vm7  ;;  %vm13716_vm7 = vcmp.ge.s32.totalorder %v9644_v24, 1  ;;  %vm13717_vm8 = vcmask 97344  }
 0x15a   : > { %vm9753_vm10 = vmand %vm13710_vm2, %vm9517_vm13  ;;  %1027 = vst.msk [vmem:[#allocation6 + $0xb8] sm:$0xff] %vm13714_vm5, %v995_v49  ;;  %v3289_v38 = vpack.c.bf16 %v3263_v13, %v3262_v50  ;;  %v1152_v21 = vsel %vm13716_vm7, %v9560_v58, 0.0  ;;  %vm13718_vm2 = vcmask 293888   ;;  %v386_v58 = vand.u32 15, %v9629_v1  ;;  %v9984_v32 = vld [vmem:[#allocation2 + $0xe0] sm:$0xff] }
 0x15b   : > { %v13712_v57 = vsel %vm9753_vm10, 4294967295, %v13711_v57  ;;  %1308 = vst.msk [vmem:[#allocation6 + $0x78] sm:$0xff] %vm13715_vm3, %v1227_v10  ;;  %3157 = vrot.lane.b32.xlu1 %v3076_v6, %s8131_s21  ;;  %v1514_v27 = vpop.permute.xlu0 %1513  ;;  %v3078_v11 = vsel %vm9753_vm10, %v9757_v4, 0.0  ;;  %vm13719_vm5 = vmmov %vm13717_vm8  ;;  %vm13720_vm3 = vcmp.ge.s32.totalorder %v9661_v31, 1  ;;  %vm13721_vm7 = vcmask 130144  }
 0x15c   : > { %13713 = vst [vmem:[#allocation81_spill] sm:$0xff] %v13712_v57  ;;  %1596 = vst.msk [vmem:[#allocation6 + $0x70] sm:$0xff] %vm13717_vm8, %v1514_v27  ;;  %7816 = vmatmul.mubr.msk.bf16.gmra.mxu0 %vm13718_vm2, %v3289_v38  ;;  %v1154_v50 = vsel %vm13720_vm3, %v9642_v36, 0.0  ;;  %vm13722_vm8 = vcmp.ge.s32.totalorder %v9668_v8, 1  ;;  %vm9786_vm3 = vcmp.le.s32.totalorder %v386_v58, 14  ;;  %v13725_v1 = vmov 0 }
 0x15d   : > { %v1512_v34 = vpop.permute.xlu1 %1511  ;;  %1236 = vrot.lane.b32.xlu0 %v1152_v21, %s8124_s26  ;;  %v1153_v49 = vsel %vm13722_vm8, %v9570_v62, 0.0  ;;  %vm13723_vm2 = vmmov %vm13719_vm5  ;;  %v13726_v1 = vsel %vm9786_vm3, 4294967295, %v13725_v1  ;;  %v388_v13 = vand.u32 15, %v9649_v42  ;;  %v1155_v62 = vsel %vm13233_vm14, %v9686_v63, 0.0 }
 0x15e   : > { %1595 = vst.msk [vmem:[#allocation6 + $0x68] sm:$0xff] %vm13719_vm5, %v1512_v34  ;;  %vm13724_vm5 = vcmp.ge.s32.totalorder %v9644_v24, 1  ;;  %13727 = vst [vmem:[#allocation82_spill] sm:$0xff] %v13726_v1  ;;  %v13733_v27 = vmov 0  ;;  %vm13736_vm14 = vcmask 162944  }
 0x15f   : > { %3161 = vrot.lane.b32.xlu1 %v3078_v11, %s8131_s21  ;;  %v1799_v6 = vpop.permute.xlu0 %1798  ;;  %v1441_v34 = vsel %vm13724_vm5, %v9577_v44, 0.0  ;;  %v13728_v44 = vmov 0  ;;  %vm13731_vm5 = vmmov %vm13721_vm7  ;;  %vm9809_vm13 = vcmp.le.s32.totalorder %v388_v13, 14 }
 0x160   : > { %1883 = vst.msk [vmem:[#allocation6 + $0x60] sm:$0xff] %vm13721_vm7, %v1799_v6  ;;  %v13734_v27 = vsel %vm9809_vm13, 4294967295, %v13733_v27  ;;  %v13738_v6 = vmov 0 }
 0x161   : > { %v1516_v10 = vpop.permute.xlu1 %1515  ;;  %1240 = vrot.lane.b32.xlu0 %v1154_v50, %s8124_s26  ;;  %13735 = vst [vmem:[#allocation84_spill] sm:$0xff] %v13734_v27 }
 0x162   : > { %1597 = vst.msk [vmem:[#allocation6 + $0x78] sm:$0xff] %vm13723_vm2, %v1516_v10  ;;  %vm9801_vm2 = vmand %vm13722_vm8, %vm9786_vm3  ;;  %vm13737_vm8 = vcmp.ge.s32.totalorder %v9702_v39, 1  ;;  %v1636_v10 = vld [vmem:[#allocation2 + $0xc7] sm:$0xff] }
 0x163   : > { %1238 = vrot.lane.b32.xlu1 %v1153_v49, %s8124_s26  ;;  %v1803_v38 = vpop.permute.xlu0 %1802  ;;  %v13729_v44 = vsel %vm9801_vm2, 4294967295, %v13728_v44  ;;  %v1442_v50 = vsel %vm9801_vm2, %v9597_v47, 0.0  ;;  %v1730_v49 = vsel %vm9663_vm9, %v9612_v60, 0.0  ;;  %vm13744_vm2 = vcmask 195744  }
 0x164   : > { %1885 = vst.msk [vmem:[#allocation6 + $0x70] sm:$0xff] %vm13721_vm7, %v1803_v38  ;;  %13730 = vst [vmem:[#allocation83_spill] sm:$0xff] %v13729_v44  ;;  %vm13732_vm7 = vcmp.ge.s32.totalorder %v9661_v31, 1  ;;  %v1732_v38 = vsel %vm9696_vm15, %v1636_v10, 0.0  ;;  %v5149_v44 = vld [vmem:[#allocation3 + $0x119] sm:$0xff] }
 0x165   : > { %v1801_v21 = vpop.permute.xlu1 %1800  ;;  %1525 = vrot.lane.b32.xlu0 %v1441_v34, %s8125_s27  ;;  %v1443_v42 = vsel %vm13732_vm7, %v9693_v9, 0.0  ;;  %vm13741_vm7 = vcmask 130144  }
 0x166   : > { %1884 = vst.msk [vmem:[#allocation6 + $0x68] sm:$0xff] %vm13731_vm5, %v1801_v21  ;;  %vm9823_vm5 = vmand %vm13737_vm8, %vm9809_vm13 }
 0x167   : > { %1242 = vrot.lane.b32.xlu1 %v1155_v62, %s8124_s26  ;;  %v1992_v11 = vpop.permute.xlu0 %1991  ;;  %v13739_v6 = vsel %vm9823_vm5, 4294967295, %v13738_v6  ;;  %v1444_v34 = vsel %vm9823_vm5, %v9757_v4, 0.0  ;;  %vm13742_vm8 = vmmov %vm13736_vm14  ;;  %v843_v62 = vld [vmem:[%s8265_s25 + $0xf8] sm:$0xff] }
 0x168   : > { %2076 = vst.msk [vmem:[#allocation6 + $0x60] sm:$0xff] %vm13736_vm14, %v1992_v11  ;;  %13740 = vst [vmem:[#allocation85_spill] sm:$0xff] %v13739_v6  ;;  %v1637_v11 = vld [vmem:[#allocation2 + $0xcf] sm:$0xff] }
 0x169   : > { %v1805_v58 = vpop.permute.xlu1 %1804  ;;  %1529 = vrot.lane.b32.xlu0 %v1443_v42, %s8125_s27  ;;  %vm13747_vm5 = vmmov %vm13744_vm2 }
 0x16a   : > { %1886 = vst.msk [vmem:[#allocation6 + $0x78] sm:$0xff] %vm13741_vm7, %v1805_v58  ;;  %vm13743_vm7 = vcmask 31744   ;;  %v9852_v58 = vld [vmem:[#allocation2 + $0xc8] sm:$0xff] }
 0x16b   : > { %1527 = vrot.lane.b32.xlu1 %v1442_v50, %s8125_s27  ;;  %v1996_v47 = vpop.permute.xlu0 %1995  ;;  %875 = vst.msk [vmem:[#allocation2 + $0x110] sm:$0xff] %vm13743_vm7, %v843_v62  ;;  %vm13749_vm7 = vmmov %vm13747_vm5  ;;  %v9886_v62 = vadd.s32 240, %v8247_v2 }
 0x16c   : > { %2078 = vst.msk [vmem:[#allocation6 + $0x70] sm:$0xff] %vm13736_vm14, %v1996_v47  ;;  %vm13745_vm14 = vmmov %vm13742_vm8 }
 0x16d   : > { %v1994_v13 = vpop.permute.xlu1 %1993  ;;  %1814 = vrot.lane.b32.xlu0 %v1730_v49, %s8126_s28 }
 0x16e   : > { %2077 = vst.msk [vmem:[#allocation6 + $0x68] sm:$0xff] %vm13742_vm8, %v1994_v13  ;;  %vm13746_vm8 = vmmov %vm13744_vm2  ;;  %v9868_v13 = vld [vmem:[#allocation2 + $0xc9] sm:$0xff] }
 0x16f   : > { %1531 = vrot.lane.b32.xlu1 %v1444_v34, %s8125_s27  ;;  %v2281_v60 = vpop.permute.xlu0 %2280 }
 0x170   : > { %2365 = vst.msk [vmem:[#allocation6 + $0x60] sm:$0xff] %vm13744_vm2, %v2281_v60  ;;  %vm13748_vm2 = vcmask 228544  }
 0x171   : > { %v1998_v21 = vpop.permute.xlu1 %1997  ;;  %1818 = vrot.lane.b32.xlu0 %v1732_v38, %s8126_s28 }
 0x172   : > { %2079 = vst.msk [vmem:[#allocation6 + $0x78] sm:$0xff] %vm13745_vm14, %v1998_v21  ;;  %vm13750_vm14 = vmmov %vm13748_vm2  ;;  %v9890_v21 = vld [vmem:[#allocation2 + $0xd1] sm:$0xff] }
 0x173   : > { %1816 = vrot.lane.b32.xlu1 %v9636_v29, %s8126_s28  ;;  %v2285_v42 = vpop.permute.xlu0 %2284 }
 0x174   : > { %2367 = vst.msk [vmem:[#allocation6 + $0x70] sm:$0xff] %vm13746_vm8, %v2285_v42  ;;  %vm13751_vm8 = vmmov %vm13748_vm2 }
 0x175   : > { %v2283_v50 = vpop.permute.xlu1 %2282  ;;  %2007 = vrot.lane.b32.xlu0 %v9642_v36, %s8127_s29  ;;  %v9862_v36 = vld [vmem:[#allocation2 + $0xd0] sm:$0xff] }
 0x176   : > { %2366 = vst.msk [vmem:[#allocation6 + $0x68] sm:$0xff] %vm13747_vm5, %v2283_v50  ;;  %vm13236_vm5 = vcmp.le.s32.totalorder %v9644_v24, 14  ;;  %v357_v50 = vadd.s32 192, %v8247_v2 }
 0x177   : > { %1820 = vrot.lane.b32.xlu1 %v1637_v11, %s8126_s28  ;;  %v2570_v49 = vpop.permute.xlu0 %2569 }
 0x178   : > { %2654 = vst.msk [vmem:[#allocation6 + $0x60] sm:$0xff] %vm13748_vm2, %v2570_v49  ;;  %vm9876_vm2 = vmand %vm13236_vm5, %vm9663_vm9  ;;  %v13756_v49 = vmov 0  ;;  %vm13759_vm5 = vcmask 261344  }
 0x179   : > { %v2287_v47 = vpop.permute.xlu1 %2286  ;;  %2011 = vrot.lane.b32.xlu0 %v9852_v58, %s8127_s29  ;;  %v2501_v42 = vsel %vm9876_vm2, %v1636_v10, 0.0  ;;  %v2215_v10 = vsel %vm9809_vm13, %v9890_v21, 0.0  ;;  %vm13760_vm9 = vmmov %vm13759_vm5 }
 0x17a   : > { %2368 = vst.msk [vmem:[#allocation6 + $0x78] sm:$0xff] %vm13749_vm7, %v2287_v47  ;;  %vm13755_vm7 = vcmask 261344   ;;  %v9905_v47 = vld [vmem:[#allocation2 + $0xd7] sm:$0xff] }
 0x17b   : > { %2009 = vrot.lane.b32.xlu1 %v9686_v63, %s8127_s29  ;;  %v2574_v29 = vpop.permute.xlu0 %2573  ;;  %v13752_v63 = vmov 0 }
 0x17c   : > { %2656 = vst.msk [vmem:[#allocation6 + $0x70] sm:$0xff] %vm13750_vm14, %v2574_v29  ;;  %v13753_v63 = vsel %vm9876_vm2, 4294967295, %v13752_v63  ;;  %vm13241_vm14 = vcmp.le.s32.totalorder %v9661_v31, 14  ;;  %v427_v29 = vshra.s32 %v9886_v62, 4 }
 0x17d   : > { %v2572_v34 = vpop.permute.xlu1 %2571  ;;  %2296 = vrot.lane.b32.xlu0 %v9693_v9, %s8128_s14  ;;  %13754 = vst [vmem:[#allocation86_spill] sm:$0xff] %v13753_v63  ;;  %v2213_v9 = vsel %vm9786_vm3, %v9757_v4, 0.0  ;;  %v9943_v63 = vadd.s32 216, %v8247_v2 }
 0x17e   : > { %2655 = vst.msk [vmem:[#allocation6 + $0x68] sm:$0xff] %vm13751_vm8, %v2572_v34  ;;  %v9926_v6 = vand.u32 15, %v427_v29  ;;  %v389_v29 = vand.u32 15, %v357_v50 }
 0x17f   : > { %2013 = vrot.lane.b32.xlu1 %v9862_v36, %s8127_s29  ;;  %v2859_v38 = vpop.permute.xlu0 %2858 }
 0x180   : > { %2943 = vst.msk [vmem:[#allocation6 + $0x60] sm:$0xff] %vm13755_vm7, %v2859_v38  ;;  %vm9901_vm7 = vmand %vm13241_vm14, %vm9696_vm15  ;;  %vm13256_vm14 = vcmp.le.s32.totalorder %v9702_v39, 14  ;;  %vm13767_vm15 = vcmp.le.s32.totalorder %v9661_v31, 14 }
 0x181   : > { %v2576_v60 = vpop.permute.xlu1 %2575  ;;  %2300 = vrot.lane.b32.xlu0 %v9868_v13, %s8128_s14  ;;  %v13757_v49 = vsel %vm9901_vm7, 4294967295, %v13756_v49  ;;  %v2503_v38 = vsel %vm9901_vm7, %v9905_v47, 0.0 }
 0x182   : > { %2657 = vst.msk [vmem:[#allocation6 + $0x78] sm:$0xff] %vm13751_vm8, %v2576_v60  ;;  %13758 = vst [vmem:[#allocation87_spill] sm:$0xff] %v13757_v49  ;;  %vm13243_vm8 = vcmp.le.s32.totalorder %v9668_v8, 14  ;;  %v359_v60 = vadd.s32 208, %v8247_v2 }
 0x183   : > { %2298 = vrot.lane.b32.xlu1 %v2213_v9, %s8128_s14  ;;  %v2863_v4 = vpop.permute.xlu0 %2862  ;;  %v421_v9 = vshra.s32 %v357_v50, 4  ;;  %v2502_v61 = vsel %vm13243_vm8, %v1637_v11, 0.0  ;;  %vm13249_vm8 = vcmp.le.s32.totalorder %v9926_v6, 14 }
 0x184   : > { %2945 = vst.msk [vmem:[#allocation6 + $0x70] sm:$0xff] %vm13759_vm5, %v2863_v4  ;;  %vm13761_vm5 = vcmask 294144   ;;  %v423_v46 = vshra.s32 %v359_v60, 4  ;;  %v5181_v57 = vsel %vm13249_vm8, %v5149_v44, 0.0  ;;  %v391_v5 = vand.u32 15, %v359_v60 }
 0x185   : > { %v2861_v34 = vpop.permute.xlu1 %2860  ;;  %2585 = vrot.lane.b32.xlu0 %v2501_v42, %s8129_s16  ;;  %v9924_v42 = vadd.s32 200, %v8247_v2  ;;  %v9938_v11 = vand.u32 15, %v421_v9 }
 0x186   : > { %2944 = vst.msk [vmem:[#allocation6 + $0x68] sm:$0xff] %vm13760_vm9, %v2861_v34  ;;  %vm13762_vm9 = vcmp.le.s32.totalorder %v9644_v24, 14  ;;  %v9959_v44 = vand.u32 15, %v423_v46  ;;  %v900_v46 = vld [vmem:[#allocation2 + $0xc7] sm:$0xff]  ;;  %vm9994_vm2 = vcmp.ge.s32.totalorder %v391_v5, 1 }
 0x187   : > { %2302 = vrot.lane.b32.xlu1 %v2215_v10, %s8128_s14  ;;  %v3148_v4 = vpop.permute.xlu0 %3147  ;;  %v2790_v49 = vsel %vm13762_vm9, %v9852_v58, 0.0  ;;  %v9933_v10 = vld [vmem:[#allocation2 + $0xdf] sm:$0xff]  ;;  %13764 = vst [vmem:[#allocation88_spill] sm:$0xff] %v9938_v11  ;;  %vm13765_vm9 = vcmask 294144   ;;  %v422_v50 = vshra.s32 %v9924_v42, 4  ;;  %vm13255_vm8 = vcmp.ge.s32.totalorder %v9938_v11, 1 }
 0x188   : > { %3232 = vst.msk [vmem:[#allocation6 + $0x60] sm:$0xff] %vm13761_vm5, %v3148_v4  ;;  %vm13763_vm5 = vcmask 261344   ;;  %v9936_v4 = vld [vmem:[#allocation2 + $0xd8] sm:$0xff]  ;;  %v2504_v9 = vsel %vm13256_vm14, %v9933_v10, 0.0  ;;  %vm13768_vm7 = vmmov %vm13765_vm9  ;;  %vm13779_vm14 = vcmask 294144  }
 0x189   : > { %v2865_v34 = vpop.permute.xlu1 %2864  ;;  %2589 = vrot.lane.b32.xlu0 %v2503_v38, %s8129_s16 }
 0x18a   : > { %2946 = vst.msk [vmem:[#allocation6 + $0x78] sm:$0xff] %vm13763_vm5, %v2865_v34  ;;  %vm13766_vm5 = vcmask 261120  }
 0x18b   : > { %2587 = vrot.lane.b32.xlu1 %v2502_v61, %s8129_s16  ;;  %v3152_v38 = vpop.permute.xlu0 %3151  ;;  %5213 = vst.msk [vmem:[#allocation7 + $0x2e0] sm:$0xff] %vm13766_vm5, %v5181_v57  ;;  %v2792_v61 = vsel %vm13767_vm15, %v9936_v4, 0.0  ;;  %vm13776_vm5 = vcmp.le.s32.totalorder %v9668_v8, 14 }
 0x18c   : > { %3234 = vst.msk [vmem:[#allocation6 + $0x70] sm:$0xff] %vm13765_vm9, %v3152_v38  ;;  %vm9961_vm9 = vcmp.ge.s32.totalorder %v389_v29, 1  ;;  %v13769_v38 = vmov 0  ;;  %v2791_v60 = vsel %vm13776_vm5, %v9862_v36, 0.0  ;;  %v9979_v29 = vand.u32 15, %v422_v50 }
 0x18d   : > { %v3150_v34 = vpop.permute.xlu1 %3149  ;;  %2874 = vrot.lane.b32.xlu0 %v2790_v49, %s8130_s17  ;;  %v13770_v38 = vsel %vm9961_vm9, 4294967295, %v13769_v38  ;;  %v424_v49 = vshra.s32 %v9943_v63, 4  ;;  %vm9971_vm15 = vmand %vm13255_vm8, %vm9961_vm9  ;;  %vm13778_vm8 = vcmask 31744   ;;  %vm13264_vm5 = vcmp.ge.s32.totalorder %v9959_v44, 1 }
 0x18e   : > { %3233 = vst.msk [vmem:[#allocation6 + $0x68] sm:$0xff] %vm13768_vm7, %v3150_v34  ;;  %13771 = vst [vmem:[#allocation89_spill] sm:$0xff] %v13770_v38  ;;  %v13772_v34 = vmov 0  ;;  %vm13775_vm7 = vcmask 64544   ;;  %v13781_v50 = vmov 0  ;;  %v10284_v38 = vadd.s32 232, %v8247_v2 }
 0x18f   : > { %2591 = vrot.lane.b32.xlu1 %v2504_v9, %s8129_s16  ;;  %v1229_v57 = vpop.permute.xlu0 %1228  ;;  %v13773_v34 = vsel %vm9971_vm15, 4294967295, %v13772_v34  ;;  %13777 = vst [vmem:[#allocation91_spill] sm:$0xff] %v9979_v29  ;;  %v996_v9 = vsel %vm9971_vm15, %v900_v46, 0.0  ;;  %v13782_v50 = vsel %vm9994_vm2, 4294967295, %v13781_v50  ;;  %v3264_v46 = vld [vmem:[#allocation6 + $0x60] sm:$0xff]  ;;  %vm13279_vm15 = vcmp.ge.s32.totalorder %v9979_v29, 1 }
 0x190   : > { %13774 = vst [vmem:[#allocation90_spill] sm:$0xff] %v13773_v34  ;;  %1309 = vst.msk [vmem:[#allocation6 + $0x80] sm:$0xff] %vm13775_vm7, %v1229_v57  ;;  %vm13780_vm7 = vcmp.le.s32.totalorder %v9644_v24, 14  ;;  %v9999_v34 = vand.u32 15, %v424_v49 }
 0x191   : > { %v3154_v19 = vpop.permute.xlu1 %3153  ;;  %2878 = vrot.lane.b32.xlu0 %v2792_v61, %s8130_s17  ;;  %1028 = vst.msk [vmem:[#allocation6 + $0xc0] sm:$0xff] %vm13778_vm8, %v996_v9  ;;  %v3079_v57 = vsel %vm13780_vm7, %v9868_v13, 0.0  ;;  %13783 = vst [vmem:[#allocation92_spill] sm:$0xff] %v13782_v50  ;;  %v902_v9 = vld [vmem:[#allocation2 + $0xd7] sm:$0xff]  ;;  %vm13787_vm8 = vcmask 64544   ;;  %vm13788_vm7 = vcmp.le.s32.totalorder %v9702_v39, 14 }
 0x192   : > { %3235 = vst.msk [vmem:[#allocation6 + $0x78] sm:$0xff] %vm13779_vm14, %v3154_v19  ;;  %vm10005_vm14 = vmand %vm13264_vm5, %vm9994_vm2  ;;  %v13784_v19 = vmov 0  ;;  %v2793_v5 = vsel %vm13788_vm7, %v9984_v32, 0.0  ;;  %vm13789_vm5 = vcmp.le.s32.totalorder %v9668_v8, 14  ;;  %vm13794_vm7 = vcmask 64544   ;;  %v903_v8 = vld [vmem:[#allocation2 + $0xdf] sm:$0xff] }
 0x193   : > { %2876 = vrot.lane.b32.xlu1 %v2791_v60, %s8130_s17  ;;  %v1233_v61 = vpop.permute.xlu0 %1232  ;;  %v13785_v19 = vsel %vm10005_vm14, 4294967295, %v13784_v19  ;;  %v998_v49 = vsel %vm10005_vm14, %v902_v9, 0.0  ;;  %v901_v60 = vld [vmem:[#allocation2 + $0xcf] sm:$0xff]  ;;  %vm10021_vm10 = vmand %vm13789_vm5, %vm9786_vm3  ;;  %vm13795_vm14 = vcmp.le.s32.totalorder %v9661_v31, 14  ;;  %vm13274_vm5 = vcmp.ge.s32.totalorder %v9999_v34, 1 }
 0x194   : > { %13786 = vst [vmem:[#allocation93_spill] sm:$0xff] %v13785_v19  ;;  %1311 = vst.msk [vmem:[#allocation6 + $0x90] sm:$0xff] %vm13787_vm8, %v1233_v61  ;;  %v13790_v61 = vmov 0  ;;  %vm13793_vm8 = vcmask 31744   ;;  %v997_v23 = vsel %vm13279_vm15, %v901_v60, 0.0  ;;  %v3266_v1 = vld [vmem:[#allocation6 + $0x70] sm:$0xff] }
 0x195   : > { %v1231_v24 = vpop.permute.xlu1 %1230  ;;  %3163 = vrot.lane.b32.xlu0 %v3079_v57, %s8131_s21  ;;  %v3265_v55 = vld [vmem:[#allocation6 + $0x68] sm:$0xff]  ;;  %v13791_v61 = vsel %vm10021_vm10, 4294967295, %v13790_v61  ;;  %1030 = vst.msk [vmem:[#allocation6 + $0xd0] sm:$0xff] %vm13793_vm8, %v998_v49  ;;  %v3081_v57 = vsel %vm13795_vm14, %v9991_v52, 0.0  ;;  %vm13796_vm0 = vmmov %vm13793_vm8  ;;  %vm13797_vm8 = vcmask 97344   ;;  %vm13798_vm3 = vcmask 293888  }
 0x196   : > { %13792 = vst [vmem:[#allocation94_spill] sm:$0xff] %v13791_v61  ;;  %1310 = vst.msk [vmem:[#allocation6 + $0x88] sm:$0xff] %vm13794_vm7, %v1231_v24  ;;  %v3290_v9 = vpack.c.bf16 %v3265_v55, %v3264_v46  ;;  %v3080_v55 = vsel %vm10021_vm10, %v9890_v21, 0.0  ;;  %v999_v24 = vsel %vm13274_vm5, %v903_v8, 0.0  ;;  %v10058_v8 = vld [vmem:[%s13046_s2] ss:$0 sm:$0xff] }
 0x197   : > { %1029 = vst.msk [vmem:[#allocation6 + $0xc8] sm:$0xff] %vm13796_vm0, %v997_v23  ;;  %2880 = vrot.lane.b32.xlu1 %v2793_v5, %s8130_s17  ;;  %v1518_v19 = vpop.permute.xlu0 %1517  ;;  %vm13799_vm0 = vcmp.le.s32.totalorder %v9702_v39, 14  ;;  %v13800_v5 = vmov 0  ;;  %vm13806_vm5 = vcmask 293888   ;;  %v10333_v39 = vld [vmem:[#allocation2 + $0x100] sm:$0xff] }
 0x198   : > { %1598 = vst.msk [vmem:[#allocation6 + $0x80] sm:$0xff] %vm13797_vm8, %v1518_v19  ;;  %7819 = vmatprep.mubr.msk.bf16.mxu0 %vm13798_vm3, %v3290_v9  ;;  %vm10047_vm14 = vmand %vm13799_vm0, %vm9809_vm13  ;;  %v10051_v19 = vld [vmem:[#allocation2 + $0xe1] sm:$0xff]  ;;  %vm13803_vm3 = vcmask 31744   ;;  %vm13804_vm8 = vcmp.ge.s32.totalorder %v9938_v11, 1  ;;  %vm13805_vm0 = vcmask 97344  }
 0x199   : > { %v1235_v46 = vpop.permute.xlu1 %1234  ;;  %3167 = vrot.lane.b32.xlu0 %v3081_v57, %s8131_s21  ;;  %v3267_v23 = vld [vmem:[#allocation6 + $0x78] sm:$0xff]  ;;  %v13801_v5 = vsel %vm10047_vm14, 4294967295, %v13800_v5  ;;  %1031 = vst.msk [vmem:[#allocation6 + $0xd8] sm:$0xff] %vm13803_vm3, %v999_v24  ;;  %v1156_v60 = vsel %vm13804_vm8, %v9852_v58, 0.0  ;;  %v3082_v24 = vsel %vm10047_vm14, %v10051_v19, 0.0  ;;  %vm13807_vm3 = vmmov %vm13805_vm0  ;;  %vm13810_vm8 = vcmask 261120  }
 0x19a   : > { %13802 = vst [vmem:[#allocation95_spill] sm:$0xff] %v13801_v5  ;;  %1312 = vst.msk [vmem:[#allocation6 + $0x98] sm:$0xff] %vm13794_vm7, %v1235_v46  ;;  %v3291_v49 = vpack.c.bf16 %v3267_v23, %v3266_v1  ;;  %vm13808_vm7 = vcmp.ge.s32.totalorder %v9959_v44, 1  ;;  %vm13826_vm14 = vcmask 261120  }
 0x19b   : > { %3165 = vrot.lane.b32.xlu1 %v3080_v55, %s8131_s21  ;;  %v1522_v9 = vpop.permute.xlu0 %1521  ;;  %v1158_v58 = vsel %vm13808_vm7, %v9936_v4, 0.0  ;;  %v390_v55 = vand.u32 15, %v9924_v42  ;;  %v364_v42 = vadd.s32 248, %v8247_v2 }
 0x19c   : > { %1600 = vst.msk [vmem:[#allocation6 + $0x90] sm:$0xff] %vm13805_vm0, %v1522_v9  ;;  %v7809_v57 = vpop.f32.mrf.mxu0  ;;  %7820 = vmatmul.mubr.msk.bf16.gmra.mxu0 %vm13806_vm5, %v3291_v49  ;;  %vm13809_vm5 = vcmask 130144  }
 0x19d   : > { %v3423_v46 = vadd.f32 %v7809_v57, %v10058_v8  ;;  %v1520_v27 = vpop.permute.xlu1 %1519  ;;  %1244 = vrot.lane.b32.xlu0 %v1156_v60, %s8124_s26  ;;  %vm10090_vm7 = vcmp.le.s32.totalorder %v390_v55, 14 }
 0x19e   : > { %1599 = vst.msk [vmem:[#allocation6 + $0x88] sm:$0xff] %vm13807_vm3, %v1520_v27  ;;  %v3414_v1 = vpop.f32.mrf.mxu0  ;;  %v1157_v27 = vsel %vm13279_vm15, %v9862_v36, 0.0  ;;  %vm13811_vm3 = vcmp.ge.s32.totalorder %v9938_v11, 1  ;;  %v392_v36 = vand.u32 15, %v9943_v63  ;;  %v13819_v63 = vmov 0 }
 0x19f   : > { %v3543_v23 = vmax.f32 %v3423_v46, 0.0  ;;  %v3415_v49 = vadd.f32 %v10058_v8, %v3414_v1  ;;  %3169 = vrot.lane.b32.xlu1 %v3082_v24, %s8131_s21  ;;  %v1807_v9 = vpop.permute.xlu0 %1806  ;;  %v1445_v46 = vsel %vm13811_vm3, %v9868_v13, 0.0  ;;  %v13812_v1 = vmov 0 }
 0x1a0   : > { %1887 = vst.msk [vmem:[#allocation6 + $0x80] sm:$0xff] %vm13809_vm5, %v1807_v9  ;;  %v7810_v57 = vpop.f32.mrf.mxu0  ;;  %v13813_v1 = vsel %vm10090_vm7, 4294967295, %v13812_v1  ;;  %vm13815_vm5 = vmmov %vm13810_vm8 }
 0x1a1   : > { %3582 = vst.msk [vmem:[#allocation3 + $0x28] sm:$0xff] %vm13810_vm8, %v3543_v23  ;;  %v3541_v60 = vmax.f32 %v3415_v49, 0.0  ;;  %v3426_v5 = vadd.f32 %v7810_v57, %v10058_v8  ;;  %v1524_v61 = vpop.permute.xlu1 %1523  ;;  %1248 = vrot.lane.b32.xlu0 %v1158_v58, %s8124_s26  ;;  %13814 = vst [vmem:[#allocation96_spill] sm:$0xff] %v13813_v1  ;;  %vm13816_vm8 = vcmask 130144   ;;  %v13823_v57 = vmov 0 }
 0x1a2   : > { %1601 = vst.msk [vmem:[#allocation6 + $0x98] sm:$0xff] %vm13805_vm0, %v1524_v61  ;;  %v3417_v24 = vpop.f32.mrf.mxu0  ;;  %vm13817_vm0 = vcmp.ge.s32.totalorder %v9999_v34, 1  ;;  %vm13818_vm3 = vmmov %vm13815_vm5 }
 0x1a3   : > { %3580 = vst.msk [vmem:[#allocation3 + $0x18] sm:$0xff] %vm13815_vm5, %v3541_v60  ;;  %v3544_v23 = vmax.f32 %v3426_v5, 0.0  ;;  %v3418_v58 = vadd.f32 %v10058_v8, %v3417_v24  ;;  %1246 = vrot.lane.b32.xlu1 %v1157_v27, %s8124_s26  ;;  %v1811_v49 = vpop.permute.xlu0 %1810  ;;  %v1159_v13 = vsel %vm13817_vm0, %v9984_v32, 0.0  ;;  %vm10108_vm5 = vmand %vm13279_vm15, %vm10090_vm7  ;;  %v428_v5 = vshra.s32 %v364_v42, 4 }
 0x1a4   : > { %1889 = vst.msk [vmem:[#allocation6 + $0x90] sm:$0xff] %vm13816_vm8, %v1811_v49  ;;  %v13820_v63 = vsel %vm10108_vm5, 4294967295, %v13819_v63  ;;  %vm13822_vm0 = vcmp.ge.s32.totalorder %v9959_v44, 1  ;;  %v396_v60 = vand.u32 15, %v364_v42  ;;  %vm13827_vm15 = vcmask 162944  }
 0x1a5   : > { %3583 = vst.msk [vmem:[#allocation3 + $0x30] sm:$0xff] %vm13818_vm3, %v3544_v23  ;;  %v3542_v61 = vmax.f32 %v3418_v58, 0.0  ;;  %v1809_v55 = vpop.permute.xlu1 %1808  ;;  %1533 = vrot.lane.b32.xlu0 %v1445_v46, %s8125_s27  ;;  %13821 = vst [vmem:[#allocation97_spill] sm:$0xff] %v13820_v63  ;;  %v1447_v9 = vsel %vm13822_vm0, %v9991_v52, 0.0  ;;  %vm10116_vm3 = vcmp.le.s32.totalorder %v392_v36, 14  ;;  %v1446_v24 = vsel %vm10108_vm5, %v9890_v21, 0.0 }
 0x1a6   : > { %1888 = vst.msk [vmem:[#allocation6 + $0x88] sm:$0xff] %vm13816_vm8, %v1809_v55  ;;  %v13824_v57 = vsel %vm10116_vm3, 4294967295, %v13823_v57  ;;  %vm13828_vm8 = vcmp.ge.s32.totalorder %v9999_v34, 1  ;;  %v13829_v36 = vmov 0  ;;  %v10137_v42 = vand.u32 15, %v428_v5 }
 0x1a7   : > { %13825 = vst [vmem:[#allocation98_spill] sm:$0xff] %v13824_v57  ;;  %3581 = vst.msk [vmem:[#allocation3 + $0x20] sm:$0xff] %vm13826_vm14, %v3542_v61  ;;  %1250 = vrot.lane.b32.xlu1 %v1159_v13, %s8124_s26  ;;  %v2000_v27 = vpop.permute.xlu0 %1999  ;;  %vm13833_vm0 = vcmask 130144   ;;  %v1734_v21 = vsel %vm9961_vm9, %v9905_v47, 0.0  ;;  %v10150_v61 = vld [vmem:[#allocation2 + $0xe7] sm:$0xff]  ;;  %v13834_v55 = vmov 0 }
 0x1a8   : > { %2080 = vst.msk [vmem:[#allocation6 + $0x80] sm:$0xff] %vm13827_vm15, %v2000_v27  ;;  %v10126_v46 = vld [vmem:[#allocation3 + $0x28] sm:$0xff]  ;;  %vm10133_vm14 = vmand %vm13828_vm8, %vm10116_vm3  ;;  %vm13832_vm15 = vcmask 261120   ;;  %vm10152_vm8 = vcmp.le.s32.totalorder %v396_v60, 14  ;;  %vm13837_vm5 = vcmask 162944  }
 0x1a9   : > { %v1813_v23 = vpop.permute.xlu1 %1812  ;;  %1537 = vrot.lane.b32.xlu0 %v1447_v9, %s8125_s27  ;;  %v13830_v36 = vsel %vm10133_vm14, 4294967295, %v13829_v36  ;;  %4417 = vst.msk [vmem:[#allocation7 + $0x38] sm:$0xff] %vm13832_vm15, %v10126_v46  ;;  %v13835_v55 = vsel %vm10152_vm8, 4294967295, %v13834_v55  ;;  %vm13282_vm15 = vcmp.le.s32.totalorder %v10137_v42, 14  ;;  %v1448_v9 = vsel %vm10133_vm14, %v10051_v19, 0.0  ;;  %v5150_v60 = vld [vmem:[#allocation3 + $0x121] sm:$0xff] }
 0x1aa   : > { %13831 = vst [vmem:[#allocation99_spill] sm:$0xff] %v13830_v36  ;;  %1890 = vst.msk [vmem:[#allocation6 + $0x98] sm:$0xff] %vm13833_vm0, %v1813_v23  ;;  %v10145_v58 = vld [vmem:[#allocation3 + $0x17] sm:$0xff]  ;;  %vm13836_vm0 = vcmask 261120   ;;  %v1736_v36 = vsel %vm9994_vm2, %v10150_v61, 0.0  ;;  %vm13844_vm14 = vcmask 195744  }
 0x1ab   : > { %v10147_v49 = vld [vmem:[#allocation3 + $0x18] sm:$0xff]  ;;  %1535 = vrot.lane.b32.xlu1 %v1446_v24, %s8125_s27  ;;  %v2004_v13 = vpop.permute.xlu0 %2003  ;;  %v3646_v47 = vsel %vm8383_vm12, %v10145_v58, 0.0  ;;  %vm10170_vm13 = vmand %vm13282_vm15, %vm10152_vm8  ;;  %vm13840_vm12 = vcmp.le.s32.totalorder %v8260_v7, 14  ;;  %vm13842_vm15 = vcmask 162944  }
 0x1ac   : > { %4415 = vst.msk [vmem:[#allocation7 + $0x8] sm:$0xff] %vm13836_vm0, %v10147_v49  ;;  %v5119_v5 = vld [vmem:[#allocation3 + $0x29] sm:$0xff]  ;;  %3678 = vst.msk [vmem:[#allocation7 + $0x30] sm:$0xff] %vm13836_vm0, %v3646_v47  ;;  %v5182_v23 = vsel %vm10170_vm13, %v5150_v60, 0.0 }
 0x1ad   : > { %2082 = vst.msk [vmem:[#allocation6 + $0x90] sm:$0xff] %vm13837_vm5, %v2004_v13  ;;  %v5151_v59 = vsel %vm13840_vm12, %v5119_v5, 0.0  ;;  %v2002_v24 = vpop.permute.xlu1 %2001  ;;  %1822 = vrot.lane.b32.xlu0 %v1734_v21, %s8126_s28  ;;  %v10180_v13 = vld [vmem:[#allocation3 + $0x30] sm:$0xff]  ;;  %vm13841_vm5 = vmmov %vm13836_vm0 }
 0x1ae   : > { %5183 = vst.msk [vmem:[#allocation7 + $0x10] sm:$0xff] %vm13841_vm5, %v5151_v59  ;;  %vm13843_vm12 = vmmov %vm13836_vm0  ;;  %v10191_v47 = vld [vmem:[#allocation3 + $0x1f] sm:$0xff]  ;;  %vm13846_vm5 = vcmp.ge.s32.totalorder %v8317_v33, 1  ;;  %v3616_v59 = vld [vmem:[#allocation3 + $0x27] sm:$0xff] }
 0x1af   : > { %2081 = vst.msk [vmem:[#allocation6 + $0x88] sm:$0xff] %vm13842_vm15, %v2002_v24  ;;  %1539 = vrot.lane.b32.xlu1 %v1448_v9, %s8125_s27  ;;  %v2289_v21 = vpop.permute.xlu0 %2288  ;;  %v10193_v5 = vld [vmem:[#allocation3 + $0x20] sm:$0xff]  ;;  %vm13845_vm15 = vmmov %vm13836_vm0  ;;  %v3647_v60 = vsel %vm13846_vm5, %v10191_v47, 0.0  ;;  %v3617_v24 = vld [vmem:[#allocation3 + $0x2f] sm:$0xff]  ;;  %v3648_v9 = vsel %vm8524_vm4, %v3616_v59, 0.0  ;;  %vm13851_vm5 = vcmask 195744  }
 0x1b0   : > { %5214 = vst.msk [vmem:[#allocation7 + $0x2f8] sm:$0xff] %vm13836_vm0, %v5182_v23  ;;  %3679 = vst.msk [vmem:[#allocation7 + $0x48] sm:$0xff] %vm13836_vm0, %v3647_v60 }
 0x1b1   : > { %4418 = vst.msk [vmem:[#allocation7 + $0x50] sm:$0xff] %vm13843_vm12, %v10180_v13  ;;  %v2006_v23 = vpop.permute.xlu1 %2005  ;;  %1826 = vrot.lane.b32.xlu0 %v1736_v36, %s8126_s28  ;;  %vm13847_vm12 = vcmp.ge.s32.totalorder %v8493_v41, 1  ;;  %vm13850_vm10 = vmmov %vm13836_vm0  ;;  %v1641_v36 = vld [vmem:[#allocation2 + $0xef] sm:$0xff] }
 0x1b2   : > { %2369 = vst.msk [vmem:[#allocation6 + $0x80] sm:$0xff] %vm13844_vm14, %v2289_v21  ;;  %v3649_v21 = vsel %vm13847_vm12, %v3617_v24, 0.0  ;;  %vm13848_vm14 = vcmask 162944   ;;  %vm13852_vm4 = vmmov %vm13851_vm5 }
 0x1b3   : > { %4416 = vst.msk [vmem:[#allocation7 + $0x20] sm:$0xff] %vm13845_vm15, %v10193_v5  ;;  %vm13849_vm15 = vmmov %vm13836_vm0  ;;  %1824 = vrot.lane.b32.xlu1 %v9933_v10, %s8126_s28  ;;  %v2293_v63 = vpop.permute.xlu0 %2292  ;;  %vm13853_vm0 = vcmask 228544  }
 0x1b4   : > { %2083 = vst.msk [vmem:[#allocation6 + $0x98] sm:$0xff] %vm13848_vm14, %v2006_v23  ;;  %vm13855_vm12 = vmmov %vm13853_vm0  ;;  %vm13294_vm14 = vcmp.le.s32.totalorder %v9938_v11, 14  ;;  %v10232_v23 = vld [vmem:[#allocation2 + $0xe9] sm:$0xff] }
 0x1b5   : > { %3680 = vst.msk [vmem:[#allocation7 + $0x60] sm:$0xff] %vm13849_vm15, %v3648_v9  ;;  %v2291_v60 = vpop.permute.xlu1 %2290  ;;  %2015 = vrot.lane.b32.xlu0 %v9936_v4, %s8127_s29  ;;  %v10226_v4 = vld [vmem:[#allocation2 + $0xf0] sm:$0xff]  ;;  %vm13856_vm15 = vmmov %vm13853_vm0 }
 0x1b6   : > { %3681 = vst.msk [vmem:[#allocation7 + $0x78] sm:$0xff] %vm13850_vm10, %v3649_v21  ;;  %vm13854_vm10 = vmmov %vm13852_vm4 }
 0x1b7   : > { %2371 = vst.msk [vmem:[#allocation6 + $0x90] sm:$0xff] %vm13851_vm5, %v2293_v63  ;;  %1828 = vrot.lane.b32.xlu1 %v1641_v36, %s8126_s28  ;;  %v2578_v59 = vpop.permute.xlu0 %2577  ;;  %vm10240_vm5 = vmand %vm13294_vm14, %vm9961_vm9 }
 0x1b8   : > { %2370 = vst.msk [vmem:[#allocation6 + $0x88] sm:$0xff] %vm13852_vm4, %v2291_v60  ;;  %vm13860_vm4 = vcmask 261344   ;;  %v10251_v60 = vld [vmem:[#allocation2 + $0xf1] sm:$0xff] }
 0x1b9   : > { %2658 = vst.msk [vmem:[#allocation6 + $0x80] sm:$0xff] %vm13853_vm0, %v2578_v59  ;;  %v2295_v24 = vpop.permute.xlu1 %2294  ;;  %2019 = vrot.lane.b32.xlu0 %v10216_v56, %s8127_s29  ;;  %vm13289_vm0 = vcmp.le.s32.totalorder %v9959_v44, 14  ;;  %v2505_v59 = vsel %vm10240_vm5, %v10150_v61, 0.0  ;;  %v2219_v61 = vsel %vm10116_vm3, %v10251_v60, 0.0 }
 0x1ba   : > { %2372 = vst.msk [vmem:[#allocation6 + $0x98] sm:$0xff] %vm13854_vm10, %v2295_v24  ;;  %vm13861_vm10 = vmmov %vm13855_vm12  ;;  %v361_v24 = vadd.s32 224, %v8247_v2  ;;  %v10297_v2 = vld [vmem:[#allocation2 + $0xf8] sm:$0xff] }
 0x1bb   : > { %2017 = vrot.lane.b32.xlu1 %v9984_v32, %s8127_s29  ;;  %v2582_v10 = vpop.permute.xlu0 %2581  ;;  %v13857_v32 = vmov 0 }
 0x1bc   : > { %2660 = vst.msk [vmem:[#allocation6 + $0x90] sm:$0xff] %vm13855_vm12, %v2582_v10  ;;  %v13858_v32 = vsel %vm10240_vm5, 4294967295, %v13857_v32  ;;  %vm10263_vm12 = vmand %vm13289_vm0, %vm9994_vm2  ;;  %vm13868_vm0 = vcmask 261344   ;;  %vm13893_vm5 = vcmask 64544  }
 0x1bd   : > { %v2580_v63 = vpop.permute.xlu1 %2579  ;;  %2304 = vrot.lane.b32.xlu0 %v9991_v52, %s8128_s14  ;;  %13859 = vst [vmem:[#allocation100_spill] sm:$0xff] %v13858_v32  ;;  %v2217_v52 = vsel %vm10090_vm7, %v10051_v19, 0.0  ;;  %v13862_v19 = vmov 0 }
 0x1be   : > { %2659 = vst.msk [vmem:[#allocation6 + $0x88] sm:$0xff] %vm13856_vm15, %v2580_v63  ;;  %v13863_v19 = vsel %vm10263_vm12, 4294967295, %v13862_v19  ;;  %v10267_v63 = vld [vmem:[#allocation2 + $0xf7] sm:$0xff]  ;;  %vm13865_vm15 = vmmov %vm13860_vm4 }
 0x1bf   : > { %2021 = vrot.lane.b32.xlu1 %v10226_v4, %s8127_s29  ;;  %v2867_v9 = vpop.permute.xlu0 %2866  ;;  %13864 = vst [vmem:[#allocation101_spill] sm:$0xff] %v13863_v19  ;;  %v393_v19 = vand.u32 15, %v361_v24 }
 0x1c0   : > { %2947 = vst.msk [vmem:[#allocation6 + $0x80] sm:$0xff] %vm13860_vm4, %v2867_v9  ;;  %vm13295_vm4 = vcmp.le.s32.totalorder %v9979_v29, 14 }
 0x1c1   : > { %v2584_v21 = vpop.permute.xlu1 %2583  ;;  %2308 = vrot.lane.b32.xlu0 %v10232_v23, %s8128_s14  ;;  %vm10310_vm2 = vcmp.ge.s32.totalorder %v393_v19, 1 }
 0x1c2   : > { %2661 = vst.msk [vmem:[#allocation6 + $0x98] sm:$0xff] %vm13861_vm10, %v2584_v21  ;;  %vm13866_vm10 = vmmov %vm13865_vm15  ;;  %v425_v21 = vshra.s32 %v361_v24, 4 }
 0x1c3   : > { %2306 = vrot.lane.b32.xlu1 %v2217_v52, %s8128_s14  ;;  %v2871_v10 = vpop.permute.xlu0 %2870  ;;  %v2507_v52 = vsel %vm10263_vm12, %v10267_v63, 0.0 }
 0x1c4   : > { %2949 = vst.msk [vmem:[#allocation6 + $0x90] sm:$0xff] %vm13865_vm15, %v2871_v10  ;;  %vm13867_vm15 = vcmask 294144   ;;  %v2506_v10 = vsel %vm13295_vm4, %v1641_v36, 0.0 }
 0x1c5   : > { %v2869_v9 = vpop.permute.xlu1 %2868  ;;  %2593 = vrot.lane.b32.xlu0 %v2505_v59, %s8129_s16 }
 0x1c6   : > { %2948 = vst.msk [vmem:[#allocation6 + $0x88] sm:$0xff] %vm13866_vm10, %v2869_v9  ;;  %vm13302_vm10 = vcmp.le.s32.totalorder %v9999_v34, 14  ;;  %v10288_v9 = vld [vmem:[#allocation2 + $0xff] sm:$0xff] }
 0x1c7   : > { %2310 = vrot.lane.b32.xlu1 %v2219_v61, %s8128_s14  ;;  %v3156_v50 = vpop.permute.xlu0 %3155  ;;  %v2794_v61 = vsel %vm13294_vm14, %v10216_v56, 0.0  ;;  %vm13870_vm14 = vcmp.le.s32.totalorder %v9959_v44, 14 }
 0x1c8   : > { %3236 = vst.msk [vmem:[#allocation6 + $0x80] sm:$0xff] %vm13867_vm15, %v3156_v50  ;;  %v10294_v50 = vand.u32 15, %v425_v21  ;;  %v2796_v24 = vsel %vm13870_vm14, %v10297_v2, 0.0  ;;  %vm13876_vm14 = vcmask 64544   ;;  %v7989_v21 = vld [vmem:[%s13049_s5 + $0x70] sm:$0xff]  }
 0x1c9   : > { %v2873_v59 = vpop.permute.xlu1 %2872  ;;  %2597 = vrot.lane.b32.xlu0 %v2507_v52, %s8129_s16  ;;  %v2508_v52 = vsel %vm13302_vm10, %v10288_v9, 0.0  ;;  %vm13879_vm10 = vcmask 294144  }
 0x1ca   : > { %2950 = vst.msk [vmem:[#allocation6 + $0x98] sm:$0xff] %vm13868_vm0, %v2873_v59  ;;  %v426_v59 = vshra.s32 %v10284_v38, 4  ;;  %vm13869_vm0 = vmmov %vm13867_vm15  ;;  %vm13301_vm4 = vcmp.ge.s32.totalorder %v10294_v50, 1 }
 0x1cb   : > { %2595 = vrot.lane.b32.xlu1 %v2506_v10, %s8129_s16  ;;  %v3160_v36 = vpop.permute.xlu0 %3159  ;;  %v395_v10 = vand.u32 15, %v9886_v62 }
 0x1cc   : > { %3238 = vst.msk [vmem:[#allocation6 + $0x90] sm:$0xff] %vm13867_vm15, %v3160_v36  ;;  %vm10320_vm15 = vmand %vm13301_vm4, %vm10310_vm2  ;;  %v10328_v31 = vand.u32 15, %v426_v59  ;;  %vm13878_vm4 = vcmask 31744  }
 0x1cd   : > { %v3158_v32 = vpop.permute.xlu1 %3157  ;;  %2882 = vrot.lane.b32.xlu0 %v2794_v61, %s8130_s17  ;;  %v904_v61 = vld [vmem:[#allocation2 + $0xe7] sm:$0xff]  ;;  %vm10341_vm12 = vcmp.ge.s32.totalorder %v395_v10, 1 }
 0x1ce   : > { %3237 = vst.msk [vmem:[#allocation6 + $0x88] sm:$0xff] %vm13869_vm0, %v3158_v32  ;;  %v13873_v32 = vmov 0  ;;  %vm13877_vm0 = vcmp.le.s32.totalorder %v9979_v29, 14  ;;  %v1000_v62 = vsel %vm10320_vm15, %v904_v61, 0.0  ;;  %vm13325_vm9 = vcmp.ge.s32.totalorder %v10328_v31, 1 }
 0x1cf   : > { %2599 = vrot.lane.b32.xlu1 %v2508_v52, %s8129_s16  ;;  %v1237_v36 = vpop.permute.xlu0 %1236  ;;  %v13874_v32 = vsel %vm10320_vm15, 4294967295, %v13873_v32  ;;  %v2795_v19 = vsel %vm13877_vm0, %v10226_v4, 0.0  ;;  %1032 = vst.msk [vmem:[#allocation6 + $0xe0] sm:$0xff] %vm13878_vm4, %v1000_v62  ;;  %vm13310_vm0 = vcmp.ge.s32.totalorder %v9926_v6, 1  ;;  %v13883_v62 = vmov 0 }
 0x1d0   : > { %13875 = vst [vmem:[#allocation102_spill] sm:$0xff] %v13874_v32  ;;  %1313 = vst.msk [vmem:[#allocation6 + $0xa0] sm:$0xff] %vm13876_vm14, %v1237_v36  ;;  %vm13880_vm14 = vcmp.le.s32.totalorder %v9938_v11, 14  ;;  %v10346_v32 = vld [vmem:[#allocation2 + $0xf9] sm:$0xff] }
 0x1d1   : > { %v3162_v52 = vpop.permute.xlu1 %3161  ;;  %2886 = vrot.lane.b32.xlu0 %v2796_v24, %s8130_s17  ;;  %v3083_v36 = vsel %vm13880_vm14, %v10232_v23, 0.0  ;;  %v3268_v24 = vld [vmem:[#allocation6 + $0x80] sm:$0xff]  ;;  %vm10352_vm4 = vmand %vm13310_vm0, %vm10341_vm12  ;;  %vm13887_vm14 = vcmp.le.s32.totalorder %v9999_v34, 14  ;;  %vm13888_vm0 = vcmp.le.s32.totalorder %v9979_v29, 14 }
 0x1d2   : > { %3239 = vst.msk [vmem:[#allocation6 + $0x98] sm:$0xff] %vm13879_vm10, %v3162_v52  ;;  %v13884_v62 = vsel %vm10352_vm4, 4294967295, %v13883_v62  ;;  %vm13886_vm10 = vcmask 64544   ;;  %v2797_v10 = vsel %vm13887_vm14, %v10333_v39, 0.0  ;;  %v905_v52 = vld [vmem:[#allocation2 + $0xef] sm:$0xff]  ;;  %vm13892_vm14 = vcmask 31744  }
 0x1d3   : > { %2884 = vrot.lane.b32.xlu1 %v2795_v19, %s8130_s17  ;;  %v1241_v61 = vpop.permute.xlu0 %1240  ;;  %13885 = vst [vmem:[#allocation103_spill] sm:$0xff] %v13884_v62  ;;  %v1002_v19 = vsel %vm10352_vm4, %v10267_v63, 0.0  ;;  %v1001_v33 = vsel %vm13325_vm9, %v905_v52, 0.0  ;;  %vm13894_vm4 = vcmp.le.s32.totalorder %v9959_v44, 14  ;;  %vm13895_vm15 = vmmov %vm13892_vm14  ;;  %v3270_v29 = vld [vmem:[#allocation6 + $0x90] sm:$0xff] }
 0x1d4   : > { %1315 = vst.msk [vmem:[#allocation6 + $0xb0] sm:$0xff] %vm13886_vm10, %v1241_v61  ;;  %vm10369_vm10 = vmand %vm13888_vm0, %vm10090_vm7  ;;  %v13889_v61 = vmov 0  ;;  %vm13321_vm0 = vcmp.ge.s32.totalorder %v10137_v42, 1  ;;  %vm13896_vm7 = vcmask 97344  }
 0x1d5   : > { %v1239_v11 = vpop.permute.xlu1 %1238  ;;  %3171 = vrot.lane.b32.xlu0 %v3083_v36, %s8131_s21  ;;  %v3269_v41 = vld [vmem:[#allocation6 + $0x88] sm:$0xff]  ;;  %v13890_v61 = vsel %vm10369_vm10, 4294967295, %v13889_v61  ;;  %1034 = vst.msk [vmem:[#allocation6 + $0xf0] sm:$0xff] %vm13892_vm14, %v1002_v19  ;;  %v3085_v36 = vsel %vm13894_vm4, %v10346_v32, 0.0  ;;  %vm13897_vm14 = vcmask 293888   ;;  %vm13903_vm4 = vcmask 64544  }
 0x1d6   : > { %13891 = vst [vmem:[#allocation104_spill] sm:$0xff] %v13890_v61  ;;  %1314 = vst.msk [vmem:[#allocation6 + $0xa8] sm:$0xff] %vm13893_vm5, %v1239_v11  ;;  %v3292_v62 = vpack.c.bf16 %v3269_v41, %v3268_v24  ;;  %v3084_v41 = vsel %vm10369_vm10, %v10251_v60, 0.0  ;;  %v1003_v11 = vsel %vm13321_vm0, %v10288_v9, 0.0  ;;  %vm13898_vm5 = vcmp.le.s32.totalorder %v9999_v34, 14 }
 0x1d7   : > { %1033 = vst.msk [vmem:[#allocation6 + $0xe8] sm:$0xff] %vm13895_vm15, %v1001_v33  ;;  %2888 = vrot.lane.b32.xlu1 %v2797_v10, %s8130_s17  ;;  %v1526_v1 = vpop.permute.xlu0 %1525  ;;  %vm10396_vm15 = vmand %vm13898_vm5, %vm10116_vm3  ;;  %vm13905_vm0 = vcmask 97344   ;;  %vm13906_vm5 = vcmask 293888  }
 0x1d8   : > { %1602 = vst.msk [vmem:[#allocation6 + $0xa0] sm:$0xff] %vm13896_vm7, %v1526_v1  ;;  %7823 = vmatprep.mubr.msk.bf16.mxu0 %vm13897_vm14, %v3292_v62  ;;  %v13899_v1 = vmov 0  ;;  %v10400_v62 = vld [vmem:[#allocation2 + $0x101] sm:$0xff]  ;;  %vm13902_vm7 = vcmask 31744   ;;  %vm13904_vm14 = vcmp.ge.s32.totalorder %v10294_v50, 1 }
 0x1d9   : > { %v1243_v24 = vpop.permute.xlu1 %1242  ;;  %3175 = vrot.lane.b32.xlu0 %v3085_v36, %s8131_s21  ;;  %v3271_v33 = vld [vmem:[#allocation6 + $0x98] sm:$0xff]  ;;  %v13900_v1 = vsel %vm10396_vm15, 4294967295, %v13899_v1  ;;  %1035 = vst.msk [vmem:[#allocation6 + $0xf8] sm:$0xff] %vm13902_vm7, %v1003_v11  ;;  %v1160_v19 = vsel %vm13904_vm14, %v10216_v56, 0.0  ;;  %v3086_v57 = vsel %vm10396_vm15, %v10400_v62, 0.0  ;;  %vm13907_vm7 = vmmov %vm13905_vm0  ;;  %vm13910_vm14 = vcmask 261120  }
 0x1da   : > { %13901 = vst [vmem:[#allocation105_spill] sm:$0xff] %v13900_v1  ;;  %1316 = vst.msk [vmem:[#allocation6 + $0xb8] sm:$0xff] %vm13903_vm4, %v1243_v24  ;;  %v3293_v10 = vpack.c.bf16 %v3271_v33, %v3270_v29  ;;  %vm13908_vm4 = vcmp.ge.s32.totalorder %v9926_v6, 1 }
 0x1db   : > { %3173 = vrot.lane.b32.xlu1 %v3084_v41, %s8131_s21  ;;  %v1530_v52 = vpop.permute.xlu0 %1529  ;;  %v1162_v56 = vsel %vm13908_vm4, %v10297_v2, 0.0  ;;  %v394_v41 = vand.u32 15, %v10284_v38 }
 0x1dc   : > { %1604 = vst.msk [vmem:[#allocation6 + $0xb0] sm:$0xff] %vm13905_vm0, %v1530_v52  ;;  %v7813_v36 = vpop.f32.mrf.mxu0  ;;  %7824 = vmatmul.mubr.msk.bf16.gmra.mxu0 %vm13906_vm5, %v3293_v10  ;;  %vm13909_vm0 = vcmask 130144   ;;  %vm13911_vm5 = vmmov %vm13907_vm7 }
 0x1dd   : > { %v3439_v11 = vadd.f32 %v7813_v36, %v10058_v8  ;;  %v1528_v24 = vpop.permute.xlu1 %1527  ;;  %1252 = vrot.lane.b32.xlu0 %v1160_v19, %s8124_s26  ;;  %v1161_v19 = vsel %vm13325_vm9, %v10226_v4, 0.0  ;;  %vm10433_vm4 = vcmp.le.s32.totalorder %v394_v41, 14 }
 0x1de   : > { %1603 = vst.msk [vmem:[#allocation6 + $0xa8] sm:$0xff] %vm13907_vm7, %v1528_v24  ;;  %v3430_v29 = vpop.f32.mrf.mxu0  ;;  %vm13912_vm7 = vcmp.ge.s32.totalorder %v10294_v50, 1 }
 0x1df   : > { %v3547_v33 = vmax.f32 %v3439_v11, 0.0  ;;  %v3431_v10 = vadd.f32 %v10058_v8, %v3430_v29  ;;  %3177 = vrot.lane.b32.xlu1 %v3086_v57, %s8131_s21  ;;  %v1815_v52 = vpop.permute.xlu0 %1814  ;;  %v1449_v57 = vsel %vm13912_vm7, %v10232_v23, 0.0  ;;  %vm13919_vm7 = vcmp.ge.s32.totalorder %v10328_v31, 1 }
 0x1e0   : > { %1891 = vst.msk [vmem:[#allocation6 + $0xa0] sm:$0xff] %vm13909_vm0, %v1815_v52  ;;  %v7814_v36 = vpop.f32.mrf.mxu0  ;;  %vm13915_vm0 = vmmov %vm13910_vm14 }
 0x1e1   : > { %3586 = vst.msk [vmem:[#allocation3 + $0x48] sm:$0xff] %vm13910_vm14, %v3547_v33  ;;  %v3545_v24 = vmax.f32 %v3431_v10, 0.0  ;;  %v3442_v1 = vadd.f32 %v7814_v36, %v10058_v8  ;;  %v1532_v61 = vpop.permute.xlu1 %1531  ;;  %1256 = vrot.lane.b32.xlu0 %v1162_v56, %s8124_s26  ;;  %vm13916_vm14 = vcmask 130144   ;;  %vm13918_vm9 = vmmov %vm13915_vm0 }
 0x1e2   : > { %1605 = vst.msk [vmem:[#allocation6 + $0xb8] sm:$0xff] %vm13911_vm5, %v1532_v61  ;;  %v3433_v38 = vpop.f32.mrf.mxu0  ;;  %vm13917_vm5 = vcmp.ge.s32.totalorder %v10137_v42, 1  ;;  %vm13922_vm15 = vmmov %vm13916_vm14 }
 0x1e3   : > { %3584 = vst.msk [vmem:[#allocation3 + $0x38] sm:$0xff] %vm13915_vm0, %v3545_v24  ;;  %v3548_v4 = vmax.f32 %v3442_v1, 0.0  ;;  %v3434_v29 = vadd.f32 %v10058_v8, %v3433_v38  ;;  %1254 = vrot.lane.b32.xlu1 %v1161_v19, %s8124_s26  ;;  %v1819_v33 = vpop.permute.xlu0 %1818  ;;  %v1163_v61 = vsel %vm13917_vm5, %v10333_v39, 0.0  ;;  %vm10450_vm0 = vmand %vm13919_vm7, %vm10433_vm4  ;;  %v13927_v24 = vmov 0 }
 0x1e4   : > { %1893 = vst.msk [vmem:[#allocation6 + $0xb0] sm:$0xff] %vm13916_vm14, %v1819_v33  ;;  %vm13923_vm14 = vcmp.ge.s32.totalorder %v9926_v6, 1  ;;  %vm13924_vm5 = vmmov %vm13918_vm9  ;;  %v1450_v52 = vsel %vm10450_vm0, %v10251_v60, 0.0  ;;  %v1738_v60 = vsel %vm10310_vm2, %v10267_v63, 0.0 }
 0x1e5   : > { %3587 = vst.msk [vmem:[#allocation3 + $0x50] sm:$0xff] %vm13918_vm9, %v3548_v4  ;;  %v3546_v23 = vmax.f32 %v3434_v29, 0.0  ;;  %v1817_v56 = vpop.permute.xlu1 %1816  ;;  %1541 = vrot.lane.b32.xlu0 %v1449_v57, %s8125_s27  ;;  %v1451_v41 = vsel %vm13923_vm14, %v10346_v32, 0.0  ;;  %vm13925_vm9 = vcmask 162944   ;;  %vm13929_vm14 = vmmov %vm13924_vm5  ;;  %v10487_v29 = vld [vmem:[#allocation2 + $0x107] sm:$0xff] }
 0x1e6   : > { %1892 = vst.msk [vmem:[#allocation6 + $0xa8] sm:$0xff] %vm13922_vm15, %v1817_v56  ;;  %vm13926_vm15 = vcmp.ge.s32.totalorder %v10137_v42, 1 }
 0x1e7   : > { %3585 = vst.msk [vmem:[#allocation3 + $0x40] sm:$0xff] %vm13924_vm5, %v3546_v23  ;;  %1258 = vrot.lane.b32.xlu1 %v1163_v61, %s8124_s26  ;;  %v2008_v10 = vpop.permute.xlu0 %2007  ;;  %vm10471_vm7 = vmand %vm13926_vm15, %vm10152_vm8  ;;  %vm13930_vm5 = vcmask 130144   ;;  %vm13932_vm15 = vcmask 162944  }
 0x1e8   : > { %2084 = vst.msk [vmem:[#allocation6 + $0xa0] sm:$0xff] %vm13925_vm9, %v2008_v10  ;;  %v10464_v36 = vld [vmem:[#allocation3 + $0x48] sm:$0xff]  ;;  %v13928_v24 = vsel %vm10471_vm7, 4294967295, %v13927_v24  ;;  %vm13931_vm9 = vmmov %vm13929_vm14  ;;  %v1452_v63 = vsel %vm10471_vm7, %v10400_v62, 0.0  ;;  %vm13966_vm7 = vcmp.le.s32.totalorder %v9926_v6, 14 }
 0x1e9   : > { %v1821_v19 = vpop.permute.xlu1 %1820  ;;  %1545 = vrot.lane.b32.xlu0 %v1451_v41, %s8125_s27  ;;  %4421 = vst.msk [vmem:[#allocation7 + $0x98] sm:$0xff] %vm13929_vm14, %v10464_v36  ;;  %vm13934_vm14 = vcmp.le.s32.totalorder %v8480_v35, 14 }
 0x1ea   : > { %v10477_v38 = vld [vmem:[#allocation3 + $0x31] sm:$0xff]  ;;  %1894 = vst.msk [vmem:[#allocation6 + $0xb8] sm:$0xff] %vm13930_vm5, %v1821_v19 }
 0x1eb   : > { %v5152_v57 = vsel %vm8572_vm6, %v10477_v38, 0.0  ;;  %1543 = vrot.lane.b32.xlu1 %v1450_v52, %s8125_s27  ;;  %v2012_v4 = vpop.permute.xlu0 %2011  ;;  %v4387_v33 = vld [vmem:[#allocation3 + $0x38] sm:$0xff]  ;;  %vm13933_vm6 = vmmov %vm13931_vm9 }
 0x1ec   : > { %v3618_v61 = vld [vmem:[#allocation3 + $0x37] sm:$0xff]  ;;  %5184 = vst.msk [vmem:[#allocation7 + $0x28] sm:$0xff] %vm13931_vm9, %v5152_v57  ;;  %v10490_v23 = vld [vmem:[#allocation3 + $0x49] sm:$0xff]  ;;  %vm13935_vm5 = vmmov %vm13933_vm6  ;;  %v1740_v57 = vsel %vm10341_vm12, %v10487_v29, 0.0 }
 0x1ed   : > { %2086 = vst.msk [vmem:[#allocation6 + $0xb0] sm:$0xff] %vm13932_vm15, %v2012_v4  ;;  %v10496_v56 = vld [vmem:[#allocation3 + $0x50] sm:$0xff]  ;;  %v5155_v25 = vsel %vm13934_vm14, %v10490_v23, 0.0  ;;  %v2010_v41 = vpop.permute.xlu1 %2009  ;;  %1830 = vrot.lane.b32.xlu0 %v1738_v60, %s8126_s28  ;;  %vm13936_vm9 = vmmov %vm13935_vm5  ;;  %v3650_v4 = vsel %vm8557_vm1, %v3618_v61, 0.0  ;;  %vm13938_vm14 = vcmp.le.s32.totalorder %v8284_v20, 14 }
 0x1ee   : > { %4419 = vst.msk [vmem:[#allocation7 + $0x68] sm:$0xff] %vm13933_vm6, %v4387_v33  ;;  %v3621_v10 = vld [vmem:[#allocation3 + $0x4f] sm:$0xff]  ;;  %v10506_v52 = vld [vmem:[#allocation3 + $0x39] sm:$0xff]  ;;  %v10508_v19 = vld [vmem:[#allocation3 + $0x41] sm:$0xff]  ;;  %vm13937_vm6 = vcmp.ge.s32.totalorder %v8781_v54, 1 }
 0x1ef   : > { %4422 = vst.msk [vmem:[#allocation7 + $0xb0] sm:$0xff] %vm13935_vm5, %v10496_v56  ;;  %v3653_v60 = vsel %vm13937_vm6, %v3621_v10, 0.0  ;;  %v5153_v33 = vsel %vm13938_vm14, %v10506_v52, 0.0  ;;  %1547 = vrot.lane.b32.xlu1 %v1452_v63, %s8125_s27  ;;  %3682 = vst.msk [vmem:[#allocation7 + $0x90] sm:$0xff] %vm13935_vm5, %v3650_v4  ;;  %vm13942_vm6 = vcmask 195744   ;;  %v4388_v12 = vld [vmem:[#allocation3 + $0x40] sm:$0xff] }
 0x1f0   : > { %5187 = vst.msk [vmem:[#allocation7 + $0x70] sm:$0xff] %vm13936_vm9, %v5155_v25  ;;  %v5154_v25 = vsel %vm8595_vm11, %v10508_v19, 0.0  ;;  %vm13939_vm9 = vmmov %vm13935_vm5  ;;  %v3619_v61 = vld [vmem:[#allocation3 + $0x3f] sm:$0xff]  ;;  %vm13944_vm11 = vcmp.ge.s32.totalorder %v8551_v53, 1  ;;  %v3620_v63 = vld [vmem:[#allocation3 + $0x47] sm:$0xff]  ;;  %s323_s27 = sand.u32 1, %s8113_s10  }
 0x1f1   : > { %2085 = vst.msk [vmem:[#allocation6 + $0xa8] sm:$0xff] %vm13932_vm15, %v2010_v41  ;;  %v2297_v41 = vpop.permute.xlu0 %2296  ;;  %vm13940_vm15 = vmmov %vm13935_vm5  ;;  %v2014_v10 = vpop.permute.xlu1 %2013  ;;  %1834 = vrot.lane.b32.xlu0 %v1740_v57, %s8126_s28  ;;  %v3651_v30 = vsel %vm13944_vm11, %v3619_v61, 0.0  ;;  %v1645_v57 = vld [vmem:[#allocation2 + $0x10f] sm:$0xff]  ;;  %vm13949_vm11 = vcmask 228544   ;;  %s7308_s25 = scalar_lea.sflag [#allocation10], %s323_s27 }
 0x1f2   : > { %3685 = vst.msk [vmem:[#allocation7 + $0xd8] sm:$0xff] %vm13939_vm9, %v3653_v60  ;;  %vm13941_vm1 = vmmov %vm13935_vm5  ;;  %vm13945_vm5 = vcmask 162944   ;;  %v2126_v61 = vld [vmem:[#allocation2 + $0x109] sm:$0xff] }
 0x1f3   : > { %5185 = vst.msk [vmem:[#allocation7 + $0x40] sm:$0xff] %vm13940_vm15, %v5153_v33  ;;  %vm13943_vm14 = vmmov %vm13941_vm1  ;;  %vm13947_vm15 = vnez %v13431_v0  ;;  %1832 = vrot.lane.b32.xlu1 %v10288_v9, %s8126_s28 }
 0x1f4   : > { %5186 = vst.msk [vmem:[#allocation7 + $0x58] sm:$0xff] %vm13941_vm1, %v5154_v25  ;;  %vm13946_vm9 = vmmov %vm13941_vm1  ;;  %v3652_v4 = vsel %vm13947_vm15, %v3620_v63, 0.0  ;;  %v1933_v25 = vld [vmem:[#allocation2 + $0x108] sm:$0xff]  ;;  %vm13329_vm15 = vcmp.le.s32.totalorder %v10294_v50, 14  ;;  %v10570_v63 = vld [vmem:[#allocation2 + $0x111] sm:$0xff] }
 0x1f5   : > { %2373 = vst.msk [vmem:[#allocation6 + $0xa0] sm:$0xff] %vm13942_vm6, %v2297_v41  ;;  %v2301_v60 = vpop.permute.xlu0 %2300  ;;  %v2299_v33 = vpop.permute.xlu1 %2298  ;;  %2023 = vrot.lane.b32.xlu0 %v10297_v2, %s8127_s29  ;;  %v1934_v2 = vld [vmem:[#allocation2 + $0x110] sm:$0xff] }
 0x1f6   : > { %4420 = vst.msk [vmem:[#allocation7 + $0x80] sm:$0xff] %vm13943_vm14, %v4388_v12  ;;  %vm13948_vm14 = vmmov %vm13942_vm6 }
 0x1f7   : > { %2087 = vst.msk [vmem:[#allocation6 + $0xb8] sm:$0xff] %vm13945_vm5, %v2014_v10  ;;  %1836 = vrot.lane.b32.xlu1 %v1645_v57, %s8126_s28  ;;  %vm13950_vm5 = vmmov %vm13942_vm6  ;;  %s7387_s28 = sshll.u32 %s323_s27, 5 }
 0x1f8   : > { %3683 = vst.msk [vmem:[#allocation7 + $0xa8] sm:$0xff] %vm13946_vm9, %v3651_v30  ;;  %vm13951_vm9 = vmmov %vm13949_vm11 }
 0x1f9   : > { %3684 = vst.msk [vmem:[#allocation7 + $0xc0] sm:$0xff] %vm13941_vm1, %v3652_v4  ;;  %v2586_v0 = vpop.permute.xlu0 %2585  ;;  %v2303_v41 = vpop.permute.xlu1 %2302  ;;  %2027 = vrot.lane.b32.xlu0 %v1933_v25, %s8127_s29  ;;  %vm13952_vm1 = vmmov %vm13951_vm9 }
 0x1fa   : > { %2375 = vst.msk [vmem:[#allocation6 + $0xb0] sm:$0xff] %vm13942_vm6, %v2301_v60  ;;  %vm10561_vm6 = vmand %vm13329_vm15, %vm10310_vm2 }
 0x1fb   : > { %2374 = vst.msk [vmem:[#allocation6 + $0xa8] sm:$0xff] %vm13948_vm14, %v2299_v33  ;;  %2025 = vrot.lane.b32.xlu1 %v10333_v39, %s8127_s29  ;;  %vm13955_vm14 = vcmask 261344   ;;  %v2509_v4 = vsel %vm10561_vm6, %v10487_v29, 0.0  ;;  %v2415_v33 = vld [vmem:[#allocation2 + $0x117] sm:$0xff] }
 0x1fc   : > { %2662 = vst.msk [vmem:[#allocation6 + $0xa0] sm:$0xff] %vm13949_vm11, %v2586_v0  ;;  %vm13956_vm11 = vmmov %vm13952_vm1  ;;  %v2223_v0 = vsel %vm10152_vm8, %v10570_v63, 0.0  ;;  %vm14011_vm8 = vcmask 195744  }
 0x1fd   : > { %2376 = vst.msk [vmem:[#allocation6 + $0xb8] sm:$0xff] %vm13950_vm5, %v2303_v41  ;;  %v2590_v9 = vpop.permute.xlu0 %2589  ;;  %v2588_v12 = vpop.permute.xlu1 %2587  ;;  %2312 = vrot.lane.b32.xlu0 %v10346_v32, %s8128_s14  ;;  %v2221_v32 = vsel %vm10433_vm4, %v10400_v62, 0.0  ;;  %vm13957_vm5 = vcmp.le.s32.totalorder %v9926_v6, 14 }
 0x1fe   : > { %2664 = vst.msk [vmem:[#allocation6 + $0xb0] sm:$0xff] %vm13951_vm9, %v2590_v9  ;;  %vm10581_vm9 = vmand %vm13957_vm5, %vm10341_vm12  ;;  %vm13962_vm5 = vcmask 294144  }
 0x1ff   : > { %2663 = vst.msk [vmem:[#allocation6 + $0xa8] sm:$0xff] %vm13952_vm1, %v2588_v12  ;;  %2029 = vrot.lane.b32.xlu1 %v1934_v2, %s8127_s29  ;;  %vm13960_vm1 = vmmov %vm13955_vm14  ;;  %v2511_v29 = vsel %vm10581_vm9, %v2415_v33, 0.0  ;;  %s13341_s29 = smov 64  }
 0x201   : > { %v2875_v10 = vpop.permute.xlu0 %2874  ;;  %v2592_v30 = vpop.permute.xlu1 %2591  ;;  %2316 = vrot.lane.b32.xlu0 %v2126_v61, %s8128_s14 }
 0x202   : > { %2951 = vst.msk [vmem:[#allocation6 + $0xa0] sm:$0xff] %vm13955_vm14, %v2875_v10  ;;  %vm13327_vm14 = vcmp.le.s32.totalorder %v10328_v31, 14 }
 0x203   : > { %2665 = vst.msk [vmem:[#allocation6 + $0xb8] sm:$0xff] %vm13956_vm11, %v2592_v30  ;;  %2314 = vrot.lane.b32.xlu1 %v2221_v32, %s8128_s14  ;;  %vm13961_vm11 = vmmov %vm13960_vm1  ;;  %v2510_v12 = vsel %vm13327_vm14, %v1645_v57, 0.0  ;;  %v2416_v32 = vld [vmem:[#allocation2 + $0x11f] sm:$0xff]  ;;  %v2798_v30 = vsel %vm13329_vm15, %v1933_v25, 0.0  ;;  %vm13968_vm15 = vcmp.le.s32.totalorder %v10328_v31, 14 }
 0x205   : > { %v2879_v60 = vpop.permute.xlu0 %2878  ;;  %v2877_v41 = vpop.permute.xlu1 %2876  ;;  %2601 = vrot.lane.b32.xlu0 %v2509_v4, %s8129_s16 }
 0x206   : > { %2953 = vst.msk [vmem:[#allocation6 + $0xb0] sm:$0xff] %vm13960_vm1, %v2879_v60  ;;  %v2704_v60 = vld [vmem:[#allocation2 + $0x118] sm:$0xff] }
 0x207   : > { %2952 = vst.msk [vmem:[#allocation6 + $0xa8] sm:$0xff] %vm13961_vm11, %v2877_v41  ;;  %2318 = vrot.lane.b32.xlu1 %v2223_v0, %s8128_s14  ;;  %vm13963_vm11 = vmmov %vm13962_vm5  ;;  %v2800_v57 = vsel %vm13966_vm7, %v2704_v60, 0.0  ;;  %v2799_v41 = vsel %vm13968_vm15, %v1934_v2, 0.0  ;;  %v3612_v60 = vld [vmem:[#allocation3 + $0x7] sm:$0xff]  ;;  %vm13971_vm15 = vcmp.le.s32.totalorder %v10137_v42, 14  ;;  %s12973_s14 = scalar_lea.vmem [#allocation9], %s7387_s28 }
 0x208   : > { %vm13965_vm14 = vmmov %vm13963_vm11  ;;  %s7321_s22 = sshll.u32 %s12973_s14, 4  ;;  %s12999_s22 = int_to_ptr.vmem [resolvable:$true] %s7321_s22 }
 0x209   : > { %v3164_v9 = vpop.permute.xlu0 %3163  ;;  %v2881_v10 = vpop.permute.xlu1 %2880  ;;  %2605 = vrot.lane.b32.xlu0 %v2511_v29, %s8129_s16 }
 0x20a   : > { %3240 = vst.msk [vmem:[#allocation6 + $0xa0] sm:$0xff] %vm13962_vm5, %v3164_v9  ;;  %vm13964_vm5 = vcmp.le.s32.totalorder %v10137_v42, 14  ;;  %v2705_v9 = vld [vmem:[#allocation2 + $0x120] sm:$0xff] }
 0x20b   : > { %2954 = vst.msk [vmem:[#allocation6 + $0xb8] sm:$0xff] %vm13960_vm1, %v2881_v10  ;;  %2603 = vrot.lane.b32.xlu1 %v2510_v12, %s8129_s16  ;;  %v2512_v33 = vsel %vm13964_vm5, %v2416_v32, 0.0  ;;  %vm13967_vm1 = vcmask 64544   ;;  %vm13969_vm5 = vcmp.le.s32.totalorder %v10294_v50, 14  ;;  %v2993_v10 = vld [vmem:[#allocation2 + $0x119] sm:$0xff]  ;;  %v2801_v2 = vsel %vm13971_vm15, %v2705_v9, 0.0 }
 0x20c   : > { %v3087_v12 = vsel %vm13969_vm5, %v2126_v61, 0.0  ;;  %vm13970_vm7 = vmmov %vm13967_vm1  ;;  %v7970_v61 = vld [vmem:[%s13047_s3 + $0x38] sm:$0xff]   ;;  %vm13976_vm5 = vcmask 261120   ;;  %vm13977_vm15 = vcmp.le.s32.totalorder %v9926_v6, 14 }
 0x20d   : > { %v3168_v4 = vpop.permute.xlu0 %3167  ;;  %v3166_v0 = vpop.permute.xlu1 %3165  ;;  %2890 = vrot.lane.b32.xlu0 %v2798_v30, %s8130_s17 }
 0x20e   : > { %3242 = vst.msk [vmem:[#allocation6 + $0xb0] sm:$0xff] %vm13963_vm11, %v3168_v4  ;;  %v7969_v4 = vld [vmem:[%s13047_s3 + $0x78] sm:$0xff]  }
 0x20f   : > { %3241 = vst.msk [vmem:[#allocation6 + $0xa8] sm:$0xff] %vm13965_vm14, %v3166_v0  ;;  %2607 = vrot.lane.b32.xlu1 %v2512_v33, %s8129_s16  ;;  %vm13972_vm14 = vnez %v13351_v28  ;;  %7575 = vmatprep.subr.bf16.mxu1 %v7969_v4  ;;  %s7532_s16 = sshll.u32 %s8206_s13, 9  ;;  %s8134_s13 = smov [#allocation9]  }
 0x210   : > { %v3644_v33 = vsel %vm13972_vm14, %v3612_v60, 0.0  ;;  %7576 = vmatpush3.bf16.msra.mxu1 %v7970_v61  ;;  %vm13978_vm14 = vcmask 97344   ;;  %s8065_s28 = sshll.u32 %s8134_s13, 4  ;;  %s8066_s28 = int_to_ptr.vmem [resolvable:$false] %s8065_s28 }
 0x211   : > { %v1245_v25 = vpop.permute.xlu0 %1244  ;;  %v3170_v29 = vpop.permute.xlu1 %3169  ;;  %2894 = vrot.lane.b32.xlu0 %v2800_v57, %s8130_s17  ;;  %v3272_v30 = vld [vmem:[#allocation6 + $0xa0] sm:$0xff]  ;;  %3676 = vst.msk [vmem:[#allocation7] sm:$0xff] %vm13976_vm5, %v3644_v33  ;;  %vm13980_vm5 = vcmp.ge.s32.totalorder %v8276_v16, 1  ;;  %p8068_p0 = scmp.lt.s32.totalorder %s12999_s22, %s8066_s28 }
 0x212   : > { %1317 = vst.msk [vmem:[#allocation6 + $0xc0] sm:$0xff] %vm13967_vm1, %v1245_v25  ;;  %vm13973_vm1 = vcmp.le.s32.totalorder %v10328_v31, 14 }
 0x213   : > { %3243 = vst.msk [vmem:[#allocation6 + $0xb8] sm:$0xff] %vm13963_vm11, %v3170_v29  ;;  %2892 = vrot.lane.b32.xlu1 %v2799_v41, %s8130_s17  ;;  %vm10635_vm11 = vmand %vm13973_vm1, %vm10433_vm4  ;;  %v3089_v41 = vsel %vm13977_vm15, %v2993_v10, 0.0  ;;  %vm13979_vm1 = vcmask 293888   ;;  %v7972_v10 = vld [vmem:[%s13047_s3 + $0x30] sm:$0xff]   ;;  %vm13981_vm15 = vcmask 261120  }
 0x215   : > { %v1249_v32 = vpop.permute.xlu0 %1248  ;;  %v1247_v0 = vpop.permute.xlu1 %1246  ;;  %3179 = vrot.lane.b32.xlu0 %v3087_v12, %s8131_s21  ;;  %v3274_v9 = vld [vmem:[#allocation6 + $0xb0] sm:$0xff]  ;;  %v3088_v12 = vsel %vm10635_vm11, %v10570_v63, 0.0 }
 0x216   : > { %1319 = vst.msk [vmem:[#allocation6 + $0xd0] sm:$0xff] %vm13970_vm7, %v1249_v32  ;;  %v3273_v57 = vld [vmem:[#allocation6 + $0xa8] sm:$0xff]  ;;  %1318 = vst.msk [vmem:[#allocation6 + $0xc8] sm:$0xff] %vm13970_vm7, %v1247_v0  ;;  %v7971_v32 = vld [vmem:[%s13047_s3 + $0x70] sm:$0xff]  }
 0x217   : > { %v3294_v28 = vpack.c.bf16 %v3273_v57, %v3272_v30  ;;  %2896 = vrot.lane.b32.xlu1 %v2801_v2, %s8130_s17  ;;  %v3613_v30 = vld [vmem:[#allocation3 + $0xf] sm:$0xff]  ;;  %7577 = vmatprep.subr.bf16.mxu1 %v7971_v32  ;;  %s8061_s17 = scalar_lea.vmem %s12999_s22, 512 }
 0x218   : > { %v2994_v2 = vld [vmem:[#allocation2 + $0x121] sm:$0xff]  ;;  %v3645_v33 = vsel %vm13980_vm5, %v3613_v30, 0.0  ;;  %v3708_v0 = vld [vmem:[#allocation3 + $0x8] sm:$0xff]  ;;  %7578 = vmatpush3.bf16.msra.mxu1 %v7972_v10  ;;  %vm13982_vm5 = vmmov %vm13978_vm14  ;;  %p8062_p11 = scmp.ne.s32.totalorder %s12999_s22, %s8061_s17 }
 0x219   : > { %v1534_v29 = vpop.permute.xlu0 %1533  ;;  %7827 = vmatprep.mubr.msk.bf16.mxu0 %vm13979_vm1, %v3294_v28  ;;  %v1251_v4 = vpop.permute.xlu1 %1250  ;;  %3183 = vrot.lane.b32.xlu0 %v3089_v41, %s8131_s21  ;;  %3677 = vst.msk [vmem:[#allocation7 + $0x18] sm:$0xff] %vm13981_vm15, %v3645_v33  ;;  %v10663_v28 = vld [vmem:[#allocation3 + $0x19] sm:$0xff]  ;;  %v3090_v41 = vsel %vm10170_vm13, %v2994_v2, 0.0  ;;  %vm13983_vm13 = vcmp.ge.s32.totalorder %v8260_v7, 1  ;;  %v10684_v33 = vld [vmem:[#allocation3 + $0x21] sm:$0xff] }
 0x21a   : > { %1606 = vst.msk [vmem:[#allocation6 + $0xc0] sm:$0xff] %vm13978_vm14, %v1534_v29  ;;  %v3275_v60 = vld [vmem:[#allocation6 + $0xb8] sm:$0xff]  ;;  %v7973_v29 = vld [vmem:[%s13047_s3 + $0x68] sm:$0xff]   ;;  %v3740_v30 = vsel %vm13983_vm13, %v3708_v0, 0.0  ;;  %v7977_v0 = vld [vmem:[%s13047_s3 + $0x80] sm:$0xff]   ;;  %p8063_p12 = pnand %p8062_p11, %p8223_p5 }
 0x21b   : > { %1320 = vst.msk [vmem:[#allocation6 + $0xd8] sm:$0xff] %vm13970_vm7, %v1251_v4  ;;  %v3295_v63 = vpack.c.bf16 %v3275_v60, %v3274_v9  ;;  %3181 = vrot.lane.b32.xlu1 %v3088_v12, %s8131_s21  ;;  %v7974_v9 = vld [vmem:[%s13047_s3 + $0x88] sm:$0xff]   ;;  %7579 = vmatprep.subr.bf16.mxu1 %v7973_v29  ;;  %vm13984_vm7 = vcmask 130144  }
 0x21c   : > { %v7817_v57 = vpop.f32.mrf.mxu0  ;;  %v7975_v10 = vld [vmem:[%s13047_s3 + $0x28] sm:$0xff]   ;;  %7839 = vmatprep.subr.bf16.mxu0 %v7974_v9  ;;  %vm13988_vm13 = vmmov %vm13984_vm7  ;;  %p8064_p13 = pneg %p8063_p12 }
 0x21d   : > { %v1538_v61 = vpop.permute.xlu0 %1537  ;;  %7828 = vmatmul.mubr.msk.bf16.gmra.mxu0 %vm13979_vm1, %v3295_v63  ;;  %v3455_v12 = vadd.f32 %v7817_v57, %v10058_v8  ;;  %v1536_v32 = vpop.permute.xlu1 %1535  ;;  %4543 = vrot.lane.b32.xlu0 %v10663_v28, %s8131_s21  ;;  %vm13986_vm1 = vnez %v13354_v43 }
 0x21e   : > { %1608 = vst.msk [vmem:[#allocation6 + $0xd0] sm:$0xff] %vm13978_vm14, %v1538_v61  ;;  %v3446_v27 = vpop.f32.mrf.mxu0  ;;  %7580 = vmatpush3.bf16.msra.mxu1 %v7975_v10  ;;  %7840 = vmatpush3.bf16.msra.mxu0 %v7974_v9  ;;  %v7976_v61 = vld [vmem:[%s13047_s3 + $0x60] sm:$0xff]   ;;  %vm13985_vm14 = vmmov %vm13982_vm5 }
 0x21f   : > { %1607 = vst.msk [vmem:[#allocation6 + $0xc8] sm:$0xff] %vm13982_vm5, %v1536_v32  ;;  %v3551_v4 = vmax.f32 %v3455_v12, 0.0  ;;  %v3447_v60 = vadd.f32 %v10058_v8, %v3446_v27  ;;  %3185 = vrot.lane.b32.xlu1 %v3090_v41, %s8131_s21  ;;  %v10696_v12 = vld [vmem:[#allocation3 + $0x27] sm:$0xff]  ;;  %v3709_v32 = vld [vmem:[#allocation3 + $0x10] sm:$0xff]  ;;  %v4480_v27 = vsel %vm13986_vm1, %v10684_v33, 0.0  ;;  %7581 = vmatprep.subr.bf16.mxu1 %v7976_v61  ;;  %vm13987_vm5 = vmmov %vm13981_vm15 }
 0x220   : > { %v7818_v63 = vpop.f32.mrf.mxu0  ;;  %v7978_v9 = vld [vmem:[%s13047_s3 + $0x20] sm:$0xff]   ;;  %7841 = vmatprep.subr.bf16.mxu0 %v7977_v0  ;;  %v7979_v61 = vld [vmem:[%s13047_s3 + $0x58] sm:$0xff]   ;;  %vm13992_vm1 = vmmov %vm13988_vm13 }
 0x221   : > { %v1823_v2 = vpop.permute.xlu0 %1822  ;;  %3590 = vst.msk [vmem:[#allocation3 + $0x68] sm:$0xff] %vm13981_vm15, %v3551_v4  ;;  %v3549_v57 = vmax.f32 %v3447_v60, 0.0  ;;  %v3458_v41 = vadd.f32 %v7818_v63, %v10058_v8  ;;  %v1540_v29 = vpop.permute.xlu1 %1539  ;;  %3804 = vrot.lane.b32.xlu0 %v3740_v30, %s8131_s21  ;;  %vm13990_vm15 = vcmp.ge.s32.totalorder %v8276_v16, 1 }
 0x222   : > { %1895 = vst.msk [vmem:[#allocation6 + $0xc0] sm:$0xff] %vm13984_vm7, %v1823_v2  ;;  %v3449_v10 = vpop.f32.mrf.mxu0  ;;  %v3933_v2 = vld [vmem:[#allocation3 + $0x9] sm:$0xff]  ;;  %7582 = vmatpush3.bf16.msra.mxu1 %v7978_v9  ;;  %vm13989_vm7 = vnez %v13370_v17  ;;  %v3741_v43 = vsel %vm13990_vm15, %v3709_v32, 0.0  ;;  %7842 = vmatpush3.bf16.msra.mxu0 %v7977_v0  ;;  %v7981_v32 = vld [vmem:[%s13047_s3 + $0x50] sm:$0xff]  }
 0x223   : > { %1609 = vst.msk [vmem:[#allocation6 + $0xd8] sm:$0xff] %vm13985_vm14, %v1540_v29  ;;  %v3552_v4 = vmax.f32 %v3458_v41, 0.0  ;;  %v3450_v30 = vadd.f32 %v10058_v8, %v3449_v10  ;;  %4545 = vrot.lane.b32.xlu1 %v4480_v27, %s8131_s21  ;;  %v4703_v63 = vsel %vm13989_vm7, %v10696_v12, 0.0  ;;  %vm13991_vm14 = vmmov %vm13987_vm5  ;;  %v7980_v17 = vld [vmem:[%s13047_s3 + $0x18] sm:$0xff]   ;;  %7583 = vmatprep.subr.bf16.mxu1 %v7979_v61  ;;  %vm13995_vm7 = vcmask 162944   ;;  %v7982_v27 = vld [vmem:[%s13047_s3 + $0x10] sm:$0xff]  }
 0x224   : > { %3588 = vst.msk [vmem:[#allocation3 + $0x58] sm:$0xff] %vm13987_vm5, %v3549_v57  ;;  %vm13993_vm5 = vcmp.ge.s32.totalorder %v8260_v7, 1  ;;  %v10727_v29 = vld [vmem:[#allocation3 + $0x2f] sm:$0xff] }
 0x225   : > { %v1827_v60 = vpop.permute.xlu0 %1826  ;;  %3591 = vst.msk [vmem:[#allocation3 + $0x70] sm:$0xff] %vm13991_vm14, %v3552_v4  ;;  %v3550_v8 = vmax.f32 %v3450_v30, 0.0  ;;  %v1825_v57 = vpop.permute.xlu1 %1824  ;;  %4767 = vrot.lane.b32.xlu0 %v4703_v63, %s13341_s29  ;;  %v3965_v0 = vsel %vm13993_vm5, %v3933_v2, 0.0  ;;  %vm13999_vm5 = vnez %v13443_v3  ;;  %v3934_v63 = vld [vmem:[#allocation3 + $0x11] sm:$0xff] }
 0x226   : > { %1897 = vst.msk [vmem:[#allocation6 + $0xd0] sm:$0xff] %vm13988_vm13, %v1827_v60  ;;  %vm13994_vm13 = vmmov %vm13991_vm14  ;;  %7584 = vmatpush3.bf16.msra.mxu1 %v7980_v17 }
 0x227   : > { %1896 = vst.msk [vmem:[#allocation6 + $0xc8] sm:$0xff] %vm13992_vm1, %v1825_v57  ;;  %3806 = vrot.lane.b32.xlu1 %v3741_v43, %s8131_s21  ;;  %vm13996_vm15 = vmmov %vm13994_vm13  ;;  %7585 = vmatprep.subr.bf16.mxu1 %v7981_v32 }
 0x228   : > { %3589 = vst.msk [vmem:[#allocation3 + $0x60] sm:$0xff] %vm13994_vm13, %v3550_v8  ;;  %v4393_v9 = vld [vmem:[#allocation3 + $0x68] sm:$0xff]  ;;  %vm13997_vm14 = vmmov %vm13992_vm1  ;;  %vm13998_vm1 = vcmp.le.s32.totalorder %v8276_v16, 14 }
 0x229   : > { %v2016_v41 = vpop.permute.xlu0 %2015  ;;  %v1829_v10 = vpop.permute.xlu1 %1828  ;;  %4029 = vrot.lane.b32.xlu0 %v3965_v0, %s13341_s29  ;;  %4425 = vst.msk [vmem:[#allocation7 + $0xf8] sm:$0xff] %vm13996_vm15, %v4393_v9  ;;  %v4704_v30 = vsel %vm13998_vm1, %v10727_v29, 0.0  ;;  %vm14000_vm15 = vcmp.le.s32.totalorder %v8260_v7, 14  ;;  %vm14002_vm1 = vcmp.le.s32.totalorder %v8759_v18, 14  ;;  %v7983_v0 = vld [vmem:[%s13047_s3 + $0x48] sm:$0xff]  }
 0x22a   : > { %2088 = vst.msk [vmem:[#allocation6 + $0xc0] sm:$0xff] %vm13995_vm7, %v2016_v41  ;;  %7586 = vmatpush3.bf16.msra.mxu1 %v7982_v27  ;;  %v4927_v57 = vsel %vm14000_vm15, %v10126_v46, 0.0  ;;  %v7984_v41 = vld [vmem:[%s13047_s3 + $0x8] sm:$0xff]   ;;  %vm14006_vm15 = vnez %v13439_v15  ;;  %v7985_v15 = vld [vmem:[%s13047_s3 + $0x40] sm:$0xff]  }
 0x22b   : > { %v10738_v4 = vld [vmem:[#allocation3 + $0x51] sm:$0xff]  ;;  %1898 = vst.msk [vmem:[#allocation6 + $0xd8] sm:$0xff] %vm13997_vm14, %v1829_v10  ;;  %4769 = vrot.lane.b32.xlu1 %v4704_v30, %s13341_s29  ;;  %vm14001_vm14 = vmmov %vm13994_vm13  ;;  %7587 = vmatprep.subr.bf16.mxu1 %v7983_v0 }
 0x22c   : > { %v5156_v60 = vsel %vm13999_vm5, %v10738_v4, 0.0  ;;  %v4391_v43 = vld [vmem:[#allocation3 + $0x58] sm:$0xff]  ;;  %v10749_v8 = vld [vmem:[#allocation3 + $0x69] sm:$0xff]  ;;  %vm14003_vm5 = vmmov %vm13994_vm13 }
 0x22d   : > { %v2020_v2 = vpop.permute.xlu0 %2019  ;;  %v3622_v61 = vld [vmem:[#allocation3 + $0x57] sm:$0xff]  ;;  %5188 = vst.msk [vmem:[#allocation7 + $0x88] sm:$0xff] %vm13994_vm13, %v5156_v60  ;;  %v5159_v3 = vsel %vm14002_vm1, %v10749_v8, 0.0  ;;  %v2018_v17 = vpop.permute.xlu1 %2017  ;;  %4991 = vrot.lane.b32.xlu0 %v4927_v57, %s8133_s24  ;;  %vm14004_vm13 = vmmov %vm13995_vm7  ;;  %vm14008_vm1 = vnez %v13451_v14  ;;  %v3625_v57 = vld [vmem:[#allocation3 + $0x6f] sm:$0xff] }
 0x22e   : > { %2090 = vst.msk [vmem:[#allocation6 + $0xd0] sm:$0xff] %vm13995_vm7, %v2020_v2  ;;  %vm14005_vm7 = vnez %v13356_v48  ;;  %v3654_v10 = vsel %vm14006_vm15, %v3622_v61, 0.0  ;;  %vm14012_vm15 = vnez %v13349_v22  ;;  %7588 = vmatpush3.bf16.msra.mxu1 %v7984_v41  ;;  %v7986_v14 = vld [vmem:[%s13047_s3] sm:$0xff]  }
 0x22f   : > { %4423 = vst.msk [vmem:[#allocation7 + $0xc8] sm:$0xff] %vm14001_vm14, %v4391_v43  ;;  %v10767_v7 = vld [vmem:[#allocation3 + $0x59] sm:$0xff]  ;;  %v10769_v32 = vld [vmem:[#allocation3 + $0x61] sm:$0xff]  ;;  %v3966_v9 = vsel %vm14005_vm7, %v3934_v63, 0.0  ;;  %vm14007_vm14 = vcmp.le.s32.totalorder %v8485_v37, 14  ;;  %vm14010_vm7 = vmmov %vm14003_vm5  ;;  %v4190_v48 = vsel %vm14012_vm15, %v10145_v58, 0.0  ;;  %7589 = vmatprep.subr.bf16.mxu1 %v7985_v15 }
 0x230   : > { %5191 = vst.msk [vmem:[#allocation7 + $0xd0] sm:$0xff] %vm14003_vm5, %v5159_v3  ;;  %v5157_v27 = vsel %vm14007_vm14, %v10767_v7, 0.0  ;;  %v5158_v30 = vsel %vm14008_vm1, %v10769_v32, 0.0  ;;  %4031 = vrot.lane.b32.xlu1 %v3966_v9, %s13341_s29  ;;  %3686 = vst.msk [vmem:[#allocation7 + $0xf0] sm:$0xff] %vm14003_vm5, %v3654_v10  ;;  %v4392_v63 = vld [vmem:[#allocation3 + $0x60] sm:$0xff]  ;;  %v4394_v43 = vld [vmem:[#allocation3 + $0x70] sm:$0xff] }
 0x231   : > { %2089 = vst.msk [vmem:[#allocation6 + $0xc8] sm:$0xff] %vm14004_vm13, %v2018_v17  ;;  %v2305_v60 = vpop.permute.xlu0 %2304  ;;  %vm14009_vm13 = vmmov %vm14003_vm5  ;;  %v2022_v2 = vpop.permute.xlu1 %2021  ;;  %4254 = vrot.lane.b32.xlu0 %v4190_v48, %s8133_s24  ;;  %vm14013_vm14 = vcmask 162944   ;;  %v3623_v58 = vld [vmem:[#allocation3 + $0x5f] sm:$0xff]  ;;  %v3624_v61 = vld [vmem:[#allocation3 + $0x67] sm:$0xff]  ;;  %vm14019_vm15 = vcmp.ge.s32.totalorder %v9072_v26, 1 }
 0x232   : > { %5189 = vst.msk [vmem:[#allocation7 + $0xa0] sm:$0xff] %vm14009_vm13, %v5157_v27  ;;  %vm14015_vm1 = vmmov %vm14003_vm5  ;;  %vm14017_vm13 = vcmp.ge.s32.totalorder %v8815_v45, 1  ;;  %v10811_v41 = vld [vmem:[#allocation3 + $0x29] sm:$0xff]  ;;  %7590 = vmatpush3.bf16.msra.mxu1 %v7986_v14  ;;  %v14029_v48 = vld [vmem:[#allocation22_spill] sm:$0xff] }
 0x233   : > { %5190 = vst.msk [vmem:[#allocation7 + $0xb8] sm:$0xff] %vm14010_vm7, %v5158_v30  ;;  %vm14016_vm5 = vmmov %vm14015_vm1  ;;  %v3655_v17 = vsel %vm14017_vm13, %v3623_v58, 0.0  ;;  %vm14018_vm7 = vnez %v13497_v40  ;;  %v10826_v30 = vld [vmem:[#allocation3 + $0x37] sm:$0xff] }
 0x234   : > { %2377 = vst.msk [vmem:[#allocation6 + $0xc0] sm:$0xff] %vm14011_vm8, %v2305_v60  ;;  %vm14014_vm8 = vcmp.le.s32.totalorder %v8276_v16, 14  ;;  %v3656_v0 = vsel %vm14018_vm7, %v3624_v61, 0.0  ;;  %v3657_v16 = vsel %vm14019_vm15, %v3625_v57, 0.0  ;;  %vm14024_vm7 = vcmask 228544   ;;  %v14032_v14 = vld [vmem:[#allocation16_spill] sm:$0xff] }
 0x235   : > { %2091 = vst.msk [vmem:[#allocation6 + $0xd8] sm:$0xff] %vm14013_vm14, %v2022_v2  ;;  %v4928_v22 = vsel %vm14014_vm8, %v10180_v13, 0.0  ;;  %v2309_v3 = vpop.permute.xlu0 %2308  ;;  %vm14020_vm14 = vcmask 195744   ;;  %vm14021_vm8 = vmmov %vm14015_vm1  ;;  %v2307_v9 = vpop.permute.xlu1 %2306  ;;  %4547 = vrot.lane.b32.xlu0 %v10811_v41, %s8131_s21  ;;  %vm14025_vm15 = vcmp.ge.s32.totalorder %v8284_v20, 1  ;;  %v10850_v58 = vld [vmem:[#allocation3 + $0x38] sm:$0xff] }
 0x236   : > { %4424 = vst.msk [vmem:[#allocation7 + $0xe0] sm:$0xff] %vm14015_vm1, %v4392_v63  ;;  %4993 = vrot.lane.b32.xlu1 %v4928_v22, %s8133_s24  ;;  %3688 = vst.msk [vmem:[#allocation7 + $0x120] sm:$0xff] %vm14015_vm1, %v3656_v0  ;;  %v3742_v10 = vsel %vm14025_vm15, %v10147_v49, 0.0  ;;  %v10843_v63 = vld [vmem:[#allocation3 + $0x3f] sm:$0xff]  ;;  %vm14034_vm15 = vcmask 261344  }
 0x237   : > { %4426 = vst.msk [vmem:[#allocation7 + $0x110] sm:$0xff] %vm14016_vm5, %v4394_v43  ;;  %vm14022_vm5 = vmmov %vm14015_vm1 }
 0x238   : > { %2379 = vst.msk [vmem:[#allocation6 + $0xd0] sm:$0xff] %vm14020_vm14, %v2309_v3  ;;  %vm14023_vm13 = vmmov %vm14020_vm14  ;;  %v14041_v3 = vld [vmem:[#allocation18_spill] sm:$0xff] }
 0x239   : > { %3687 = vst.msk [vmem:[#allocation7 + $0x108] sm:$0xff] %vm14021_vm8, %v3655_v17  ;;  %v2594_v40 = vpop.permute.xlu0 %2593  ;;  %v2311_v27 = vpop.permute.xlu1 %2310  ;;  %3808 = vrot.lane.b32.xlu0 %v3742_v10, %s8131_s21  ;;  %vm14026_vm14 = vmmov %vm14023_vm13  ;;  %vm14027_vm8 = vnez %v13358_v51 }
 0x23a   : > { %3689 = vst.msk [vmem:[#allocation7 + $0x138] sm:$0xff] %vm14022_vm5, %v3657_v16  ;;  %4256 = vrot.lane.b32.xlu1 %v10191_v47, %s8133_s24  ;;  %v4482_v60 = vsel %vm14027_vm8, %v10477_v38, 0.0  ;;  %vm14028_vm1 = vmmov %vm14024_vm7  ;;  %vm14030_vm5 = vnez %v14029_v48  ;;  %v10867_v16 = vld [vmem:[#allocation3 + $0x40] sm:$0xff] }
 0x23b   : > { %2378 = vst.msk [vmem:[#allocation6 + $0xc8] sm:$0xff] %vm14023_vm13, %v2307_v9  ;;  %v4705_v49 = vsel %vm14030_vm5, %v10826_v30, 0.0  ;;  %vm14031_vm13 = vmmov %vm14028_vm1  ;;  %v14044_v9 = vld [vmem:[#allocation17_spill] sm:$0xff]  ;;  %v10890_v48 = vld [vmem:[#allocation3 + $0x47] sm:$0xff] }
 0x23c   : > { %2666 = vst.msk [vmem:[#allocation6 + $0xc0] sm:$0xff] %vm14024_vm7, %v2594_v40  ;;  %vm14033_vm7 = vcmp.ge.s32.totalorder %v14032_v14, 1  ;;  %vm14036_vm8 = vmmov %vm14028_vm1 }
 0x23d   : > { %2380 = vst.msk [vmem:[#allocation6 + $0xd8] sm:$0xff] %vm14026_vm14, %v2311_v27  ;;  %v2598_v47 = vpop.permute.xlu0 %2597  ;;  %v2596_v15 = vpop.permute.xlu1 %2595  ;;  %4771 = vrot.lane.b32.xlu0 %v4705_v49, %s13341_s29  ;;  %v3743_v2 = vsel %vm14033_vm7, %v10193_v5, 0.0  ;;  %vm14035_vm14 = vcmp.ge.s32.totalorder %v8284_v20, 1  ;;  %vm14038_vm5 = vmmov %vm14034_vm15  ;;  %v14053_v49 = vld [vmem:[#allocation27_spill] sm:$0xff] }
 0x23e   : > { %4549 = vrot.lane.b32.xlu1 %v4482_v60, %s8131_s21  ;;  %2668 = vst.msk [vmem:[#allocation6 + $0xd0] sm:$0xff] %vm14028_vm1, %v2598_v47  ;;  %v3967_v43 = vsel %vm14035_vm14, %v10663_v28, 0.0  ;;  %vm14037_vm1 = vcmp.le.s32.totalorder %v14032_v14, 14  ;;  %vm14040_vm7 = vmmov %vm14038_vm5  ;;  %vm14043_vm14 = vcmask 294144  }
 0x23f   : > { %2667 = vst.msk [vmem:[#allocation6 + $0xc8] sm:$0xff] %vm14031_vm13, %v2596_v15  ;;  %v4706_v5 = vsel %vm14037_vm1, %v10843_v63, 0.0  ;;  %vm14039_vm13 = vcmp.le.s32.totalorder %v8284_v20, 14  ;;  %vm14046_vm1 = vmmov %vm14038_vm5 }
 0x240   : > { %v4929_v28 = vsel %vm14039_vm13, %v10850_v58, 0.0  ;;  %vm14048_vm13 = vmmov %vm14043_vm14 }
 0x241   : > { %v2883_v51 = vpop.permute.xlu0 %2882  ;;  %v2600_v22 = vpop.permute.xlu1 %2599  ;;  %4033 = vrot.lane.b32.xlu0 %v3967_v43, %s13341_s29 }
 0x242   : > { %3810 = vrot.lane.b32.xlu1 %v3743_v2, %s8131_s21  ;;  %2955 = vst.msk [vmem:[#allocation6 + $0xc0] sm:$0xff] %vm14034_vm15, %v2883_v51  ;;  %vm14042_vm15 = vnez %v14041_v3  ;;  %v14056_v2 = vld [vmem:[#allocation31_spill] sm:$0xff] }
 0x243   : > { %2669 = vst.msk [vmem:[#allocation6 + $0xd8] sm:$0xff] %vm14036_vm8, %v2600_v22  ;;  %v3968_v17 = vsel %vm14042_vm15, %v10684_v33, 0.0  ;;  %vm14045_vm8 = vnez %v14044_v9  ;;  %vm14050_vm15 = vcmask 64544   ;;  %v14059_v22 = vld [vmem:[#allocation24_spill] sm:$0xff] }
 0x244   : > { %v4192_v20 = vsel %vm14045_vm8, %v10696_v12, 0.0 }
 0x245   : > { %v2887_v61 = vpop.permute.xlu0 %2886  ;;  %v2885_v57 = vpop.permute.xlu1 %2884  ;;  %4995 = vrot.lane.b32.xlu0 %v4929_v28, %s8133_s24 }
 0x246   : > { %4773 = vrot.lane.b32.xlu1 %v4706_v5, %s13341_s29  ;;  %2957 = vst.msk [vmem:[#allocation6 + $0xd0] sm:$0xff] %vm14038_vm5, %v2887_v61  ;;  %vm14047_vm5 = vcmp.le.s32.totalorder %v14032_v14, 14 }
 0x247   : > { %2956 = vst.msk [vmem:[#allocation6 + $0xc8] sm:$0xff] %vm14040_vm7, %v2885_v57  ;;  %v4930_v33 = vsel %vm14047_vm5, %v10867_v16, 0.0  ;;  %vm14049_vm7 = vmmov %vm14048_vm13  ;;  %v10907_v57 = vld [vmem:[#allocation3 + $0x4f] sm:$0xff] }
 0x248   : > { %vm14052_vm8 = vmmov %vm14049_vm7 }
 0x249   : > { %v3172_v0 = vpop.permute.xlu0 %3171  ;;  %v2889_v40 = vpop.permute.xlu1 %2888  ;;  %4258 = vrot.lane.b32.xlu0 %v4192_v20, %s8133_s24  ;;  %vm14055_vm5 = vmmov %vm14050_vm15 }
 0x24a   : > { %4035 = vrot.lane.b32.xlu1 %v3968_v17, %s13341_s29  ;;  %3244 = vst.msk [vmem:[#allocation6 + $0xc0] sm:$0xff] %vm14043_vm14, %v3172_v0  ;;  %vm14051_vm14 = vcmp.ge.s32.totalorder %v8480_v35, 1 }
 0x24b   : > { %2958 = vst.msk [vmem:[#allocation6 + $0xd8] sm:$0xff] %vm14046_vm1, %v2889_v40  ;;  %v3744_v60 = vsel %vm14051_vm14, %v10126_v46, 0.0  ;;  %vm14054_vm1 = vnez %v14053_v49  ;;  %vm14061_vm14 = vcmask 97344  }
 0x24c   : > { %v4484_v15 = vsel %vm14054_vm1, %v10508_v19, 0.0  ;;  %vm14063_vm1 = vcmp.ge.s32.totalorder %v8480_v35, 1 }
 0x24d   : > { %v3176_v10 = vpop.permute.xlu0 %3175  ;;  %v3174_v27 = vpop.permute.xlu1 %3173  ;;  %4551 = vrot.lane.b32.xlu0 %v10506_v52, %s8131_s21  ;;  %v3969_v17 = vsel %vm14063_vm1, %v10811_v41, 0.0 }
 0x24e   : > { %4997 = vrot.lane.b32.xlu1 %v4930_v33, %s8133_s24  ;;  %3246 = vst.msk [vmem:[#allocation6 + $0xd0] sm:$0xff] %vm14048_vm13, %v3176_v10  ;;  %vm14057_vm13 = vnez %v14056_v2  ;;  %v10928_v10 = vld [vmem:[%s13046_s2] ss:$0 sm:$0xff]  ;;  %v14072_v2 = vld [vmem:[#allocation25_spill] sm:$0xff] }
 0x24f   : > { %3245 = vst.msk [vmem:[#allocation6 + $0xc8] sm:$0xff] %vm14049_vm7, %v3174_v27  ;;  %v4707_v46 = vsel %vm14057_vm13, %v10890_v48, 0.0  ;;  %vm14058_vm7 = vmmov %vm14055_vm5  ;;  %vm14064_vm13 = vcmp.le.s32.totalorder %v14059_v22, 14 }
 0x251   : > { %v1253_v12 = vpop.permute.xlu0 %1252  ;;  %v3178_v47 = vpop.permute.xlu1 %3177  ;;  %3812 = vrot.lane.b32.xlu0 %v3744_v60, %s8131_s21  ;;  %v3276_v14 = vld [vmem:[#allocation6 + $0xc0] sm:$0xff] }
 0x252   : > { %4260 = vrot.lane.b32.xlu1 %v10727_v29, %s8133_s24  ;;  %1321 = vst.msk [vmem:[#allocation6 + $0xe0] sm:$0xff] %vm14050_vm15, %v1253_v12  ;;  %vm14060_vm15 = vcmp.ge.s32.totalorder %v14059_v22, 1 }
 0x253   : > { %3247 = vst.msk [vmem:[#allocation6 + $0xd8] sm:$0xff] %vm14052_vm8, %v3178_v47  ;;  %v3745_v5 = vsel %vm14060_vm15, %v10180_v13, 0.0  ;;  %vm14062_vm8 = vcmask 293888   ;;  %v4708_v13 = vsel %vm14064_vm13, %v10907_v57, 0.0  ;;  %v14069_v47 = vld [vmem:[#allocation28_spill] sm:$0xff]  ;;  %vm14073_vm13 = vnez %v14072_v2 }
 0x254   : > { %vm14066_vm15 = vmmov %vm14062_vm8  ;;  %vm14070_vm1 = vnez %v14069_v47 }
 0x255   : > { %v1257_v29 = vpop.permute.xlu0 %1256  ;;  %v1255_v51 = vpop.permute.xlu1 %1254  ;;  %4775 = vrot.lane.b32.xlu0 %v4707_v46, %s13341_s29  ;;  %v3278_v3 = vld [vmem:[#allocation6 + $0xd0] sm:$0xff]  ;;  %v3970_v49 = vsel %vm14070_vm1, %v10477_v38, 0.0  ;;  %v4194_v46 = vsel %vm14073_vm13, %v10826_v30, 0.0 }
 0x256   : > { %4553 = vrot.lane.b32.xlu1 %v4484_v15, %s8131_s21  ;;  %1323 = vst.msk [vmem:[#allocation6 + $0xf0] sm:$0xff] %vm14055_vm5, %v1257_v29  ;;  %v3277_v43 = vld [vmem:[#allocation6 + $0xc8] sm:$0xff] }
 0x257   : > { %1322 = vst.msk [vmem:[#allocation6 + $0xe8] sm:$0xff] %vm14058_vm7, %v1255_v51  ;;  %v3296_v61 = vpack.c.bf16 %v3277_v43, %v3276_v14  ;;  %vm14065_vm7 = vmmov %vm14061_vm14 }
 0x259   : > { %v1542_v28 = vpop.permute.xlu0 %1541  ;;  %7831 = vmatprep.mubr.msk.bf16.mxu0 %vm14062_vm8, %v3296_v61  ;;  %v1259_v0 = vpop.permute.xlu1 %1258  ;;  %4037 = vrot.lane.b32.xlu0 %v3969_v17, %s13341_s29  ;;  %vm14068_vm8 = vmmov %vm14065_vm7 }
 0x25a   : > { %3814 = vrot.lane.b32.xlu1 %v3745_v5, %s8131_s21  ;;  %1610 = vst.msk [vmem:[#allocation6 + $0xe0] sm:$0xff] %vm14061_vm14, %v1542_v28  ;;  %v3279_v9 = vld [vmem:[#allocation6 + $0xd8] sm:$0xff]  ;;  %vm14067_vm14 = vcmp.le.s32.totalorder %v8480_v35, 14 }
 0x25b   : > { %1324 = vst.msk [vmem:[#allocation6 + $0xf8] sm:$0xff] %vm14055_vm5, %v1259_v0  ;;  %v3297_v20 = vpack.c.bf16 %v3279_v9, %v3278_v3  ;;  %v4931_v41 = vsel %vm14067_vm14, %v10464_v36, 0.0  ;;  %vm14071_vm5 = vcmask 130144   ;;  %vm14076_vm14 = vcmp.le.s32.totalorder %v14059_v22, 14 }
 0x25c   : > { %v7821_v33 = vpop.f32.mrf.mxu0  ;;  %v4932_v61 = vsel %vm14076_vm14, %v10496_v56, 0.0  ;;  %vm14078_vm1 = vmmov %vm14071_vm5  ;;  %vm14083_vm14 = vcmp.ge.s32.totalorder %v8485_v37, 1 }
 0x25d   : > { %v1546_v40 = vpop.permute.xlu0 %1545  ;;  %7832 = vmatmul.mubr.msk.bf16.gmra.mxu0 %vm14066_vm15, %v3297_v20  ;;  %v3471_v27 = vadd.f32 %v10928_v10, %v7821_v33  ;;  %v1544_v12 = vpop.permute.xlu1 %1543  ;;  %4999 = vrot.lane.b32.xlu0 %v4931_v41, %s8133_s24  ;;  %vm14075_vm15 = vmmov %vm14068_vm8  ;;  %v3746_v9 = vsel %vm14083_vm14, %v10850_v58, 0.0  ;;  %v14087_v58 = vld [vmem:[#allocation48_spill] sm:$0xff]  ;;  %vm14090_vm14 = vcmask 162944  }
 0x25e   : > { %4777 = vrot.lane.b32.xlu1 %v4708_v13, %s13341_s29  ;;  %1612 = vst.msk [vmem:[#allocation6 + $0xf0] sm:$0xff] %vm14065_vm7, %v1546_v40  ;;  %v3462_v60 = vpop.f32.mrf.mxu0  ;;  %vm14074_vm7 = vcmask 261120   ;;  %vm14080_vm13 = vmmov %vm14078_vm1 }
 0x25f   : > { %1611 = vst.msk [vmem:[#allocation6 + $0xe8] sm:$0xff] %vm14068_vm8, %v1544_v12  ;;  %v3555_v15 = vmax.f32 %v3471_v27, 0.0  ;;  %v3463_v35 = vadd.f32 %v10928_v10, %v3462_v60  ;;  %vm14077_vm8 = vmmov %vm14074_vm7 }
 0x260   : > { %v7822_v14 = vpop.f32.mrf.mxu0 }
 0x261   : > { %v1831_v29 = vpop.permute.xlu0 %1830  ;;  %3594 = vst.msk [vmem:[#allocation3 + $0x88] sm:$0xff] %vm14074_vm7, %v3555_v15  ;;  %v3553_v51 = vmax.f32 %v3463_v35, 0.0  ;;  %v3474_v43 = vadd.f32 %v10928_v10, %v7822_v14  ;;  %v1548_v5 = vpop.permute.xlu1 %1547  ;;  %4262 = vrot.lane.b32.xlu0 %v4194_v46, %s8133_s24 }
 0x262   : > { %4039 = vrot.lane.b32.xlu1 %v3970_v49, %s13341_s29  ;;  %1899 = vst.msk [vmem:[#allocation6 + $0xe0] sm:$0xff] %vm14071_vm5, %v1831_v29  ;;  %v3465_v38 = vpop.f32.mrf.mxu0  ;;  %vm14079_vm5 = vmmov %vm14074_vm7  ;;  %v14091_v49 = vld [vmem:[#allocation32_spill] sm:$0xff]  ;;  %v14093_v29 = vld [vmem:[#allocation42_spill] sm:$0xff] }
 0x263   : > { %1613 = vst.msk [vmem:[#allocation6 + $0xf8] sm:$0xff] %vm14075_vm15, %v1548_v5  ;;  %v3556_v28 = vmax.f32 %v3474_v43, 0.0  ;;  %v3466_v30 = vadd.f32 %v10928_v10, %v3465_v38  ;;  %vm14081_vm7 = vmmov %vm14079_vm5  ;;  %vm14082_vm15 = vcmask 162944   ;;  %v14099_v38 = vld [vmem:[#allocation47_spill] sm:$0xff] }
 0x264   : > { %3592 = vst.msk [vmem:[#allocation3 + $0x78] sm:$0xff] %vm14077_vm8, %v3553_v51  ;;  %vm14084_vm8 = vmmov %vm14079_vm5 }
 0x265   : > { %v1835_v3 = vpop.permute.xlu0 %1834  ;;  %3595 = vst.msk [vmem:[#allocation3 + $0x90] sm:$0xff] %vm14079_vm5, %v3556_v28  ;;  %v3554_v17 = vmax.f32 %v3466_v30, 0.0  ;;  %v1833_v0 = vpop.permute.xlu1 %1832  ;;  %4555 = vrot.lane.b32.xlu0 %v10490_v23, %s8131_s21  ;;  %v10967_v23 = vld [vmem:[#allocation3 + $0x57] sm:$0xff]  ;;  %v14101_v28 = vld [vmem:[#allocation59_spill] sm:$0xff] }
 0x266   : > { %5001 = vrot.lane.b32.xlu1 %v4932_v61, %s8133_s24  ;;  %1901 = vst.msk [vmem:[#allocation6 + $0xf0] sm:$0xff] %vm14078_vm1, %v1835_v3  ;;  %v14103_v3 = vld [vmem:[#allocation33_spill] sm:$0xff] }
 0x267   : > { %1900 = vst.msk [vmem:[#allocation6 + $0xe8] sm:$0xff] %vm14080_vm13, %v1833_v0  ;;  %vm14088_vm13 = vnez %v14087_v58  ;;  %v14105_v0 = vld [vmem:[#allocation49_spill] sm:$0xff] }
 0x268   : > { %3593 = vst.msk [vmem:[#allocation3 + $0x80] sm:$0xff] %vm14081_vm7, %v3554_v17  ;;  %v10964_v13 = vld [vmem:[#allocation3 + $0x88] sm:$0xff] }
 0x269   : > { %v2024_v22 = vpop.permute.xlu0 %2023  ;;  %v1837_v20 = vpop.permute.xlu1 %1836  ;;  %3816 = vrot.lane.b32.xlu0 %v3746_v9, %s8131_s21  ;;  %4429 = vst.msk [vmem:[#allocation7 + $0x158] sm:$0xff] %vm14084_vm8, %v10964_v13  ;;  %vm14092_vm8 = vnez %v14091_v49 }
 0x26a   : > { %4264 = vrot.lane.b32.xlu1 %v10843_v63, %s8133_s24  ;;  %2092 = vst.msk [vmem:[#allocation6 + $0xe0] sm:$0xff] %vm14082_vm15, %v2024_v22  ;;  %v14085_v63 = vld [vmem:[#allocation29_spill] sm:$0xff]  ;;  %vm14089_vm15 = vmmov %vm14081_vm7  ;;  %v4709_v15 = vsel %vm14092_vm8, %v10967_v23, 0.0  ;;  %vm14102_vm8 = vcmp.ge.s32.totalorder %v14101_v28, 1 }
 0x26b   : > { %v10971_v40 = vld [vmem:[#allocation3 + $0x71] sm:$0xff]  ;;  %1902 = vst.msk [vmem:[#allocation6 + $0xf8] sm:$0xff] %vm14078_vm1, %v1837_v20  ;;  %vm14086_vm5 = vnez %v14085_v63  ;;  %vm14094_vm1 = vcmp.le.s32.totalorder %v14093_v29, 14  ;;  %v11020_v20 = vld [vmem:[#allocation3 + $0x5f] sm:$0xff] }
 0x26c   : > { %v4486_v33 = vsel %vm14086_vm5, %v10738_v4, 0.0  ;;  %v10977_v41 = vld [vmem:[#allocation3 + $0x78] sm:$0xff]  ;;  %v5160_v27 = vsel %vm14088_vm13, %v10971_v40, 0.0  ;;  %v10986_v47 = vld [vmem:[#allocation3 + $0x89] sm:$0xff]  ;;  %vm14095_vm5 = vmmov %vm14081_vm7 }
 0x26d   : > { %v2028_v12 = vpop.permute.xlu0 %2027  ;;  %4427 = vst.msk [vmem:[#allocation7 + $0x128] sm:$0xff] %vm14081_vm7, %v10977_v41  ;;  %v3626_v60 = vld [vmem:[#allocation3 + $0x77] sm:$0xff]  ;;  %v5163_v14 = vsel %vm14094_vm1, %v10986_v47, 0.0  ;;  %v2026_v2 = vpop.permute.xlu1 %2025  ;;  %4779 = vrot.lane.b32.xlu0 %v4709_v15, %s13341_s29  ;;  %v3629_v46 = vld [vmem:[#allocation3 + $0x8f] sm:$0xff]  ;;  %vm14096_vm13 = vmmov %vm14095_vm5  ;;  %vm14104_vm1 = vcmp.le.s32.totalorder %v14103_v3, 14 }
 0x26e   : > { %4557 = vrot.lane.b32.xlu1 %v4486_v33, %s8131_s21  ;;  %5192 = vst.msk [vmem:[#allocation7 + $0xe8] sm:$0xff] %vm14089_vm15, %v5160_v27  ;;  %v10992_v35 = vld [vmem:[#allocation3 + $0x90] sm:$0xff]  ;;  %vm14097_vm7 = vmmov %vm14090_vm14  ;;  %vm14098_vm15 = vcmp.ge.s32.totalorder %v8551_v53, 1  ;;  %v3661_v30 = vsel %vm14102_vm8, %v3629_v46, 0.0  ;;  %vm14110_vm8 = vcmask 195744  }
 0x26f   : > { %2094 = vst.msk [vmem:[#allocation6 + $0xf0] sm:$0xff] %vm14090_vm14, %v2028_v12  ;;  %v11001_v51 = vld [vmem:[#allocation3 + $0x79] sm:$0xff]  ;;  %v11003_v43 = vld [vmem:[#allocation3 + $0x81] sm:$0xff]  ;;  %v3747_v5 = vsel %vm14098_vm15, %v10867_v16, 0.0  ;;  %vm14100_vm14 = vnez %v14099_v38  ;;  %v14115_v15 = vld [vmem:[#allocation60_spill] sm:$0xff] }
 0x270   : > { %4430 = vst.msk [vmem:[#allocation7 + $0x170] sm:$0xff] %vm14095_vm5, %v10992_v35  ;;  %v3658_v61 = vsel %vm14100_vm14, %v3626_v60, 0.0  ;;  %v5161_v17 = vsel %vm14104_vm1, %v11001_v51, 0.0  ;;  %vm14106_vm5 = vnez %v14105_v0  ;;  %v11022_v16 = vld [vmem:[#allocation3 + $0x80] sm:$0xff]  ;;  %vm14111_vm1 = vcmp.ge.s32.totalorder %v8485_v37, 1  ;;  %v11035_v12 = vld [vmem:[#allocation3 + $0x58] sm:$0xff] }
 0x271   : > { %5195 = vst.msk [vmem:[#allocation7 + $0x130] sm:$0xff] %vm14096_vm13, %v5163_v14  ;;  %v5162_v22 = vsel %vm14106_vm5, %v11003_v43, 0.0  ;;  %v2313_v9 = vpop.permute.xlu0 %2312  ;;  %3690 = vst.msk [vmem:[#allocation7 + $0x150] sm:$0xff] %vm14096_vm13, %v3658_v61  ;;  %v3971_v63 = vsel %vm14111_vm1, %v10506_v52, 0.0  ;;  %v3627_v33 = vld [vmem:[#allocation3 + $0x7f] sm:$0xff]  ;;  %v3628_v58 = vld [vmem:[#allocation3 + $0x87] sm:$0xff]  ;;  %v2030_v27 = vpop.permute.xlu1 %2029 }
 0x272   : > { %2093 = vst.msk [vmem:[#allocation6 + $0xe8] sm:$0xff] %vm14097_vm7, %v2026_v2  ;;  %3818 = vrot.lane.b32.xlu1 %v3747_v5, %s8131_s21  ;;  %vm14107_vm7 = vmmov %vm14096_vm13  ;;  %4041 = vrot.lane.b32.xlu0 %v3971_v63, %s13341_s29  ;;  %v14113_v60 = vld [vmem:[#allocation46_spill] sm:$0xff] }
 0x273   : > { %3693 = vst.msk [vmem:[#allocation7 + $0x198] sm:$0xff] %vm14107_vm7, %v3661_v30  ;;  %vm14108_vm15 = vmmov %vm14107_vm7  ;;  %vm14114_vm13 = vcmp.ge.s32.totalorder %v14113_v60, 1  ;;  %v14124_v38 = vld [vmem:[#allocation30_spill] sm:$0xff] }
 0x274   : > { %5193 = vst.msk [vmem:[#allocation7 + $0x100] sm:$0xff] %vm14108_vm15, %v5161_v17  ;;  %vm14109_vm14 = vmmov %vm14107_vm7  ;;  %v3659_v49 = vsel %vm14114_vm13, %v3627_v33, 0.0  ;;  %vm14117_vm15 = vcmask 162944   ;;  %vm14122_vm13 = vcmp.le.s32.totalorder %v8485_v37, 14  ;;  %v11058_v17 = vld [vmem:[#allocation3 + $0x60] sm:$0xff] }
 0x275   : > { %5194 = vst.msk [vmem:[#allocation7 + $0x118] sm:$0xff] %vm14109_vm14, %v5162_v22  ;;  %vm14112_vm5 = vmmov %vm14107_vm7  ;;  %vm14116_vm7 = vnez %v14115_v15  ;;  %vm14118_vm14 = vcmp.le.s32.totalorder %v8551_v53, 14  ;;  %v2317_v2 = vpop.permute.xlu0 %2316  ;;  %v4933_v46 = vsel %vm14122_vm13, %v11035_v12, 0.0  ;;  %v2315_v5 = vpop.permute.xlu1 %2314  ;;  %v14127_v0 = vld [vmem:[#allocation26_spill] sm:$0xff]  ;;  %v14139_v15 = vld [vmem:[#allocation40_spill] sm:$0xff] }
 0x276   : > { %2381 = vst.msk [vmem:[#allocation6 + $0xe0] sm:$0xff] %vm14110_vm8, %v2313_v9  ;;  %v3660_v14 = vsel %vm14116_vm7, %v3628_v58, 0.0  ;;  %v4710_v52 = vsel %vm14118_vm14, %v11020_v20, 0.0  ;;  %vm14119_vm8 = vmmov %vm14112_vm5  ;;  %5003 = vrot.lane.b32.xlu0 %v4933_v46, %s8133_s24  ;;  %vm14126_vm14 = vcmask 228544   ;;  %v11081_v58 = vld [vmem:[#allocation3 + $0x67] sm:$0xff] }
 0x277   : > { %4428 = vst.msk [vmem:[#allocation7 + $0x140] sm:$0xff] %vm14112_vm5, %v11022_v16  ;;  %vm14120_vm1 = vmmov %vm14112_vm5  ;;  %4781 = vrot.lane.b32.xlu1 %v4710_v52, %s13341_s29  ;;  %vm14121_vm5 = vcmask 195744   ;;  %v3941_v52 = vld [vmem:[#allocation3 + $0x49] sm:$0xff] }
 0x278   : > { %2095 = vst.msk [vmem:[#allocation6 + $0xf8] sm:$0xff] %vm14117_vm15, %v2030_v27  ;;  %vm14123_vm7 = vmmov %vm14121_vm5  ;;  %vm14125_vm15 = vnez %v14124_v38  ;;  %v14136_v27 = vld [vmem:[#allocation36_spill] sm:$0xff] }
 0x279   : > { %3691 = vst.msk [vmem:[#allocation7 + $0x168] sm:$0xff] %vm14119_vm8, %v3659_v49  ;;  %v3972_v61 = vsel %vm14125_vm15, %v10508_v19, 0.0  ;;  %v2602_v30 = vpop.permute.xlu0 %2601  ;;  %vm14128_vm8 = vnez %v14127_v0  ;;  %v2319_v22 = vpop.permute.xlu1 %2318  ;;  %vm14131_vm13 = vmmov %vm14126_vm14  ;;  %vm14133_vm15 = vcmask 261344  }
 0x27a   : > { %3692 = vst.msk [vmem:[#allocation7 + $0x180] sm:$0xff] %vm14120_vm1, %v3660_v14  ;;  %v4196_v37 = vsel %vm14128_vm8, %v10890_v48, 0.0  ;;  %vm14129_vm1 = vmmov %vm14121_vm5 }
 0x27b   : > { %2383 = vst.msk [vmem:[#allocation6 + $0xf0] sm:$0xff] %vm14121_vm5, %v2317_v2  ;;  %4043 = vrot.lane.b32.xlu1 %v3972_v61, %s13341_s29  ;;  %4266 = vrot.lane.b32.xlu0 %v4196_v37, %s8133_s24  ;;  %vm14130_vm5 = vcmp.le.s32.totalorder %v8551_v53, 14 }
 0x27c   : > { %2382 = vst.msk [vmem:[#allocation6 + $0xe8] sm:$0xff] %vm14123_vm7, %v2315_v5  ;;  %v4934_v19 = vsel %vm14130_vm5, %v11058_v17, 0.0  ;;  %vm14132_vm7 = vmmov %vm14131_vm13  ;;  %v11098_v5 = vld [vmem:[#allocation3 + $0x6f] sm:$0xff] }
 0x27d   : > { %2670 = vst.msk [vmem:[#allocation6 + $0xe0] sm:$0xff] %vm14126_vm14, %v2602_v30  ;;  %v2606_v9 = vpop.permute.xlu0 %2605  ;;  %v2604_v63 = vpop.permute.xlu1 %2603  ;;  %vm14134_vm14 = vcmp.ge.s32.totalorder %v8759_v18, 1  ;;  %vm14135_vm8 = vmmov %vm14132_vm7  ;;  %v11104_v30 = vld [vmem:[#allocation3 + $0x68] sm:$0xff] }
 0x27e   : > { %2384 = vst.msk [vmem:[#allocation6 + $0xf8] sm:$0xff] %vm14129_vm1, %v2319_v22  ;;  %v3748_v53 = vsel %vm14134_vm14, %v10464_v36, 0.0  ;;  %vm14137_vm1 = vnez %v14136_v27  ;;  %vm14138_vm5 = vmmov %vm14133_vm15  ;;  %vm14143_vm14 = vcmask 294144  }
 0x27f   : > { %5005 = vrot.lane.b32.xlu1 %v4934_v19, %s8133_s24  ;;  %2672 = vst.msk [vmem:[#allocation6 + $0xf0] sm:$0xff] %vm14131_vm13, %v2606_v9  ;;  %4559 = vrot.lane.b32.xlu0 %v10767_v7, %s8131_s21  ;;  %v4488_v49 = vsel %vm14137_vm1, %v10769_v32, 0.0  ;;  %vm14140_vm13 = vnez %v14139_v15  ;;  %vm14145_vm1 = vmmov %vm14138_vm5  ;;  %v14150_v19 = vld [vmem:[#allocation37_spill] sm:$0xff] }
 0x280   : > { %2671 = vst.msk [vmem:[#allocation6 + $0xe8] sm:$0xff] %vm14132_vm7, %v2604_v63  ;;  %v4711_v36 = vsel %vm14140_vm13, %v11081_v58, 0.0  ;;  %vm14141_vm7 = vmmov %vm14138_vm5 }
 0x281   : > { %v2891_v48 = vpop.permute.xlu0 %2890  ;;  %v2608_v33 = vpop.permute.xlu1 %2607  ;;  %vm14147_vm13 = vmmov %vm14143_vm14 }
 0x282   : > { %2959 = vst.msk [vmem:[#allocation6 + $0xe0] sm:$0xff] %vm14133_vm15, %v2891_v48  ;;  %vm14142_vm15 = vcmp.ge.s32.totalorder %v8781_v54, 1  ;;  %v11121_v48 = vld [vmem:[#allocation3 + $0x70] sm:$0xff] }
 0x283   : > { %4268 = vrot.lane.b32.xlu1 %v10907_v57, %s8133_s24  ;;  %3820 = vrot.lane.b32.xlu0 %v3748_v53, %s8131_s21  ;;  %2673 = vst.msk [vmem:[#allocation6 + $0xf8] sm:$0xff] %vm14135_vm8, %v2608_v33  ;;  %v3749_v2 = vsel %vm14142_vm15, %v10496_v56, 0.0  ;;  %vm14144_vm8 = vcmp.ge.s32.totalorder %v8759_v18, 1  ;;  %vm13333_vm15 = vcmask 523520  }
 0x284   : > { %v3973_v38 = vsel %vm14144_vm8, %v3941_v52, 0.0  ;;  %vm14151_vm8 = vnez %v14150_v19  ;;  %v5220_v52 = vld [vmem:[#allocation7 + $0x28] sm:$0xff] }
 0x285   : > { %v2895_v57 = vpop.permute.xlu0 %2894  ;;  %v2893_v14 = vpop.permute.xlu1 %2892  ;;  %v3974_v9 = vsel %vm14151_vm8, %v10738_v4, 0.0  ;;  %vm14157_vm8 = vcmp.ge.s32.totalorder %v14103_v3, 1 }
 0x286   : > { %2961 = vst.msk [vmem:[#allocation6 + $0xf0] sm:$0xff] %vm14138_vm5, %v2895_v57  ;;  %vm14146_vm5 = vcmp.le.s32.totalorder %v8781_v54, 14 }
 0x287   : > { %4561 = vrot.lane.b32.xlu1 %v4488_v49, %s8131_s21  ;;  %4783 = vrot.lane.b32.xlu0 %v4711_v36, %s13341_s29  ;;  %2960 = vst.msk [vmem:[#allocation6 + $0xe8] sm:$0xff] %vm14141_vm7, %v2893_v14  ;;  %v4712_v56 = vsel %vm14146_vm5, %v11098_v5, 0.0  ;;  %vm14148_vm7 = vcmp.le.s32.totalorder %v8759_v18, 14  ;;  %v14152_v18 = vld [vmem:[#allocation34_spill] sm:$0xff]  ;;  %vm14154_vm5 = vmmov %vm14147_vm13  ;;  %v3750_v14 = vsel %vm14157_vm8, %v11035_v12, 0.0  ;;  %vm13332_vm8 = vcmask 1048320  }
 0x288   : > { %v4935_v37 = vsel %vm14148_vm7, %v11104_v30, 0.0  ;;  %vm13331_vm7 = vcmask 785920  }
 0x289   : > { %v3180_v46 = vpop.permute.xlu0 %3179  ;;  %v2897_v61 = vpop.permute.xlu1 %2896 }
 0x28a   : > { %3248 = vst.msk [vmem:[#allocation6 + $0xe0] sm:$0xff] %vm14143_vm14, %v3180_v46  ;;  %vm14149_vm14 = vmmov %vm14147_vm13  ;;  %v11145_v46 = vld [vmem:[#allocation3 + $0x77] sm:$0xff] }
 0x28b   : > { %3822 = vrot.lane.b32.xlu1 %v3749_v2, %s8131_s21  ;;  %4045 = vrot.lane.b32.xlu0 %v3973_v38, %s13341_s29  ;;  %2962 = vst.msk [vmem:[#allocation6 + $0xf8] sm:$0xff] %vm14145_vm1, %v2897_v61  ;;  %vm14153_vm1 = vnez %v14152_v18 }
 0x28c   : > { %v4198_v53 = vsel %vm14153_vm1, %v10967_v23, 0.0 }
 0x28d   : > { %v3184_v0 = vpop.permute.xlu0 %3183  ;;  %v3182_v22 = vpop.permute.xlu1 %3181 }
 0x28e   : > { %3250 = vst.msk [vmem:[#allocation6 + $0xf0] sm:$0xff] %vm14147_vm13, %v3184_v0  ;;  %vm14155_vm13 = vcmp.le.s32.totalorder %v8781_v54, 14 }
 0x28f   : > { %4785 = vrot.lane.b32.xlu1 %v4712_v56, %s13341_s29  ;;  %5007 = vrot.lane.b32.xlu0 %v4935_v37, %s8133_s24  ;;  %3249 = vst.msk [vmem:[#allocation6 + $0xe8] sm:$0xff] %vm14149_vm14, %v3182_v22  ;;  %v4936_v4 = vsel %vm14155_vm13, %v11121_v48, 0.0  ;;  %vm14156_vm14 = vcmask 293888   ;;  %v5217_v56 = vld [vmem:[#allocation7 + $0x10] sm:$0xff]  ;;  %v14161_v22 = vld [vmem:[#allocation41_spill] sm:$0xff] }
 0x290   : > { %v5313_v37 = vpack.c.bf16 %v5220_v52, %v5217_v56  ;;  %vm14162_vm13 = vnez %v14161_v22 }
 0x291   : > { %v4544_v63 = vpop.permute.xlu0 %4543  ;;  %v3186_v33 = vpop.permute.xlu1 %3185  ;;  %v3280_v49 = vld [vmem:[#allocation6 + $0xe0] sm:$0xff]  ;;  %v4713_v19 = vsel %vm14162_vm13, %v11145_v46, 0.0 }
 0x292   : > { %4639 = vst.msk [vmem:[#allocation7 + $0x8] sm:$0xff] %vm13333_vm15, %v4544_v63 }
 0x293   : > { %4047 = vrot.lane.b32.xlu1 %v3974_v9, %s13341_s29  ;;  %4270 = vrot.lane.b32.xlu0 %v4198_v53, %s8133_s24  ;;  %3251 = vst.msk [vmem:[#allocation6 + $0xf8] sm:$0xff] %vm14154_vm5, %v3186_v33  ;;  %vm14160_vm5 = vmmov %vm14156_vm14 }
 0x295   : > { %v3805_v27 = vpop.permute.xlu0 %3804  ;;  %v4546_v57 = vpop.permute.xlu1 %4545  ;;  %v3282_v36 = vld [vmem:[#allocation6 + $0xf0] sm:$0xff] }
 0x296   : > { %3901 = vst.msk [vmem:[#allocation7] sm:$0xff] %vm13333_vm15, %v3805_v27  ;;  %v3281_v23 = vld [vmem:[#allocation6 + $0xe8] sm:$0xff]  ;;  %4640 = vst.msk [vmem:[#allocation7 + $0x20] sm:$0xff] %vm13333_vm15, %v4546_v57  ;;  %v5223_v57 = vld [vmem:[#allocation7 + $0x40] sm:$0xff] }
 0x297   : > { %5009 = vrot.lane.b32.xlu1 %v4936_v4, %s8133_s24  ;;  %4563 = vrot.lane.b32.xlu0 %v10749_v8, %s8131_s21  ;;  %v3298_v15 = vpack.c.bf16 %v3281_v23, %v3280_v49  ;;  %v11166_v49 = vld [vmem:[#allocation3 + $0x7f] sm:$0xff]  ;;  %v5226_v23 = vld [vmem:[#allocation7 + $0x58] sm:$0xff] }
 0x299   : > { %v4768_v54 = vpop.permute.xlu0 %4767  ;;  %7835 = vmatprep.mubr.msk.bf16.mxu0 %vm14156_vm14, %v3298_v15  ;;  %v3807_v8 = vpop.permute.xlu1 %3806  ;;  %vm14163_vm14 = vcmask 261120  }
 0x29a   : > { %4863 = vst.msk [vmem:[#allocation7 + $0x8] sm:$0xff] %vm13331_vm7, %v4768_v54  ;;  %v3283_v2 = vld [vmem:[#allocation6 + $0xf8] sm:$0xff]  ;;  %vm14166_vm13 = vmmov %vm14163_vm14 }
 0x29b   : > { %4272 = vrot.lane.b32.xlu1 %v11020_v20, %s8133_s24  ;;  %3824 = vrot.lane.b32.xlu0 %v3750_v14, %s8131_s21  ;;  %3902 = vst.msk [vmem:[#allocation7 + $0x18] sm:$0xff] %vm13333_vm15, %v3807_v8  ;;  %v14158_v20 = vld [vmem:[#allocation38_spill] sm:$0xff]  ;;  %v3299_v61 = vpack.c.bf16 %v3283_v2, %v3282_v36  ;;  %v5232_v36 = vld [vmem:[#allocation7 + $0x88] sm:$0xff] }
 0x29c   : > { %vm14159_vm1 = vnez %v14158_v20  ;;  %v7825_v12 = vpop.f32.mrf.mxu0  ;;  %v5316_v20 = vpack.c.bf16 %v5226_v23, %v5223_v57 }
 0x29d   : > { %v4490_v38 = vsel %vm14159_vm1, %v10971_v40, 0.0  ;;  %v4030_v0 = vpop.permute.xlu0 %4029  ;;  %7836 = vmatmul.mubr.msk.bf16.gmra.mxu0 %vm14160_vm5, %v3299_v61  ;;  %v3487_v9 = vadd.f32 %v10928_v10, %v7825_v12  ;;  %v4770_v63 = vpop.permute.xlu1 %4769  ;;  %vm14164_vm1 = vcmp.ge.s32.totalorder %v8815_v45, 1  ;;  %vm14165_vm5 = vcmp.ge.s32.totalorder %v14103_v3, 1 }
 0x29e   : > { %4126 = vst.msk [vmem:[#allocation7] sm:$0xff] %vm13331_vm7, %v4030_v0  ;;  %7843 = vmatprep.mubr.msk.bf16.mxu0 %vm14163_vm14, %v5313_v37  ;;  %4864 = vst.msk [vmem:[#allocation7 + $0x20] sm:$0xff] %vm13331_vm7, %v4770_v63  ;;  %v3478_v18 = vpop.f32.mrf.mxu0  ;;  %v3751_v53 = vsel %vm14164_vm1, %v11058_v17, 0.0  ;;  %v3975_v54 = vsel %vm14165_vm5, %v10767_v7, 0.0  ;;  %vm14167_vm14 = vcmp.le.s32.totalorder %v8815_v45, 14  ;;  %v5235_v63 = vld [vmem:[#allocation7 + $0xa0] sm:$0xff] }
 0x29f   : > { %4565 = vrot.lane.b32.xlu1 %v4490_v38, %s8131_s21  ;;  %4787 = vrot.lane.b32.xlu0 %v4713_v19, %s13341_s29  ;;  %v3559_v33 = vmax.f32 %v3487_v9, 0.0  ;;  %v3479_v4 = vadd.f32 %v10928_v10, %v3478_v18  ;;  %v4714_v2 = vsel %vm14167_vm14, %v11166_v49, 0.0  ;;  %v5229_v38 = vld [vmem:[#allocation7 + $0x70] sm:$0xff]  ;;  %vm14168_vm1 = vmmov %vm14166_vm13  ;;  %v14173_v19 = vld [vmem:[#allocation39_spill] sm:$0xff] }
 0x2a0   : > { %v7826_v15 = vpop.f32.mrf.mxu0  ;;  %v5319_v0 = vpack.c.bf16 %v5232_v36, %v5229_v38  ;;  %vm14169_vm5 = vmmov %vm14168_vm1  ;;  %v5238_v18 = vld [vmem:[#allocation7 + $0xb8] sm:$0xff]  ;;  %v14179_v36 = vld [vmem:[#allocation64_spill] sm:$0xff] }
 0x2a1   : > { %v4992_v27 = vpop.permute.xlu0 %4991  ;;  %3598 = vst.msk [vmem:[#allocation3 + $0xa8] sm:$0xff] %vm14166_vm13, %v3559_v33  ;;  %v3557_v17 = vmax.f32 %v3479_v4, 0.0  ;;  %v3490_v14 = vadd.f32 %v10928_v10, %v7826_v15  ;;  %vm14170_vm13 = vcmp.le.s32.totalorder %v14103_v3, 14  ;;  %vm14171_vm14 = vmmov %vm14168_vm1  ;;  %v5244_v4 = vld [vmem:[#allocation7 + $0xe8] sm:$0xff]  ;;  %v5322_v15 = vpack.c.bf16 %v5238_v18, %v5235_v63  ;;  %v14192_v18 = vld [vmem:[#allocation43_spill] sm:$0xff] }
 0x2a2   : > { %5087 = vst.msk [vmem:[#allocation7 + $0x8] sm:$0xff] %vm13332_vm8, %v4992_v27  ;;  %v4032_v52 = vpop.permute.xlu1 %4031  ;;  %v3481_v8 = vpop.f32.mrf.mxu0  ;;  %v4937_v37 = vsel %vm14170_vm13, %v10977_v41, 0.0  ;;  %vm14177_vm13 = vmmov %vm14169_vm5 }
 0x2a3   : > { %3826 = vrot.lane.b32.xlu1 %v3751_v53, %s8131_s21  ;;  %4049 = vrot.lane.b32.xlu0 %v3975_v54, %s13341_s29  ;;  %4127 = vst.msk [vmem:[#allocation7 + $0x18] sm:$0xff] %vm13331_vm7, %v4032_v52  ;;  %v3560_v7 = vmax.f32 %v3490_v14, 0.0  ;;  %v3482_v61 = vadd.f32 %v10928_v10, %v3481_v8  ;;  %vm14172_vm7 = vmmov %vm14168_vm1  ;;  %v14175_v53 = vld [vmem:[#allocation35_spill] sm:$0xff]  ;;  %v5241_v54 = vld [vmem:[#allocation7 + $0xd0] sm:$0xff] }
 0x2a4   : > { %3596 = vst.msk [vmem:[#allocation3 + $0x98] sm:$0xff] %vm14168_vm1, %v3557_v17  ;;  %vm14174_vm1 = vnez %v14173_v19  ;;  %v5325_v52 = vpack.c.bf16 %v5244_v4, %v5241_v54  ;;  %v14188_v19 = vld [vmem:[#allocation63_spill] sm:$0xff] }
 0x2a5   : > { %v4255_v56 = vpop.permute.xlu0 %4254  ;;  %7844 = vmatmul.mubr.msk.bf16.vlgmr.msra.gmra.mxu0 %vm14169_vm5, %v5316_v20  ;;  %3599 = vst.msk [vmem:[#allocation3 + $0xb0] sm:$0xff] %vm14171_vm14, %v3560_v7  ;;  %v3558_v12 = vmax.f32 %v3482_v61, 0.0  ;;  %v3976_v9 = vsel %vm14174_vm1, %v10769_v32, 0.0  ;;  %vm14178_vm14 = vcmp.le.s32.totalorder %v8815_v45, 14  ;;  %vm14180_vm1 = vnez %v14179_v36  ;;  %v14183_v20 = vld [vmem:[#allocation56_spill] sm:$0xff] }
 0x2a6   : > { %4351 = vst.msk [vmem:[#allocation7] sm:$0xff] %vm13332_vm8, %v4255_v56  ;;  %7847 = vmatprep.mubr.msk.bf16.mxu0 %vm14172_vm7, %v5319_v0  ;;  %vm14176_vm7 = vnez %v14175_v53  ;;  %v4938_v23 = vsel %vm14178_vm14, %v11022_v16, 0.0  ;;  %vm14184_vm14 = vcmp.le.s32.totalorder %v14183_v20, 14 }
 0x2a7   : > { %4789 = vrot.lane.b32.xlu1 %v4714_v2, %s13341_s29  ;;  %5011 = vrot.lane.b32.xlu0 %v4937_v37, %s8133_s24  ;;  %3597 = vst.msk [vmem:[#allocation3 + $0xa0] sm:$0xff] %vm14169_vm5, %v3558_v12  ;;  %v4200_v33 = vsel %vm14176_vm7, %v11081_v58, 0.0  ;;  %vm14181_vm7 = vmmov %vm14169_vm5 }
 0x2a8   : > { %v4994_v22 = vpop.permute.xlu1 %4993  ;;  %v11200_v27 = vld [vmem:[#allocation3 + $0xa8] sm:$0xff] }
 0x2a9   : > { %5088 = vst.msk [vmem:[#allocation7 + $0x20] sm:$0xff] %vm13332_vm8, %v4994_v22  ;;  %v4548_v3 = vpop.permute.xlu0 %4547  ;;  %v5216_v61 = vld [vmem:[#allocation7 + $0x8] sm:$0xff] }
 0x2aa   : > { %4641 = vst.msk [vmem:[#allocation7 + $0x38] sm:$0xff] %vm13333_vm15, %v4548_v3  ;;  %v14190_v3 = vld [vmem:[#allocation75_spill] sm:$0xff] }
 0x2ab   : > { %4051 = vrot.lane.b32.xlu1 %v3976_v9, %s13341_s29  ;;  %4274 = vrot.lane.b32.xlu0 %v4200_v33, %s8133_s24  ;;  %4433 = vst.msk [vmem:[#allocation7 + $0x1b8] sm:$0xff] %vm14177_vm13, %v11200_v27  ;;  %v11205_v32 = vld [vmem:[#allocation3 + $0x91] sm:$0xff]  ;;  %vm14182_vm13 = vmmov %vm14169_vm5 }
 0x2ac   : > { %v4257_v57 = vpop.permute.xlu1 %4256  ;;  %v11211_v58 = vld [vmem:[#allocation3 + $0x98] sm:$0xff]  ;;  %v5164_v17 = vsel %vm14180_vm1, %v11205_v32, 0.0  ;;  %v11220_v45 = vld [vmem:[#allocation3 + $0xa9] sm:$0xff]  ;;  %vm14185_vm1 = vmmov %vm14169_vm5 }
 0x2ad   : > { %4352 = vst.msk [vmem:[#allocation7 + $0x18] sm:$0xff] %vm13332_vm8, %v4257_v57  ;;  %v3809_v14 = vpop.permute.xlu0 %3808  ;;  %v3630_v8 = vld [vmem:[#allocation3 + $0x97] sm:$0xff]  ;;  %7848 = vmatmul.mubr.msk.bf16.gmra.mxu0 %vm14182_vm13, %v5322_v15  ;;  %v5167_v38 = vsel %vm14184_vm14, %v11220_v45, 0.0  ;;  %v3633_v0 = vld [vmem:[#allocation3 + $0xaf] sm:$0xff]  ;;  %vm14189_vm13 = vnez %v14188_v19  ;;  %vm14191_vm14 = vcmp.ge.s32.totalorder %v14190_v3, 1 }
 0x2ae   : > { %4431 = vst.msk [vmem:[#allocation7 + $0x188] sm:$0xff] %vm14169_vm5, %v11211_v58  ;;  %v11224_v2 = vld [vmem:[#allocation3 + $0xb0] sm:$0xff]  ;;  %7851 = vmatprep.mubr.msk.bf16.mxu0 %vm14185_vm1, %v5325_v52  ;;  %vm14186_vm5 = vmmov %vm14185_vm1  ;;  %v11235_v37 = vld [vmem:[#allocation3 + $0x99] sm:$0xff]  ;;  %v3662_v9 = vsel %vm14189_vm13, %v3630_v8, 0.0  ;;  %v3665_v63 = vsel %vm14191_vm14, %v3633_v0, 0.0 }
 0x2af   : > { %5013 = vrot.lane.b32.xlu1 %v4938_v23, %s8133_s24  ;;  %5196 = vst.msk [vmem:[#allocation7 + $0x148] sm:$0xff] %vm14181_vm7, %v5164_v17  ;;  %4567 = vrot.lane.b32.xlu0 %v11001_v51, %s8131_s21  ;;  %vm14187_vm7 = vmmov %vm14185_vm1  ;;  %v11237_v12 = vld [vmem:[#allocation3 + $0xa1] sm:$0xff]  ;;  %vm14193_vm1 = vcmp.le.s32.totalorder %v14192_v18, 14  ;;  %v14194_v33 = vld [vmem:[#allocation65_spill] sm:$0xff] }
 0x2b0   : > { %3903 = vst.msk [vmem:[#allocation7 + $0x30] sm:$0xff] %vm13333_vm15, %v3809_v14  ;;  %v4550_v7 = vpop.permute.xlu1 %4549  ;;  %v5219_v56 = vld [vmem:[#allocation7 + $0x20] sm:$0xff]  ;;  %v5165_v53 = vsel %vm14193_vm1, %v11235_v37, 0.0  ;;  %v5250_v15 = vld [vmem:[#allocation7 + $0x118] sm:$0xff]  ;;  %v11252_v54 = vld [vmem:[#allocation3 + $0xa0] sm:$0xff]  ;;  %vm14199_vm1 = vcmask 785920  }
 0x2b1   : > { %4434 = vst.msk [vmem:[#allocation7 + $0x1d0] sm:$0xff] %vm14186_vm5, %v11224_v2  ;;  %v5312_v22 = vpack.c.bf16 %v5219_v56, %v5216_v61  ;;  %vm14195_vm5 = vnez %v14194_v33  ;;  %v4772_v57 = vpop.permute.xlu0 %4771  ;;  %v5247_v23 = vld [vmem:[#allocation7 + $0x100] sm:$0xff]  ;;  %vm14196_vm13 = vmmov %vm14187_vm7  ;;  %v3631_v36 = vld [vmem:[#allocation3 + $0x9f] sm:$0xff] }
 0x2b2   : > { %5199 = vst.msk [vmem:[#allocation7 + $0x190] sm:$0xff] %vm14187_vm7, %v5167_v38  ;;  %v5166_v4 = vsel %vm14195_vm5, %v11237_v12, 0.0  ;;  %3694 = vst.msk [vmem:[#allocation7 + $0x1b0] sm:$0xff] %vm14187_vm7, %v3662_v9  ;;  %vm14200_vm5 = vcmp.ge.s32.totalorder %v14093_v29, 1  ;;  %v3632_v17 = vld [vmem:[#allocation3 + $0xa7] sm:$0xff]  ;;  %v5215_v52 = vld [vmem:[#allocation7] sm:$0xff]  ;;  %v5328_v9 = vpack.c.bf16 %v5250_v15, %v5247_v23 }
 0x2b3   : > { %4642 = vst.msk [vmem:[#allocation7 + $0x50] sm:$0xff] %vm13333_vm15, %v4550_v7  ;;  %4276 = vrot.lane.b32.xlu1 %v11098_v5, %s8133_s24  ;;  %vm14197_vm14 = vmmov %vm14187_vm7  ;;  %5583 = vmatprep.mubr.bf16.mxu1 %v5312_v22  ;;  %v3752_v5 = vsel %vm14200_vm5, %v11104_v30, 0.0  ;;  %v11265_v38 = vld [vmem:[#allocation3 + $0x87] sm:$0xff]  ;;  %v14204_v56 = vld [vmem:[#allocation76_spill] sm:$0xff] }
 0x2b4   : > { %3697 = vst.msk [vmem:[#allocation7 + $0x1f8] sm:$0xff] %vm14196_vm13, %v3665_v63  ;;  %vm14198_vm8 = vmmov %vm14187_vm7  ;;  %v3811_v14 = vpop.permute.xlu1 %3810  ;;  %3828 = vrot.lane.b32.xlu0 %v3752_v5, %s8131_s21  ;;  %v5218_v8 = vld [vmem:[#allocation7 + $0x18] sm:$0xff]  ;;  %v14202_v7 = vld [vmem:[#allocation62_spill] sm:$0xff]  ;;  %vm14206_vm13 = vcmask 523520  }
 0x2b5   : > { %5197 = vst.msk [vmem:[#allocation7 + $0x160] sm:$0xff] %vm14197_vm14, %v5165_v53  ;;  %vm14201_vm15 = vmmov %vm14187_vm7  ;;  %vm14205_vm7 = vnez %v14204_v56  ;;  %v14207_v30 = vld [vmem:[#allocation50_spill] sm:$0xff]  ;;  %v5311_v19 = vpack.c.bf16 %v5218_v8, %v5215_v52  ;;  %v4034_v63 = vpop.permute.xlu0 %4033  ;;  %v3945_v15 = vld [vmem:[#allocation3 + $0x69] sm:$0xff] }
 0x2b6   : > { %5198 = vst.msk [vmem:[#allocation7 + $0x178] sm:$0xff] %vm14198_vm8, %v5166_v4  ;;  %vm14203_vm8 = vcmp.ge.s32.totalorder %v14202_v7, 1  ;;  %v3664_v0 = vsel %vm14205_vm7, %v3632_v17, 0.0  ;;  %v5253_v53 = vld [vmem:[#allocation7 + $0x130] sm:$0xff]  ;;  %v5256_v33 = vld [vmem:[#allocation7 + $0x148] sm:$0xff] }
 0x2b7   : > { %4865 = vst.msk [vmem:[#allocation7 + $0x38] sm:$0xff] %vm14199_vm1, %v4772_v57  ;;  %v3663_v61 = vsel %vm14203_vm8, %v3631_v36, 0.0  ;;  %vm14209_vm1 = vmmov %vm14197_vm14  ;;  %5584 = vmatmul.mubr.bf16.vlgmr.msra.gmra.mxu1 %v5311_v19  ;;  %vm14211_vm8 = vcmask 785920   ;;  %v5331_v4 = vpack.c.bf16 %v5256_v33, %v5253_v53  ;;  %v14212_v57 = vld [vmem:[#allocation54_spill] sm:$0xff]  ;;  %v14226_v33 = vld [vmem:[#allocation44_spill] sm:$0xff] }
 0x2b8   : > { %4432 = vst.msk [vmem:[#allocation7 + $0x1a0] sm:$0xff] %vm14201_vm15, %v11252_v54  ;;  %vm14208_vm15 = vnez %v14207_v30  ;;  %vm14210_vm5 = vmmov %vm14209_vm1  ;;  %vm14213_vm7 = vnez %v14212_v57  ;;  %v4774_v23 = vpop.permute.xlu1 %4773 }
 0x2b9   : > { %3904 = vst.msk [vmem:[#allocation7 + $0x48] sm:$0xff] %vm14206_vm13, %v3811_v14  ;;  %v4492_v22 = vsel %vm14208_vm15, %v11003_v43, 0.0  ;;  %7852 = vmatmul.mubr.msk.bf16.gmra.mxu0 %vm14210_vm5, %v5328_v9  ;;  %v4715_v5 = vsel %vm14213_vm7, %v11265_v38, 0.0  ;;  %vm14214_vm13 = vmmov %vm14211_vm8  ;;  %v4996_v17 = vpop.permute.xlu0 %4995  ;;  %v11290_v14 = vld [vmem:[#allocation3 + $0x8f] sm:$0xff]  ;;  %vm14218_vm5 = vcmp.ge.s32.totalorder %v14093_v29, 1  ;;  %vm14219_vm7 = vcmp.le.s32.totalorder %v9072_v26, 14 }
 0x2ba   : > { %3695 = vst.msk [vmem:[#allocation7 + $0x1c8] sm:$0xff] %vm14197_vm14, %v3663_v61  ;;  %4569 = vrot.lane.b32.xlu1 %v4492_v22, %s8131_s21  ;;  %4791 = vrot.lane.b32.xlu0 %v4715_v5, %s13341_s29  ;;  %vm14215_vm15 = vmmov %vm14209_vm1  ;;  %vm14216_vm14 = vcmp.ge.s32.totalorder %v9072_v26, 1  ;;  %v3977_v61 = vsel %vm14218_vm5, %v3945_v15, 0.0  ;;  %v14223_v9 = vld [vmem:[#allocation51_spill] sm:$0xff] }
 0x2bb   : > { %3696 = vst.msk [vmem:[#allocation7 + $0x1e0] sm:$0xff] %vm14209_vm1, %v3664_v0  ;;  %7855 = vmatprep.mubr.msk.bf16.mxu0 %vm14215_vm15, %v5331_v4  ;;  %v3753_v36 = vsel %vm14216_vm14, %v11121_v48, 0.0  ;;  %vm14217_vm1 = vcmask 1048320   ;;  %v4716_v48 = vsel %vm14219_vm7, %v11290_v14, 0.0  ;;  %vm14222_vm14 = vcmp.le.s32.totalorder %v14093_v29, 14 }
 0x2bc   : > { %4128 = vst.msk [vmem:[#allocation7 + $0x30] sm:$0xff] %vm14211_vm8, %v4034_v63  ;;  %v5259_v52 = vld [vmem:[#allocation7 + $0x160] sm:$0xff]  ;;  %v4036_v56 = vpop.permute.xlu1 %4035  ;;  %v4939_v22 = vsel %vm14222_vm14, %v10964_v13, 0.0  ;;  %vm14224_vm5 = vnez %v14223_v9  ;;  %vm14227_vm7 = vnez %v14226_v33  ;;  %v11350_v9 = vld [vmem:[#allocation3 + $0x9f] sm:$0xff] }
 0x2bd   : > { %4866 = vst.msk [vmem:[#allocation7 + $0x50] sm:$0xff] %vm14214_vm13, %v4774_v23  ;;  %v5262_v8 = vld [vmem:[#allocation7 + $0x178] sm:$0xff]  ;;  %v4259_v30 = vpop.permute.xlu0 %4258  ;;  %vm14220_vm13 = vmmov %vm14215_vm15  ;;  %v3978_v63 = vsel %vm14224_vm5, %v10971_v40, 0.0  ;;  %v4202_v4 = vsel %vm14227_vm7, %v11145_v46, 0.0  ;;  %vm14232_vm5 = vcmask 785920  }
 0x2be   : > { %3830 = vrot.lane.b32.xlu1 %v3753_v36, %s8131_s21  ;;  %5089 = vst.msk [vmem:[#allocation7 + $0x38] sm:$0xff] %vm14217_vm1, %v4996_v17  ;;  %4053 = vrot.lane.b32.xlu0 %v3977_v61, %s13341_s29  ;;  %v5334_v0 = vpack.c.bf16 %v5262_v8, %v5259_v52  ;;  %vm14221_vm15 = vmmov %vm14217_vm1  ;;  %v11333_v8 = vld [vmem:[#allocation3 + $0x97] sm:$0xff] }
 0x2bf   : > { %4129 = vst.msk [vmem:[#allocation7 + $0x48] sm:$0xff] %vm14211_vm8, %v4036_v56  ;;  %vm14225_vm8 = vcmask 523520   ;;  %v14235_v61 = vld [vmem:[#allocation52_spill] sm:$0xff] }
 0x2c0   : > { %4353 = vst.msk [vmem:[#allocation7 + $0x30] sm:$0xff] %vm14221_vm15, %v4259_v30  ;;  %v4998_v19 = vpop.permute.xlu1 %4997  ;;  %vm14229_vm15 = vcmp.le.s32.totalorder %v9072_v26, 14  ;;  %vm14230_vm14 = vmmov %vm14225_vm8 }
 0x2c1   : > { %7856 = vmatmul.mubr.msk.bf16.gmra.mxu0 %vm14220_vm13, %v5334_v0  ;;  %5090 = vst.msk [vmem:[#allocation7 + $0x50] sm:$0xff] %vm14217_vm1, %v4998_v19  ;;  %v4552_v53 = vpop.permute.xlu0 %4551  ;;  %vm14228_vm13 = vmmov %vm14217_vm1  ;;  %v4940_v57 = vsel %vm14229_vm15, %v10992_v35, 0.0 }
 0x2c2   : > { %4793 = vrot.lane.b32.xlu1 %v4716_v48, %s13341_s29  ;;  %5015 = vrot.lane.b32.xlu0 %v4939_v22, %s8133_s24  ;;  %4643 = vst.msk [vmem:[#allocation7 + $0x68] sm:$0xff] %vm14225_vm8, %v4552_v53  ;;  %vm14231_vm1 = vmmov %vm14225_vm8  ;;  %vm14233_vm8 = vcmp.ge.s32.totalorder %v14192_v18, 1 }
 0x2c3   : > { %v3754_v26 = vsel %vm14233_vm8, %v10977_v41, 0.0  ;;  %vm14234_vm7 = vmmov %vm14231_vm1  ;;  %v14238_v41 = vld [vmem:[#allocation55_spill] sm:$0xff]  ;;  %vm14242_vm8 = vcmask 1048320  }
 0x2c4   : > { %v4261_v29 = vpop.permute.xlu1 %4260  ;;  %vm14237_vm15 = vmmov %vm14232_vm5 }
 0x2c5   : > { %4354 = vst.msk [vmem:[#allocation7 + $0x48] sm:$0xff] %vm14228_vm13, %v4261_v29  ;;  %v3813_v40 = vpop.permute.xlu0 %3812  ;;  %v5222_v23 = vld [vmem:[#allocation7 + $0x38] sm:$0xff]  ;;  %vm14236_vm13 = vnez %v14235_v61 }
 0x2c6   : > { %4055 = vrot.lane.b32.xlu1 %v3978_v63, %s13341_s29  ;;  %4278 = vrot.lane.b32.xlu0 %v4202_v4, %s8133_s24  ;;  %3905 = vst.msk [vmem:[#allocation7 + $0x60] sm:$0xff] %vm14230_vm14, %v3813_v40  ;;  %vm14239_vm14 = vnez %v14238_v41 }
 0x2c7   : > { %v4717_v0 = vsel %vm14239_vm14, %v11333_v8, 0.0  ;;  %vm14246_vm14 = vmmov %vm14242_vm8 }
 0x2c8   : > { %v4554_v5 = vpop.permute.xlu1 %4553  ;;  %v5225_v46 = vld [vmem:[#allocation7 + $0x50] sm:$0xff] }
 0x2c9   : > { %4644 = vst.msk [vmem:[#allocation7 + $0x80] sm:$0xff] %vm14231_vm1, %v4554_v5  ;;  %v5315_v15 = vpack.c.bf16 %v5225_v46, %v5222_v23  ;;  %v4776_v36 = vpop.permute.xlu0 %4775  ;;  %vm14240_vm1 = vmmov %vm14232_vm5  ;;  %v14252_v5 = vld [vmem:[#allocation45_spill] sm:$0xff] }
 0x2ca   : > { %5017 = vrot.lane.b32.xlu1 %v4940_v57, %s8133_s24  ;;  %4571 = vrot.lane.b32.xlu0 %v10986_v47, %s8131_s21  ;;  %4867 = vst.msk [vmem:[#allocation7 + $0x68] sm:$0xff] %vm14232_vm5, %v4776_v36  ;;  %v5221_v47 = vld [vmem:[#allocation7 + $0x30] sm:$0xff]  ;;  %vm14241_vm5 = vcmp.ge.s32.totalorder %v14113_v60, 1 }
 0x2cb   : > { %5591 = vmatprep.mubr.bf16.mxu1 %v5315_v15  ;;  %v3755_v22 = vsel %vm14241_vm5, %v11022_v16, 0.0  ;;  %vm14248_vm5 = vmmov %vm14242_vm8 }
 0x2cc   : > { %v3815_v17 = vpop.permute.xlu1 %3814  ;;  %v5224_v52 = vld [vmem:[#allocation7 + $0x48] sm:$0xff] }
 0x2cd   : > { %3906 = vst.msk [vmem:[#allocation7 + $0x78] sm:$0xff] %vm14234_vm7, %v3815_v17  ;;  %v5314_v56 = vpack.c.bf16 %v5224_v52, %v5221_v47  ;;  %v4038_v48 = vpop.permute.xlu0 %4037  ;;  %vm14243_vm7 = vcmp.ge.s32.totalorder %v14192_v18, 1 }
 0x2ce   : > { %4280 = vrot.lane.b32.xlu1 %v11166_v49, %s8133_s24  ;;  %3832 = vrot.lane.b32.xlu0 %v3754_v26, %s8131_s21  ;;  %v4494_v49 = vsel %vm14236_vm13, %v11205_v32, 0.0  ;;  %4130 = vst.msk [vmem:[#allocation7 + $0x60] sm:$0xff] %vm14237_vm15, %v4038_v48  ;;  %v3979_v63 = vsel %vm14243_vm7, %v11001_v51, 0.0  ;;  %vm14244_vm13 = vmmov %vm14240_vm1  ;;  %vm14245_vm15 = vcmp.le.s32.totalorder %v14113_v60, 14  ;;  %v14249_v51 = vld [vmem:[#allocation53_spill] sm:$0xff]  ;;  %vm14251_vm7 = vcmask 523520  }
 0x2cf   : > { %5592 = vmatmul.mubr.bf16.gmra.mxu1 %v5314_v56  ;;  %v4718_v16 = vsel %vm14245_vm15, %v11350_v9, 0.0  ;;  %vm14254_vm15 = vmmov %vm14248_vm5 }
 0x2d0   : > { %v4778_v30 = vpop.permute.xlu1 %4777 }
 0x2d1   : > { %4868 = vst.msk [vmem:[#allocation7 + $0x80] sm:$0xff] %vm14240_vm1, %v4778_v30  ;;  %v5000_v19 = vpop.permute.xlu0 %4999  ;;  %vm14247_vm1 = vcmp.le.s32.totalorder %v14192_v18, 14 }
 0x2d2   : > { %4573 = vrot.lane.b32.xlu1 %v4494_v49, %s8131_s21  ;;  %4795 = vrot.lane.b32.xlu0 %v4717_v0, %s13341_s29  ;;  %5091 = vst.msk [vmem:[#allocation7 + $0x68] sm:$0xff] %vm14242_vm8, %v5000_v19  ;;  %v4941_v4 = vsel %vm14247_vm1, %v11211_v58, 0.0  ;;  %vm14250_vm8 = vnez %v14249_v51  ;;  %vm14256_vm1 = vmmov %vm14251_vm7  ;;  %v14266_v51 = vld [vmem:[#allocation70_spill] sm:$0xff] }
 0x2d3   : > { %v3980_v57 = vsel %vm14250_vm8, %v11003_v43, 0.0  ;;  %vm14258_vm8 = vcmask 785920  }
 0x2d4   : > { %v4040_v53 = vpop.permute.xlu1 %4039 }
 0x2d5   : > { %4131 = vst.msk [vmem:[#allocation7 + $0x78] sm:$0xff] %vm14244_vm13, %v4040_v53  ;;  %v4263_v33 = vpop.permute.xlu0 %4262  ;;  %vm14253_vm13 = vnez %v14252_v5  ;;  %v14262_v53 = vld [vmem:[#allocation66_spill] sm:$0xff] }
 0x2d6   : > { %3834 = vrot.lane.b32.xlu1 %v3755_v22, %s8131_s21  ;;  %4057 = vrot.lane.b32.xlu0 %v3979_v63, %s13341_s29  ;;  %4355 = vst.msk [vmem:[#allocation7 + $0x60] sm:$0xff] %vm14246_vm14, %v4263_v33  ;;  %v4204_v23 = vsel %vm14253_vm13, %v11265_v38, 0.0  ;;  %vm14255_vm14 = vcmp.le.s32.totalorder %v14113_v60, 14  ;;  %vm14260_vm13 = vcmask 261120  }
 0x2d7   : > { %v4942_v46 = vsel %vm14255_vm14, %v11252_v54, 0.0  ;;  %vm14263_vm14 = vnez %v14262_v53  ;;  %v14290_v53 = vld [vmem:[#allocation79_spill] sm:$0xff] }
 0x2d8   : > { %v5002_v29 = vpop.permute.xlu1 %5001 }
 0x2d9   : > { %5092 = vst.msk [vmem:[#allocation7 + $0x80] sm:$0xff] %vm14248_vm5, %v5002_v29  ;;  %v4556_v40 = vpop.permute.xlu0 %4555  ;;  %v5228_v38 = vld [vmem:[#allocation7 + $0x68] sm:$0xff]  ;;  %vm14257_vm5 = vmmov %vm14256_vm1 }
 0x2da   : > { %4797 = vrot.lane.b32.xlu1 %v4718_v16, %s13341_s29  ;;  %5019 = vrot.lane.b32.xlu0 %v4941_v4, %s8133_s24  ;;  %4645 = vst.msk [vmem:[#allocation7 + $0x98] sm:$0xff] %vm14251_vm7, %v4556_v40  ;;  %vm14259_vm7 = vcmp.ge.s32.totalorder %v14183_v20, 1  ;;  %v4496_v16 = vsel %vm14263_vm14, %v11237_v12, 0.0 }
 0x2db   : > { %v3756_v48 = vsel %vm14259_vm7, %v10964_v13, 0.0 }
 0x2dc   : > { %v4265_v18 = vpop.permute.xlu1 %4264 }
 0x2dd   : > { %4356 = vst.msk [vmem:[#allocation7 + $0x78] sm:$0xff] %vm14254_vm15, %v4265_v18  ;;  %v3817_v43 = vpop.permute.xlu0 %3816  ;;  %v7829_v15 = vpop.f32.mrf.mxu0  ;;  %v5227_v22 = vld [vmem:[#allocation7 + $0x60] sm:$0xff]  ;;  %vm14261_vm15 = vmmov %vm14256_vm1 }
 0x2de   : > { %4059 = vrot.lane.b32.xlu1 %v3980_v57, %s13341_s29  ;;  %4282 = vrot.lane.b32.xlu0 %v4204_v23, %s8133_s24  ;;  %3907 = vst.msk [vmem:[#allocation7 + $0x90] sm:$0xff] %vm14256_vm1, %v3817_v43  ;;  %v3503_v36 = vadd.f32 %v10928_v10, %v7829_v15  ;;  %vm14264_vm1 = vmmov %vm14260_vm13  ;;  %v3949_v23 = vld [vmem:[#allocation3 + $0x89] sm:$0xff] }
 0x2df   : > { %v3494_v47 = vpop.f32.mrf.mxu0  ;;  %vm14268_vm7 = vmmov %vm14264_vm1 }
 0x2e0   : > { %v4558_v26 = vpop.permute.xlu1 %4557  ;;  %v5231_v17 = vld [vmem:[#allocation7 + $0x80] sm:$0xff]  ;;  %v3563_v60 = vmax.f32 %v3503_v36, 0.0  ;;  %v3495_v61 = vadd.f32 %v10928_v10, %v3494_v47  ;;  %vm14271_vm14 = vmmov %vm14264_vm1 }
 0x2e1   : > { %4646 = vst.msk [vmem:[#allocation7 + $0xb0] sm:$0xff] %vm14257_vm5, %v4558_v26  ;;  %v5318_v52 = vpack.c.bf16 %v5231_v17, %v5228_v38  ;;  %v4780_v49 = vpop.permute.xlu0 %4779  ;;  %v7830_v56 = vpop.f32.mrf.mxu0  ;;  %vm14265_vm5 = vmmov %vm14258_vm8  ;;  %v14277_v17 = vld [vmem:[#allocation80_spill] sm:$0xff] }
 0x2e2   : > { %5021 = vrot.lane.b32.xlu1 %v4942_v46, %s8133_s24  ;;  %4575 = vrot.lane.b32.xlu0 %v11235_v37, %s8131_s21  ;;  %4869 = vst.msk [vmem:[#allocation7 + $0x98] sm:$0xff] %vm14258_vm8, %v4780_v49  ;;  %v3561_v41 = vmax.f32 %v3495_v61, 0.0  ;;  %v3506_v0 = vadd.f32 %v10928_v10, %v7830_v56  ;;  %vm14267_vm8 = vnez %v14266_v51  ;;  %v11418_v46 = vld [vmem:[#allocation3 + $0xaf] sm:$0xff]  ;;  %v14296_v51 = vld [vmem:[#allocation81_spill] sm:$0xff] }
 0x2e3   : > { %5599 = vmatprep.mubr.bf16.mxu1 %v5318_v52  ;;  %3602 = vst.msk [vmem:[#allocation3 + $0xc8] sm:$0xff] %vm14260_vm13, %v3563_v60  ;;  %v3497_v63 = vpop.f32.mrf.mxu0  ;;  %vm14269_vm13 = vmmov %vm14265_vm5 }
 0x2e4   : > { %v3819_v30 = vpop.permute.xlu1 %3818  ;;  %v5230_v19 = vld [vmem:[#allocation7 + $0x78] sm:$0xff]  ;;  %3600 = vst.msk [vmem:[#allocation3 + $0xb8] sm:$0xff] %vm14264_vm1, %v3561_v41  ;;  %v3564_v33 = vmax.f32 %v3506_v0, 0.0  ;;  %v3498_v4 = vadd.f32 %v10928_v10, %v3497_v63  ;;  %vm14272_vm1 = vcmask 1048320  }
 0x2e5   : > { %3908 = vst.msk [vmem:[#allocation7 + $0xa8] sm:$0xff] %vm14261_vm15, %v3819_v30  ;;  %v5317_v13 = vpack.c.bf16 %v5230_v19, %v5227_v22  ;;  %v4042_v29 = vpop.permute.xlu0 %4041  ;;  %vm14270_vm15 = vcmp.ge.s32.totalorder %v14101_v28, 1 }
 0x2e6   : > { %4284 = vrot.lane.b32.xlu1 %v11290_v14, %s8133_s24  ;;  %3836 = vrot.lane.b32.xlu0 %v3756_v48, %s8131_s21  ;;  %v11397_v14 = vld [vmem:[#allocation3 + $0xa7] sm:$0xff]  ;;  %4132 = vst.msk [vmem:[#allocation7 + $0x90] sm:$0xff] %vm14265_vm5, %v4042_v29  ;;  %v3562_v40 = vmax.f32 %v3498_v4, 0.0  ;;  %v3757_v10 = vsel %vm14270_vm15, %v10992_v35, 0.0  ;;  %vm14273_vm5 = vcmp.ge.s32.totalorder %v14183_v20, 1  ;;  %vm14278_vm15 = vnez %v14277_v17  ;;  %v14283_v48 = vld [vmem:[#allocation72_spill] sm:$0xff] }
 0x2e7   : > { %5600 = vmatmul.mubr.bf16.gmra.mxu1 %v5317_v13  ;;  %v4719_v57 = vsel %vm14267_vm8, %v11397_v14, 0.0  ;;  %3603 = vst.msk [vmem:[#allocation3 + $0xd0] sm:$0xff] %vm14268_vm7, %v3564_v33  ;;  %v3981_v43 = vsel %vm14273_vm5, %v3949_v23, 0.0  ;;  %vm14274_vm8 = vmmov %vm14268_vm7  ;;  %vm14281_vm5 = vcmask 1048320   ;;  %v14292_v13 = vld [vmem:[#allocation91_spill] sm:$0xff]  ;;  %v14294_v4 = vld [vmem:[#allocation57_spill] sm:$0xff] }
 0x2e8   : > { %3601 = vst.msk [vmem:[#allocation3 + $0xc0] sm:$0xff] %vm14271_vm14, %v3562_v40  ;;  %vm14275_vm7 = vmmov %vm14269_vm13 }
 0x2e9   : > { %v4782_v5 = vpop.permute.xlu1 %4781  ;;  %v5004_v18 = vpop.permute.xlu0 %5003  ;;  %vm14279_vm14 = vmmov %vm14274_vm8 }
 0x2ea   : > { %4577 = vrot.lane.b32.xlu1 %v4496_v16, %s8131_s21  ;;  %4799 = vrot.lane.b32.xlu0 %v4719_v57, %s13341_s29  ;;  %4870 = vst.msk [vmem:[#allocation7 + $0xb0] sm:$0xff] %vm14269_vm13, %v4782_v5  ;;  %v11423_v15 = vld [vmem:[#allocation3 + $0xc8] sm:$0xff]  ;;  %vm14276_vm13 = vcmp.le.s32.totalorder %v14101_v28, 14 }
 0x2eb   : > { %5093 = vst.msk [vmem:[#allocation7 + $0x98] sm:$0xff] %vm14272_vm1, %v5004_v18  ;;  %v11428_v35 = vld [vmem:[#allocation3 + $0xb1] sm:$0xff]  ;;  %v4720_v26 = vsel %vm14276_vm13, %v11418_v46, 0.0  ;;  %vm14280_vm1 = vmmov %vm14274_vm8 }
 0x2ec   : > { %4437 = vst.msk [vmem:[#allocation7 + $0x218] sm:$0xff] %vm14274_vm8, %v11423_v15  ;;  %v11434_v38 = vld [vmem:[#allocation3 + $0xb8] sm:$0xff]  ;;  %v5168_v47 = vsel %vm14278_vm15, %v11428_v35, 0.0  ;;  %vm14282_vm8 = vcmp.le.s32.totalorder %v14183_v20, 14  ;;  %vm14285_vm13 = vmmov %vm14280_vm1  ;;  %v14288_v20 = vld [vmem:[#allocation67_spill] sm:$0xff] }
 0x2ed   : > { %v4044_v36 = vpop.permute.xlu1 %4043  ;;  %v4267_v52 = vpop.permute.xlu0 %4266  ;;  %4435 = vst.msk [vmem:[#allocation7 + $0x1e8] sm:$0xff] %vm14279_vm14, %v11434_v38  ;;  %v3634_v60 = vld [vmem:[#allocation3 + $0xb7] sm:$0xff]  ;;  %v4943_v49 = vsel %vm14282_vm8, %v11200_v27, 0.0  ;;  %vm14286_vm15 = vmmov %vm14280_vm1  ;;  %vm14293_vm8 = vcmp.ge.s32.totalorder %v14292_v13, 1 }
 0x2ee   : > { %3838 = vrot.lane.b32.xlu1 %v3757_v10, %s8131_s21  ;;  %4061 = vrot.lane.b32.xlu0 %v3981_v43, %s13341_s29  ;;  %4133 = vst.msk [vmem:[#allocation7 + $0xa8] sm:$0xff] %vm14275_vm7, %v4044_v36  ;;  %v11443_v61 = vld [vmem:[#allocation3 + $0xc9] sm:$0xff]  ;;  %vm14284_vm7 = vcmp.le.s32.totalorder %v14283_v48, 14  ;;  %vm14287_vm14 = vmmov %vm14281_vm5  ;;  %v14305_v43 = vld [vmem:[#allocation78_spill] sm:$0xff] }
 0x2ef   : > { %5200 = vst.msk [vmem:[#allocation7 + $0x1a8] sm:$0xff] %vm14280_vm1, %v5168_v47  ;;  %v11449_v56 = vld [vmem:[#allocation3 + $0xd0] sm:$0xff]  ;;  %v5171_v41 = vsel %vm14284_vm7, %v11443_v61, 0.0  ;;  %v11458_v22 = vld [vmem:[#allocation3 + $0xb9] sm:$0xff]  ;;  %v11460_v19 = vld [vmem:[#allocation3 + $0xc1] sm:$0xff]  ;;  %vm14289_vm1 = vnez %v14288_v20  ;;  %vm14295_vm7 = vcmp.le.s32.totalorder %v14294_v4, 14 }
 0x2f0   : > { %4357 = vst.msk [vmem:[#allocation7 + $0x90] sm:$0xff] %vm14281_vm5, %v4267_v52  ;;  %v3637_v30 = vld [vmem:[#allocation3 + $0xcf] sm:$0xff]  ;;  %v3982_v63 = vsel %vm14289_vm1, %v11205_v32, 0.0  ;;  %vm14291_vm5 = vnez %v14290_v53  ;;  %v5169_v29 = vsel %vm14295_vm7, %v11458_v22, 0.0  ;;  %v11477_v5 = vld [vmem:[#allocation3 + $0xc0] sm:$0xff] }
 0x2f1   : > { %v5006_v0 = vpop.permute.xlu1 %5005  ;;  %4438 = vst.msk [vmem:[#allocation7 + $0x230] sm:$0xff] %vm14285_vm13, %v11449_v56  ;;  %v3666_v16 = vsel %vm14291_vm5, %v3634_v60, 0.0  ;;  %v3669_v33 = vsel %vm14293_vm8, %v3637_v30, 0.0  ;;  %vm14297_vm13 = vnez %v14296_v51  ;;  %v4560_v40 = vpop.permute.xlu0 %4559  ;;  %vm14301_vm8 = vcmask 523520   ;;  %v14302_v32 = vld [vmem:[#allocation58_spill] sm:$0xff] }
 0x2f2   : > { %4801 = vrot.lane.b32.xlu1 %v4720_v26, %s13341_s29  ;;  %5023 = vrot.lane.b32.xlu0 %v4943_v49, %s8133_s24  ;;  %5203 = vst.msk [vmem:[#allocation7 + $0x1f0] sm:$0xff] %vm14286_vm15, %v5171_v41  ;;  %v5170_v57 = vsel %vm14297_vm13, %v11460_v19, 0.0  ;;  %3698 = vst.msk [vmem:[#allocation7 + $0x210] sm:$0xff] %vm14286_vm15, %v3666_v16  ;;  %vm14303_vm7 = vnez %v14302_v32  ;;  %v3635_v10 = vld [vmem:[#allocation3 + $0xbf] sm:$0xff]  ;;  %v3636_v26 = vld [vmem:[#allocation3 + $0xc7] sm:$0xff] }
 0x2f3   : > { %5094 = vst.msk [vmem:[#allocation7 + $0xb0] sm:$0xff] %vm14287_vm14, %v5006_v0  ;;  %vm14298_vm14 = vmmov %vm14286_vm15  ;;  %v4206_v23 = vsel %vm14303_vm7, %v11333_v8, 0.0  ;;  %vm14306_vm15 = vcmp.ge.s32.totalorder %v14305_v43, 1  ;;  %v14309_v8 = vld [vmem:[#allocation90_spill] sm:$0xff]  ;;  %v11513_v32 = vld [vmem:[#allocation3 + $0xb7] sm:$0xff] }
 0x2f4   : > { %3701 = vst.msk [vmem:[#allocation7 + $0x258] sm:$0xff] %vm14298_vm14, %v3669_v33  ;;  %vm14299_vm1 = vmmov %vm14298_vm14  ;;  %v3667_v36 = vsel %vm14306_vm15, %v3635_v10, 0.0  ;;  %vm14307_vm14 = vcmask 1048320   ;;  %v5265_v60 = vld [vmem:[#allocation7 + $0x190] sm:$0xff] }
 0x2f5   : > { %5201 = vst.msk [vmem:[#allocation7 + $0x1c0] sm:$0xff] %vm14299_vm1, %v5169_v29  ;;  %vm14300_vm5 = vmmov %vm14299_vm1  ;;  %v4269_v18 = vpop.permute.xlu1 %4268  ;;  %v3821_v52 = vpop.permute.xlu0 %3820 }
 0x2f6   : > { %4063 = vrot.lane.b32.xlu1 %v3982_v63, %s13341_s29  ;;  %5202 = vst.msk [vmem:[#allocation7 + $0x1d8] sm:$0xff] %vm14300_vm5, %v5170_v57  ;;  %vm14304_vm13 = vmmov %vm14299_vm1  ;;  %4286 = vrot.lane.b32.xlu0 %v4206_v23, %s8133_s24  ;;  %vm14308_vm1 = vcmp.le.s32.totalorder %v14101_v28, 14  ;;  %v5268_v49 = vld [vmem:[#allocation7 + $0x1a8] sm:$0xff]  ;;  %v5234_v28 = vld [vmem:[#allocation7 + $0x98] sm:$0xff] }
 0x2f7   : > { %4647 = vst.msk [vmem:[#allocation7 + $0xc8] sm:$0xff] %vm14301_vm8, %v4560_v40  ;;  %v4944_v17 = vsel %vm14308_vm1, %v11224_v2, 0.0  ;;  %vm14310_vm8 = vnez %v14309_v8  ;;  %vm14311_vm7 = vmmov %vm14300_vm5  ;;  %v5337_v41 = vpack.c.bf16 %v5268_v49, %v5265_v60  ;;  %vm14315_vm1 = vcmask 785920   ;;  %v5233_v57 = vld [vmem:[#allocation7 + $0x90] sm:$0xff] }
 0x2f8   : > { %4436 = vst.msk [vmem:[#allocation7 + $0x200] sm:$0xff] %vm14304_vm13, %v11477_v5  ;;  %v3668_v47 = vsel %vm14310_vm8, %v3636_v26, 0.0  ;;  %vm14312_vm13 = vcmask 523520   ;;  %vm13334_vm8 = vcmask 523264  }
 0x2f9   : > { %4358 = vst.msk [vmem:[#allocation7 + $0xa8] sm:$0xff] %vm14307_vm14, %v4269_v18  ;;  %v4562_v0 = vpop.permute.xlu1 %4561  ;;  %vm14313_vm15 = vmmov %vm14312_vm13  ;;  %v4784_v63 = vpop.permute.xlu0 %4783  ;;  %v14321_v18 = vmov 0.0  }
 0x2fa   : > { %3699 = vst.msk [vmem:[#allocation7 + $0x228] sm:$0xff] %vm14300_vm5, %v3667_v36  ;;  %5025 = vrot.lane.b32.xlu1 %v4944_v17, %s8133_s24  ;;  %4579 = vrot.lane.b32.xlu0 %v11220_v45, %s8131_s21  ;;  %v5237_v30 = vld [vmem:[#allocation7 + $0xb0] sm:$0xff]  ;;  %vm14314_vm14 = vmmov %vm14300_vm5  ;;  %vm14316_vm5 = vcmp.ge.s32.totalorder %v14294_v4, 1  ;;  %v14323_v36 = vld [vmem:[#allocation71_spill] sm:$0xff] }
 0x2fb   : > { %3700 = vst.msk [vmem:[#allocation7 + $0x240] sm:$0xff] %vm14311_vm7, %v3668_v47  ;;  %7859 = vmatprep.mubr.msk.bf16.mxu0 %vm14314_vm14, %v5337_v41  ;;  %v5321_v20 = vpack.c.bf16 %v5237_v30, %v5234_v28  ;;  %v3758_v29 = vsel %vm14316_vm5, %v11211_v58, 0.0  ;;  %vm14317_vm7 = vmmov %vm14312_vm13 }
 0x2fc   : > { %3909 = vst.msk [vmem:[#allocation7 + $0xc0] sm:$0xff] %vm14312_vm13, %v3821_v52  ;;  %v5271_v53 = vld [vmem:[#allocation7 + $0x1c0] sm:$0xff]  ;;  %vm14318_vm13 = vmmov %vm14314_vm14  ;;  %v11539_v52 = vld [vmem:[#allocation3 + $0xbf] sm:$0xff] }
 0x2fd   : > { %4648 = vst.msk [vmem:[#allocation7 + $0xe0] sm:$0xff] %vm14313_vm15, %v4562_v0  ;;  %v5274_v16 = vld [vmem:[#allocation7 + $0x1d8] sm:$0xff]  ;;  %5607 = vmatprep.mubr.bf16.mxu1 %v5321_v20  ;;  %v3823_v51 = vpop.permute.xlu1 %3822  ;;  %v4046_v58 = vpop.permute.xlu0 %4045  ;;  %vm14322_vm14 = vmmov %vm14315_vm1 }
 0x2fe   : > { %4288 = vrot.lane.b32.xlu1 %v11350_v9, %s8133_s24  ;;  %4871 = vst.msk [vmem:[#allocation7 + $0xc8] sm:$0xff] %vm14315_vm1, %v4784_v63  ;;  %v5340_v33 = vpack.c.bf16 %v5274_v16, %v5271_v53  ;;  %3840 = vrot.lane.b32.xlu0 %v3758_v29, %s8131_s21  ;;  %v14319_v9 = vld [vmem:[#allocation68_spill] sm:$0xff]  ;;  %vm14324_vm1 = vnez %v14323_v36  ;;  %vm14325_vm5 = vmmov %vm14322_vm14  ;;  %v14337_v63 = vld [vmem:[#allocation61_spill] sm:$0xff] }
 0x2ff   : > { %3910 = vst.msk [vmem:[#allocation7 + $0xd8] sm:$0xff] %vm14317_vm7, %v3823_v51  ;;  %vm14320_vm15 = vnez %v14319_v9  ;;  %v4721_v26 = vsel %vm14324_vm1, %v11513_v32, 0.0  ;;  %vm14326_vm7 = vcmp.ge.s32.totalorder %v14202_v7, 1  ;;  %vm14330_vm1 = vcmp.le.s32.totalorder %v14202_v7, 14 }
 0x300   : > { %v5236_v40 = vld [vmem:[#allocation7 + $0xa8] sm:$0xff]  ;;  %7860 = vmatmul.mubr.msk.bf16.gmra.mxu0 %vm14318_vm13, %v5340_v33  ;;  %v4498_v23 = vsel %vm14320_vm15, %v11428_v35, 0.0  ;;  %5906 = vst.msk [vmem:[#allocation5] sm:$0xff] %vm13334_vm8, %v14321_v18  ;;  %5907 = vst.msk [vmem:[#allocation5 + $0x8] sm:$0xff] %vm13334_vm8, %v14321_v18  ;;  %v3759_v8 = vsel %vm14326_vm7, %v11252_v54, 0.0  ;;  %vm14327_vm13 = vcmask 1048320  }
 0x301   : > { %v5320_v10 = vpack.c.bf16 %v5236_v40, %v5233_v57  ;;  %5908 = vst.msk [vmem:[#allocation5 + $0x50] sm:$0xff] %vm13334_vm8, %v14321_v18  ;;  %5909 = vst.msk [vmem:[#allocation5 + $0x58] sm:$0xff] %vm13334_vm8, %v14321_v18  ;;  %v4786_v17 = vpop.permute.xlu1 %4785  ;;  %v5008_v47 = vpop.permute.xlu0 %5007  ;;  %vm14328_vm15 = vcmp.ge.s32.totalorder %v14294_v4, 1  ;;  %v4722_v54 = vsel %vm14330_vm1, %v11539_v52, 0.0  ;;  %vm14332_vm7 = vcmp.le.s32.totalorder %v14294_v4, 14  ;;  %v14345_v18 = vld [vmem:[#allocation82_spill] sm:$0xff] }
 0x302   : > { %4581 = vrot.lane.b32.xlu1 %v4498_v23, %s8131_s21  ;;  %4134 = vst.msk [vmem:[#allocation7 + $0xc0] sm:$0xff] %vm14322_vm14, %v4046_v58  ;;  %4803 = vrot.lane.b32.xlu0 %v4721_v26, %s13341_s29  ;;  %v3983_v60 = vsel %vm14328_vm15, %v11235_v37, 0.0  ;;  %vm14329_vm14 = vmmov %vm14325_vm5  ;;  %v4945_v0 = vsel %vm14332_vm7, %v11434_v38, 0.0  ;;  %v14334_v37 = vld [vmem:[#allocation69_spill] sm:$0xff]  ;;  %vm14338_vm1 = vnez %v14337_v63  ;;  %vm14339_vm7 = vcmp.le.s32.totalorder %v14202_v7, 14  ;;  %v14357_v63 = vld [vmem:[#allocation83_spill] sm:$0xff] }
 0x303   : > { %5608 = vmatmul.mubr.bf16.gmra.mxu1 %v5320_v10  ;;  %4872 = vst.msk [vmem:[#allocation7 + $0xe0] sm:$0xff] %vm14325_vm5, %v4786_v17  ;;  %vm14331_vm5 = vmmov %vm14327_vm13  ;;  %vm14335_vm15 = vnez %v14334_v37  ;;  %v4208_v53 = vsel %vm14338_vm1, %v11397_v14, 0.0  ;;  %v4946_v16 = vsel %vm14339_vm7, %v11477_v5, 0.0  ;;  %vm14343_vm1 = vcmp.ge.s32.totalorder %v14283_v48, 1  ;;  %v11582_v10 = vld [vmem:[#allocation3 + $0xc7] sm:$0xff] }
 0x304   : > { %5095 = vst.msk [vmem:[#allocation7 + $0xc8] sm:$0xff] %vm14327_vm13, %v5008_v47  ;;  %vm14333_vm13 = vmmov %vm14331_vm5  ;;  %v3984_v30 = vsel %vm14335_vm15, %v11237_v12, 0.0  ;;  %v3760_v7 = vsel %vm14343_vm1, %v11200_v27, 0.0  ;;  %vm14346_vm7 = vnez %v14345_v18  ;;  %v14348_v27 = vld [vmem:[#allocation86_spill] sm:$0xff]  ;;  %vm14351_vm1 = vcmp.ge.s32.totalorder %v14190_v3, 1 }
 0x305   : > { %v4048_v49 = vpop.permute.xlu1 %4047  ;;  %v4271_v41 = vpop.permute.xlu0 %4270 }
 0x306   : > { %3842 = vrot.lane.b32.xlu1 %v3759_v8, %s8131_s21  ;;  %4065 = vrot.lane.b32.xlu0 %v3983_v60, %s13341_s29  ;;  %4135 = vst.msk [vmem:[#allocation7 + $0xd8] sm:$0xff] %vm14329_vm14, %v4048_v49  ;;  %vm14336_vm14 = vcmask 523520   ;;  %v3761_v8 = vsel %vm14351_vm1, %v11224_v2, 0.0  ;;  %v11599_v60 = vld [vmem:[#allocation3 + $0xcf] sm:$0xff]  ;;  %vm14356_vm1 = vcmp.le.s32.totalorder %v14283_v48, 14 }
 0x307   : > { %4359 = vst.msk [vmem:[#allocation7 + $0xc0] sm:$0xff] %vm14331_vm5, %v4271_v41 }
 0x309   : > { %v5010_v28 = vpop.permute.xlu1 %5009  ;;  %v4564_v20 = vpop.permute.xlu0 %4563 }
 0x30a   : > { %4805 = vrot.lane.b32.xlu1 %v4722_v54, %s13341_s29  ;;  %5027 = vrot.lane.b32.xlu0 %v4945_v0, %s8133_s24  ;;  %5096 = vst.msk [vmem:[#allocation7 + $0xe0] sm:$0xff] %vm14333_vm13, %v5010_v28  ;;  %vm14340_vm13 = vmmov %vm14336_vm14  ;;  %v4947_v28 = vsel %vm14356_vm1, %v11423_v15, 0.0 }
 0x30b   : > { %4649 = vst.msk [vmem:[#allocation7 + $0xf8] sm:$0xff] %vm14336_vm14, %v4564_v20  ;;  %v5240_v29 = vld [vmem:[#allocation7 + $0xc8] sm:$0xff]  ;;  %vm14341_vm15 = vmmov %vm14340_vm13  ;;  %vm14342_vm14 = vcmask 785920  }
 0x30d   : > { %v4273_v4 = vpop.permute.xlu1 %4272  ;;  %v3825_v12 = vpop.permute.xlu0 %3824 }
 0x30e   : > { %4067 = vrot.lane.b32.xlu1 %v3984_v30, %s13341_s29  ;;  %4290 = vrot.lane.b32.xlu0 %v4208_v53, %s8133_s24  ;;  %4360 = vst.msk [vmem:[#allocation7 + $0xd8] sm:$0xff] %vm14331_vm5, %v4273_v4  ;;  %v5239_v9 = vld [vmem:[#allocation7 + $0xc0] sm:$0xff]  ;;  %vm14344_vm5 = vmmov %vm14340_vm13 }
 0x30f   : > { %3911 = vst.msk [vmem:[#allocation7 + $0xf0] sm:$0xff] %vm14340_vm13, %v3825_v12  ;;  %vm14347_vm13 = vmmov %vm14342_vm14 }
 0x311   : > { %v4566_v33 = vpop.permute.xlu1 %4565  ;;  %v5243_v14 = vld [vmem:[#allocation7 + $0xe0] sm:$0xff]  ;;  %v4788_v57 = vpop.permute.xlu0 %4787 }
 0x312   : > { %5029 = vrot.lane.b32.xlu1 %v4946_v16, %s8133_s24  ;;  %4583 = vrot.lane.b32.xlu0 %v11458_v22, %s8131_s21  ;;  %4650 = vst.msk [vmem:[#allocation7 + $0x110] sm:$0xff] %vm14341_vm15, %v4566_v33  ;;  %v5324_v51 = vpack.c.bf16 %v5243_v14, %v5240_v29  ;;  %vm14349_vm15 = vnez %v14348_v27  ;;  %v14360_v33 = vld [vmem:[#allocation74_spill] sm:$0xff]  ;;  %v14370_v27 = vld [vmem:[#allocation73_spill] sm:$0xff] }
 0x313   : > { %4873 = vst.msk [vmem:[#allocation7 + $0xf8] sm:$0xff] %vm14342_vm14, %v4788_v57  ;;  %v4723_v26 = vsel %vm14349_vm15, %v11582_v10, 0.0  ;;  %vm14350_vm14 = vmmov %vm14347_vm13  ;;  %vm14354_vm15 = vcmp.le.s32.totalorder %v14190_v3, 14 }
 0x314   : > { %5615 = vmatprep.mubr.bf16.mxu1 %v5324_v51  ;;  %v4724_v2 = vsel %vm14354_vm15, %v11599_v60, 0.0  ;;  %vm14361_vm15 = vnez %v14360_v33 }
 0x315   : > { %v3827_v40 = vpop.permute.xlu1 %3826  ;;  %v5242_v23 = vld [vmem:[#allocation7 + $0xd8] sm:$0xff]  ;;  %v4050_v36 = vpop.permute.xlu0 %4049  ;;  %v4210_v29 = vsel %vm14361_vm15, %v11513_v32, 0.0 }
 0x316   : > { %4292 = vrot.lane.b32.xlu1 %v11418_v46, %s8133_s24  ;;  %3844 = vrot.lane.b32.xlu0 %v3760_v7, %s8131_s21  ;;  %3912 = vst.msk [vmem:[#allocation7 + $0x108] sm:$0xff] %vm14344_vm5, %v3827_v40  ;;  %v4500_v46 = vsel %vm14346_vm7, %v11460_v19, 0.0  ;;  %v5323_v58 = vpack.c.bf16 %v5242_v23, %v5239_v9  ;;  %vm14352_vm5 = vcmask 1048320   ;;  %vm14353_vm7 = vcmp.ge.s32.totalorder %v14283_v48, 1 }
 0x317   : > { %4136 = vst.msk [vmem:[#allocation7 + $0xf0] sm:$0xff] %vm14347_vm13, %v4050_v36  ;;  %v3985_v49 = vsel %vm14353_vm7, %v11220_v45, 0.0  ;;  %v11618_v45 = vld [vmem:[%s13046_s2] ss:$0 sm:$0xff]  ;;  %vm14358_vm7 = vnez %v14357_v63  ;;  %vm14363_vm1 = vmmov %vm14352_vm5 }
 0x318   : > { %5616 = vmatmul.mubr.bf16.gmra.mxu1 %v5323_v58  ;;  %v3986_v53 = vsel %vm14358_vm7, %v11428_v35, 0.0 }
 0x319   : > { %v4790_v17 = vpop.permute.xlu1 %4789  ;;  %v5012_v47 = vpop.permute.xlu0 %5011 }
 0x31a   : > { %4585 = vrot.lane.b32.xlu1 %v4500_v46, %s8131_s21  ;;  %4807 = vrot.lane.b32.xlu0 %v4723_v26, %s13341_s29  ;;  %4874 = vst.msk [vmem:[#allocation7 + $0x110] sm:$0xff] %vm14350_vm14, %v4790_v17  ;;  %vm14355_vm14 = vmmov %vm14352_vm5 }
 0x31b   : > { %5097 = vst.msk [vmem:[#allocation7 + $0xf8] sm:$0xff] %vm14352_vm5, %v5012_v47 }
 0x31d   : > { %v4052_v54 = vpop.permute.xlu1 %4051  ;;  %v4275_v41 = vpop.permute.xlu0 %4274 }
 0x31e   : > { %3846 = vrot.lane.b32.xlu1 %v3761_v8, %s8131_s21  ;;  %4069 = vrot.lane.b32.xlu0 %v3985_v49, %s13341_s29  ;;  %4137 = vst.msk [vmem:[#allocation7 + $0x108] sm:$0xff] %vm14347_vm13, %v4052_v54  ;;  %v7833_v0 = vpop.f32.mrf.mxu0  ;;  %vm14359_vm13 = vcmask 523520  }
 0x31f   : > { %4361 = vst.msk [vmem:[#allocation7 + $0xf0] sm:$0xff] %vm14355_vm14, %v4275_v41  ;;  %v3519_v37 = vadd.f32 %v11618_v45, %v7833_v0  ;;  %vm14362_vm14 = vcmask 261120  }
 0x320   : > { %v3510_v20 = vpop.f32.mrf.mxu0  ;;  %vm14365_vm7 = vmmov %vm14362_vm14 }
 0x321   : > { %v5014_v30 = vpop.permute.xlu1 %5013  ;;  %v3567_v4 = vmax.f32 %v3519_v37, 0.0  ;;  %v3511_v48 = vadd.f32 %v11618_v45, %v3510_v20  ;;  %v4568_v16 = vpop.permute.xlu0 %4567  ;;  %vm14366_vm15 = vmmov %vm14365_vm7 }
 0x322   : > { %4809 = vrot.lane.b32.xlu1 %v4724_v2, %s13341_s29  ;;  %5031 = vrot.lane.b32.xlu0 %v4947_v28, %s8133_s24  ;;  %5098 = vst.msk [vmem:[#allocation7 + $0x110] sm:$0xff] %vm14352_vm5, %v5014_v30  ;;  %v7834_v12 = vpop.f32.mrf.mxu0  ;;  %vm14364_vm5 = vcmp.le.s32.totalorder %v14190_v3, 14  ;;  %v5246_v46 = vld [vmem:[#allocation7 + $0xf8] sm:$0xff]  ;;  %v14376_v28 = vld [vmem:[#allocation84_spill] sm:$0xff] }
 0x323   : > { %4651 = vst.msk [vmem:[#allocation7 + $0x128] sm:$0xff] %vm14359_vm13, %v4568_v16  ;;  %v3565_v14 = vmax.f32 %v3511_v48, 0.0  ;;  %v3522_v51 = vadd.f32 %v11618_v45, %v7834_v12  ;;  %v4948_v7 = vsel %vm14364_vm5, %v11449_v56, 0.0  ;;  %vm14369_vm5 = vcmask 785920   ;;  %v14383_v16 = vld [vmem:[#allocation88_spill] sm:$0xff] }
 0x324   : > { %3606 = vst.msk [vmem:[#allocation3 + $0xe8] sm:$0xff] %vm14362_vm14, %v3567_v4  ;;  %v3513_v35 = vpop.f32.mrf.mxu0  ;;  %vm14367_vm14 = vmmov %vm14359_vm13 }
 0x325   : > { %v4277_v57 = vpop.permute.xlu1 %4276  ;;  %3604 = vst.msk [vmem:[#allocation3 + $0xd8] sm:$0xff] %vm14365_vm7, %v3565_v14  ;;  %v3568_v40 = vmax.f32 %v3522_v51, 0.0  ;;  %v3514_v32 = vadd.f32 %v11618_v45, %v3513_v35 }
 0x326   : > { %4071 = vrot.lane.b32.xlu1 %v3986_v53, %s13341_s29  ;;  %4294 = vrot.lane.b32.xlu0 %v4210_v29, %s8133_s24  ;;  %4362 = vst.msk [vmem:[#allocation7 + $0x108] sm:$0xff] %vm14363_vm1, %v4277_v57  ;;  %v3829_v9 = vpop.permute.xlu0 %3828  ;;  %vm14368_vm1 = vmmov %vm14365_vm7  ;;  %vm14371_vm7 = vcmp.ge.s32.totalorder %v14370_v27, 1  ;;  %v5245_v47 = vld [vmem:[#allocation7 + $0xf0] sm:$0xff]  ;;  %v14381_v53 = vld [vmem:[#allocation87_spill] sm:$0xff] }
 0x327   : > { %3913 = vst.msk [vmem:[#allocation7 + $0x120] sm:$0xff] %vm14359_vm13, %v3829_v9  ;;  %v3566_v23 = vmax.f32 %v3514_v32, 0.0  ;;  %v3762_v26 = vsel %vm14371_vm7, %v11434_v38, 0.0  ;;  %vm14372_vm13 = vmmov %vm14368_vm1  ;;  %v14374_v38 = vld [vmem:[#allocation94_spill] sm:$0xff]  ;;  %v14388_v57 = vld [vmem:[#allocation93_spill] sm:$0xff] }
 0x328   : > { %3607 = vst.msk [vmem:[#allocation3 + $0xf0] sm:$0xff] %vm14366_vm15, %v3568_v40  ;;  %vm14373_vm15 = vmmov %vm14367_vm14  ;;  %v14392_v32 = vld [vmem:[#allocation95_spill] sm:$0xff] }
 0x329   : > { %v5249_v3 = vld [vmem:[#allocation7 + $0x110] sm:$0xff]  ;;  %3605 = vst.msk [vmem:[#allocation3 + $0xe0] sm:$0xff] %vm14368_vm1, %v3566_v23  ;;  %vm14377_vm1 = vnez %v14376_v28 }
 0x32a   : > { %5033 = vrot.lane.b32.xlu1 %v4948_v7, %s8133_s24  ;;  %4587 = vrot.lane.b32.xlu0 %v11443_v61, %s8131_s21  ;;  %v5327_v58 = vpack.c.bf16 %v5249_v3, %v5246_v46 }
 0x32b   : > { %v11654_v17 = vld [vmem:[#allocation3 + $0xe8] sm:$0xff] }
 0x32c   : > { %v4570_v18 = vpop.permute.xlu1 %4569  ;;  %v4792_v36 = vpop.permute.xlu0 %4791  ;;  %5623 = vmatprep.mubr.bf16.mxu1 %v5327_v58  ;;  %4441 = vst.msk [vmem:[#allocation7 + $0x278] sm:$0xff] %vm14372_vm13, %v11654_v17  ;;  %v11659_v54 = vld [vmem:[#allocation3 + $0xd1] sm:$0xff] }
 0x32d   : > { %4652 = vst.msk [vmem:[#allocation7 + $0x140] sm:$0xff] %vm14367_vm14, %v4570_v18  ;;  %v5248_v49 = vld [vmem:[#allocation7 + $0x108] sm:$0xff]  ;;  %vm14375_vm14 = vnez %v14374_v38  ;;  %v4502_v37 = vsel %vm14377_vm1, %v11659_v54, 0.0  ;;  %v5277_v38 = vld [vmem:[#allocation7 + $0x1f0] sm:$0xff] }
 0x32e   : > { %4296 = vrot.lane.b32.xlu1 %v11539_v52, %s8133_s24  ;;  %4875 = vst.msk [vmem:[#allocation7 + $0x128] sm:$0xff] %vm14369_vm5, %v4792_v36  ;;  %3848 = vrot.lane.b32.xlu0 %v3762_v26, %s8131_s21  ;;  %v5326_v52 = vpack.c.bf16 %v5248_v49, %v5245_v47  ;;  %v11662_v2 = vld [vmem:[#allocation3 + $0xd7] sm:$0xff]  ;;  %v5172_v0 = vsel %vm14375_vm14, %v11659_v54, 0.0  ;;  %vm14378_vm5 = vmmov %vm14372_vm13  ;;  %vm14380_vm13 = vcmask 785920   ;;  %vm14384_vm14 = vcmp.le.s32.totalorder %v14383_v16, 14  ;;  %v14405_v47 = vld [vmem:[#allocation102_spill] sm:$0xff] }
 0x32f   : > { %v11664_v41 = vld [vmem:[#allocation3 + $0xd8] sm:$0xff]  ;;  %vm14379_vm7 = vmmov %vm14378_vm5  ;;  %v11675_v63 = vld [vmem:[#allocation3 + $0xe9] sm:$0xff] }
 0x330   : > { %v3831_v8 = vpop.permute.xlu1 %3830  ;;  %v4054_v30 = vpop.permute.xlu0 %4053  ;;  %4439 = vst.msk [vmem:[#allocation7 + $0x248] sm:$0xff] %vm14378_vm5, %v11664_v41  ;;  %v3638_v20 = vld [vmem:[#allocation3 + $0xd7] sm:$0xff]  ;;  %5624 = vmatmul.mubr.bf16.gmra.mxu1 %v5326_v52  ;;  %v5175_v12 = vsel %vm14384_vm14, %v11675_v63, 0.0  ;;  %vm14385_vm1 = vmmov %vm14378_vm5  ;;  %v3641_v29 = vld [vmem:[#allocation3 + $0xef] sm:$0xff]  ;;  %vm14391_vm14 = vcmp.le.s32.totalorder %v14370_v27, 14 }
 0x331   : > { %3914 = vst.msk [vmem:[#allocation7 + $0x138] sm:$0xff] %vm14373_vm15, %v3831_v8  ;;  %vm14382_vm15 = vnez %v14381_v53  ;;  %v11682_v48 = vld [vmem:[#allocation3 + $0xf0] sm:$0xff]  ;;  %vm14386_vm5 = vmmov %vm14385_vm1  ;;  %v11691_v14 = vld [vmem:[#allocation3 + $0xd9] sm:$0xff] }
 0x332   : > { %5204 = vst.msk [vmem:[#allocation7 + $0x208] sm:$0xff] %vm14379_vm7, %v5172_v0  ;;  %4589 = vrot.lane.b32.xlu1 %v4502_v37, %s8131_s21  ;;  %v4725_v4 = vsel %vm14382_vm15, %v11662_v2, 0.0  ;;  %v11693_v51 = vld [vmem:[#allocation3 + $0xe1] sm:$0xff]  ;;  %vm14387_vm7 = vmmov %vm14380_vm13  ;;  %vm14390_vm15 = vcmp.ge.s32.totalorder %v10328_v31, 1  ;;  %v5173_v40 = vsel %vm14391_vm14, %v11691_v14, 0.0  ;;  %vm14399_vm14 = vcmask 1048320  }
 0x333   : > { %4138 = vst.msk [vmem:[#allocation7 + $0x120] sm:$0xff] %vm14380_vm13, %v4054_v30  ;;  %4811 = vrot.lane.b32.xlu0 %v4725_v4, %s13341_s29  ;;  %vm14389_vm13 = vnez %v14388_v57  ;;  %v3673_v7 = vsel %vm14390_vm15, %v3641_v29, 0.0  ;;  %v11709_v46 = vld [vmem:[#allocation3 + $0xe0] sm:$0xff]  ;;  %v14416_v29 = vld [vmem:[#allocation77_spill] sm:$0xff] }
 0x334   : > { %v4794_v33 = vpop.permute.xlu1 %4793  ;;  %4442 = vst.msk [vmem:[#allocation7 + $0x290] sm:$0xff] %vm14385_vm1, %v11682_v48  ;;  %v3670_v35 = vsel %vm14389_vm13, %v3638_v20, 0.0  ;;  %vm14393_vm1 = vnez %v14392_v32  ;;  %v5016_v18 = vpop.permute.xlu0 %5015  ;;  %v3639_v58 = vld [vmem:[#allocation3 + $0xdf] sm:$0xff]  ;;  %v3640_v8 = vld [vmem:[#allocation3 + $0xe7] sm:$0xff] }
 0x335   : > { %5207 = vst.msk [vmem:[#allocation7 + $0x250] sm:$0xff] %vm14386_vm5, %v5175_v12  ;;  %v5174_v9 = vsel %vm14393_vm1, %v11693_v51, 0.0  ;;  %vm14394_vm5 = vcmp.ge.s32.totalorder %v14305_v43, 1  ;;  %vm14400_vm1 = vcmp.ge.s32.totalorder %v14370_v27, 1  ;;  %v14413_v20 = vld [vmem:[#allocation85_spill] sm:$0xff] }
 0x336   : > { %4876 = vst.msk [vmem:[#allocation7 + $0x140] sm:$0xff] %vm14387_vm7, %v4794_v33  ;;  %v3763_v23 = vsel %vm14394_vm5, %v11477_v5, 0.0  ;;  %vm14395_vm7 = vcmask 261120   ;;  %v3987_v3 = vsel %vm14400_vm1, %v11458_v22, 0.0  ;;  %v11720_v5 = vld [vmem:[#allocation3 + $0xdf] sm:$0xff] }
 0x337   : > { %3702 = vst.msk [vmem:[#allocation7 + $0x270] sm:$0xff] %vm14395_vm7, %v3670_v35  ;;  %vm14396_vm13 = vmmov %vm14395_vm7  ;;  %3850 = vrot.lane.b32.xlu1 %v3763_v23, %s8131_s21  ;;  %4073 = vrot.lane.b32.xlu0 %v3987_v3, %s13341_s29 }
 0x338   : > { %3705 = vst.msk [vmem:[#allocation7 + $0x2b8] sm:$0xff] %vm14396_vm13, %v3673_v7  ;;  %vm14397_vm15 = vmmov %vm14395_vm7  ;;  %v4056_v36 = vpop.permute.xlu1 %4055  ;;  %v4279_v52 = vpop.permute.xlu0 %4278 }
 0x339   : > { %5205 = vst.msk [vmem:[#allocation7 + $0x220] sm:$0xff] %vm14397_vm15, %v5173_v40  ;;  %vm14398_vm8 = vmmov %vm14395_vm7  ;;  %vm14406_vm15 = vnez %v14405_v47  ;;  %v5280_v0 = vld [vmem:[#allocation7 + $0x208] sm:$0xff] }
 0x33a   : > { %5206 = vst.msk [vmem:[#allocation7 + $0x238] sm:$0xff] %vm14398_vm8, %v5174_v9  ;;  %vm14401_vm5 = vmmov %vm14395_vm7  ;;  %vm14402_vm7 = vcmp.ge.s32.totalorder %v9999_v34, 1  ;;  %vm14403_vm8 = vcmask 785920   ;;  %v3672_v22 = vsel %vm14406_vm15, %v3640_v8, 0.0  ;;  %v5343_v28 = vpack.c.bf16 %v5280_v0, %v5277_v38  ;;  %v14425_v8 = vld [vmem:[#allocation96_spill] sm:$0xff] }
 0x33b   : > { %5099 = vst.msk [vmem:[#allocation7 + $0x128] sm:$0xff] %vm14399_vm14, %v5016_v18  ;;  %v3671_v26 = vsel %vm14402_vm7, %v3639_v58, 0.0  ;;  %vm14404_vm13 = vmmov %vm14401_vm5  ;;  %vm14407_vm14 = vcmp.le.s32.totalorder %v14305_v43, 14  ;;  %vm14410_vm7 = vcmp.le.s32.totalorder %v14370_v27, 14  ;;  %vm14414_vm15 = vnez %v14413_v20 }
 0x33c   : > { %4440 = vst.msk [vmem:[#allocation7 + $0x260] sm:$0xff] %vm14401_vm5, %v11709_v46  ;;  %v4726_v49 = vsel %vm14407_vm14, %v11720_v5, 0.0  ;;  %vm14408_vm1 = vmmov %vm14401_vm5  ;;  %vm14409_vm5 = vcmask 1048320   ;;  %v4949_v37 = vsel %vm14410_vm7, %v11664_v41, 0.0  ;;  %v5018_v30 = vpop.permute.xlu1 %5017  ;;  %v3988_v53 = vsel %vm14414_vm15, %v11460_v19, 0.0  ;;  %v4572_v4 = vpop.permute.xlu0 %4571 }
 0x33d   : > { %4139 = vst.msk [vmem:[#allocation7 + $0x138] sm:$0xff] %vm14403_vm8, %v4056_v36  ;;  %4813 = vrot.lane.b32.xlu1 %v4726_v49, %s13341_s29  ;;  %5035 = vrot.lane.b32.xlu0 %v4949_v37, %s8133_s24  ;;  %vm14411_vm8 = vmmov %vm14409_vm5  ;;  %vm14415_vm14 = vcmask 523520   ;;  %v11769_v36 = vld [vmem:[#allocation3 + $0xe7] sm:$0xff] }
 0x33e   : > { %3703 = vst.msk [vmem:[#allocation7 + $0x288] sm:$0xff] %vm14404_vm13, %v3671_v26  ;;  %vm14412_vm13 = vmmov %vm14408_vm1 }
 0x33f   : > { %3704 = vst.msk [vmem:[#allocation7 + $0x2a0] sm:$0xff] %vm14408_vm1, %v3672_v22  ;;  %7863 = vmatprep.mubr.msk.bf16.mxu0 %vm14412_vm13, %v5343_v28  ;;  %vm14417_vm1 = vnez %v14416_v29  ;;  %vm14418_vm7 = vmmov %vm14412_vm13  ;;  %v11790_v28 = vld [vmem:[#allocation3 + $0xef] sm:$0xff] }
 0x340   : > { %4363 = vst.msk [vmem:[#allocation7 + $0x120] sm:$0xff] %vm14409_vm5, %v4279_v52  ;;  %v5283_v12 = vld [vmem:[#allocation7 + $0x220] sm:$0xff]  ;;  %v4212_v57 = vsel %vm14417_vm1, %v11582_v10, 0.0  ;;  %v4281_v35 = vpop.permute.xlu1 %4280  ;;  %v3833_v7 = vpop.permute.xlu0 %3832  ;;  %vm14420_vm13 = vmmov %vm14415_vm14  ;;  %vm14423_vm1 = vcmp.ge.s32.totalorder %v14383_v16, 1 }
 0x341   : > { %5100 = vst.msk [vmem:[#allocation7 + $0x140] sm:$0xff] %vm14411_vm8, %v5018_v30  ;;  %v5286_v33 = vld [vmem:[#allocation7 + $0x238] sm:$0xff]  ;;  %4075 = vrot.lane.b32.xlu1 %v3988_v53, %s13341_s29  ;;  %4298 = vrot.lane.b32.xlu0 %v4212_v57, %s8133_s24  ;;  %vm14419_vm8 = vcmp.le.s32.totalorder %v14305_v43, 14  ;;  %vm14421_vm15 = vmmov %vm14420_vm13  ;;  %v3764_v43 = vsel %vm14423_vm1, %v11423_v15, 0.0  ;;  %v14428_v15 = vld [vmem:[#allocation100_spill] sm:$0xff]  ;;  %vm14432_vm1 = vcmask 1048320  }
 0x342   : > { %4653 = vst.msk [vmem:[#allocation7 + $0x158] sm:$0xff] %vm14415_vm14, %v4572_v4  ;;  %v5346_v27 = vpack.c.bf16 %v5286_v33, %v5283_v12  ;;  %v4950_v19 = vsel %vm14419_vm8, %v11709_v46, 0.0  ;;  %v5252_v10 = vld [vmem:[#allocation7 + $0x128] sm:$0xff]  ;;  %vm14422_vm14 = vcmask 785920  }
 0x343   : > { %4364 = vst.msk [vmem:[#allocation7 + $0x138] sm:$0xff] %vm14409_vm5, %v4281_v35  ;;  %vm14424_vm5 = vmmov %vm14420_vm13  ;;  %v14439_v53 = vld [vmem:[#allocation97_spill] sm:$0xff] }
 0x344   : > { %7864 = vmatmul.mubr.msk.bf16.gmra.mxu0 %vm14418_vm7, %v5346_v27  ;;  %3915 = vst.msk [vmem:[#allocation7 + $0x150] sm:$0xff] %vm14420_vm13, %v3833_v7  ;;  %v4574_v40 = vpop.permute.xlu1 %4573  ;;  %v4796_v23 = vpop.permute.xlu0 %4795  ;;  %vm14426_vm7 = vnez %v14425_v8  ;;  %vm14427_vm8 = vmmov %vm14422_vm14  ;;  %vm14429_vm13 = vnez %v14428_v15  ;;  %v14442_v33 = vld [vmem:[#allocation89_spill] sm:$0xff] }
 0x345   : > { %5037 = vrot.lane.b32.xlu1 %v4950_v19, %s8133_s24  ;;  %4591 = vrot.lane.b32.xlu0 %v11691_v14, %s8131_s21  ;;  %4654 = vst.msk [vmem:[#allocation7 + $0x170] sm:$0xff] %vm14421_vm15, %v4574_v40  ;;  %v4727_v22 = vsel %vm14429_vm13, %v11769_v36, 0.0  ;;  %vm14430_vm15 = vmmov %vm14427_vm8 }
 0x346   : > { %4877 = vst.msk [vmem:[#allocation7 + $0x158] sm:$0xff] %vm14422_vm14, %v4796_v23  ;;  %vm14431_vm14 = vcmp.ge.s32.totalorder %v14292_v13, 1  ;;  %vm14436_vm13 = vmmov %vm14432_vm1 }
 0x347   : > { %v5251_v3 = vld [vmem:[#allocation7 + $0x120] sm:$0xff]  ;;  %v3765_v52 = vsel %vm14431_vm14, %v11449_v56, 0.0  ;;  %vm14438_vm14 = vmmov %vm14432_vm1 }
 0x348   : > { %v5255_v32 = vld [vmem:[#allocation7 + $0x140] sm:$0xff]  ;;  %v3835_v18 = vpop.permute.xlu1 %3834  ;;  %v4058_v47 = vpop.permute.xlu0 %4057 }
 0x349   : > { %v5330_v9 = vpack.c.bf16 %v5255_v32, %v5252_v10  ;;  %4300 = vrot.lane.b32.xlu1 %v11599_v60, %s8133_s24  ;;  %3852 = vrot.lane.b32.xlu0 %v3764_v43, %s8131_s21  ;;  %3916 = vst.msk [vmem:[#allocation7 + $0x168] sm:$0xff] %vm14424_vm5, %v3835_v18  ;;  %v4504_v60 = vsel %vm14426_vm7, %v11693_v51, 0.0  ;;  %vm14433_vm5 = vcmp.ge.s32.totalorder %v14383_v16, 1  ;;  %vm14434_vm7 = vmmov %vm14427_vm8 }
 0x34a   : > { %v5254_v58 = vld [vmem:[#allocation7 + $0x138] sm:$0xff]  ;;  %4140 = vst.msk [vmem:[#allocation7 + $0x150] sm:$0xff] %vm14427_vm8, %v4058_v47  ;;  %v3989_v0 = vsel %vm14433_vm5, %v11443_v61, 0.0  ;;  %vm14435_vm8 = vcmp.le.s32.totalorder %v14292_v13, 14  ;;  %vm14441_vm5 = vcmask 523520  }
 0x34b   : > { %5631 = vmatprep.mubr.bf16.mxu1 %v5330_v9  ;;  %v5329_v26 = vpack.c.bf16 %v5254_v58, %v5251_v3  ;;  %v4728_v56 = vsel %vm14435_vm8, %v11790_v28, 0.0  ;;  %vm14444_vm8 = vmmov %vm14436_vm13 }
 0x34c   : > { %v4798_v49 = vpop.permute.xlu1 %4797  ;;  %v5020_v38 = vpop.permute.xlu0 %5019 }
 0x34d   : > { %4593 = vrot.lane.b32.xlu1 %v4504_v60, %s8131_s21  ;;  %5632 = vmatmul.mubr.bf16.gmra.mxu1 %v5329_v26  ;;  %4878 = vst.msk [vmem:[#allocation7 + $0x170] sm:$0xff] %vm14430_vm15, %v4798_v49  ;;  %vm14437_vm15 = vcmp.le.s32.totalorder %v14383_v16, 14 }
 0x34e   : > { %4815 = vrot.lane.b32.xlu0 %v4727_v22, %s13341_s29  ;;  %5101 = vst.msk [vmem:[#allocation7 + $0x158] sm:$0xff] %vm14432_vm1, %v5020_v38  ;;  %v4951_v61 = vsel %vm14437_vm15, %v11654_v17, 0.0  ;;  %vm14440_vm1 = vnez %v14439_v53  ;;  %vm14446_vm15 = vmmov %vm14441_vm5 }
 0x34f   : > { %v3990_v4 = vsel %vm14440_vm1, %v11659_v54, 0.0  ;;  %vm14448_vm1 = vcmask 785920  }
 0x350   : > { %v4060_v37 = vpop.permute.xlu1 %4059  ;;  %v4283_v30 = vpop.permute.xlu0 %4282 }
 0x351   : > { %3854 = vrot.lane.b32.xlu1 %v3765_v52, %s8131_s21  ;;  %4141 = vst.msk [vmem:[#allocation7 + $0x168] sm:$0xff] %vm14434_vm7, %v4060_v37  ;;  %vm14443_vm7 = vnez %v14442_v33 }
 0x352   : > { %4077 = vrot.lane.b32.xlu0 %v3989_v0, %s13341_s29  ;;  %4365 = vst.msk [vmem:[#allocation7 + $0x150] sm:$0xff] %vm14436_vm13, %v4283_v30  ;;  %v4214_v27 = vsel %vm14443_vm7, %v11662_v2, 0.0  ;;  %vm14445_vm13 = vcmp.le.s32.totalorder %v14292_v13, 14 }
 0x353   : > { %v4952_v29 = vsel %vm14445_vm13, %v11682_v48, 0.0  ;;  %vm14452_vm13 = vmmov %vm14448_vm1 }
 0x354   : > { %v5022_v20 = vpop.permute.xlu1 %5021  ;;  %v4576_v12 = vpop.permute.xlu0 %4575 }
 0x355   : > { %4817 = vrot.lane.b32.xlu1 %v4728_v56, %s13341_s29  ;;  %5102 = vst.msk [vmem:[#allocation7 + $0x170] sm:$0xff] %vm14438_vm14, %v5022_v20  ;;  %v5258_v35 = vld [vmem:[#allocation7 + $0x158] sm:$0xff]  ;;  %vm14447_vm14 = vmmov %vm14441_vm5 }
 0x356   : > { %5039 = vrot.lane.b32.xlu0 %v4951_v61, %s8133_s24  ;;  %4655 = vst.msk [vmem:[#allocation7 + $0x188] sm:$0xff] %vm14441_vm5, %v4576_v12  ;;  %vm14449_vm5 = vcmp.ge.s32.totalorder %v9959_v44, 1  ;;  %vm14450_vm7 = vmmov %vm14447_vm14 }
 0x357   : > { %v3766_v13 = vsel %vm14449_vm5, %v11664_v41, 0.0 }
 0x358   : > { %v4285_v16 = vpop.permute.xlu1 %4284  ;;  %v3837_v57 = vpop.permute.xlu0 %3836 }
 0x359   : > { %4079 = vrot.lane.b32.xlu1 %v3990_v4, %s13341_s29  ;;  %4366 = vst.msk [vmem:[#allocation7 + $0x168] sm:$0xff] %vm14444_vm8, %v4285_v16  ;;  %v5257_v10 = vld [vmem:[#allocation7 + $0x150] sm:$0xff]  ;;  %vm14451_vm8 = vmmov %vm14448_vm1  ;;  %v14465_v16 = vld [vmem:[#allocation101_spill] sm:$0xff] }
 0x35a   : > { %4302 = vrot.lane.b32.xlu0 %v4214_v27, %s8133_s24  ;;  %3917 = vst.msk [vmem:[#allocation7 + $0x180] sm:$0xff] %vm14446_vm15, %v3837_v57  ;;  %vm14453_vm15 = vcmask 1048320  }
 0x35c   : > { %v4578_v54 = vpop.permute.xlu1 %4577  ;;  %v5261_v2 = vld [vmem:[#allocation7 + $0x170] sm:$0xff]  ;;  %v4800_v7 = vpop.permute.xlu0 %4799 }
 0x35d   : > { %5041 = vrot.lane.b32.xlu1 %v4952_v29, %s8133_s24  ;;  %4656 = vst.msk [vmem:[#allocation7 + $0x1a0] sm:$0xff] %vm14447_vm14, %v4578_v54  ;;  %v5333_v19 = vpack.c.bf16 %v5261_v2, %v5258_v35  ;;  %v7837_v43 = vpop.f32.mrf.mxu0  ;;  %vm14454_vm14 = vcmask 261120  }
 0x35e   : > { %4595 = vrot.lane.b32.xlu0 %v11675_v63, %s8131_s21  ;;  %4879 = vst.msk [vmem:[#allocation7 + $0x188] sm:$0xff] %vm14448_vm1, %v4800_v7  ;;  %vm14455_vm5 = vmmov %vm14454_vm14 }
 0x35f   : > { %5639 = vmatprep.mubr.bf16.mxu1 %v5333_v19  ;;  %v3526_v3 = vpop.f32.mrf.mxu0 }
 0x360   : > { %v3839_v40 = vpop.permute.xlu1 %3838  ;;  %v5260_v32 = vld [vmem:[#allocation7 + $0x168] sm:$0xff]  ;;  %v4062_v23 = vpop.permute.xlu0 %4061  ;;  %v3527_v58 = vadd.f32 %v11618_v45, %v3526_v3 }
 0x361   : > { %4304 = vrot.lane.b32.xlu1 %v11720_v5, %s8133_s24  ;;  %3918 = vst.msk [vmem:[#allocation7 + $0x198] sm:$0xff] %vm14450_vm7, %v3839_v40  ;;  %v5332_v9 = vpack.c.bf16 %v5260_v32, %v5257_v10  ;;  %v3535_v5 = vadd.f32 %v11618_v45, %v7837_v43  ;;  %v7838_v8 = vpop.f32.mrf.mxu0  ;;  %vm14456_vm7 = vmmov %vm14453_vm15 }
 0x362   : > { %3856 = vrot.lane.b32.xlu0 %v3766_v13, %s8131_s21  ;;  %4142 = vst.msk [vmem:[#allocation7 + $0x180] sm:$0xff] %vm14451_vm8, %v4062_v23  ;;  %v3569_v60 = vmax.f32 %v3527_v58, 0.0  ;;  %v3538_v47 = vadd.f32 %v11618_v45, %v7838_v8  ;;  %vm14457_vm8 = vmmov %vm14455_vm5 }
 0x363   : > { %5640 = vmatmul.mubr.bf16.gmra.mxu1 %v5332_v9  ;;  %v3571_v41 = vmax.f32 %v3535_v5, 0.0  ;;  %v3529_v22 = vpop.f32.mrf.mxu0  ;;  %v14476_v5 = vld [vmem:[#allocation105_spill] sm:$0xff] }
 0x364   : > { %v4802_v18 = vpop.permute.xlu1 %4801  ;;  %v5024_v26 = vpop.permute.xlu0 %5023  ;;  %3608 = vst.msk [vmem:[#allocation3 + $0xf8] sm:$0xff] %vm14455_vm5, %v3569_v60  ;;  %v3572_v49 = vmax.f32 %v3538_v47, 0.0  ;;  %v3530_v52 = vadd.f32 %v11618_v45, %v3529_v22  ;;  %v14484_v22 = vld [vmem:[#allocation103_spill] sm:$0xff] }
 0x365   : > { %4880 = vst.msk [vmem:[#allocation7 + $0x1a0] sm:$0xff] %vm14452_vm13, %v4802_v18  ;;  %vm14458_vm13 = vmmov %vm14456_vm7  ;;  %v7845_v8 = vpop.f32.mrf.mxu0 }
 0x366   : > { %5103 = vst.msk [vmem:[#allocation7 + $0x188] sm:$0xff] %vm14453_vm15, %v5024_v26  ;;  %v3570_v0 = vmax.f32 %v3530_v52, 0.0  ;;  %vm14459_vm15 = vmmov %vm14455_vm5 }
 0x367   : > { %3610 = vst.msk [vmem:[#allocation3 + $0x108] sm:$0xff] %vm14454_vm14, %v3571_v41  ;;  %vm14460_vm14 = vcmask 523520  }
 0x368   : > { %v4064_v15 = vpop.permute.xlu1 %4063  ;;  %v4287_v38 = vpop.permute.xlu0 %4286  ;;  %3611 = vst.msk [vmem:[#allocation3 + $0x110] sm:$0xff] %vm14457_vm8, %v3572_v49 }
 0x369   : > { %4143 = vst.msk [vmem:[#allocation7 + $0x198] sm:$0xff] %vm14448_vm1, %v4064_v15  ;;  %vm14461_vm1 = vmmov %vm14455_vm5 }
 0x36a   : > { %4367 = vst.msk [vmem:[#allocation7 + $0x180] sm:$0xff] %vm14456_vm7, %v4287_v38  ;;  %vm14462_vm5 = vmmov %vm14456_vm7  ;;  %vm14466_vm7 = vnez %v14465_v16 }
 0x36b   : > { %3609 = vst.msk [vmem:[#allocation3 + $0x100] sm:$0xff] %vm14459_vm15, %v3570_v0  ;;  %v11849_v45 = vld [vmem:[#allocation3 + $0xf1] sm:$0xff]  ;;  %vm14467_vm8 = vmmov %vm14461_vm1 }
 0x36c   : > { %v5026_v37 = vpop.permute.xlu1 %5025  ;;  %v4580_v56 = vpop.permute.xlu0 %4579  ;;  %v11852_v20 = vld [vmem:[#allocation3 + $0xf7] sm:$0xff]  ;;  %v5176_v12 = vsel %vm10369_vm10, %v11849_v45, 0.0  ;;  %v4506_v27 = vsel %vm10116_vm3, %v11849_v45, 0.0  ;;  %vm14469_vm10 = vmmov %vm14460_vm14  ;;  %vm14470_vm3 = vcmp.le.s32.totalorder %v10294_v50, 14 }
 0x36d   : > { %5104 = vst.msk [vmem:[#allocation7 + $0x1a0] sm:$0xff] %vm14458_vm13, %v5026_v37  ;;  %v11854_v53 = vld [vmem:[#allocation3 + $0xf8] sm:$0xff]  ;;  %v4729_v29 = vsel %vm14466_vm7, %v11852_v20, 0.0  ;;  %vm14468_vm13 = vmmov %vm14461_vm1  ;;  %4597 = vrot.lane.b32.xlu1 %v4506_v27, %s8131_s21  ;;  %vm14477_vm7 = vnez %v14476_v5 }
 0x36e   : > { %4657 = vst.msk [vmem:[#allocation7 + $0x1b8] sm:$0xff] %vm14460_vm14, %v4580_v56  ;;  %v11845_v30 = vld [vmem:[#allocation3 + $0x108] sm:$0xff]  ;;  %4819 = vrot.lane.b32.xlu0 %v4729_v29, %s13341_s29  ;;  %v5264_v13 = vld [vmem:[#allocation7 + $0x188] sm:$0xff]  ;;  %vm14471_vm15 = vmmov %vm14461_vm1 }
 0x36f   : > { %4445 = vst.msk [vmem:[#allocation7 + $0x2d8] sm:$0xff] %vm14461_vm1, %v11845_v30  ;;  %v11868_v54 = vld [vmem:[#allocation3 + $0x109] sm:$0xff]  ;;  %v11870_v35 = vld [vmem:[#allocation3 + $0x111] sm:$0xff]  ;;  %vm14472_vm14 = vmmov %vm14461_vm1 }
 0x370   : > { %v4289_v61 = vpop.permute.xlu1 %4288  ;;  %v3841_v57 = vpop.permute.xlu0 %3840  ;;  %4443 = vst.msk [vmem:[#allocation7 + $0x2a8] sm:$0xff] %vm14467_vm8, %v11854_v53  ;;  %v5179_v2 = vsel %vm14470_vm3, %v11868_v54, 0.0  ;;  %v5180_v19 = vsel %vm10635_vm11, %v11870_v35, 0.0  ;;  %v11881_v10 = vld [vmem:[#allocation3 + $0x110] sm:$0xff]  ;;  %vm14473_vm1 = vmmov %vm14469_vm10  ;;  %vm14475_vm11 = vcmp.le.s32.totalorder %v9959_v44, 14 }
 0x371   : > { %4368 = vst.msk [vmem:[#allocation7 + $0x198] sm:$0xff] %vm14462_vm5, %v4289_v61  ;;  %v3642_v43 = vld [vmem:[#allocation3 + $0xf7] sm:$0xff]  ;;  %vm14474_vm5 = vmmov %vm14467_vm8  ;;  %vm14478_vm8 = vcmp.ge.s32.totalorder %v9999_v34, 1  ;;  %v5289_v61 = vld [vmem:[#allocation7 + $0x250] sm:$0xff] }
 0x372   : > { %5208 = vst.msk [vmem:[#allocation7 + $0x268] sm:$0xff] %vm14468_vm13, %v5176_v12  ;;  %v11885_v32 = vld [vmem:[#allocation3 + $0xf9] sm:$0xff]  ;;  %v11887_v9 = vld [vmem:[#allocation3 + $0x101] sm:$0xff]  ;;  %v3767_v3 = vsel %vm14478_vm8, %v11709_v46, 0.0  ;;  %vm14479_vm13 = vcmp.ge.s32.totalorder %v9959_v44, 1  ;;  %vm14481_vm3 = vmmov %vm14474_vm5  ;;  %v5746_v12 = vpop.f32.mrf.mxu0 }
 0x373   : > { %3919 = vst.msk [vmem:[#allocation7 + $0x1b0] sm:$0xff] %vm14469_vm10, %v3841_v57  ;;  %v5177_v25 = vsel %vm14475_vm11, %v11885_v32, 0.0  ;;  %v5178_v18 = vsel %vm14477_vm7, %v11887_v9, 0.0  ;;  %v3991_v41 = vsel %vm14479_vm13, %v11691_v14, 0.0  ;;  %v11904_v26 = vld [vmem:[#allocation3 + $0x100] sm:$0xff]  ;;  %vm14480_vm10 = vmmov %vm14474_vm5  ;;  %3858 = vrot.lane.b32.xlu1 %v3767_v3, %s8131_s21  ;;  %v5263_v47 = vld [vmem:[#allocation7 + $0x180] sm:$0xff] }
 0x374   : > { %v4582_v7 = vpop.permute.xlu1 %4581  ;;  %v5267_v40 = vld [vmem:[#allocation7 + $0x1a0] sm:$0xff]  ;;  %5211 = vst.msk [vmem:[#allocation7 + $0x2b0] sm:$0xff] %vm14471_vm15, %v5179_v2  ;;  %v4804_v58 = vpop.permute.xlu0 %4803  ;;  %4081 = vrot.lane.b32.xlu0 %v3991_v41, %s13341_s29  ;;  %vm14482_vm15 = vcmask 785920   ;;  %v11911_v60 = vld [vmem:[#allocation3 + $0xff] sm:$0xff]  ;;  %vm14487_vm11 = vcmask 523520   ;;  %vm14488_vm7 = vmmov %vm14481_vm3  ;;  %vm14490_vm13 = vcmp.le.s32.totalorder %v9999_v34, 14 }
 0x375   : > { %5212 = vst.msk [vmem:[#allocation7 + $0x2c8] sm:$0xff] %vm14472_vm14, %v5180_v19  ;;  %v5336_v23 = vpack.c.bf16 %v5267_v40, %v5264_v13  ;;  %vm14483_vm14 = vmmov %vm14481_vm3  ;;  %v3643_v14 = vld [vmem:[#allocation3 + $0xff] sm:$0xff]  ;;  %v4730_v0 = vsel %vm14490_vm13, %v11911_v60, 0.0  ;;  %v14495_v19 = vld [vmem:[#allocation99_spill] sm:$0xff]  ;;  %v7846_v5 = vpop.f32.mrf.mxu0  ;;  %vm14501_vm13 = vcmask 523264  }
 0x376   : > { %4658 = vst.msk [vmem:[#allocation7 + $0x1d0] sm:$0xff] %vm14473_vm1, %v4582_v7  ;;  %vm14485_vm1 = vnez %v14484_v22  ;;  %vm14489_vm8 = vmmov %vm14481_vm3  ;;  %v14497_v13 = vld [vmem:[#allocation92_spill] sm:$0xff] }
 0x377   : > { %4446 = vst.msk [vmem:[#allocation7 + $0x2f0] sm:$0xff] %vm14474_vm5, %v11881_v10  ;;  %5647 = vmatprep.mubr.bf16.mxu1 %v5336_v23  ;;  %v3674_v49 = vsel %vm14485_vm1, %v3642_v43, 0.0  ;;  %vm14486_vm5 = vcmp.ge.s32.totalorder %v10137_v42, 1  ;;  %v7591_v33 = vpop.f32.mrf.mxu1  ;;  %4821 = vrot.lane.b32.xlu1 %v4730_v0, %s13341_s29  ;;  %vm14496_vm1 = vnez %v14495_v19  ;;  %v14510_v0 = vld [vmem:[#allocation12_spill] sm:$0xff] }
 0x378   : > { %5209 = vst.msk [vmem:[#allocation7 + $0x280] sm:$0xff] %vm14480_vm10, %v5177_v25  ;;  %v3843_v46 = vpop.permute.xlu1 %3842  ;;  %v5266_v15 = vld [vmem:[#allocation7 + $0x198] sm:$0xff]  ;;  %v3675_v52 = vsel %vm14486_vm5, %v3643_v14, 0.0  ;;  %vm14491_vm10 = vcmp.le.s32.totalorder %v9959_v44, 14  ;;  %v4066_v56 = vpop.permute.xlu0 %4065  ;;  %v3992_v7 = vsel %vm14496_vm1, %v11693_v51, 0.0  ;;  %vm14498_vm5 = vnez %v14497_v13  ;;  %vm14506_vm1 = vmmov %vm14501_vm13 }
 0x379   : > { %5210 = vst.msk [vmem:[#allocation7 + $0x298] sm:$0xff] %vm14481_vm3, %v5178_v18  ;;  %v5335_v38 = vpack.c.bf16 %v5266_v15, %v5263_v47  ;;  %v4953_v37 = vsel %vm14491_vm10, %v11854_v53, 0.0  ;;  %v5292_v4 = vld [vmem:[#allocation7 + $0x268] sm:$0xff]  ;;  %vm14492_vm3 = vmmov %vm14482_vm15  ;;  %v7592_v29 = vpop.f32.mrf.mxu1  ;;  %v4216_v40 = vsel %vm14498_vm5, %v11769_v36, 0.0  ;;  %v5749_v47 = vpop.f32.mrf.mxu0  ;;  %vm14507_vm5 = vcmp.ge.s32.totalorder %v10294_v50, 1  ;;  %v11995_v13 = vld [vmem:[#allocation3 + $0x10f] sm:$0xff] }
 0x37a   : > { %4881 = vst.msk [vmem:[#allocation7 + $0x1b8] sm:$0xff] %vm14482_vm15, %v4804_v58  ;;  %5043 = vrot.lane.b32.xlu0 %v4953_v37, %s8133_s24  ;;  %v5349_v27 = vpack.c.bf16 %v5292_v4, %v5289_v61  ;;  %vm14493_vm15 = vmmov %vm14492_vm3  ;;  %v7593_v2 = vadd.f32 %v7592_v29, %v7591_v33  ;;  %v725_v37 = vshra.s32 %v14510_v0, 3  ;;  %v11975_v61 = vld [vmem:[%s13048_s4] ss:$0 sm:$0xff]  ;;  %v14513_v29 = vld [vmem:[#allocation13_spill] sm:$0xff] }
 0x37b   : > { %4444 = vst.msk [vmem:[#allocation7 + $0x2c0] sm:$0xff] %vm14483_vm14, %v11904_v26  ;;  %5648 = vmatmul.mubr.bf16.gmra.mxu1 %v5335_v38  ;;  %vm14494_vm14 = vmmov %vm14488_vm7  ;;  %v5301_v44 = vld [vmem:[#allocation7 + $0x2b0] sm:$0xff]  ;;  %v7594_v18 = vpop.f32.mrf.mxu1  ;;  %4083 = vrot.lane.b32.xlu1 %v3992_v7, %s13341_s29 }
 0x37c   : > { %3920 = vst.msk [vmem:[#allocation7 + $0x1c8] sm:$0xff] %vm14487_vm11, %v3843_v46  ;;  %v4806_v16 = vpop.permute.xlu1 %4805  ;;  %7867 = vmatprep.mubr.msk.bf16.mxu0 %vm14494_vm14, %v5349_v27  ;;  %v5304_v57 = vld [vmem:[#allocation7 + $0x2c8] sm:$0xff]  ;;  %v5028_v23 = vpop.permute.xlu0 %5027  ;;  %vm14499_vm11 = vcmask 1048320   ;;  %v5747_v41 = vadd.f32 %v7593_v2, %v5746_v12  ;;  %vm14502_vm10 = vmmov %vm14489_vm8  ;;  %v717_v27 = vand.u32 7, %v14510_v0 }
 0x37d   : > { %3706 = vst.msk [vmem:[#allocation7 + $0x2d0] sm:$0xff] %vm14488_vm7, %v3674_v49  ;;  %v5355_v8 = vpack.c.bf16 %v5304_v57, %v5301_v44  ;;  %vm14500_vm7 = vmmov %vm14492_vm3  ;;  %v7595_v51 = vpop.f32.mrf.mxu1  ;;  %v726_v44 = vshra.s32 %v14513_v29, 3 }
 0x37e   : > { %3707 = vst.msk [vmem:[#allocation7 + $0x2e8] sm:$0xff] %vm14489_vm8, %v3675_v52  ;;  %4306 = vrot.lane.b32.xlu0 %v4216_v40, %s8133_s24  ;;  %v7596_v36 = vadd.f32 %v7595_v51, %v7594_v18  ;;  %vm14505_vm14 = vmmov %vm14499_vm11  ;;  %v11962_v52 = vld [vmem:[#allocation3 + $0x107] sm:$0xff] }
 0x37f   : > { %4144 = vst.msk [vmem:[#allocation7 + $0x1b0] sm:$0xff] %vm14492_vm3, %v4066_v56  ;;  %v5295_v43 = vld [vmem:[#allocation7 + $0x280] sm:$0xff]  ;;  %vm14503_vm3 = vcmp.le.s32.totalorder %v9999_v34, 14  ;;  %v3768_v34 = vsel %vm14507_vm5, %v11654_v17, 0.0  ;;  %v4508_v56 = vsel %vm10433_vm4, %v11887_v9, 0.0  ;;  %v4731_v17 = vsel %vm10561_vm6, %v11962_v52, 0.0 }
 0x380   : > { %4882 = vst.msk [vmem:[#allocation7 + $0x1d0] sm:$0xff] %vm14493_vm15, %v4806_v16  ;;  %v5298_v25 = vld [vmem:[#allocation7 + $0x298] sm:$0xff]  ;;  %v4068_v58 = vpop.permute.xlu1 %4067  ;;  %v4954_v14 = vsel %vm14503_vm3, %v11904_v26, 0.0  ;;  %v4291_v46 = vpop.permute.xlu0 %4290  ;;  %vm14504_vm15 = vmmov %vm14499_vm11  ;;  %v5750_v15 = vadd.f32 %v7596_v36, %v5749_v47  ;;  %v11982_v16 = vand.u32 7, %v725_v37  ;;  %vm14514_vm6 = vcmp.ge.s32.totalorder %v10328_v31, 1 }
 0x381   : > { %5105 = vst.msk [vmem:[#allocation7 + $0x1b8] sm:$0xff] %vm14499_vm11, %v5028_v23  ;;  %v5352_v3 = vpack.c.bf16 %v5298_v25, %v5295_v43  ;;  %5045 = vrot.lane.b32.xlu1 %v4954_v14, %s8133_s24  ;;  %vm14508_vm11 = vcmask 523520   ;;  %v3769_v2 = vsel %vm14514_vm6, %v11682_v48, 0.0  ;;  %v718_v48 = vand.u32 7, %v14513_v29  ;;  %vm14525_vm6 = vmmov %vm14506_vm1  ;;  %v7998_v29 = vld [vmem:[%s13049_s5 + $0x10] sm:$0xff]  }
 0x382   : > { %4145 = vst.msk [vmem:[#allocation7 + $0x1c8] sm:$0xff] %vm14500_vm7, %v4068_v58  ;;  %4599 = vrot.lane.b32.xlu0 %v11885_v32, %s8131_s21  ;;  %vm14509_vm7 = vmmov %vm14505_vm14  ;;  %v12004_v18 = vand.u32 7, %v726_v44  ;;  %v3994_v47 = vsel %vm10450_vm0, %v11849_v45, 0.0  ;;  %v6045_v45 = vld [vmem:[#allocation5 + $0x8] sm:$0xff] }
 0x383   : > { %7868 = vmatmul.mubr.msk.bf16.gmra.mxu0 %vm14489_vm8, %v5352_v3  ;;  %5874 = vst.msk [vmem:[#allocation4] sm:$0xff] %vm14501_vm13, %v5747_v41  ;;  %vm14511_vm8 = vmmov %vm14508_vm11 }
 0x384   : > { %7871 = vmatprep.mubr.msk.bf16.mxu0 %vm14502_vm10, %v5355_v8  ;;  %4369 = vst.msk [vmem:[#allocation7 + $0x1b0] sm:$0xff] %vm14504_vm15, %v4291_v46  ;;  %v5030_v22 = vpop.permute.xlu1 %5029  ;;  %v4584_v49 = vpop.permute.xlu0 %4583  ;;  %vm14512_vm4 = vmmov %vm14511_vm8  ;;  %vm14516_vm10 = vcmask 785920   ;;  %vm11999_vm15 = vcmp.ge.s32.totalorder %v717_v27, 1  ;;  %v6005_v8 = vld [vmem:[#allocation5 + $0x7] sm:$0xff] }
 0x385   : > { %5106 = vst.msk [vmem:[#allocation7 + $0x1d0] sm:$0xff] %vm14505_vm14, %v5030_v22  ;;  %4308 = vrot.lane.b32.xlu1 %v11790_v28, %s8133_s24  ;;  %vm14515_vm13 = vmmov %vm14507_vm5  ;;  %vm741_vm14 = vcmp.ge.s32.totalorder %v11982_v16, 1  ;;  %vm14520_vm5 = vcmp.le.s32.totalorder %v10328_v31, 14 }
 0x386   : > { %5875 = vst.msk [vmem:[#allocation4 + $0x8] sm:$0xff] %vm14506_vm1, %v5750_v15  ;;  %3860 = vrot.lane.b32.xlu0 %v3768_v34, %s8131_s21  ;;  %v3993_v19 = vsel %vm14515_vm13, %v11675_v63, 0.0  ;;  %vm14517_vm3 = vmmov %vm14512_vm4  ;;  %v4732_v3 = vsel %vm14520_vm5, %v11995_v13, 0.0  ;;  %v4218_v15 = vsel %vm10310_vm2, %v11852_v20, 0.0  ;;  %v8000_v63 = vld [vmem:[%s13049_s5 + $0x8] sm:$0xff]  }
 0x387   : > { %4659 = vst.msk [vmem:[#allocation7 + $0x1e8] sm:$0xff] %vm14508_vm11, %v4584_v49  ;;  %vm14521_vm11 = vcmp.le.s32.totalorder %v10294_v50, 14  ;;  %v7988_v49 = vld [vmem:[%s13049_s5 + $0x38] sm:$0xff]  }
 0x388   : > { %v4293_v38 = vpop.permute.xlu1 %4292  ;;  %v3845_v28 = vpop.permute.xlu0 %3844  ;;  %v5270_v12 = vld [vmem:[#allocation7 + $0x1b8] sm:$0xff]  ;;  %v4955_v41 = vsel %vm14521_vm11, %v11845_v30, 0.0  ;;  %vm14535_vm11 = vcmp.le.s32.totalorder %v10328_v31, 14  ;;  %v5307_v31 = vld [vmem:[#allocation7 + $0x2e0] sm:$0xff] }
 0x389   : > { %4370 = vst.msk [vmem:[#allocation7 + $0x1c8] sm:$0xff] %vm14509_vm7, %v4293_v38  ;;  %4601 = vrot.lane.b32.xlu1 %v4508_v56, %s8131_s21  ;;  %vm773_vm7 = vmand %vm741_vm14, %vm11999_vm15 }
 0x38a   : > { %4823 = vrot.lane.b32.xlu0 %v4731_v17, %s13341_s29  ;;  %3921 = vst.msk [vmem:[#allocation7 + $0x1e0] sm:$0xff] %vm14511_vm8, %v3845_v28  ;;  %vm14522_vm8 = vmmov %vm14516_vm10  ;;  %v6029_v36 = vsel %vm773_vm7, %v6005_v8, 0.0  ;;  %v4956_v17 = vsel %vm14535_vm11, %v11881_v10, 0.0  ;;  %v5310_v10 = vld [vmem:[#allocation7 + $0x2f8] sm:$0xff] }
 0x38b   : > { %v5269_v43 = vld [vmem:[#allocation7 + $0x1b0] sm:$0xff]  ;;  %6037 = vst.msk [vmem:[#allocation8] sm:$0xff] %vm14525_vm6, %v6029_v36  ;;  %vm14526_vm13 = vmmov %vm14522_vm8 }
 0x38c   : > { %v4586_v4 = vpop.permute.xlu1 %4585  ;;  %v5273_v11 = vld [vmem:[#allocation7 + $0x1d0] sm:$0xff]  ;;  %v4808_v7 = vpop.permute.xlu0 %4807  ;;  %vm14534_vm0 = vmmov %vm14522_vm8 }
 0x38d   : > { %v5910_v33 = vld [vmem:[#allocation4] ss:$2 sm:$0xff]  ;;  %4660 = vst.msk [vmem:[#allocation7 + $0x200] sm:$0xff] %vm14512_vm4, %v4586_v4  ;;  %v5339_v39 = vpack.c.bf16 %v5273_v11, %v5270_v12  ;;  %3862 = vrot.lane.b32.xlu1 %v3769_v2, %s8131_s21  ;;  %vm12020_vm4 = vcmp.le.s32.totalorder %v717_v27, 6  ;;  %vm14536_vm7 = vmmov %vm14525_vm6  ;;  %v5358_v27 = vpack.c.bf16 %v5310_v10, %v5307_v31 }
 0x38e   : > { %v5918_v57 = vadd.f32 %v11975_v61, %v5910_v33  ;;  %4085 = vrot.lane.b32.xlu0 %v3993_v19, %s13341_s29  ;;  %4883 = vst.msk [vmem:[#allocation7 + $0x1e8] sm:$0xff] %vm14516_vm10, %v4808_v7  ;;  %vm12028_vm10 = vcmp.ge.s32.totalorder %v718_v48, 1  ;;  %vm12046_vm5 = vmand %vm741_vm14, %vm12020_vm4 }
 0x38f   : > { %5655 = vmatprep.mubr.bf16.mxu1 %v5339_v39  ;;  %v7597_v51 = vpop.f32.mrf.mxu1  ;;  %v6069_v39 = vsel %vm741_vm14, %v6045_v45, 0.0 }
 0x390   : > { %v5919_v40 = vmax.f32 %v5918_v57, 0.0  ;;  %v3847_v23 = vpop.permute.xlu1 %3846  ;;  %v5272_v25 = vld [vmem:[#allocation7 + $0x1c8] sm:$0xff]  ;;  %v4070_v58 = vpop.permute.xlu0 %4069 }
 0x391   : > { %3922 = vst.msk [vmem:[#allocation7 + $0x1f8] sm:$0xff] %vm14517_vm3, %v3847_v23  ;;  %v5338_v5 = vpack.c.bf16 %v5272_v25, %v5269_v43  ;;  %4825 = vrot.lane.b32.xlu1 %v4732_v3, %s13341_s29  ;;  %v7598_v30 = vpop.f32.mrf.mxu1  ;;  %vm742_vm3 = vcmp.ge.s32.totalorder %v12004_v18, 1  ;;  %v7849_v25 = vpop.f32.mrf.mxu0 }
 0x392   : > { %5920 = vst.msk [vmem:[#allocation5 + $0x10] sm:$0xff] %vm14506_vm1, %v5919_v40  ;;  %5047 = vrot.lane.b32.xlu0 %v4955_v41, %s8133_s24  ;;  %vm14529_vm1 = vcmask 1048320   ;;  %vm12054_vm2 = vmand %vm742_vm3, %vm12028_vm10 }
 0x393   : > { %4146 = vst.msk [vmem:[#allocation7 + $0x1e0] sm:$0xff] %vm14522_vm8, %v4070_v58  ;;  %5656 = vmatmul.mubr.bf16.gmra.mxu1 %v5338_v5  ;;  %v7600_v34 = vpop.f32.mrf.mxu1  ;;  %vm14537_vm8 = vmmov %vm14529_vm1  ;;  %v5762_v36 = vpop.f32.mrf.mxu0 }
 0x394   : > { %v4810_v14 = vpop.permute.xlu1 %4809  ;;  %v5032_v22 = vpop.permute.xlu0 %5031  ;;  %v7987_v34 = vld [vmem:[%s13049_s5 + $0x78] sm:$0xff]  }
 0x395   : > { %4884 = vst.msk [vmem:[#allocation7 + $0x200] sm:$0xff] %vm14526_vm13, %v4810_v14  ;;  %4087 = vrot.lane.b32.xlu1 %v3994_v47, %s13341_s29  ;;  %v7601_v20 = vpop.f32.mrf.mxu1  ;;  %vm14538_vm13 = vmmov %vm14525_vm6  ;;  %v4925_v47 = vld [vmem:[#allocation3 + $0x118] sm:$0xff]  ;;  %7705 = vmatprep.subr.bf16.mxu0 %v7987_v34 }
 0x396   : > { %4310 = vrot.lane.b32.xlu0 %v4218_v15, %s8133_s24  ;;  %5107 = vst.msk [vmem:[#allocation7 + $0x1e8] sm:$0xff] %vm14529_vm1, %v5032_v22  ;;  %7706 = vmatpush3.bf16.msra.mxu0 %v7988_v49 }
 0x397   : > { %7707 = vmatprep.subr.bf16.mxu0 %v7989_v21  ;;  %v7999_v21 = vld [vmem:[%s13049_s5 + $0x48] sm:$0xff]  }
 0x398   : > { %v4072_v1 = vpop.permute.xlu1 %4071  ;;  %v4295_v4 = vpop.permute.xlu0 %4294 }
 0x399   : > { %4147 = vst.msk [vmem:[#allocation7 + $0x1f8] sm:$0xff] %vm14534_vm0, %v4072_v1  ;;  %v6158_v38 = vld [vmem:[#allocation5 + $0xf] sm:$0xff]  ;;  %5049 = vrot.lane.b32.xlu1 %v4956_v17, %s8133_s24  ;;  %vm14540_vm0 = vcmask 523520   ;;  %v7850_v1 = vpop.f32.mrf.mxu0 }
 0x39a   : > { %v12059_v37 = vld [vmem:[#allocation5 + $0x10] sm:$0xff]  ;;  %v6182_v28 = vsel %vm11999_vm15, %v6158_v38, 0.0  ;;  %4371 = vst.msk [vmem:[#allocation7 + $0x1e0] sm:$0xff] %vm14537_vm8, %v4295_v4  ;;  %v6030_v11 = vsel %vm12054_vm2, %v6158_v38, 0.0  ;;  %vm14541_vm2 = vmmov %vm14529_vm1  ;;  %vm14545_vm8 = vcmask 785920  }
 0x39b   : > { %v6118_v56 = vld [vmem:[#allocation5 + $0x9] sm:$0xff]  ;;  %6238 = vst.msk [vmem:[#allocation8 + $0x10] sm:$0xff] %vm14536_vm7, %v12059_v37  ;;  %6198 = vrot.lane.b32.xlu0 %v6182_v28, %s13341_s29  ;;  %vm14542_vm14 = vmmov %vm14540_vm0  ;;  %vm14544_vm7 = vcmp.ge.s32.totalorder %v9926_v6, 1 }
 0x39c   : > { %v6142_v12 = vsel %vm12046_vm5, %v6118_v56, 0.0  ;;  %v5034_v33 = vpop.permute.xlu1 %5033  ;;  %6038 = vst.msk [vmem:[#allocation8 + $0x28] sm:$0xff] %vm14538_vm13, %v6030_v11  ;;  %v4588_v44 = vpop.permute.xlu0 %4587  ;;  %vm14539_vm5 = vcmask 261120   ;;  %vm14543_vm11 = vmmov %vm14540_vm0  ;;  %v7990_v17 = vld [vmem:[%s13049_s5 + $0x30] sm:$0xff]   ;;  %v7992_v11 = vld [vmem:[%s13049_s5 + $0x28] sm:$0xff]  }
 0x39d   : > { %6150 = vst.msk [vmem:[#allocation8 + $0x8] sm:$0xff] %vm14525_vm6, %v6142_v12  ;;  %7872 = vmatmul.mubr.msk.bf16.gmra.mxu0 %vm14539_vm5, %v5358_v27  ;;  %4312 = vrot.lane.b32.xlu1 %v11911_v60, %s8133_s24  ;;  %v5276_v19 = vld [vmem:[#allocation7 + $0x1e8] sm:$0xff]  ;;  %v3770_v60 = vsel %vm14544_vm7, %v11854_v53, 0.0  ;;  %vm14546_vm6 = vmmov %vm14540_vm0  ;;  %v5765_v12 = vpop.f32.mrf.mxu0  ;;  %v7993_v27 = vld [vmem:[%s13049_s5 + $0x60] sm:$0xff]  }
 0x39e   : > { %5108 = vst.msk [vmem:[#allocation7 + $0x200] sm:$0xff] %vm14529_vm1, %v5034_v33  ;;  %vm14547_vm13 = vmmov %vm14545_vm8  ;;  %7708 = vmatpush3.bf16.msra.mxu0 %v7990_v17  ;;  %v4220_v33 = vsel %vm10341_vm12, %v11962_v52, 0.0  ;;  %v14559_v52 = vld [vmem:[#allocation14_spill] sm:$0xff] }
 0x39f   : > { %6085 = vrot.lane.b32.xlu0 %v6069_v39, %s13341_s29  ;;  %4661 = vst.msk [vmem:[#allocation7 + $0x218] sm:$0xff] %vm14540_vm0, %v4588_v44  ;;  %vm14548_vm1 = vmmov %vm14545_vm8  ;;  %vm14551_vm0 = vcmp.le.s32.totalorder %v9926_v6, 14  ;;  %v7991_v6 = vld [vmem:[%s13049_s5 + $0x68] sm:$0xff]  }
 0x3a0   : > { %v4297_v57 = vpop.permute.xlu1 %4296  ;;  %v3849_v2 = vpop.permute.xlu0 %3848  ;;  %vm14549_vm5 = vmmov %vm14544_vm7  ;;  %v4957_v20 = vsel %vm14551_vm0, %v4925_v47, 0.0  ;;  %7709 = vmatprep.subr.bf16.mxu0 %v7991_v6 }
 0x3a1   : > { %4372 = vst.msk [vmem:[#allocation7 + $0x1f8] sm:$0xff] %vm14541_vm2, %v4297_v57  ;;  %v5275_v5 = vld [vmem:[#allocation7 + $0x1e0] sm:$0xff]  ;;  %v3995_v22 = vsel %vm14549_vm5, %v11885_v32, 0.0  ;;  %vm14558_vm12 = vmmov %vm14546_vm6 }
 0x3a2   : > { %3923 = vst.msk [vmem:[#allocation7 + $0x210] sm:$0xff] %vm14542_vm14, %v3849_v2  ;;  %vm14553_vm14 = vmmov %vm14548_vm1  ;;  %7710 = vmatpush3.bf16.msra.mxu0 %v7992_v11  ;;  %v7994_v57 = vld [vmem:[%s13049_s5 + $0x20] sm:$0xff]   ;;  %v727_v2 = vshra.s32 %v14559_v52, 3 }
 0x3a3   : > { %4603 = vrot.lane.b32.xlu0 %v11868_v54, %s8131_s21  ;;  %v4701_v54 = vld [vmem:[#allocation3 + $0x117] sm:$0xff]  ;;  %7711 = vmatprep.subr.bf16.mxu0 %v7993_v27  ;;  %vm14561_vm5 = vmmov %vm14553_vm14 }
 0x3a4   : > { %v4590_v40 = vpop.permute.xlu1 %4589  ;;  %v4733_v8 = vsel %vm10581_vm9, %v4701_v54, 0.0  ;;  %vm14550_vm9 = vmmov %vm14541_vm2  ;;  %vm14552_vm2 = vcmask 523264   ;;  %v8001_v11 = vld [vmem:[%s13049_s5 + $0x40] sm:$0xff]  }
 0x3a5   : > { %v5279_v7 = vld [vmem:[#allocation7 + $0x200] sm:$0xff]  ;;  %4662 = vst.msk [vmem:[#allocation7 + $0x230] sm:$0xff] %vm14543_vm11, %v4590_v40  ;;  %v4812_v43 = vpop.permute.xlu0 %4811  ;;  %vm14554_vm11 = vmmov %vm14550_vm9 }
 0x3a6   : > { %v5342_v23 = vpack.c.bf16 %v5279_v7, %v5276_v19  ;;  %4885 = vst.msk [vmem:[#allocation7 + $0x218] sm:$0xff] %vm14545_vm8, %v4812_v43  ;;  %vm14555_vm7 = vmmov %vm14552_vm2  ;;  %v7995_v19 = vld [vmem:[%s13049_s5 + $0x58] sm:$0xff]   ;;  %7712 = vmatpush3.bf16.msra.mxu0 %v7994_v57 }
 0x3a7   : > { %3864 = vrot.lane.b32.xlu0 %v3770_v60, %s8131_s21  ;;  %v7603_v53 = vpop.f32.mrf.mxu1  ;;  %vm14556_vm8 = vmmov %vm14550_vm9  ;;  %7713 = vmatprep.subr.bf16.mxu0 %v7995_v19 }
 0x3a8   : > { %5663 = vmatprep.mubr.bf16.mxu1 %v5342_v23  ;;  %v5278_v3 = vld [vmem:[#allocation7 + $0x1f8] sm:$0xff] }
 0x3a9   : > { %v3851_v41 = vpop.permute.xlu1 %3850  ;;  %v5341_v58 = vpack.c.bf16 %v5278_v3, %v5275_v5  ;;  %v4074_v51 = vpop.permute.xlu0 %4073  ;;  %v719_v3 = vand.u32 7, %v14559_v52 }
 0x3aa   : > { %3924 = vst.msk [vmem:[#allocation7 + $0x228] sm:$0xff] %vm14546_vm6, %v3851_v41  ;;  %v7604_v30 = vpop.f32.mrf.mxu1  ;;  %v12153_v41 = vand.u32 7, %v727_v2 }
 0x3ab   : > { %4827 = vrot.lane.b32.xlu0 %v4733_v8, %s13341_s29  ;;  %4148 = vst.msk [vmem:[#allocation7 + $0x210] sm:$0xff] %vm14547_vm13, %v4074_v51  ;;  %5664 = vmatmul.mubr.bf16.gmra.mxu1 %v5341_v58  ;;  %v7605_v15 = vadd.f32 %v7604_v30, %v7603_v53  ;;  %vm14557_vm13 = vmmov %vm14556_vm8 }
 0x3ac   : > { %v7606_v45 = vpop.f32.mrf.mxu1 }
 0x3ad   : > { %v5763_v32 = vadd.f32 %v7605_v15, %v5762_v36  ;;  %v7996_v36 = vld [vmem:[%s13049_s5 + $0x18] sm:$0xff]   ;;  %v7997_v15 = vld [vmem:[%s13049_s5 + $0x50] sm:$0xff]  }
 0x3ae   : > { %v7607_v56 = vpop.f32.mrf.mxu1  ;;  %7714 = vmatpush3.bf16.msra.mxu0 %v7996_v36 }
 0x3af   : > { %v4814_v14 = vpop.permute.xlu1 %4813  ;;  %v5036_v62 = vpop.permute.xlu0 %5035  ;;  %4089 = vrot.lane.b32.xlu0 %v3995_v22, %s13341_s29  ;;  %5878 = vst.msk [vmem:[#allocation4 + $0x20] sm:$0xff] %vm14552_vm2, %v5763_v32  ;;  %v7608_v28 = vadd.f32 %v7607_v56, %v7606_v45  ;;  %7715 = vmatprep.subr.bf16.mxu0 %v7997_v15 }
 0x3b0   : > { %4886 = vst.msk [vmem:[#allocation7 + $0x230] sm:$0xff] %vm14548_vm1, %v4814_v14  ;;  %vm14560_vm1 = vmmov %vm14546_vm6 }
 0x3b1   : > { %5109 = vst.msk [vmem:[#allocation7 + $0x218] sm:$0xff] %vm14550_vm9, %v5036_v62  ;;  %v5766_v31 = vadd.f32 %v7608_v28, %v5765_v12  ;;  %vm14562_vm9 = vmmov %vm14552_vm2 }
 0x3b2   : > { %vm14563_vm0 = vmmov %vm14560_vm1  ;;  %7716 = vmatpush3.bf16.msra.mxu0 %v7998_v29 }
 0x3b3   : > { %v4076_v38 = vpop.permute.xlu1 %4075  ;;  %v4299_v4 = vpop.permute.xlu0 %4298  ;;  %5051 = vrot.lane.b32.xlu0 %v4957_v20, %s8133_s24  ;;  %5879 = vst.msk [vmem:[#allocation4 + $0x28] sm:$0xff] %vm14555_vm7, %v5766_v31  ;;  %vm14564_vm2 = vmmov %vm14561_vm5  ;;  %vm743_vm7 = vcmp.ge.s32.totalorder %v12153_v41, 1  ;;  %7717 = vmatprep.subr.bf16.mxu0 %v7999_v21  ;;  %v14596_v21 = vld [vmem:[#allocation15_spill] sm:$0xff] }
 0x3b4   : > { %4149 = vst.msk [vmem:[#allocation7 + $0x228] sm:$0xff] %vm14553_vm14, %v4076_v38  ;;  %vm12163_vm14 = vcmp.le.s32.totalorder %v718_v48, 6  ;;  %v728_v32 = vshra.s32 %v14596_v21, 3 }
 0x3b5   : > { %4373 = vst.msk [vmem:[#allocation7 + $0x210] sm:$0xff] %vm14554_vm11, %v4299_v4  ;;  %vm12172_vm11 = vcmp.ge.s32.totalorder %v719_v3, 1 }
 0x3b6   : > { %7718 = vmatpush3.bf16.msra.mxu0 %v8000_v63 }
 0x3b7   : > { %v5038_v10 = vpop.permute.xlu1 %5037  ;;  %v4592_v39 = vpop.permute.xlu0 %4591  ;;  %4314 = vrot.lane.b32.xlu0 %v4220_v33, %s8133_s24  ;;  %7719 = vmatprep.subr.bf16.mxu0 %v8001_v11 }
 0x3b8   : > { %5110 = vst.msk [vmem:[#allocation7 + $0x230] sm:$0xff] %vm14556_vm8, %v5038_v10  ;;  %v5282_v23 = vld [vmem:[#allocation7 + $0x218] sm:$0xff]  ;;  %vm749_vm8 = vcmp.le.s32.totalorder %v11982_v16, 6 }
 0x3b9   : > { %4663 = vst.msk [vmem:[#allocation7 + $0x248] sm:$0xff] %vm14546_vm6, %v4592_v39  ;;  %vm14569_vm6 = vmmov %vm14564_vm2  ;;  %v8002_v39 = vld [vmem:[%s13049_s5] sm:$0xff]  }
 0x3ba   : > { %v5922_v7 = vld [vmem:[#allocation4 + $0x20] ss:$2 sm:$0xff]  ;;  %7720 = vmatpush3.bf16.msra.mxu0 %v8002_v39 }
 0x3bb   : > { %v4301_v44 = vpop.permute.xlu1 %4300  ;;  %v3853_v59 = vpop.permute.xlu0 %3852  ;;  %v5930_v43 = vadd.f32 %v11975_v61, %v5922_v7  ;;  %v4702_v7 = vld [vmem:[#allocation3 + $0x11f] sm:$0xff] }
 0x3bc   : > { %4374 = vst.msk [vmem:[#allocation7 + $0x228] sm:$0xff] %vm14557_vm13, %v4301_v44  ;;  %v5281_v8 = vld [vmem:[#allocation7 + $0x210] sm:$0xff]  ;;  %vm12186_vm13 = vmand %vm742_vm3, %vm12163_vm14  ;;  %v6070_v44 = vsel %vm742_vm3, %v12059_v37, 0.0  ;;  %vm14588_vm3 = vcmp.ge.s32.totalorder %v10137_v42, 1 }
 0x3bd   : > { %3925 = vst.msk [vmem:[#allocation7 + $0x240] sm:$0xff] %vm14558_vm12, %v3853_v59  ;;  %v5931_v5 = vmax.f32 %v5930_v43, 0.0  ;;  %vm14572_vm12 = vcmask 1048320  }
 0x3bf   : > { %v4594_v40 = vpop.permute.xlu1 %4593  ;;  %v5285_v60 = vld [vmem:[#allocation7 + $0x230] sm:$0xff]  ;;  %5932 = vst.msk [vmem:[#allocation5 + $0x18] sm:$0xff] %vm14562_vm9, %v5931_v5  ;;  %vm14577_vm9 = vmmov %vm14564_vm2 }
 0x3c0   : > { %4664 = vst.msk [vmem:[#allocation7 + $0x260] sm:$0xff] %vm14560_vm1, %v4594_v40  ;;  %v4816_v25 = vpop.permute.xlu0 %4815  ;;  %v5345_v54 = vpack.c.bf16 %v5285_v60, %v5282_v23  ;;  %vm12195_vm1 = vmand %vm743_vm7, %vm12172_vm11  ;;  %v3771_v40 = vsel %vm14588_vm3, %v11904_v26, 0.0  ;;  %v7853_v60 = vpop.f32.mrf.mxu0 }
 0x3c1   : > { %4887 = vst.msk [vmem:[#allocation7 + $0x248] sm:$0xff] %vm14561_vm5, %v4816_v25  ;;  %vm12206_vm5 = vmand %vm749_vm8, %vm11999_vm15  ;;  %vm14578_vm15 = vcmask 523264  }
 0x3c2   : > { %5671 = vmatprep.mubr.bf16.mxu1 %v5345_v54  ;;  %v5778_v54 = vpop.f32.mrf.mxu0 }
 0x3c3   : > { %v3855_v58 = vpop.permute.xlu1 %3854  ;;  %v5284_v51 = vld [vmem:[#allocation7 + $0x228] sm:$0xff]  ;;  %v7609_v30 = vpop.f32.mrf.mxu1 }
 0x3c4   : > { %3926 = vst.msk [vmem:[#allocation7 + $0x258] sm:$0xff] %vm14563_vm0, %v3855_v58  ;;  %v4078_v53 = vpop.permute.xlu0 %4077  ;;  %v5344_v14 = vpack.c.bf16 %v5284_v51, %v5281_v8  ;;  %vm14579_vm0 = vmmov %vm14572_vm12  ;;  %v4926_v8 = vld [vmem:[#allocation3 + $0x120] sm:$0xff]  ;;  %v7854_v36 = vpop.f32.mrf.mxu0 }
 0x3c5   : > { %4150 = vst.msk [vmem:[#allocation7 + $0x240] sm:$0xff] %vm14564_vm2, %v4078_v53  ;;  %v7610_v48 = vpop.f32.mrf.mxu1  ;;  %vm14580_vm2 = vmmov %vm14578_vm15 }
 0x3c6   : > { %5672 = vmatmul.mubr.bf16.gmra.mxu1 %v5344_v14  ;;  %v6159_v38 = vld [vmem:[#allocation5 + $0x17] sm:$0xff]  ;;  %v5781_v29 = vpop.f32.mrf.mxu0 }
 0x3c7   : > { %v4818_v62 = vpop.permute.xlu1 %4817  ;;  %v7612_v45 = vpop.f32.mrf.mxu1  ;;  %v12210_v56 = vld [vmem:[#allocation5 + $0x18] sm:$0xff]  ;;  %v6183_v12 = vsel %vm12028_vm10, %v6159_v38, 0.0  ;;  %v6031_v31 = vsel %vm12195_vm1, %v6159_v38, 0.0  ;;  %v6342_v10 = vsel %vm12206_vm5, %v6159_v38, 0.0  ;;  %vm14584_vm1 = vcmask 523520   ;;  %vm14585_vm5 = vmmov %vm14579_vm0 }
 0x3c8   : > { %4888 = vst.msk [vmem:[#allocation7 + $0x260] sm:$0xff] %vm14569_vm6, %v4818_v62  ;;  %v5040_v34 = vpop.permute.xlu0 %5039  ;;  %v12212_v17 = vld [vmem:[#allocation5 + $0x11] sm:$0xff]  ;;  %6200 = vrot.lane.b32.xlu1 %v6183_v12, %s13341_s29  ;;  %vm14581_vm6 = vmmov %vm14580_vm2  ;;  %v12279_v12 = vand.u32 7, %v728_v32 }
 0x3c9   : > { %5111 = vst.msk [vmem:[#allocation7 + $0x248] sm:$0xff] %vm14572_vm12, %v5040_v34  ;;  %v7613_v28 = vpop.f32.mrf.mxu1  ;;  %v6143_v6 = vsel %vm12186_vm13, %v12212_v17, 0.0  ;;  %vm14582_vm12 = vmmov %vm14580_vm2 }
 0x3ca   : > { %6239 = vst.msk [vmem:[#allocation8 + $0x38] sm:$0xff] %vm14578_vm15, %v12210_v56  ;;  %vm14583_vm13 = vmmov %vm14579_vm0 }
 0x3cb   : > { %v4080_v20 = vpop.permute.xlu1 %4079  ;;  %6151 = vst.msk [vmem:[#allocation8 + $0x30] sm:$0xff] %vm14580_vm2, %v6143_v6  ;;  %vm14587_vm15 = vmmov %vm14584_vm1  ;;  %vm14590_vm2 = vnez %v13928_v24 }
 0x3cc   : > { %4151 = vst.msk [vmem:[#allocation7 + $0x258] sm:$0xff] %vm14577_vm9, %v4080_v20  ;;  %v4303_v4 = vpop.permute.xlu0 %4302  ;;  %6087 = vrot.lane.b32.xlu1 %v6070_v44, %s13341_s29  ;;  %vm14586_vm9 = vnez %v13835_v55  ;;  %v3996_v26 = vsel %vm14590_vm2, %v11887_v9, 0.0  ;;  %vm14599_vm2 = vmmov %vm14582_vm12 }
 0x3cd   : > { %4375 = vst.msk [vmem:[#allocation7 + $0x240] sm:$0xff] %vm14579_vm0, %v4303_v4  ;;  %v4510_v2 = vsel %vm14586_vm9, %v11870_v35, 0.0  ;;  %vm14589_vm0 = vcmp.le.s32.totalorder %v10137_v42, 14  ;;  %vm14594_vm9 = vmmov %vm14584_vm1  ;;  %v720_v4 = vand.u32 7, %v14596_v21 }
 0x3ce   : > { %6039 = vst.msk [vmem:[#allocation8 + $0x50] sm:$0xff] %vm14581_vm6, %v6031_v31  ;;  %v4734_v55 = vsel %vm14589_vm0, %v4702_v7, 0.0  ;;  %vm14591_vm6 = vmmov %vm14589_vm0  ;;  %vm14598_vm0 = vcmask 1048320  }
 0x3cf   : > { %6350 = vst.msk [vmem:[#allocation8 + $0x18] sm:$0xff] %vm14582_vm12, %v6342_v10  ;;  %v5042_v33 = vpop.permute.xlu1 %5041  ;;  %v4958_v30 = vsel %vm14591_vm6, %v4926_v8, 0.0 }
 0x3d0   : > { %5112 = vst.msk [vmem:[#allocation7 + $0x260] sm:$0xff] %vm14583_vm13, %v5042_v33  ;;  %v4596_v27 = vpop.permute.xlu0 %4595  ;;  %4605 = vrot.lane.b32.xlu1 %v4510_v2, %s8131_s21  ;;  %v5288_v19 = vld [vmem:[#allocation7 + $0x248] sm:$0xff]  ;;  %vm14592_vm13 = vmmov %vm14582_vm12 }
 0x3d1   : > { %4665 = vst.msk [vmem:[#allocation7 + $0x278] sm:$0xff] %vm14584_vm1, %v4596_v27  ;;  %v8006_v27 = vld [vmem:[%s13049_s5 + $0xb0] sm:$0xff]  }
 0x3d3   : > { %v4305_v57 = vpop.permute.xlu1 %4304 }
 0x3d4   : > { %4376 = vst.msk [vmem:[#allocation7 + $0x258] sm:$0xff] %vm14585_vm5, %v4305_v57  ;;  %v3857_v59 = vpop.permute.xlu0 %3856  ;;  %3866 = vrot.lane.b32.xlu1 %v3771_v40, %s8131_s21  ;;  %v5287_v35 = vld [vmem:[#allocation7 + $0x240] sm:$0xff]  ;;  %vm14593_vm5 = vcmask 785920  }
 0x3d5   : > { %3927 = vst.msk [vmem:[#allocation7 + $0x270] sm:$0xff] %vm14587_vm15, %v3857_v59  ;;  %vm14595_vm15 = vmmov %vm14593_vm5 }
 0x3d6   : > { %vm14597_vm3 = vmmov %vm14593_vm5 }
 0x3d7   : > { %v5291_v37 = vld [vmem:[#allocation7 + $0x260] sm:$0xff]  ;;  %vm14600_vm6 = vmmov %vm14597_vm3 }
 0x3d8   : > { %v5348_v23 = vpack.c.bf16 %v5291_v37, %v5288_v19  ;;  %v7615_v5 = vpop.f32.mrf.mxu1  ;;  %4829 = vrot.lane.b32.xlu1 %v4734_v55, %s13341_s29 }
 0x3da   : > { %5679 = vmatprep.mubr.bf16.mxu1 %v5348_v23  ;;  %v7616_v58 = vpop.f32.mrf.mxu1 }
 0x3db   : > { %v5290_v43 = vld [vmem:[#allocation7 + $0x258] sm:$0xff]  ;;  %v7617_v51 = vadd.f32 %v7616_v58, %v7615_v5  ;;  %v6071_v5 = vsel %vm743_vm7, %v12210_v56, 0.0 }
 0x3dc   : > { %v5347_v25 = vpack.c.bf16 %v5290_v43, %v5287_v35  ;;  %v7618_v53 = vpop.f32.mrf.mxu1  ;;  %4091 = vrot.lane.b32.xlu1 %v3996_v26, %s13341_s29 }
 0x3dd   : > { %v5779_v14 = vadd.f32 %v7617_v51, %v5778_v54 }
 0x3de   : > { %5680 = vmatmul.mubr.bf16.gmra.mxu1 %v5347_v25  ;;  %v7619_v15 = vpop.f32.mrf.mxu1 }
 0x3df   : > { %5882 = vst.msk [vmem:[#allocation4 + $0x40] sm:$0xff] %vm14582_vm12, %v5779_v14  ;;  %v7620_v62 = vadd.f32 %v7619_v15, %v7618_v53  ;;  %v4598_v34 = vpop.permute.xlu1 %4597  ;;  %vm14601_vm12 = vmmov %vm14598_vm0  ;;  %v6382_v53 = vsel %vm749_vm8, %v12210_v56, 0.0 }
 0x3e0   : > { %5053 = vrot.lane.b32.xlu1 %v4958_v30, %s8133_s24  ;;  %v4820_v49 = vpop.permute.xlu0 %4819  ;;  %4666 = vst.msk [vmem:[#allocation7 + $0x290] sm:$0xff] %vm14584_vm1, %v4598_v34  ;;  %vm12292_vm1 = vcmp.ge.s32.totalorder %v720_v4, 1 }
 0x3e1   : > { %v5782_v48 = vadd.f32 %v7620_v62, %v5781_v29  ;;  %4889 = vst.msk [vmem:[#allocation7 + $0x278] sm:$0xff] %vm14593_vm5, %v4820_v49  ;;  %vm13335_vm5 = vcmp.ge.s32.totalorder %v12279_v12, 1  ;;  %v6270_v62 = vsel %vm12020_vm4, %v12212_v17, 0.0  ;;  %v7857_v29 = vpop.f32.mrf.mxu0 }
 0x3e3   : > { %5883 = vst.msk [vmem:[#allocation4 + $0x48] sm:$0xff] %vm14592_vm13, %v5782_v48  ;;  %vm12286_vm13 = vcmp.le.s32.totalorder %v719_v3, 6  ;;  %v5794_v48 = vpop.f32.mrf.mxu0 }
 0x3e4   : > { %4316 = vrot.lane.b32.xlu1 %v11995_v13, %s8133_s24  ;;  %s12997_s24 = scalar_lea.hbm %s13053_s9, %s7532_s16 }
 0x3e5   : > { %v3859_v42 = vpop.permute.xlu1 %3858 }
 0x3e6   : > { %v4082_v24 = vpop.permute.xlu0 %4081  ;;  %3928 = vst.msk [vmem:[#allocation7 + $0x288] sm:$0xff] %vm14594_vm9, %v3859_v42  ;;  %vm14606_vm9 = vmmov %vm14598_vm0 }
 0x3e7   : > { %4152 = vst.msk [vmem:[#allocation7 + $0x270] sm:$0xff] %vm14595_vm15, %v4082_v24  ;;  %vm14607_vm15 = vcmask 523520   ;;  %v7858_v24 = vpop.f32.mrf.mxu0 }
 0x3e8   : > { %v8013_v24 = vld [vmem:[%s13049_s5 + $0xd0] sm:$0xff]  }
 0x3e9   : > { %v4822_v1 = vpop.permute.xlu1 %4821 }
 0x3ea   : > { %v5934_v9 = vld [vmem:[#allocation4 + $0x40] ss:$2 sm:$0xff]  ;;  %4890 = vst.msk [vmem:[#allocation7 + $0x290] sm:$0xff] %vm14597_vm3, %v4822_v1  ;;  %vm12303_vm3 = vmand %vm749_vm8, %vm12020_vm4  ;;  %vm14630_vm4 = vcmask 523264  }
 0x3eb   : > { %v5942_v20 = vadd.f32 %v11975_v61, %v5934_v9 }
 0x3ec   : > { %v5044_v45 = vpop.permute.xlu0 %5043 }
 0x3ed   : > { %5113 = vst.msk [vmem:[#allocation7 + $0x278] sm:$0xff] %vm14598_vm0, %v5044_v45  ;;  %v5943_v38 = vmax.f32 %v5942_v20, 0.0  ;;  %v4084_v28 = vpop.permute.xlu1 %4083  ;;  %vm750_vm0 = vcmp.le.s32.totalorder %v12004_v18, 6 }
 0x3ee   : > { %4153 = vst.msk [vmem:[#allocation7 + $0x288] sm:$0xff] %vm14600_vm6, %v4084_v28  ;;  %vm12320_vm6 = vmand %vm13335_vm5, %vm12292_vm1  ;;  %v5797_v28 = vpop.f32.mrf.mxu0 }
 0x3ef   : > { %5944 = vst.msk [vmem:[#allocation5 + $0x20] sm:$0xff] %vm14599_vm2, %v5943_v38  ;;  %vm12312_vm2 = vmand %vm743_vm7, %vm12286_vm13 }
 0x3f0   : > { %v4307_v13 = vpop.permute.xlu0 %4306  ;;  %v7621_v63 = vpop.f32.mrf.mxu1 }
 0x3f1   : > { %4377 = vst.msk [vmem:[#allocation7 + $0x270] sm:$0xff] %vm14601_vm12, %v4307_v13  ;;  %vm12330_vm12 = vmand %vm750_vm0, %vm12028_vm10  ;;  %vm14616_vm10 = vcmask 523264   ;;  %v8003_v13 = vld [vmem:[%s13049_s5 + $0xf8] sm:$0xff]   ;;  %v7861_v18 = vpop.f32.mrf.mxu0 }
 0x3f2   : > { %v7622_v33 = vpop.f32.mrf.mxu1  ;;  %v8004_v63 = vld [vmem:[%s13049_s5 + $0xb8] sm:$0xff]   ;;  %7745 = vmatprep.subr.bf16.mxu1 %v8003_v13  ;;  %v8018_v13 = vld [vmem:[%s13049_s5 + $0x80] sm:$0xff]  }
 0x3f3   : > { %v5046_v31 = vpop.permute.xlu1 %5045  ;;  %7746 = vmatpush3.bf16.msra.mxu1 %v8004_v63 }
 0x3f4   : > { %v4600_v10 = vpop.permute.xlu0 %4599  ;;  %5114 = vst.msk [vmem:[#allocation7 + $0x290] sm:$0xff] %vm14606_vm9, %v5046_v31  ;;  %v7624_v39 = vpop.f32.mrf.mxu1  ;;  %v5294_v25 = vld [vmem:[#allocation7 + $0x278] sm:$0xff] }
 0x3f5   : > { %4667 = vst.msk [vmem:[#allocation7 + $0x2a8] sm:$0xff] %vm14607_vm15, %v4600_v10  ;;  %v8005_v39 = vld [vmem:[%s13049_s5 + $0xf0] sm:$0xff]  }
 0x3f6   : > { %v6160_v59 = vld [vmem:[#allocation5 + $0x1f] sm:$0xff]  ;;  %v7625_v37 = vpop.f32.mrf.mxu1  ;;  %7747 = vmatprep.subr.bf16.mxu1 %v8005_v39 }
 0x3f7   : > { %v4309_v44 = vpop.permute.xlu1 %4308  ;;  %v12324_v2 = vld [vmem:[#allocation5 + $0x19] sm:$0xff]  ;;  %v6184_v7 = vsel %vm12172_vm11, %v6160_v59, 0.0  ;;  %v6032_v60 = vsel %vm12320_vm6, %v6160_v59, 0.0  ;;  %v6343_v55 = vsel %vm12330_vm12, %v6160_v59, 0.0  ;;  %vm14626_vm12 = vcmask 1048320   ;;  %7748 = vmatpush3.bf16.msra.mxu1 %v8006_v27 }
 0x3f8   : > { %v3861_v57 = vpop.permute.xlu0 %3860  ;;  %4378 = vst.msk [vmem:[#allocation7 + $0x288] sm:$0xff] %vm14606_vm9, %v4309_v44  ;;  %v6454_v40 = vsel %vm12303_vm3, %v12324_v2, 0.0  ;;  %v12341_v23 = vld [vmem:[#allocation5 + $0x20] sm:$0xff]  ;;  %v6144_v46 = vsel %vm12312_vm2, %v12324_v2, 0.0  ;;  %6202 = vrot.lane.b32.xlu0 %v6184_v7, %s13341_s29  ;;  %vm14617_vm9 = vmmov %vm14616_vm10  ;;  %vm14621_vm2 = vcmask 523520   ;;  %v5293_v51 = vld [vmem:[#allocation7 + $0x270] sm:$0xff] }
 0x3f9   : > { %3929 = vst.msk [vmem:[#allocation7 + $0x2a0] sm:$0xff] %vm14607_vm15, %v3861_v57  ;;  %vm14618_vm15 = vmmov %vm14617_vm9  ;;  %v14634_v37 = vld [vmem:[#allocation19_spill] sm:$0xff]  ;;  %v6271_v63 = vsel %vm12163_vm14, %v12324_v2, 0.0 }
 0x3fa   : > { %6462 = vst.msk [vmem:[#allocation8 + $0x20] sm:$0xff] %vm14616_vm10, %v6454_v40  ;;  %vm14619_vm5 = vmmov %vm14617_vm9  ;;  %vm14622_vm10 = vcmask 785920   ;;  %v729_v7 = vshra.s32 %v14634_v37, 3  ;;  %v8007_v40 = vld [vmem:[%s13049_s5 + $0xe8] sm:$0xff]  }
 0x3fb   : > { %6152 = vst.msk [vmem:[#allocation8 + $0x58] sm:$0xff] %vm14617_vm9, %v6144_v46  ;;  %v4602_v35 = vpop.permute.xlu1 %4601  ;;  %v5297_v54 = vld [vmem:[#allocation7 + $0x290] sm:$0xff]  ;;  %vm14620_vm3 = vmmov %vm14619_vm5  ;;  %v8008_v46 = vld [vmem:[%s13049_s5 + $0xa8] sm:$0xff]   ;;  %7749 = vmatprep.subr.bf16.mxu1 %v8007_v40 }
 0x3fc   : > { %6240 = vst.msk [vmem:[#allocation8 + $0x60] sm:$0xff] %vm14618_vm15, %v12341_v23  ;;  %v4824_v43 = vpop.permute.xlu0 %4823  ;;  %v5351_v58 = vpack.c.bf16 %v5297_v54, %v5294_v25  ;;  %6089 = vrot.lane.b32.xlu0 %v6071_v5, %s13341_s29  ;;  %vm14624_vm6 = vmmov %vm14622_vm10  ;;  %vm6109_vm15 = vcmask 1048064   ;;  %7750 = vmatpush3.bf16.msra.mxu1 %v8008_v46  ;;  %v721_v25 = vand.u32 7, %v14634_v37  ;;  %v12407_v54 = vand.u32 7, %v729_v7 }
 0x3fd   : > { %6040 = vst.msk [vmem:[#allocation8 + $0x78] sm:$0xff] %vm14619_vm5, %v6032_v60  ;;  %vm14623_vm5 = vmmov %vm14621_vm2 }
 0x3fe   : > { %6351 = vst.msk [vmem:[#allocation8 + $0x40] sm:$0xff] %vm14620_vm3, %v6343_v55  ;;  %5687 = vmatprep.mubr.bf16.mxu1 %v5351_v58  ;;  %vm14625_vm7 = vmmov %vm14624_vm6 }
 0x3ff   : > { %4668 = vst.msk [vmem:[#allocation7 + $0x2c0] sm:$0xff] %vm14621_vm2, %v4602_v35  ;;  %v3863_v8 = vpop.permute.xlu1 %3862  ;;  %v5296_v26 = vld [vmem:[#allocation7 + $0x288] sm:$0xff]  ;;  %vm14627_vm8 = vmmov %vm14624_vm6 }
 0x400   : > { %4891 = vst.msk [vmem:[#allocation7 + $0x2a8] sm:$0xff] %vm14622_vm10, %v4824_v43  ;;  %v4086_v36 = vpop.permute.xlu0 %4085  ;;  %v5350_v14 = vpack.c.bf16 %v5296_v26, %v5293_v51  ;;  %6398 = vrot.lane.b32.xlu0 %v6382_v53, %s13341_s29  ;;  %vm14628_vm9 = vmmov %vm14626_vm12  ;;  %v8010_v51 = vld [vmem:[%s13049_s5 + $0xa0] sm:$0xff]  }
 0x401   : > { %3930 = vst.msk [vmem:[#allocation7 + $0x2b8] sm:$0xff] %vm14623_vm5, %v3863_v8  ;;  %vm14629_vm3 = vmmov %vm14628_vm9  ;;  %v8009_v8 = vld [vmem:[%s13049_s5 + $0xe0] sm:$0xff]  }
 0x402   : > { %4154 = vst.msk [vmem:[#allocation7 + $0x2a0] sm:$0xff] %vm14624_vm6, %v4086_v36  ;;  %5688 = vmatmul.mubr.bf16.gmra.mxu1 %v5350_v14  ;;  %vm14631_vm2 = vmmov %vm14629_vm3  ;;  %7751 = vmatprep.subr.bf16.mxu1 %v8009_v8  ;;  %v14662_v8 = vld [vmem:[#allocation21_spill] sm:$0xff] }
 0x403   : > { %v4826_v30 = vpop.permute.xlu1 %4825  ;;  %vm14632_vm10 = vmmov %vm14630_vm4  ;;  %7752 = vmatpush3.bf16.msra.mxu1 %v8010_v51  ;;  %v730_v51 = vshra.s32 %v14662_v8, 3 }
 0x404   : > { %4892 = vst.msk [vmem:[#allocation7 + $0x2c0] sm:$0xff] %vm14625_vm7, %v4826_v30  ;;  %v5048_v15 = vpop.permute.xlu0 %5047  ;;  %6286 = vrot.lane.b32.xlu0 %v6270_v62, %s13341_s29  ;;  %vm14633_vm6 = vmmov %vm14623_vm5 }
 0x405   : > { %5115 = vst.msk [vmem:[#allocation7 + $0x2a8] sm:$0xff] %vm14626_vm12, %v5048_v15  ;;  %vm14635_vm12 = vmmov %vm14630_vm4  ;;  %v8011_v15 = vld [vmem:[%s13049_s5 + $0xd8] sm:$0xff]   ;;  %v12539_v30 = vand.u32 7, %v730_v51 }
 0x406   : > { %7753 = vmatprep.subr.bf16.mxu1 %v8011_v15 }
 0x407   : > { %v4088_v16 = vpop.permute.xlu1 %4087 }
 0x408   : > { %4155 = vst.msk [vmem:[#allocation7 + $0x2b8] sm:$0xff] %vm14627_vm8, %v4088_v16  ;;  %v4311_v56 = vpop.permute.xlu0 %4310  ;;  %vm14636_vm8 = vmmov %vm14625_vm7 }
 0x409   : > { %4379 = vst.msk [vmem:[#allocation7 + $0x2a0] sm:$0xff] %vm14628_vm9, %v4311_v56  ;;  %vm12413_vm9 = vcmp.le.s32.totalorder %v720_v4, 6 }
 0x40b   : > { %v5050_v49 = vpop.permute.xlu1 %5049 }
 0x40c   : > { %5116 = vst.msk [vmem:[#allocation7 + $0x2c0] sm:$0xff] %vm14629_vm3, %v5050_v49  ;;  %v5300_v10 = vld [vmem:[#allocation7 + $0x2a8] sm:$0xff]  ;;  %vm12425_vm3 = vcmp.ge.s32.totalorder %v721_v25, 1 }
 0x40d   : > { %v7627_v34 = vpop.f32.mrf.mxu1  ;;  %v6199_v50 = vpop.permute.xlu0 %6198 }
 0x40e   : > { %6222 = vst.msk [vmem:[#allocation8 + $0x8] sm:$0xff] %vm6109_vm15, %v6199_v50 }
 0x40f   : > { %v7628_v42 = vpop.f32.mrf.mxu1  ;;  %v4313_v45 = vpop.permute.xlu1 %4312 }
 0x410   : > { %v7629_v17 = vadd.f32 %v7628_v42, %v7627_v34  ;;  %4380 = vst.msk [vmem:[#allocation7 + $0x2b8] sm:$0xff] %vm14631_vm2, %v4313_v45  ;;  %v5299_v44 = vld [vmem:[#allocation7 + $0x2a0] sm:$0xff]  ;;  %vm12434_vm2 = vmand %vm750_vm0, %vm12163_vm14  ;;  %v8012_v42 = vld [vmem:[%s13049_s5 + $0x98] sm:$0xff]   ;;  %vm14659_vm14 = vcmask 523520  }
 0x411   : > { %v7630_v9 = vpop.f32.mrf.mxu1  ;;  %v6086_v20 = vpop.permute.xlu0 %6085  ;;  %7754 = vmatpush3.bf16.msra.mxu1 %v8012_v42 }
 0x412   : > { %v5795_v1 = vadd.f32 %v7629_v17, %v5794_v48  ;;  %6110 = vst.msk [vmem:[#allocation8] sm:$0xff] %vm6109_vm15, %v6086_v20  ;;  %7755 = vmatprep.subr.bf16.mxu1 %v8013_v24  ;;  %v8016_v20 = vld [vmem:[%s13049_s5 + $0x88] sm:$0xff]  }
 0x413   : > { %v7631_v32 = vpop.f32.mrf.mxu1  ;;  %v5303_v33 = vld [vmem:[#allocation7 + $0x2c0] sm:$0xff] }
 0x414   : > { %5886 = vst.msk [vmem:[#allocation4 + $0x60] sm:$0xff] %vm14630_vm4, %v5795_v1  ;;  %v7632_v38 = vadd.f32 %v7631_v32, %v7630_v9  ;;  %v5354_v3 = vpack.c.bf16 %v5303_v33, %v5300_v10  ;;  %vm745_vm4 = vcmp.ge.s32.totalorder %v12407_v54, 1  ;;  %v8014_v1 = vld [vmem:[%s13049_s5 + $0x90] sm:$0xff]   ;;  %v8015_v32 = vld [vmem:[%s13049_s5 + $0xc8] sm:$0xff]  }
 0x415   : > { %v4604_v52 = vpop.permute.xlu0 %4603  ;;  %7756 = vmatpush3.bf16.msra.mxu1 %v8014_v1  ;;  %v6471_v7 = vld [vmem:[#allocation8 + $0x8] sm:$0xff] }
 0x416   : > { %v5798_v31 = vadd.f32 %v7632_v38, %v5797_v28  ;;  %4669 = vst.msk [vmem:[#allocation7 + $0x2d8] sm:$0xff] %vm14623_vm5, %v4604_v52  ;;  %5695 = vmatprep.mubr.bf16.mxu1 %v5354_v3  ;;  %vm14643_vm5 = vcmp.ge.s32.totalorder %v12279_v12, 1  ;;  %v6383_v38 = vsel %vm750_vm0, %v12341_v23, 0.0  ;;  %7757 = vmatprep.subr.bf16.mxu1 %v8015_v32  ;;  %v8017_v28 = vld [vmem:[%s13049_s5 + $0xc0] sm:$0xff]  }
 0x417   : > { %v5302_v57 = vld [vmem:[#allocation7 + $0x2b8] sm:$0xff] }
 0x418   : > { %5887 = vst.msk [vmem:[#allocation4 + $0x68] sm:$0xff] %vm14632_vm10, %v5798_v31  ;;  %v5353_v19 = vpack.c.bf16 %v5302_v57, %v5299_v44  ;;  %vm751_vm10 = vcmp.le.s32.totalorder %v12153_v41, 6 }
 0x419   : > { %v3865_v59 = vpop.permute.xlu0 %3864  ;;  %7758 = vmatpush3.bf16.msra.mxu1 %v8016_v20 }
 0x41a   : > { %3931 = vst.msk [vmem:[#allocation7 + $0x2d0] sm:$0xff] %vm14633_vm6, %v3865_v59  ;;  %5696 = vmatmul.mubr.bf16.gmra.mxu1 %v5353_v19  ;;  %vm12443_vm6 = vmand %vm14643_vm5, %vm12413_vm9  ;;  %7759 = vmatprep.subr.bf16.mxu1 %v8017_v28 }
 0x41d   : > { %v4828_v35 = vpop.permute.xlu0 %4827  ;;  %7760 = vmatpush3.bf16.msra.mxu1 %v8018_v13 }
 0x41e   : > { %4893 = vst.msk [vmem:[#allocation7 + $0x2d8] sm:$0xff] %vm14625_vm7, %v4828_v35  ;;  %vm14646_vm7 = vcmask 1048320  }
 0x41f   : > { %v5946_v60 = vld [vmem:[#allocation4 + $0x60] ss:$2 sm:$0xff]  ;;  %vm14652_vm5 = vmmov %vm14646_vm7 }
 0x420   : > { %v5954_v55 = vadd.f32 %v11975_v61, %v5946_v60  ;;  %v6470_v60 = vld [vmem:[#allocation8] sm:$0xff] }
 0x421   : > { %v4090_v5 = vpop.permute.xlu0 %4089 }
 0x422   : > { %v5955_v43 = vmax.f32 %v5954_v55, 0.0  ;;  %4156 = vst.msk [vmem:[#allocation7 + $0x2d0] sm:$0xff] %vm14636_vm8, %v4090_v5  ;;  %vm12463_vm8 = vmand %vm751_vm10, %vm12172_vm11  ;;  %vm14651_vm11 = vcmask 523264   ;;  %v12533_v5 = vld [vmem:[%s13048_s4] ss:$0 sm:$0xff] }
 0x423   : > { %v7633_v58 = vpop.f32.mrf.mxu1 }
 0x424   : > { %5956 = vst.msk [vmem:[#allocation5 + $0x28] sm:$0xff] %vm14635_vm12, %v5955_v43  ;;  %vm12452_vm12 = vmand %vm745_vm4, %vm12425_vm3 }
 0x425   : > { %v7634_v21 = vpop.f32.mrf.mxu1  ;;  %v5052_v36 = vpop.permute.xlu0 %5051 }
 0x426   : > { %5117 = vst.msk [vmem:[#allocation7 + $0x2d8] sm:$0xff] %vm14646_vm7, %v5052_v36  ;;  %vm14653_vm7 = vmmov %vm14651_vm11 }
 0x427   : > { %v7636_v14 = vpop.f32.mrf.mxu1 }
 0x428   : > { %v722_v14 = vand.u32 7, %v14662_v8 }
 0x429   : > { %v7637_v29 = vpop.f32.mrf.mxu1  ;;  %v4315_v34 = vpop.permute.xlu0 %4314 }
 0x42a   : > { %4381 = vst.msk [vmem:[#allocation7 + $0x2d0] sm:$0xff] %vm14652_vm5, %v4315_v34  ;;  %vm14661_vm5 = vmmov %vm14659_vm14 }
 0x42b   : > { %v6161_v16 = vld [vmem:[#allocation5 + $0x27] sm:$0xff] }
 0x42c   : > { %v12467_v56 = vld [vmem:[#allocation5 + $0x21] sm:$0xff]  ;;  %v6185_v49 = vsel %vm12292_vm1, %v6161_v16, 0.0  ;;  %v6033_v17 = vsel %vm12452_vm12, %v6161_v16, 0.0  ;;  %v6344_v9 = vsel %vm12463_vm8, %v6161_v16, 0.0  ;;  %vm14657_vm12 = vcmp.ge.s32.totalorder %v12279_v12, 1  ;;  %v8019_v16 = vld [vmem:[%s13049_s5 + $0x118] sm:$0xff]  }
 0x42d   : > { %v12469_v48 = vld [vmem:[#allocation5 + $0x28] sm:$0xff]  ;;  %v6455_v22 = vsel %vm12434_vm2, %v12467_v56, 0.0  ;;  %6204 = vrot.lane.b32.xlu1 %v6185_v49, %s13341_s29  ;;  %v6145_v50 = vsel %vm12443_vm6, %v12467_v56, 0.0  ;;  %vm14654_vm2 = vmmov %vm14653_vm7  ;;  %v6072_v45 = vsel %vm14657_vm12, %v12341_v23, 0.0  ;;  %v5810_v23 = vpop.f32.mrf.mxu0  ;;  %vm12551_vm12 = vcmp.ge.s32.totalorder %v722_v14, 1  ;;  %v5306_v32 = vld [vmem:[#allocation7 + $0x2d8] sm:$0xff]  ;;  %7875 = vmatprep.subr.bf16.mxu0 %v8019_v16 }
 0x42e   : > { %6241 = vst.msk [vmem:[#allocation8 + $0x88] sm:$0xff] %vm14651_vm11, %v12469_v48  ;;  %vm14655_vm11 = vmmov %vm14654_vm2  ;;  %v6073_v18 = vsel %vm745_vm4, %v12469_v48, 0.0 }
 0x42f   : > { %6463 = vst.msk [vmem:[#allocation8 + $0x48] sm:$0xff] %vm14653_vm7, %v6455_v22  ;;  %vm14656_vm6 = vmmov %vm14654_vm2  ;;  %v7862_v3 = vpop.f32.mrf.mxu0  ;;  %vm14663_vm7 = vcmask 785920  }
 0x430   : > { %6153 = vst.msk [vmem:[#allocation8 + $0x80] sm:$0xff] %vm14654_vm2, %v6145_v50  ;;  %vm14658_vm0 = vmmov %vm14654_vm2  ;;  %v6272_v3 = vsel %vm12286_vm13, %v12467_v56, 0.0 }
 0x431   : > { %6041 = vst.msk [vmem:[#allocation8 + $0xa0] sm:$0xff] %vm14655_vm11, %v6033_v17  ;;  %6091 = vrot.lane.b32.xlu1 %v6072_v45, %s13341_s29  ;;  %v5813_v2 = vpop.f32.mrf.mxu0  ;;  %vm14660_vm8 = vmmov %vm14658_vm0 }
 0x432   : > { %6352 = vst.msk [vmem:[#allocation8 + $0x68] sm:$0xff] %vm14656_vm6, %v6344_v9  ;;  %vm14664_vm2 = vmmov %vm14663_vm7  ;;  %vm12545_vm6 = vcmp.le.s32.totalorder %v721_v25, 6 }
 0x433   : > { %vm14665_vm11 = vmmov %vm14658_vm0 }
 0x435   : > { %6400 = vrot.lane.b32.xlu1 %v6383_v38, %s13341_s29 }
 0x439   : > { %6288 = vrot.lane.b32.xlu1 %v6271_v63, %s13341_s29 }
 0x43a   : > { %v6201_v10 = vpop.permute.xlu1 %6200 }
 0x43b   : > { %v7639_v31 = vpop.f32.mrf.mxu1  ;;  %6223 = vst.msk [vmem:[#allocation8 + $0x30] sm:$0xff] %vm6109_vm15, %v6201_v10 }
 0x43d   : > { %v7640_v33 = vpop.f32.mrf.mxu1 }
 0x43e   : > { %v7641_v52 = vadd.f32 %v7640_v33, %v7639_v31  ;;  %v6088_v44 = vpop.permute.xlu1 %6087  ;;  %v6384_v33 = vsel %vm751_vm10, %v12469_v48, 0.0 }
 0x43f   : > { %v7642_v39 = vpop.f32.mrf.mxu1  ;;  %6111 = vst.msk [vmem:[#allocation8 + $0x28] sm:$0xff] %vm6109_vm15, %v6088_v44 }
 0x440   : > { %v5811_v27 = vadd.f32 %v7641_v52, %v5810_v23  ;;  %v5305_v23 = vld [vmem:[#allocation7 + $0x2d0] sm:$0xff]  ;;  %v7865_v52 = vpop.f32.mrf.mxu0 }
 0x441   : > { %v7643_v57 = vpop.f32.mrf.mxu1 }
 0x442   : > { %5890 = vst.msk [vmem:[#allocation4 + $0x80] sm:$0xff] %vm14658_vm0, %v5811_v27  ;;  %v7644_v47 = vadd.f32 %v7643_v57, %v7642_v39  ;;  %v4606_v19 = vpop.permute.xlu1 %4605  ;;  %v6476_v40 = vld [vmem:[#allocation8 + $0x30] sm:$0xff]  ;;  %vm13336_vm0 = vcmp.ge.s32.totalorder %v12539_v30, 1  ;;  %v5826_v39 = vpop.f32.mrf.mxu0 }
 0x443   : > { %4670 = vst.msk [vmem:[#allocation7 + $0x2f0] sm:$0xff] %vm14659_vm14, %v4606_v19  ;;  %v6511_v46 = vpack.c.bf16 %v6476_v40, %v6471_v7  ;;  %vm14670_vm14 = vcmask 1048320  }
 0x444   : > { %v5814_v59 = vadd.f32 %v7644_v47, %v5813_v2  ;;  %v7866_v2 = vpop.f32.mrf.mxu0 }
 0x445   : > { %6869 = vmatprep.mubr.bf16.mxu0 %v6511_v46 }
 0x446   : > { %5891 = vst.msk [vmem:[#allocation4 + $0x88] sm:$0xff] %vm14660_vm8, %v5814_v59  ;;  %v3867_v55 = vpop.permute.xlu1 %3866  ;;  %v6475_v35 = vld [vmem:[#allocation8 + $0x28] sm:$0xff]  ;;  %vm12561_vm8 = vmand %vm751_vm10, %vm12286_vm13  ;;  %v5829_v6 = vpop.f32.mrf.mxu0 }
 0x447   : > { %3932 = vst.msk [vmem:[#allocation7 + $0x2e8] sm:$0xff] %vm14661_vm5, %v3867_v55  ;;  %v6510_v43 = vpack.c.bf16 %v6475_v35, %v6470_v60  ;;  %vm13337_vm5 = vcmp.le.s32.totalorder %v12279_v12, 6  ;;  %v14686_v60 = vld [vmem:[#allocation23_spill] sm:$0xff]  ;;  %v14687_v35 = vld [vmem:[#allocation20_spill] sm:$0xff] }
 0x448   : > { %v732_v55 = vshra.s32 %v14686_v60, 3  ;;  %v724_v51 = vand.u32 7, %v14686_v60 }
 0x449   : > { %6870 = vmatmul.mubr.bf16.vlgmr.msra.gmra.mxu0 %v6510_v43  ;;  %v731_v43 = vshra.s32 %v14687_v35, 3 }
 0x44a   : > { %v4830_v58 = vpop.permute.xlu1 %4829  ;;  %7876 = vmatpush3.bf16.msra.mxu0 %v8019_v16 }
 0x44b   : > { %4894 = vst.msk [vmem:[#allocation7 + $0x2f0] sm:$0xff] %vm14663_vm7, %v4830_v58  ;;  %vm12570_vm7 = vmand %vm745_vm4, %vm12545_vm6 }
 0x44d   : > { %v5958_v21 = vld [vmem:[#allocation4 + $0x80] ss:$2 sm:$0xff] }
 0x44e   : > { %v5966_v4 = vadd.f32 %v12533_v5, %v5958_v21  ;;  %v4092_v53 = vpop.permute.xlu1 %4091  ;;  %v12635_v21 = vand.u32 7, %v732_v55 }
 0x44f   : > { %4157 = vst.msk [vmem:[#allocation7 + $0x2e8] sm:$0xff] %vm14664_vm2, %v4092_v53  ;;  %vm12578_vm2 = vmand %vm13336_vm0, %vm12551_vm12 }
 0x450   : > { %v5967_v36 = vmax.f32 %v5966_v4, 0.0  ;;  %vm13338_vm10 = vcmp.le.s32.totalorder %v12635_v21, 6 }
 0x452   : > { %5968 = vst.msk [vmem:[#allocation5 + $0x30] sm:$0xff] %vm14665_vm11, %v5967_v36  ;;  %v5054_v29 = vpop.permute.xlu1 %5053  ;;  %vm12586_vm11 = vmand %vm13337_vm5, %vm12292_vm1  ;;  %vm14679_vm1 = vcmask 523264  }
 0x453   : > { %v7645_v15 = vpop.f32.mrf.mxu1  ;;  %5118 = vst.msk [vmem:[#allocation7 + $0x2f0] sm:$0xff] %vm14670_vm14, %v5054_v29  ;;  %vm14680_vm0 = vmmov %vm14679_vm1  ;;  %v12646_v29 = vand.u32 7, %v731_v43 }
 0x454   : > { %vm14682_vm5 = vmmov %vm14680_vm0  ;;  %v723_v15 = vand.u32 7, %v14687_v35 }
 0x455   : > { %v7646_v34 = vpop.f32.mrf.mxu1  ;;  %vm14684_vm4 = vmmov %vm14680_vm0 }
 0x456   : > { %v4317_v42 = vpop.permute.xlu1 %4316  ;;  %vm14685_vm13 = vmmov %vm14680_vm0  ;;  %v6437_v34 = vld [vmem:[#allocation5 + $0x51] sm:$0xff] }
 0x457   : > { %v7648_v49 = vpop.f32.mrf.mxu1  ;;  %4382 = vst.msk [vmem:[#allocation7 + $0x2e8] sm:$0xff] %vm14670_vm14, %v4317_v42  ;;  %vm14681_vm14 = vmmov %vm14680_vm0 }
 0x459   : > { %v7649_v17 = vpop.f32.mrf.mxu1  ;;  %v6162_v24 = vld [vmem:[#allocation5 + $0x2f] sm:$0xff] }
 0x45a   : > { %v12591_v9 = vld [vmem:[#allocation5 + $0x29] sm:$0xff]  ;;  %v6186_v45 = vsel %vm12425_vm3, %v6162_v24, 0.0  ;;  %v6034_v38 = vsel %vm12578_vm2, %v6162_v24, 0.0  ;;  %v6345_v13 = vsel %vm12586_vm11, %v6162_v24, 0.0  ;;  %vm12655_vm2 = vcmp.le.s32.totalorder %v722_v14, 6 }
 0x45b   : > { %v12593_v1 = vld [vmem:[#allocation5 + $0x30] sm:$0xff]  ;;  %v6456_v11 = vsel %vm12561_vm8, %v12591_v9, 0.0  ;;  %6206 = vrot.lane.b32.xlu0 %v6186_v45, %s13341_s29  ;;  %v6146_v20 = vsel %vm12570_vm7, %v12591_v9, 0.0  ;;  %6042 = vst.msk [vmem:[#allocation8 + $0xc8] sm:$0xff] %vm14682_vm5, %v6034_v38  ;;  %vm14683_vm8 = vmmov %vm14680_vm0  ;;  %vm12661_vm11 = vcmp.ge.s32.totalorder %v723_v15, 1 }
 0x45c   : > { %6242 = vst.msk [vmem:[#allocation8 + $0xb0] sm:$0xff] %vm14679_vm1, %v12593_v1  ;;  %v5309_v28 = vld [vmem:[#allocation7 + $0x2f0] sm:$0xff]  ;;  %vm14690_vm5 = vmmov %vm14679_vm1  ;;  %vm13339_vm1 = vcmp.ge.s32.totalorder %v12646_v29, 1 }
 0x45d   : > { %6464 = vst.msk [vmem:[#allocation8 + $0x70] sm:$0xff] %vm14680_vm0, %v6456_v11  ;;  %v5357_v63 = vpack.c.bf16 %v5309_v28, %v5306_v32  ;;  %vm12641_vm0 = vcmp.le.s32.totalorder %v724_v51, 6 }
 0x45e   : > { %6154 = vst.msk [vmem:[#allocation8 + $0xa8] sm:$0xff] %vm14681_vm14, %v6146_v20  ;;  %v5308_v31 = vld [vmem:[#allocation7 + $0x2e8] sm:$0xff]  ;;  %vm804_vm7 = vmand %vm13338_vm10, %vm12641_vm0 }
 0x45f   : > { %6353 = vst.msk [vmem:[#allocation8 + $0x90] sm:$0xff] %vm14683_vm8, %v6345_v13  ;;  %6093 = vrot.lane.b32.xlu0 %v6073_v18, %s13341_s29  ;;  %5703 = vmatprep.mubr.bf16.mxu1 %v5357_v63  ;;  %v5356_v10 = vpack.c.bf16 %v5308_v31, %v5305_v23  ;;  %v6461_v25 = vsel %vm804_vm7, %v6437_v34, 0.0  ;;  %vm14695_vm14 = vmmov %vm14684_vm4  ;;  %vm14696_vm8 = vcmp.le.s32.totalorder %v12279_v12, 6  ;;  %v6273_v23 = vsel %vm12413_vm9, %v12591_v9, 0.0  ;;  %v7869_v31 = vpop.f32.mrf.mxu0 }
 0x460   : > { %6469 = vst.msk [vmem:[#allocation8 + $0x138] sm:$0xff] %vm14695_vm14, %v6461_v25  ;;  %vm12684_vm14 = vmand %vm13339_vm1, %vm12661_vm11 }
 0x461   : > { %5704 = vmatmul.mubr.bf16.gmra.mxu1 %v5356_v10  ;;  %v5842_v10 = vpop.f32.mrf.mxu0 }
 0x463   : > { %6402 = vrot.lane.b32.xlu0 %v6384_v33, %s13341_s29 }
 0x467   : > { %6290 = vrot.lane.b32.xlu0 %v6272_v3, %s13341_s29 }
 0x46a   : > { %v6203_v57 = vpop.permute.xlu0 %6202 }
 0x46b   : > { %v7651_v27 = vpop.f32.mrf.mxu1  ;;  %6224 = vst.msk [vmem:[#allocation8 + $0x58] sm:$0xff] %vm6109_vm15, %v6203_v57 }
 0x46d   : > { %v7652_v44 = vpop.f32.mrf.mxu1 }
 0x46e   : > { %v7653_v47 = vadd.f32 %v7652_v44, %v7651_v27  ;;  %v6090_v19 = vpop.permute.xlu0 %6089  ;;  %v7870_v27 = vpop.f32.mrf.mxu0 }
 0x46f   : > { %v7654_v41 = vpop.f32.mrf.mxu1  ;;  %6112 = vst.msk [vmem:[#allocation8 + $0x50] sm:$0xff] %vm6109_vm15, %v6090_v19 }
 0x470   : > { %v5827_v48 = vadd.f32 %v7653_v47, %v5826_v39  ;;  %v5845_v9 = vpop.f32.mrf.mxu0 }
 0x471   : > { %v7655_v59 = vpop.f32.mrf.mxu1 }
 0x472   : > { %5894 = vst.msk [vmem:[#allocation4 + $0xa0] sm:$0xff] %vm14684_vm4, %v5827_v48  ;;  %v7656_v7 = vadd.f32 %v7655_v59, %v7654_v41  ;;  %v6399_v40 = vpop.permute.xlu0 %6398  ;;  %vm12671_vm4 = vmand %vm14696_vm8, %vm12413_vm9  ;;  %v6481_v41 = vld [vmem:[#allocation8 + $0x58] sm:$0xff] }
 0x473   : > { %6422 = vst.msk [vmem:[#allocation8 + $0x18] sm:$0xff] %vm6109_vm15, %v6399_v40 }
 0x474   : > { %v5830_v56 = vadd.f32 %v7656_v7, %v5829_v6 }
 0x476   : > { %5895 = vst.msk [vmem:[#allocation4 + $0xa8] sm:$0xff] %vm14685_vm13, %v5830_v56  ;;  %v6287_v46 = vpop.permute.xlu0 %6286  ;;  %vm753_vm13 = vcmp.le.s32.totalorder %v12407_v54, 6  ;;  %v6480_v7 = vld [vmem:[#allocation8 + $0x50] sm:$0xff] }
 0x477   : > { %6310 = vst.msk [vmem:[#allocation8 + $0x10] sm:$0xff] %vm6109_vm15, %v6287_v46  ;;  %vm12692_vm8 = vmand %vm753_vm13, %vm12425_vm3 }
 0x47a   : > { %v6473_v40 = vld [vmem:[#allocation8 + $0x18] sm:$0xff] }
 0x47d   : > { %v5970_v58 = vld [vmem:[#allocation4 + $0xa0] ss:$2 sm:$0xff] }
 0x47e   : > { %v5978_v4 = vadd.f32 %v12533_v5, %v5970_v58 }
 0x480   : > { %v5979_v53 = vmax.f32 %v5978_v4, 0.0 }
 0x482   : > { %5980 = vst.msk [vmem:[#allocation5 + $0x38] sm:$0xff] %vm14690_vm5, %v5979_v53  ;;  %vm14699_vm5 = vcmp.ge.s32.totalorder %v12539_v30, 1  ;;  %v6472_v53 = vld [vmem:[#allocation8 + $0x10] sm:$0xff] }
 0x483   : > { %vm786_vm7 = vmand %vm14699_vm5, %vm12655_vm2  ;;  %vm14704_vm5 = vcmask 523264  }
 0x484   : > { %vm14705_vm3 = vmmov %vm14704_vm5 }
 0x485   : > { %vm14706_vm10 = vmmov %vm14705_vm3 }
 0x486   : > { %v7657_v49 = vpop.f32.mrf.mxu1  ;;  %vm14707_vm1 = vmmov %vm14705_vm3 }
 0x487   : > { %vm14712_vm9 = vmmov %vm14707_vm1 }
 0x488   : > { %v7658_v14 = vpop.f32.mrf.mxu1 }
 0x489   : > { %v6163_v24 = vld [vmem:[#allocation5 + $0x37] sm:$0xff] }
 0x48a   : > { %v7660_v50 = vpop.f32.mrf.mxu1  ;;  %v12696_v45 = vld [vmem:[#allocation5 + $0x31] sm:$0xff]  ;;  %v6187_v20 = vsel %vm12551_vm12, %v6163_v24, 0.0  ;;  %v6035_v28 = vsel %vm12684_vm14, %v6163_v24, 0.0  ;;  %v6346_v13 = vsel %vm12692_vm8, %v6163_v24, 0.0  ;;  %vm12739_vm14 = vcmp.le.s32.totalorder %v723_v15, 6 }
 0x48b   : > { %v12698_v32 = vld [vmem:[#allocation5 + $0x38] sm:$0xff]  ;;  %v6457_v38 = vsel %vm12671_vm4, %v12696_v45, 0.0  ;;  %6208 = vrot.lane.b32.xlu1 %v6187_v20, %s13341_s29  ;;  %v6147_v26 = vsel %vm786_vm7, %v12696_v45, 0.0  ;;  %6043 = vst.msk [vmem:[#allocation8 + $0xf0] sm:$0xff] %vm14707_vm1, %v6035_v28  ;;  %vm14708_vm4 = vmmov %vm14707_vm1  ;;  %vm14710_vm7 = vcmp.le.s32.totalorder %v12279_v12, 6  ;;  %vm12745_vm8 = vcmp.ge.s32.totalorder %v724_v51, 1 }
 0x48c   : > { %v7661_v11 = vpop.f32.mrf.mxu1  ;;  %6243 = vst.msk [vmem:[#allocation8 + $0xd8] sm:$0xff] %vm14704_vm5, %v12698_v32  ;;  %vm14709_vm5 = vcmp.ge.s32.totalorder %v12539_v30, 1  ;;  %v6385_v18 = vsel %vm14710_vm7, %v12593_v1, 0.0  ;;  %vm14717_vm7 = vcmp.ge.s32.totalorder %v12646_v29, 1  ;;  %v8022_v51 = vld [vmem:[%s13049_s5 + $0x100] sm:$0xff]  }
 0x48d   : > { %6465 = vst.msk [vmem:[#allocation8 + $0x98] sm:$0xff] %vm14705_vm3, %v6457_v38  ;;  %v6074_v63 = vsel %vm14709_vm5, %v12593_v1, 0.0  ;;  %vm13340_vm3 = vcmp.ge.s32.totalorder %v12635_v21, 1  ;;  %vm754_vm5 = vcmp.le.s32.totalorder %v12539_v30, 6 }
 0x48e   : > { %6155 = vst.msk [vmem:[#allocation8 + $0xd0] sm:$0xff] %vm14706_vm10, %v6147_v26  ;;  %vm14711_vm10 = vmmov %vm14707_vm1  ;;  %v6386_v26 = vsel %vm753_vm13, %v12698_v32, 0.0 }
 0x48f   : > { %6354 = vst.msk [vmem:[#allocation8 + $0xb8] sm:$0xff] %vm14708_vm4, %v6346_v13  ;;  %6095 = vrot.lane.b32.xlu1 %v6074_v63, %s13341_s29  ;;  %vm801_vm4 = vmand %vm753_vm13, %vm12545_vm6  ;;  %v6274_v63 = vsel %vm12545_vm6, %v12696_v45, 0.0 }
 0x493   : > { %6404 = vrot.lane.b32.xlu1 %v6385_v18, %s13341_s29 }
 0x497   : > { %6292 = vrot.lane.b32.xlu1 %v6273_v23, %s13341_s29 }
 0x49e   : > { %v7663_v33 = vpop.f32.mrf.mxu1 }
 0x49f   : > { %v6205_v52 = vpop.permute.xlu1 %6204 }
 0x4a0   : > { %6225 = vst.msk [vmem:[#allocation8 + $0x80] sm:$0xff] %vm6109_vm15, %v6205_v52  ;;  %v7664_v3 = vpop.f32.mrf.mxu1 }
 0x4a1   : > { %v7665_v39 = vadd.f32 %v7664_v3, %v7663_v33 }
 0x4a2   : > { %v7666_v44 = vpop.f32.mrf.mxu1 }
 0x4a3   : > { %v5843_v12 = vadd.f32 %v7665_v39, %v5842_v10  ;;  %v6092_v1 = vpop.permute.xlu1 %6091 }
 0x4a4   : > { %6113 = vst.msk [vmem:[#allocation8 + $0x78] sm:$0xff] %vm6109_vm15, %v6092_v1  ;;  %v7667_v57 = vpop.f32.mrf.mxu1 }
 0x4a5   : > { %5898 = vst.msk [vmem:[#allocation4 + $0xc0] sm:$0xff] %vm14711_vm10, %v5843_v12  ;;  %v7668_v61 = vadd.f32 %v7667_v57, %v7666_v44  ;;  %vm12759_vm10 = vmand %vm14717_vm7, %vm12739_vm14  ;;  %vm14724_vm7 = vcmask 523264  }
 0x4a7   : > { %v5846_v47 = vadd.f32 %v7668_v61, %v5845_v9  ;;  %v6401_v2 = vpop.permute.xlu1 %6400  ;;  %v6486_v48 = vld [vmem:[#allocation8 + $0x80] sm:$0xff] }
 0x4a8   : > { %6423 = vst.msk [vmem:[#allocation8 + $0x40] sm:$0xff] %vm6109_vm15, %v6401_v2  ;;  %v6516_v59 = vpack.c.bf16 %v6486_v48, %v6481_v41  ;;  %v8020_v41 = vld [vmem:[%s13049_s5 + $0x110] sm:$0xff]   ;;  %v6474_v48 = vld [vmem:[#allocation8 + $0x20] sm:$0xff] }
 0x4a9   : > { %5899 = vst.msk [vmem:[#allocation4 + $0xc8] sm:$0xff] %vm14712_vm9, %v5846_v47  ;;  %vm12767_vm9 = vmand %vm13340_vm3, %vm12745_vm8  ;;  %7877 = vmatprep.subr.bf16.mxu0 %v8020_v41 }
 0x4aa   : > { %6877 = vmatprep.mubr.bf16.mxu0 %v6516_v59  ;;  %7878 = vmatpush3.bf16.msra.mxu0 %v8020_v41 }
 0x4ab   : > { %v6289_v19 = vpop.permute.xlu1 %6288  ;;  %v6485_v6 = vld [vmem:[#allocation8 + $0x78] sm:$0xff] }
 0x4ac   : > { %6311 = vst.msk [vmem:[#allocation8 + $0x38] sm:$0xff] %vm6109_vm15, %v6289_v19  ;;  %v6515_v56 = vpack.c.bf16 %v6485_v6, %v6480_v7  ;;  %v8021_v19 = vld [vmem:[%s13049_s5 + $0x108] sm:$0xff]  }
 0x4ad   : > { %7879 = vmatprep.subr.bf16.mxu0 %v8021_v19 }
 0x4ae   : > { %6878 = vmatmul.mubr.bf16.gmra.mxu0 %v6515_v56 }
 0x4af   : > { %v6478_v46 = vld [vmem:[#allocation8 + $0x40] sm:$0xff]  ;;  %7880 = vmatpush3.bf16.msra.mxu0 %v8021_v19 }
 0x4b0   : > { %v5982_v55 = vld [vmem:[#allocation4 + $0xc0] ss:$2 sm:$0xff]  ;;  %v6513_v43 = vpack.c.bf16 %v6478_v46, %v6473_v40  ;;  %7881 = vmatprep.subr.bf16.mxu0 %v8022_v51 }
 0x4b1   : > { %v5990_v58 = vadd.f32 %v12533_v5, %v5982_v55 }
 0x4b2   : > { %6934 = vmatprep.mubr.bf16.mxu1 %v6513_v43 }
 0x4b3   : > { %v5991_v4 = vmax.f32 %v5990_v58, 0.0  ;;  %v6477_v34 = vld [vmem:[#allocation8 + $0x38] sm:$0xff]  ;;  %7882 = vmatpush3.bf16.msra.mxu0 %v8022_v51 }
 0x4b4   : > { %v6512_v25 = vpack.c.bf16 %v6477_v34, %v6472_v53 }
 0x4b5   : > { %5992 = vst.msk [vmem:[#allocation5 + $0x40] sm:$0xff] %vm14707_vm1, %v5991_v4  ;;  %vm12775_vm1 = vmand %vm754_vm5, %vm12551_vm12 }
 0x4b6   : > { %6935 = vmatmul.mubr.bf16.vlgmr.msra.gmra.mxu1 %v6512_v25  ;;  %vm14725_vm12 = vmmov %vm14724_vm7 }
 0x4bc   : > { %v6164_v15 = vld [vmem:[#allocation5 + $0x3f] sm:$0xff] }
 0x4bd   : > { %v12779_v14 = vld [vmem:[#allocation5 + $0x39] sm:$0xff]  ;;  %v6188_v50 = vsel %vm12661_vm11, %v6164_v15, 0.0  ;;  %v6036_v11 = vsel %vm12767_vm9, %v6164_v15, 0.0  ;;  %v6347_v20 = vsel %vm12775_vm1, %v6164_v15, 0.0  ;;  %vm12839_vm1 = vmand %vm754_vm5, %vm12655_vm2 }
 0x4be   : > { %v12781_v42 = vld [vmem:[#allocation5 + $0x40] sm:$0xff]  ;;  %v6458_v17 = vsel %vm801_vm4, %v12779_v14, 0.0  ;;  %6210 = vrot.lane.b32.xlu0 %v6188_v50, %s13341_s29  ;;  %v6148_v24 = vsel %vm12759_vm10, %v12779_v14, 0.0  ;;  %vm14726_vm4 = vmmov %vm14724_vm7 }
 0x4bf   : > { %6244 = vst.msk [vmem:[#allocation8 + $0x100] sm:$0xff] %vm14724_vm7, %v12781_v42  ;;  %vm14727_vm3 = vmmov %vm14726_vm4  ;;  %v6387_v50 = vsel %vm754_vm5, %v12781_v42, 0.0 }
 0x4c0   : > { %6466 = vst.msk [vmem:[#allocation8 + $0xc0] sm:$0xff] %vm14725_vm12, %v6458_v17  ;;  %vm14728_vm7 = vmmov %vm14727_vm3  ;;  %vm14729_vm12 = vcmp.ge.s32.totalorder %v12646_v29, 1 }
 0x4c1   : > { %6156 = vst.msk [vmem:[#allocation8 + $0xf8] sm:$0xff] %vm14726_vm4, %v6148_v24  ;;  %v6075_v38 = vsel %vm14729_vm12, %v12698_v32, 0.0  ;;  %v7873_v32 = vpop.f32.mrf.mxu0  ;;  %vm14730_vm6 = vmmov %vm14727_vm3 }
 0x4c2   : > { %6044 = vst.msk [vmem:[#allocation8 + $0x118] sm:$0xff] %vm14727_vm3, %v6036_v11  ;;  %6097 = vrot.lane.b32.xlu0 %v6075_v38, %s13341_s29  ;;  %v7669_v28 = vpop.f32.mrf.mxu1  ;;  %vm14731_vm13 = vmmov %vm14727_vm3  ;;  %vm755_vm3 = vcmp.le.s32.totalorder %v12646_v29, 6  ;;  %v6365_v11 = vld [vmem:[#allocation5 + $0x50] sm:$0xff] }
 0x4c3   : > { %6355 = vst.msk [vmem:[#allocation8 + $0xe0] sm:$0xff] %vm14728_vm7, %v6347_v20  ;;  %v5858_v52 = vpop.f32.mrf.mxu0  ;;  %vm14732_vm10 = vmmov %vm14726_vm4  ;;  %vm14737_vm4 = vcmp.ge.s32.totalorder %v12635_v21, 1  ;;  %v6275_v20 = vsel %vm12655_vm2, %v12779_v14, 0.0 }
 0x4c4   : > { %v7670_v13 = vpop.f32.mrf.mxu1  ;;  %vm12831_vm9 = vmand %vm755_vm3, %vm12739_vm14  ;;  %v6076_v35 = vsel %vm14737_vm4, %v12781_v42, 0.0 }
 0x4c5   : > { %v7874_v39 = vpop.f32.mrf.mxu0  ;;  %vm12847_vm7 = vmand %vm14737_vm4, %vm12641_vm0 }
 0x4c6   : > { %6406 = vrot.lane.b32.xlu0 %v6386_v26, %s13341_s29  ;;  %v7672_v18 = vpop.f32.mrf.mxu1  ;;  %vm12858_vm12 = vmand %vm755_vm3, %vm12661_vm11 }
 0x4c7   : > { %v5861_v57 = vpop.f32.mrf.mxu0  ;;  %vm14745_vm11 = vmmov %vm14732_vm10 }
 0x4c8   : > { %v7673_v23 = vpop.f32.mrf.mxu1 }
 0x4ca   : > { %6294 = vrot.lane.b32.xlu0 %v6274_v63, %s13341_s29 }
 0x4cd   : > { %v6207_v31 = vpop.permute.xlu0 %6206 }
 0x4ce   : > { %6226 = vst.msk [vmem:[#allocation8 + $0xa8] sm:$0xff] %vm6109_vm15, %v6207_v31 }
 0x4d1   : > { %v6094_v10 = vpop.permute.xlu0 %6093 }
 0x4d2   : > { %6114 = vst.msk [vmem:[#allocation8 + $0xa0] sm:$0xff] %vm6109_vm15, %v6094_v10 }
 0x4d5   : > { %v6403_v54 = vpop.permute.xlu0 %6402  ;;  %v6491_v17 = vld [vmem:[#allocation8 + $0xa8] sm:$0xff] }
 0x4d6   : > { %6424 = vst.msk [vmem:[#allocation8 + $0x68] sm:$0xff] %vm6109_vm15, %v6403_v54 }
 0x4d9   : > { %v6291_v33 = vpop.permute.xlu0 %6290  ;;  %v6490_v42 = vld [vmem:[#allocation8 + $0xa0] sm:$0xff] }
 0x4da   : > { %6312 = vst.msk [vmem:[#allocation8 + $0x60] sm:$0xff] %vm6109_vm15, %v6291_v33  ;;  %v7675_v62 = vpop.f32.mrf.mxu1 }
 0x4dc   : > { %v7676_v45 = vpop.f32.mrf.mxu1 }
 0x4dd   : > { %v7677_v3 = vadd.f32 %v7676_v45, %v7675_v62  ;;  %v6483_v13 = vld [vmem:[#allocation8 + $0x68] sm:$0xff] }
 0x4de   : > { %v7678_v27 = vpop.f32.mrf.mxu1 }
 0x4df   : > { %v5859_v44 = vadd.f32 %v7677_v3, %v5858_v52 }
 0x4e0   : > { %v7679_v12 = vpop.f32.mrf.mxu1 }
 0x4e1   : > { %5902 = vst.msk [vmem:[#allocation4 + $0xe0] sm:$0xff] %vm14730_vm6, %v5859_v44  ;;  %v7680_v1 = vadd.f32 %v7679_v12, %v7678_v27  ;;  %vm14742_vm6 = vcmp.le.s32.totalorder %v12635_v21, 6  ;;  %v6482_v14 = vld [vmem:[#allocation8 + $0x60] sm:$0xff] }
 0x4e3   : > { %v5862_v61 = vadd.f32 %v7680_v1, %v5861_v57 }
 0x4e5   : > { %5903 = vst.msk [vmem:[#allocation4 + $0xe8] sm:$0xff] %vm14731_vm13, %v5862_v61  ;;  %vm12866_vm13 = vmand %vm14742_vm6, %vm12745_vm8  ;;  %v6479_v61 = vld [vmem:[#allocation8 + $0x48] sm:$0xff] }
 0x4ec   : > { %v5994_v9 = vld [vmem:[#allocation4 + $0xe0] ss:$2 sm:$0xff] }
 0x4ed   : > { %v6002_v47 = vadd.f32 %v12533_v5, %v5994_v9  ;;  %v6514_v5 = vpack.c.bf16 %v6479_v61, %v6474_v48 }
 0x4ef   : > { %v6003_v2 = vmax.f32 %v6002_v47, 0.0 }
 0x4f1   : > { %6004 = vst.msk [vmem:[#allocation5 + $0x48] sm:$0xff] %vm14732_vm10, %v6003_v2 }
 0x4f8   : > { %v6165_v56 = vld [vmem:[#allocation5 + $0x47] sm:$0xff]  ;;  %v6325_v4 = vld [vmem:[#allocation5 + $0x4f] sm:$0xff] }
 0x4f9   : > { %v6364_v40 = vld [vmem:[#allocation5 + $0x48] sm:$0xff]  ;;  %v6189_v22 = vsel %vm12745_vm8, %v6165_v56, 0.0  ;;  %v6348_v34 = vsel %vm12858_vm12, %v6165_v56, 0.0  ;;  %vm14746_vm8 = vmmov %vm14732_vm10  ;;  %v6349_v8 = vsel %vm12866_vm13, %v6325_v4, 0.0  ;;  %v6489_v56 = vld [vmem:[#allocation8 + $0x98] sm:$0xff] }
 0x4fa   : > { %v6252_v46 = vld [vmem:[#allocation5 + $0x41] sm:$0xff]  ;;  %v6388_v55 = vsel %vm755_vm3, %v6364_v40, 0.0  ;;  %v6436_v43 = vld [vmem:[#allocation5 + $0x49] sm:$0xff]  ;;  %6245 = vst.msk [vmem:[#allocation8 + $0x128] sm:$0xff] %vm14745_vm11, %v6364_v40  ;;  %6212 = vrot.lane.b32.xlu1 %v6189_v22, %s13341_s29  ;;  %vm14747_vm3 = vmmov %vm14746_vm8 }
 0x4fb   : > { %v6459_v58 = vsel %vm12839_vm1, %v6252_v46, 0.0  ;;  %6410 = vrot.lane.b32.xlu0 %v6388_v55, %s13341_s29  ;;  %v6460_v53 = vsel %vm12831_vm9, %v6436_v43, 0.0  ;;  %v6149_v29 = vsel %vm12847_vm7, %v6252_v46, 0.0  ;;  %vm14748_vm1 = vmmov %vm14747_vm3  ;;  %v6276_v60 = vsel %vm12739_vm14, %v6252_v46, 0.0 }
 0x4fc   : > { %6467 = vst.msk [vmem:[#allocation8 + $0xe8] sm:$0xff] %vm14732_vm10, %v6459_v58  ;;  %vm14749_vm9 = vmmov %vm14748_vm1  ;;  %v6277_v37 = vsel %vm12641_vm0, %v6436_v43, 0.0  ;;  %v6484_v43 = vld [vmem:[#allocation8 + $0x70] sm:$0xff]  ;;  %vm7242_vm10 = vcmp.eq.s32.totalorder %v14510_v0, 0 }
 0x4fd   : > { %v6209_v25 = vpop.permute.xlu1 %6208  ;;  %6468 = vst.msk [vmem:[#allocation8 + $0x110] sm:$0xff] %vm14746_vm8, %v6460_v53  ;;  %vm14750_vm14 = vmmov %vm14742_vm6  ;;  %v6519_v4 = vpack.c.bf16 %v6489_v56, %v6484_v43  ;;  %v6494_v53 = vld [vmem:[#allocation8 + $0xc0] sm:$0xff] }
 0x4fe   : > { %6157 = vst.msk [vmem:[#allocation8 + $0x120] sm:$0xff] %vm14747_vm3, %v6149_v29  ;;  %6099 = vrot.lane.b32.xlu1 %v6076_v35, %s13341_s29  ;;  %v6389_v30 = vsel %vm14750_vm14, %v6365_v11, 0.0  ;;  %vm14751_vm0 = vmmov %vm14748_vm1  ;;  %v8026_v11 = vld [vmem:[%s13051_s7] sm:$0xff]  }
 0x4ff   : > { %6356 = vst.msk [vmem:[#allocation8 + $0x108] sm:$0xff] %vm14748_vm1, %v6348_v34  ;;  %6298 = vrot.lane.b32.xlu0 %v6276_v60, %s13341_s29  ;;  %vm14752_vm2 = vmmov %vm14751_vm0  ;;  %v6509_v60 = vld [vmem:[#allocation8 + $0x138] sm:$0xff] }
 0x500   : > { %6227 = vst.msk [vmem:[#allocation8 + $0xd0] sm:$0xff] %vm6109_vm15, %v6209_v25  ;;  %vm14753_vm5 = vmmov %vm14751_vm0 }
 0x501   : > { %6357 = vst.msk [vmem:[#allocation8 + $0x130] sm:$0xff] %vm14749_vm9, %v6349_v8  ;;  %v6096_v15 = vpop.permute.xlu1 %6095  ;;  %vm14755_vm7 = vmmov %vm14751_vm0 }
 0x502   : > { %6115 = vst.msk [vmem:[#allocation8 + $0xc8] sm:$0xff] %vm6109_vm15, %v6096_v15  ;;  %6408 = vrot.lane.b32.xlu1 %v6387_v50, %s13341_s29  ;;  %vm14756_vm12 = vmmov %vm14751_vm0 }
 0x503   : > { %v6499_v40 = vld [vmem:[#allocation8 + $0xe8] sm:$0xff]  ;;  %vm14757_vm6 = vmmov %vm14751_vm0 }
 0x504   : > { %v6524_v29 = vpack.c.bf16 %v6499_v40, %v6494_v53  ;;  %v6504_v35 = vld [vmem:[#allocation8 + $0x110] sm:$0xff]  ;;  %vm14758_vm13 = vmmov %vm14751_vm0 }
 0x505   : > { %v6405_v49 = vpop.permute.xlu1 %6404 }
 0x506   : > { %6425 = vst.msk [vmem:[#allocation8 + $0x90] sm:$0xff] %vm6109_vm15, %v6405_v49  ;;  %6296 = vrot.lane.b32.xlu1 %v6275_v20, %s13341_s29  ;;  %v6529_v49 = vpack.c.bf16 %v6509_v60, %v6504_v35 }
 0x507   : > { %v6496_v16 = vld [vmem:[#allocation8 + $0xd0] sm:$0xff] }
 0x508   : > { %v6521_v24 = vpack.c.bf16 %v6496_v16, %v6491_v17  ;;  %v8023_v17 = vld [vmem:[%s13051_s7 + $0x18] sm:$0xff]   ;;  %v8024_v16 = vld [vmem:[%s13051_s7 + $0x10] sm:$0xff]  }
 0x509   : > { %v6293_v38 = vpop.permute.xlu1 %6292  ;;  %v6495_v26 = vld [vmem:[#allocation8 + $0xc8] sm:$0xff]  ;;  %7907 = vmatprep.subr.bf16.mxu1 %v8023_v17  ;;  %7891 = vmatprep.subr.bf16.mxu0 %v8023_v17  ;;  %v7721_v20 = vpop.f32.mrf.mxu0 }
 0x50a   : > { %6885 = vmatprep.mubr.bf16.mxu0 %v6521_v24  ;;  %6313 = vst.msk [vmem:[#allocation8 + $0x88] sm:$0xff] %vm6109_vm15, %v6293_v38  ;;  %v6520_v28 = vpack.c.bf16 %v6495_v26, %v6490_v42  ;;  %6412 = vrot.lane.b32.xlu1 %v6389_v30, %s13341_s29  ;;  %v8025_v24 = vld [vmem:[%s13051_s7 + $0x8] sm:$0xff]  }
 0x50b   : > { %7911 = vmatpush3.bf16.msra.mxu1 %v8023_v17  ;;  %v7722_v38 = vpop.f32.mrf.mxu0 }
 0x50c   : > { %6886 = vmatmul.mubr.bf16.gmra.mxu0 %v6520_v28  ;;  %7908 = vmatprep.subr.bf16.mxu1 %v8024_v16 }
 0x50d   : > { %v6488_v63 = vld [vmem:[#allocation8 + $0x90] sm:$0xff]  ;;  %v7724_v30 = vpop.f32.mrf.mxu0 }
 0x50e   : > { %v6518_v18 = vpack.c.bf16 %v6488_v63, %v6483_v13  ;;  %6300 = vrot.lane.b32.xlu1 %v6277_v37, %s13341_s29  ;;  %s8067_s29 = scalar_lea.vmem %s8066_s28, 1024 }
 0x50f   : > { %7912 = vmatpush3.bf16.msra.mxu1 %v8024_v16  ;;  %v7725_v42 = vpop.f32.mrf.mxu0  ;;  %p8069_p1 = scmp.lt.s32.totalorder %s8067_s29, %s8061_s17 }
 0x510   : > { %6942 = vmatprep.mubr.bf16.mxu1 %v6518_v18  ;;  %7909 = vmatprep.subr.bf16.mxu1 %v8025_v24 }
 0x511   : > { %v6487_v21 = vld [vmem:[#allocation8 + $0x88] sm:$0xff]  ;;  %p8070_p2 = por %p8069_p1, %p8068_p0 }
 0x512   : > { %v6517_v23 = vpack.c.bf16 %v6487_v21, %v6482_v14 }
 0x513   : > { %7913 = vmatpush3.bf16.msra.mxu1 %v8025_v24  ;;  %p8071_p3 = pnand %p8070_p2, %p8064_p13 }
 0x514   : > { %6943 = vmatmul.mubr.bf16.gmra.mxu1 %v6517_v23  ;;  %7910 = vmatprep.subr.bf16.mxu1 %v8026_v11 }
 0x517   : > { %7914 = vmatpush3.bf16.msra.mxu1 %v8026_v11 }
 0x521   : > { %v7681_v31 = vpop.f32.mrf.mxu1 }
 0x523   : > { %v7682_v10 = vpop.f32.mrf.mxu1 }
 0x525   : > { %v7684_v54 = vpop.f32.mrf.mxu1 }
 0x527   : > { %v7685_v32 = vpop.f32.mrf.mxu1 }
 0x530   : > { %v6211_v33 = vpop.permute.xlu0 %6210 }
 0x531   : > { %6228 = vst.msk [vmem:[#allocation8 + $0xf8] sm:$0xff] %vm6109_vm15, %v6211_v33 }
 0x534   : > { %v6098_v52 = vpop.permute.xlu0 %6097 }
 0x535   : > { %6116 = vst.msk [vmem:[#allocation8 + $0xf0] sm:$0xff] %vm6109_vm15, %v6098_v52 }
 0x538   : > { %v6407_v62 = vpop.permute.xlu0 %6406  ;;  %v6501_v12 = vld [vmem:[#allocation8 + $0xf8] sm:$0xff] }
 0x539   : > { %6426 = vst.msk [vmem:[#allocation8 + $0xb8] sm:$0xff] %vm6109_vm15, %v6407_v62 }
 0x53c   : > { %v6295_v36 = vpop.permute.xlu0 %6294  ;;  %v6500_v47 = vld [vmem:[#allocation8 + $0xf0] sm:$0xff] }
 0x53d   : > { %6314 = vst.msk [vmem:[#allocation8 + $0xb0] sm:$0xff] %vm6109_vm15, %v6295_v36 }
 0x540   : > { %v6493_v19 = vld [vmem:[#allocation8 + $0xb8] sm:$0xff] }
 0x544   : > { %v6492_v22 = vld [vmem:[#allocation8 + $0xb0] sm:$0xff] }
 0x56c   : > { %v6213_v45 = vpop.permute.xlu1 %6212 }
 0x56d   : > { %v6411_v3 = vpop.permute.xlu0 %6410  ;;  %6229 = vst.msk [vmem:[#allocation8 + $0x120] sm:$0xff] %vm6109_vm15, %v6213_v45 }
 0x56e   : > { %6428 = vst.msk [vmem:[#allocation8 + $0x108] sm:$0xff] %vm6109_vm15, %v6411_v3  ;;  %v7727_v26 = vpop.f32.mrf.mxu0 }
 0x570   : > { %v6100_v39 = vpop.permute.xlu1 %6099  ;;  %v7728_v28 = vpop.f32.mrf.mxu0 }
 0x571   : > { %v6299_v27 = vpop.permute.xlu0 %6298  ;;  %6117 = vst.msk [vmem:[#allocation8 + $0x118] sm:$0xff] %vm6109_vm15, %v6100_v39  ;;  %v7723_v39 = vadd.f32 %v7722_v38, %v7721_v20 }
 0x572   : > { %6316 = vst.msk [vmem:[#allocation8 + $0x100] sm:$0xff] %vm6109_vm15, %v6299_v27  ;;  %v7730_v63 = vpop.f32.mrf.mxu0 }
 0x574   : > { %v6409_v44 = vpop.permute.xlu1 %6408  ;;  %v6506_v1 = vld [vmem:[#allocation8 + $0x120] sm:$0xff]  ;;  %v7731_v37 = vpop.f32.mrf.mxu0 }
 0x575   : > { %6427 = vst.msk [vmem:[#allocation8 + $0xe0] sm:$0xff] %vm6109_vm15, %v6409_v44  ;;  %v6526_v57 = vpack.c.bf16 %v6506_v1, %v6501_v12  ;;  %v6503_v34 = vld [vmem:[#allocation8 + $0x108] sm:$0xff]  ;;  %v7732_v27 = vadd.f32 %v7731_v37, %v7730_v63  ;;  %v7452_v44 = vld [vmem:[%s13050_s6] ss:$0 sm:$0xff]  ;;  %v7729_v12 = vadd.f32 %v7728_v28, %v7727_v26 }
 0x576   : > { %v7761_v13 = vpop.f32.mrf.mxu1  ;;  %v6872_v48 = vadd.f32 %v7723_v39, %v7452_v44 }
 0x577   : > { %6893 = vmatprep.mubr.bf16.mxu0 %v6526_v57  ;;  %v7726_v57 = vadd.f32 %v7725_v42, %v7724_v30 }
 0x578   : > { %v6297_v9 = vpop.permute.xlu1 %6296  ;;  %v6505_v2 = vld [vmem:[#allocation8 + $0x118] sm:$0xff]  ;;  %v7762_v18 = vpop.f32.mrf.mxu1 }
 0x579   : > { %6315 = vst.msk [vmem:[#allocation8 + $0xd8] sm:$0xff] %vm6109_vm15, %v6297_v9  ;;  %v6525_v41 = vpack.c.bf16 %v6505_v2, %v6500_v47  ;;  %v6502_v51 = vld [vmem:[#allocation8 + $0x100] sm:$0xff]  ;;  %v7763_v61 = vadd.f32 %v7762_v18, %v7761_v13  ;;  %v6875_v56 = vadd.f32 %v7726_v57, %v7452_v44 }
 0x57a   : > { %v7764_v14 = vpop.f32.mrf.mxu1 }
 0x57b   : > { %6894 = vmatmul.mubr.bf16.gmra.mxu0 %v6525_v41  ;;  %v6937_v40 = vadd.f32 %v7763_v61, %v6872_v48 }
 0x57c   : > { %v6413_v59 = vpop.permute.xlu1 %6412  ;;  %7883 = vmatprep.mubr.msk.bf16.mxu0 %vm14751_vm0, %v6514_v5  ;;  %v6498_v7 = vld [vmem:[#allocation8 + $0xe0] sm:$0xff]  ;;  %v7765_v23 = vpop.f32.mrf.mxu1  ;;  %v6883_v5 = vadd.f32 %v7732_v27, %v7452_v44 }
 0x57d   : > { %6429 = vst.msk [vmem:[#allocation8 + $0x130] sm:$0xff] %vm6109_vm15, %v6413_v59  ;;  %v6523_v6 = vpack.c.bf16 %v6498_v7, %v6493_v19  ;;  %v7766_v59 = vadd.f32 %v7765_v23, %v7764_v14  ;;  %v6880_v19 = vadd.f32 %v7729_v12, %v7452_v44 }
 0x57f   : > { %6950 = vmatprep.mubr.bf16.mxu1 %v6523_v6 }
 0x580   : > { %v6301_v46 = vpop.permute.xlu1 %6300  ;;  %v6497_v55 = vld [vmem:[#allocation8 + $0xd8] sm:$0xff] }
 0x581   : > { %6317 = vst.msk [vmem:[#allocation8 + $0x128] sm:$0xff] %vm6109_vm15, %v6301_v46  ;;  %v6522_v58 = vpack.c.bf16 %v6497_v55, %v6492_v22  ;;  %vm14754_vm15 = vmmov %vm14751_vm0 }
 0x583   : > { %6951 = vmatmul.mubr.bf16.gmra.mxu1 %v6522_v58  ;;  %7884 = vmatmul.mubr.msk.bf16.vlgmr.msra.gmra.mxu0 %vm14752_vm2, %v6519_v4 }
 0x584   : > { %7887 = vmatprep.mubr.msk.bf16.mxu0 %vm14753_vm5, %v6524_v29  ;;  %v6508_v25 = vld [vmem:[#allocation8 + $0x130] sm:$0xff]  ;;  %7892 = vmatpush3.bf16.msra.mxu0 %v8023_v17  ;;  %v6940_v29 = vadd.f32 %v7766_v59, %v6875_v56 }
 0x585   : > { %v6528_v8 = vpack.c.bf16 %v6508_v25, %v6503_v34  ;;  %7893 = vmatprep.subr.bf16.mxu0 %v8024_v16 }
 0x587   : > { %6958 = vmatprep.mubr.bf16.mxu1 %v6528_v8 }
 0x588   : > { %v6507_v15 = vld [vmem:[#allocation8 + $0x128] sm:$0xff]  ;;  %7894 = vmatpush3.bf16.msra.mxu0 %v8024_v16 }
 0x589   : > { %v6527_v50 = vpack.c.bf16 %v6507_v15, %v6502_v51  ;;  %7895 = vmatprep.subr.bf16.mxu0 %v8025_v24 }
 0x58b   : > { %6959 = vmatmul.mubr.bf16.gmra.mxu1 %v6527_v50  ;;  %7888 = vmatmul.mubr.msk.bf16.gmra.mxu0 %vm14754_vm15, %v6529_v49 }
 0x58c   : > { %7896 = vmatpush3.bf16.msra.mxu0 %v8025_v24 }
 0x58d   : > { %7897 = vmatprep.subr.bf16.mxu0 %v8026_v11 }
 0x590   : > { %7898 = vmatpush3.bf16.msra.mxu0 %v8026_v11 }
 0x5cc   : > { %v7733_v21 = vpop.f32.mrf.mxu0 }
 0x5ce   : > { %v7734_v31 = vpop.f32.mrf.mxu0 }
 0x5cf   : > { %v7735_v58 = vadd.f32 %v7734_v31, %v7733_v21 }
 0x5d0   : > { %v7736_v54 = vpop.f32.mrf.mxu0 }
 0x5d1   : > { %v6888_v16 = vadd.f32 %v7735_v58, %v7452_v44 }
 0x5d2   : > { %v7737_v33 = vpop.f32.mrf.mxu0 }
 0x5d3   : > { %v7738_v34 = vadd.f32 %v7737_v33, %v7736_v54 }
 0x5d4   : > { %v7767_v10 = vpop.f32.mrf.mxu1 }
 0x5d5   : > { %v6891_v38 = vadd.f32 %v7738_v34, %v7452_v44 }
 0x5d6   : > { %v7768_v32 = vpop.f32.mrf.mxu1 }
 0x5d7   : > { %v7769_v47 = vadd.f32 %v7768_v32, %v7767_v10 }
 0x5d8   : > { %v7770_v52 = vpop.f32.mrf.mxu1 }
 0x5d9   : > { %v6945_v22 = vadd.f32 %v7769_v47, %v6880_v19  ;;  %v7493_v47 = vld [vmem:[%s13052_s8] ss:$0 sm:$0xff] }
 0x5da   : > { %v7771_v45 = vpop.f32.mrf.mxu1 }
 0x5db   : > { %v7772_v9 = vadd.f32 %v7771_v45, %v7770_v52 }
 0x5dd   : > { %v6948_v46 = vadd.f32 %v7772_v9, %v6883_v5 }
 0x63b   : > { %v7739_v62 = vpop.f32.mrf.mxu0 }
 0x63d   : > { %v7740_v36 = vpop.f32.mrf.mxu0 }
 0x63e   : > { %v7741_v25 = vadd.f32 %v7740_v36, %v7739_v62 }
 0x63f   : > { %v7742_v3 = vpop.f32.mrf.mxu0 }
 0x640   : > { %v6896_v30 = vadd.f32 %v7741_v25, %v7452_v44 }
 0x641   : > { %v7743_v1 = vpop.f32.mrf.mxu0 }
 0x642   : > { %v7744_v13 = vadd.f32 %v7743_v1, %v7742_v3 }
 0x643   : > { %v7773_v2 = vpop.f32.mrf.mxu1  ;;  %v7885_v41 = vpop.f32.mrf.mxu0 }
 0x644   : > { %v7010_v8 = vadd.f32 %v7885_v41, %v6945_v22  ;;  %v6899_v52 = vadd.f32 %v7744_v13, %v7452_v44 }
 0x645   : > { %v7774_v7 = vpop.f32.mrf.mxu1  ;;  %v7001_v6 = vpop.f32.mrf.mxu0 }
 0x646   : > { %v7002_v4 = vadd.f32 %v7001_v6, %v6937_v40  ;;  %v7775_v51 = vadd.f32 %v7774_v7, %v7773_v2  ;;  %v7034_v42 = vmax.f32 %v7010_v8, 0.0 }
 0x647   : > { %v7776_v55 = vpop.f32.mrf.mxu1  ;;  %v7886_v43 = vpop.f32.mrf.mxu0 }
 0x648   : > { %v7013_v53 = vadd.f32 %v7886_v43, %v6948_v46  ;;  %v7032_v24 = vmax.f32 %v7002_v4, 0.0  ;;  %v6953_v37 = vadd.f32 %v7775_v51, %v6888_v16 }
 0x649   : > { %v7777_v35 = vpop.f32.mrf.mxu1  ;;  %v7004_v60 = vpop.f32.mrf.mxu0 }
 0x64a   : > { %v7005_v15 = vadd.f32 %v7004_v60, %v6940_v29  ;;  %v7035_v50 = vmax.f32 %v7013_v53, 0.0  ;;  %v7778_v11 = vadd.f32 %v7777_v35, %v7776_v55 }
 0x64b   : > { %v7779_v49 = vpop.f32.mrf.mxu1  ;;  %v7889_v17 = vpop.f32.mrf.mxu0 }
 0x64c   : > { %v7033_v20 = vmax.f32 %v7005_v15, 0.0  ;;  %v7041_v14 = vpack.c.bf16 %v7035_v50, %v7034_v42  ;;  %v6956_v54 = vadd.f32 %v7778_v11, %v6891_v38  ;;  %v14759_v42 = vlaneseq }
 0x64d   : > { %v7780_v26 = vpop.f32.mrf.mxu1  ;;  %v7017_v28 = vpop.f32.mrf.mxu0 }
 0x64e   : > { %v7040_v63 = vpack.c.bf16 %v7033_v20, %v7032_v24  ;;  %v7781_v18 = vadd.f32 %v7780_v26, %v7779_v49  ;;  %v7018_v10 = vadd.f32 %v7017_v28, %v6953_v37  ;;  %v7161_v26 = vand.u32 127, %v14759_v42 }
 0x64f   : > { %v7782_v21 = vpop.f32.mrf.mxu1  ;;  %v7890_v23 = vpop.f32.mrf.mxu0 }
 0x650   : > { %v6961_v31 = vadd.f32 %v7781_v18, %v6896_v30  ;;  %7899 = vmatprep.mubr.msk.bf16.mxu0 %vm14755_vm7, %v7040_v63  ;;  %v7036_v3 = vmax.f32 %v7018_v10, 0.0  ;;  %vm7162_vm11 = vcmp.lt.s32.totalorder %v7161_v26, 3  ;;  %vm7250_vm8 = vcmp.eq.s32.totalorder %v7161_v26, 11 }
 0x651   : > { %v7783_v32 = vpop.f32.mrf.mxu1  ;;  %v7020_v33 = vpop.f32.mrf.mxu0  ;;  %7900 = vmatmul.mubr.msk.bf16.vlgmr.msra.gmra.mxu0 %vm14756_vm12, %v7041_v14  ;;  %vm7251_vm3 = vmand %vm7242_vm10, %vm7250_vm8 }
 0x652   : > { %v7784_v62 = vadd.f32 %v7783_v32, %v7782_v21  ;;  %v7021_v36 = vadd.f32 %v7020_v33, %v6956_v54  ;;  %v7026_v45 = vadd.f32 %v7889_v17, %v6961_v31 }
 0x654   : > { %v6964_v39 = vadd.f32 %v7784_v62, %v6899_v52  ;;  %v7037_v27 = vmax.f32 %v7021_v36, 0.0  ;;  %v7038_v57 = vmax.f32 %v7026_v45, 0.0 }
 0x656   : > { %v7029_v12 = vadd.f32 %v7890_v23, %v6964_v39  ;;  %v7042_v1 = vpack.c.bf16 %v7037_v27, %v7036_v3 }
 0x658   : > { %v7039_v61 = vmax.f32 %v7029_v12, 0.0  ;;  %7903 = vmatprep.mubr.msk.bf16.mxu1 %vm14757_vm6, %v7042_v1 }
 0x65a   : > { %v7043_v9 = vpack.c.bf16 %v7039_v61, %v7038_v57 }
 0x65c   : > { %7904 = vmatmul.mubr.msk.bf16.vlgmr.msra.gmra.mxu1 %vm14758_vm13, %v7043_v9 }
 0x711   : > { %v7901_v44 = vpop.f32.mrf.mxu0 }
 0x712   : > { %v12958_v2 = vadd.f32 %v7901_v44, %v7493_v47 }
 0x713   : > { %v7129_v41 = vpop.f32.mrf.mxu0 }
 0x714   : > { %v7504_v48 = vmul.f32 -1.442695, %v12958_v2  ;;  %v7130_v5 = vadd.f32 %v7493_v47, %v7129_v41 }
 0x715   : > { %v7902_v59 = vpop.f32.mrf.mxu0 }
 0x716   : > { %8027 = vpow2.f32 %v7504_v48  ;;  %v7502_v19 = vmul.f32 -1.442695, %v7130_v5  ;;  %v7141_v7 = vadd.f32 %v7902_v59, %v7493_v47 }
 0x717   : > { %v7132_v6 = vpop.f32.mrf.mxu0 }
 0x718   : > { %8029 = vpow2.f32 %v7502_v19  ;;  %v7505_v56 = vmul.f32 -1.442695, %v7141_v7  ;;  %v7133_v40 = vadd.f32 %v7493_v47, %v7132_v6 }
 0x71a   : > { %8031 = vpow2.f32 %v7505_v56  ;;  %v7503_v46 = vmul.f32 -1.442695, %v7133_v40 }
 0x71c   : > { %8033 = vpow2.f32 %v7503_v46  ;;  %v7905_v22 = vpop.f32.mrf.mxu1 }
 0x71d   : > { %v7154_v55 = vadd.f32 %v7905_v22, %v7493_v47 }
 0x71e   : > { %v7145_v43 = vpop.f32.mrf.mxu1 }
 0x71f   : > { %v7508_v58 = vmul.f32 -1.442695, %v7154_v55  ;;  %v12961_v4 = vadd.f32 %v7493_v47, %v7145_v43 }
 0x720   : > { %v7906_v53 = vpop.f32.mrf.mxu1 }
 0x721   : > { %8035 = vpow2.f32 %v7508_v58  ;;  %v7506_v29 = vmul.f32 -1.442695, %v12961_v4  ;;  %v7157_v34 = vadd.f32 %v7906_v53, %v7493_v47 }
 0x722   : > { %v7148_v25 = vpop.f32.mrf.mxu1 }
 0x723   : > { %v8028_v8 = vpop.eup %8027  ;;  %8037 = vpow2.f32 %v7506_v29  ;;  %v7509_v35 = vmul.f32 -1.442695, %v7157_v34  ;;  %v7149_v60 = vadd.f32 %v7493_v47, %v7148_v25 }
 0x724   : > { %v7189_v51 = vadd.f32 1.0, %v8028_v8 }
 0x725   : > { %v8030_v15 = vpop.eup %8029  ;;  %8039 = vpow2.f32 %v7509_v35  ;;  %v7507_v50 = vmul.f32 -1.442695, %v7149_v60 }
 0x726   : > { %8041 = vrcp.f32 %v7189_v51  ;;  %v7187_v49 = vadd.f32 1.0, %v8030_v15 }
 0x727   : > { %v8032_v17 = vpop.eup %8031  ;;  %8043 = vpow2.f32 %v7507_v50 }
 0x728   : > { %8045 = vrcp.f32 %v7187_v49  ;;  %v7190_v16 = vadd.f32 1.0, %v8032_v17 }
 0x729   : > { %v8034_v24 = vpop.eup %8033 }
 0x72a   : > { %8047 = vrcp.f32 %v7190_v16  ;;  %v7188_v11 = vadd.f32 1.0, %v8034_v24 }
 0x72c   : > { %8049 = vrcp.f32 %v7188_v11 }
 0x72e   : > { %v8036_v20 = vpop.eup %8035 }
 0x72f   : > { %v7193_v38 = vadd.f32 1.0, %v8036_v20 }
 0x730   : > { %v8038_v30 = vpop.eup %8037 }
 0x731   : > { %v7191_v28 = vadd.f32 1.0, %v8038_v30  ;;  %8051 = vrcp.f32 %v7193_v38 }
 0x732   : > { %v8040_v13 = vpop.eup %8039 }
 0x733   : > { %v8042_v63 = vpop.eup %8041  ;;  %8053 = vrcp.f32 %v7191_v28  ;;  %v7194_v18 = vadd.f32 1.0, %v8040_v13 }
 0x734   : > { %v8044_v37 = vpop.eup %8043  ;;  %v7213_v10 = vsel %vm7162_vm11, %v8042_v63, %v12958_v2  ;;  %v7221_v44 = vsel %vm7162_vm11, %v8042_v63, -inf }
 0x735   : > { %v8046_v14 = vpop.eup %8045  ;;  %8055 = vrcp.f32 %v7194_v18  ;;  %v7192_v21 = vadd.f32 1.0, %v8044_v37 }
 0x736   : > { %v7211_v23 = vsel %vm7162_vm11, %v8046_v14, %v7130_v5  ;;  %v7219_v47 = vsel %vm7162_vm11, %v8046_v14, -inf }
 0x737   : > { %v8048_v31 = vpop.eup %8047  ;;  %8057 = vrcp.f32 %v7192_v21 }
 0x738   : > { %v7214_v54 = vsel %vm7162_vm11, %v8048_v31, %v7141_v7  ;;  %v7222_v39 = vsel %vm7162_vm11, %v8048_v31, -inf }
 0x739   : > { %v8050_v32 = vpop.eup %8049  ;;  %v7541_v33 = vpack.c.bf16 %v7214_v54, %v7213_v10 }
 0x73a   : > { %v7212_v52 = vsel %vm7162_vm11, %v8050_v32, %v7133_v40  ;;  %v7220_v5 = vsel %vm7162_vm11, %v8050_v32, -inf }
 0x73b   : > { %7553 = vst [vmem:[%s12973_s14 + $0x8] sm:$0xff] %v7541_v33  }
 0x73e   : > { %v8052_v62 = vpop.eup %8051 }
 0x73f   : > { %v7217_v3 = vsel %vm7162_vm11, %v8052_v62, %v7154_v55  ;;  %v7225_v1 = vsel %vm7162_vm11, %v8052_v62, -inf }
 0x740   : > { %v8054_v36 = vpop.eup %8053  ;;  %v7229_v56 = vmax.f32 %v7221_v44, %v7225_v1 }
 0x741   : > { %v7223_v12 = vsel %vm7162_vm11, %v8054_v36, -inf  ;;  %v7215_v41 = vsel %vm7162_vm11, %v8054_v36, %v12961_v4 }
 0x742   : > { %v8056_v45 = vpop.eup %8055  ;;  %v7227_v7 = vmax.f32 %v7219_v47, %v7223_v12 }
 0x743   : > { %v7218_v27 = vsel %vm7162_vm11, %v8056_v45, %v7157_v34  ;;  %v7226_v57 = vsel %vm7162_vm11, %v8056_v45, -inf }
 0x744   : > { %v8058_v61 = vpop.eup %8057  ;;  %v7551_v9 = vpack.c.bf16 %v7218_v27, %v7217_v3  ;;  %v7230_v2 = vmax.f32 %v7222_v39, %v7226_v57 }
 0x745   : > { %v7216_v48 = vsel %vm7162_vm11, %v8058_v61, %v7149_v60  ;;  %v7224_v59 = vsel %vm7162_vm11, %v8058_v61, -inf }
 0x746   : > { %7555 = vst [vmem:[%s12973_s14 + $0x18] sm:$0xff] %v7551_v9   ;;  %v7546_v19 = vpack.c.bf16 %v7216_v48, %v7215_v41  ;;  %v7228_v6 = vmax.f32 %v7220_v5, %v7224_v59  ;;  %v7232_v46 = vmax.f32 %v7229_v56, %v7230_v2 }
 0x748   : > { %7554 = vst [vmem:[%s12973_s14 + $0x10] sm:$0xff] %v7546_v19   ;;  %v7231_v40 = vmax.f32 %v7227_v7, %v7228_v6 }
 0x74a   : > { %v7233_v22 = vmax.f32 %v7231_v40, %v7232_v46 }
 0x74c   : > { %v7234_v55 = vrot.slane %v7233_v22, 4 }
 0x74e   : > { %v7235_v43 = vmax.f32 %v7233_v22, %v7234_v55 }
 0x750   : > { %v7236_v58 = vrot.slane %v7235_v43, 2 }
 0x752   : > { %v7237_v4 = vmax.f32 %v7235_v43, %v7236_v58 }
 0x754   : > { %v7238_v53 = vrot.slane %v7237_v4, 1 }
 0x756   : > { %v7239_v29 = vmax.f32 %v7237_v4, %v7238_v53 }
 0x758   : > { %7240 = vmax.xlane.f32.xlu0 %v7239_v29 }
 0x7e1   : > { %v7241_v34 = vpop.xlane.xlu0 %7240 }
 0x7e2   : > { %v7259_v25 = vsel %vm7251_vm3, %v7241_v34, %v7211_v23 }
 0x7e3   : > { %v7536_v8 = vpack.c.bf16 %v7212_v52, %v7259_v25 }
 0x7e5   : > { %7537 = vst [vmem:[%s12973_s14] sm:$0xff] %v7536_v8  }
 0x7e6   : > { %8074 = shalt.err (!%p8071_p3)
}
 0x7e7   : > { %s8075_s14 = scalar_lea.hbm %s12997_s24, 512  ;;  %s8079_s23 = scalar_lea.hbm %s13053_s9, 1024 }
 0x7e8   : > { %p8076_p4 = scmp.ne.s32.totalorder %s12997_s24, %s8075_s14  ;;  %p8080_p9 = scmp.lt.s32.totalorder %s12997_s24, %s13053_s9 }
 0x7e9   : > { %p8081_p10 = scmp.lt.s32.totalorder %s8079_s23, %s8075_s14 }
 0x7ea   : > { %p8077_p7 = pnand %p8076_p4, %p8223_p5 }
 0x7eb   : > { %p8082_p11 = por %p8081_p10, %p8080_p9 }
 0x7ec   : > { %p8078_p8 = pneg %p8077_p7 }
 0x7ee   : > { %p8083_p12 = pnand %p8082_p11, %p8078_p8 }
 0x7f0   : > { %8086 = shalt.err (!%p8083_p12)
}
 0x7f1   : > { %s14760_s29 = smov 64  }
 0x7f2   : > { %7916 = dma.vmem_to_hbm [thread:$0]  (%p8223_p5), %s12999_s22, 512, %s12997_s24, %s7308_s25, %s14760_s29, %s14760_s29, %s8124_s26  }
 0x7f3 PF: > { %p7922_p13 = scmp.ge.s32.totalorder %s8121_s12, 2  ;;  %s7336_s17 = sand.u32 1, %s8109_s30  }
 0x7f4   : > { %s7337_s28 = scalar_lea.sflag [#allocation10], %s7336_s17 }
 0x7f5   : > { %p7919_p0 = pnand %p7922_p13, %p8227_p6 }
 0x7f7   : > { %p7920_p1 = pneg %p7919_p0 }
 0x7f9   : > { %8104 = dma.done.wait (%p7920_p1), %s7337_s28, 512  }
 0x7fa   : > { %8106 = vsyncadd (%p7920_p1), %s7337_s28, 4294966784  ;;  %p19_p2 = scmp.ge.s32.totalorder %s8210_s15, 4   ;;  %s14761_s30 = smov %s8113_s10 }
 0x7fb   : > { %s14762_s10 = smov %s8117_s11  ;;  %s14763_s11 = smov %s8221_s18 }
 0x7fc   : > { %s14764_s12 = smov %s8210_s15  ;;  %21 = sbr.rel (!%p19_p2) target bundleno = 3 (0x3), region = 98 }
 0x801   :  { %7342 = vsyncpa [#allocation10], 1 }
 0x802   :  { %7344 = vsyncpa [#allocation10 + $0x1], 1 }

</bundles_post_ra>
